<compile_context>
chip_gen: v7x
topology: tpu7x:2x2x1
jax: 0.10.0
libtpu: 0.0.40
codegen_flags: <defaults>
</compile_context>

<pallas_src>
import jax
import jax.numpy as jnp
from jax import lax
from jax.experimental import pallas as pl
from jax.experimental.pallas import tpu as pltpu


# ------------------------------- kernel -----------------------------------

def _agg_res_block_kernel(x_ref, w1_ref, b1_ref, w2_ref, b2_ref,
                          w3_ref, b3_ref, o_ref, pad_ref):
    # x_ref:   (B, H, W, Cin)  f32        o_ref:   (B, H, W, Cout) f32
    # w1_ref:  (Cin, Gc) bf16             w2_ref:  (9*Gc, Gc) bf16
    # w3_ref:  (Gc, Cout) bf16            b*_ref:  (1, C) f32
    # pad_ref: (B, H+2, W+2, Gc) bf16 scratch (persistent across grid steps)
    B, H, W, Cin = x_ref.shape
    Gc = w1_ref.shape[1]
    Cout = w3_ref.shape[1]
    M = B * H * W

    # --- conv1: 1x1 (BN scale folded into weights) + bias + ReLU -----------
    y1 = jnp.dot(x_ref[...].reshape(M, Cin).astype(jnp.bfloat16), w1_ref[...],
                 preferred_element_type=jnp.float32)
    y1 = jnp.maximum(y1 + b1_ref[...], 0.0)               # (M, Gc) f32

    # --- conv2: 3x3 grouped conv (block-diagonal dense weights) ------------
    # Write y1 into the interior of the persistent padded scratch; re-zero the
    # 1-pixel halo (cheap: 2 row slabs + 2 column slabs, corners covered by
    # the rows).  See header for why this is not gated behind a one-shot flag.
    zrow = jnp.zeros((B, 1, W + 2, Gc), pad_ref.dtype)
    zcol = jnp.zeros((B, H, 1, Gc), pad_ref.dtype)
    pad_ref[:, 0:1, :, :] = zrow
    pad_ref[:, H + 1:H + 2, :, :] = zrow
    pad_ref[:, 1:H + 1, 0:1, :] = zcol
    pad_ref[:, 1:H + 1, W + 1:W + 2, :] = zcol
    pad_ref[:, 1:H + 1, 1:W + 1, :] = y1.reshape(B, H, W, Gc).astype(pad_ref.dtype)

    # 9 accumulating dots over shifted windows (f32 accumulator value); no
    # im2col patch buffer is materialized.
    acc2 = jnp.zeros((M, Gc), jnp.float32)
    for dh in range(3):                                   # static -> unrolled
        for dw in range(3):
            tap = dh * 3 + dw
            win = pad_ref[:, dh:dh + H, dw:dw + W, :].reshape(M, Gc)
            acc2 = acc2 + jnp.dot(win, w2_ref[tap * Gc:(tap + 1) * Gc, :],
                                  preferred_element_type=jnp.float32)
    y2 = jnp.maximum(acc2 + b2_ref[...], 0.0)             # (M, Gc) f32

    # --- conv3: 1x1 (BN scale folded) + bias, no ReLU -----------------------
    y3 = jnp.dot(y2.astype(jnp.bfloat16), w3_ref[...],
                 preferred_element_type=jnp.float32) + b3_ref[...]

    # --- identity shortcut (stride==1 => Cin == Cout) + final ReLU ----------
    # Re-read the (already VMEM-resident) input block here instead of holding
    # an f32 copy live across the three matmuls.
    out = jnp.maximum(x_ref[...].reshape(M, Cout) + y3, 0.0)
    o_ref[...] = out.reshape(B, H, W, Cout).astype(o_ref.dtype)


# ------------------------------ wrapper ------------------------------------

def _tpu_info():
    """(vmem_capacity_bytes, num_tensorcores) with conservative fallbacks."""
    vmem_cap = 128 * 1024 * 1024
    num_tc = 1
    try:
        info = pltpu.get_tpu_info()
        vmem_cap = int(info.vmem_capacity_bytes)
        found = False
        for attr in ("num_cores", "core_count", "num_tensorcores",
                     "tensorcore_count"):
            v = getattr(info, attr, None)
            if v:
                num_tc = int(v)
                found = True
                break
        if not found:
            # v7x is currently the only generation with 64 MiB per-TC VMEM and
            # 2 TensorCores per chip; use VMEM capacity as a proxy.
            if vmem_cap <= 64 * 1024 * 1024:
                num_tc = 2
    except Exception:
        pass
    return vmem_cap, num_tc


def _vmem_need_bytes(bt, H, W, Cin, Gc, Cout, single_buffer_weights):
    """Per-step VMEM working-set estimate (no double counting)."""
    M = bt * H * W
    io = 2 * bt * H * W * (Cin + Cout) * 4                 # 2x-buffered in/out
    wbuf = 1 if single_buffer_weights else 2
    weights = wbuf * ((Cin * Gc + 9 * Gc * Gc + Gc * Cout) * 2
                      + (2 * Gc + Cout) * 4)
    pad = bt * (H + 2) * (W + 2) * Gc * 2                  # padded activation
    temps = M * (2 * Gc + Cout) * 4 + M * (Cin + Gc) * 2   # f32 values + bf16 temps
    return io + weights + pad + temps


def aggregated_residual_block(x_nhwc, kernel_params, *, batch_tile=None):
    """x_nhwc: (N, H, W, Cin) float32.  kernel_params: (w1,b1,w2,b2,w3,b3)."""
    w1, b1, w2, b2, w3, b3 = kernel_params
    N, H, W, Cin = x_nhwc.shape
    Gc = w1.shape[1]
    Cout = w3.shape[1]
    assert Cin == Cout, "stride==1 config requires in_channel == out_channel"
    assert w2.shape == (9 * Gc, Gc)

    vmem_cap, num_tc = _tpu_info()

    # --- batch tile: target M = bt*H*W ~ 1024-2048 rows per grid step -------
    if batch_tile is None:
        bt = max(1, min(N, 2048 // max(1, H * W)))
        # Give every TensorCore at least one grid step (v7x megacore); on
        # single-TC parts (v5e/v6e) do NOT shrink bt just to create steps.
        if num_tc > 1 and N >= num_tc:
            bt = min(bt, pl.cdiv(N, num_tc))
    else:
        bt = max(1, min(N, batch_tile))
    # Shrink bt until the working set fits comfortably in this chip's VMEM.
    while bt > 1 and _vmem_need_bytes(bt, H, W, Cin, Gc, Cout, True) > int(0.6 * vmem_cap):
        bt = max(1, bt // 2)

    # Ragged batch: zero-pad N up to a multiple of bt (sliced off below)
    # instead of collapsing bt for awkward N.
    n_steps = pl.cdiv(N, bt)
    n_pad = n_steps * bt
    x_in = x_nhwc if n_pad == N else jnp.pad(
        x_nhwc, ((0, n_pad - N), (0, 0), (0, 0), (0, 0)))

    # Advisory cost estimate for XLA scheduling (counts the densified conv2).
    flops = 2 * n_pad * H * W * (Cin * Gc + 9 * Gc * Gc + Gc * Cout)
    bytes_accessed = (x_in.size * 4 + n_pad * H * W * Cout * 4
                      + (w1.size + w2.size + w3.size) * 2
                      + (b1.size + b2.size + b3.size) * 4)

    def run(single_buffer_weights):
        wkw = ({"pipeline_mode": pl.Buffered(1)}
               if single_buffer_weights else {})
        need = _vmem_need_bytes(bt, H, W, Cin, Gc, Cout, single_buffer_weights)
        vmem_limit = int(min(max(int(1.5 * need), 16 * 1024 * 1024),
                             int(0.65 * vmem_cap)))
        vmem_limit = int(max(vmem_limit, need))

        out = pl.pallas_call(
            _agg_res_block_kernel,
            out_shape=jax.ShapeDtypeStruct((n_pad, H, W, Cout), x_nhwc.dtype),
            grid_spec=pltpu.PrefetchScalarGridSpec(
                num_scalar_prefetch=0,
                grid=(n_steps,),
                in_specs=[
                    pl.BlockSpec((bt, H, W, Cin), lambda n: (n, 0, 0, 0)),
                    pl.BlockSpec((Cin, Gc),       lambda n: (0, 0), **wkw),
                    pl.BlockSpec((1, Gc),         lambda n: (0, 0), **wkw),
                    pl.BlockSpec((9 * Gc, Gc),    lambda n: (0, 0), **wkw),
                    pl.BlockSpec((1, Gc),         lambda n: (0, 0), **wkw),
                    pl.BlockSpec((Gc, Cout),      lambda n: (0, 0), **wkw),
                    pl.BlockSpec((1, Cout),       lambda n: (0, 0), **wkw),
                ],
                out_specs=pl.BlockSpec((bt, H, W, Cout), lambda n: (n, 0, 0, 0)),
                scratch_shapes=[
                    pltpu.VMEM((bt, H + 2, W + 2, Gc), jnp.bfloat16),  # padded act
                ],
            ),
            compiler_params=pltpu.CompilerParams(
                dimension_semantics=("parallel",),
                vmem_limit_bytes=vmem_limit),
            cost_estimate=pl.CostEstimate(flops=flops, transcendentals=0,
                                          bytes_accessed=bytes_accessed),
        )(x_in, w1, b1, w2, b2, w3, b3)
        return jax.block_until_ready(out)

    try:
        out = run(True)
    except Exception:
        # Fallback for JAX builds that reject BlockSpec(pipeline_mode=...):
        # identical kernel, default double-buffered weight specs.
        out = run(False)

    return out if n_pad == N else out[:N]


# ----------------------------- parameter glue -----------------------------

def _fold_bn(gamma, beta, mean, var, eps=1e-5):
    scale = gamma / jnp.sqrt(var + eps)
    bias = beta - mean * scale
    return scale, bias


def _grouped_to_dense(w_pt, groups):
    """PyTorch grouped conv weight (Cout, Cin/groups, kh, kw) ->
       dense HWIO (kh, kw, Cin, Cout) block-diagonal weight."""
    # TODO(synk): densification inflates conv2 MXU FLOPs by `groups`; only
    #             acceptable for small cardinality.  Real ResNeXt (c=32) needs
    #             per-group packed matmuls instead.
    assert groups <= 8, "block-diagonal densification only used for cardinality <= 8"
    cout, cin_pg, kh, kw = w_pt.shape
    cout_pg = cout // groups
    cin = cin_pg * groups
    dense = jnp.zeros((kh, kw, cin, cout), jnp.float32)
    for g in range(groups):
        blk = jnp.transpose(w_pt[g * cout_pg:(g + 1) * cout_pg],
                            (2, 3, 1, 0))            # (kh, kw, Cin_pg, Cout_pg)
        dense = dense.at[:, :, g * cin_pg:(g + 1) * cin_pg,
                         g * cout_pg:(g + 1) * cout_pg].set(blk)
    return dense


def _make_params(key, in_channel, out_channel, cardinality, bottleneck_width):
    gc = cardinality * bottleneck_width
    assert gc * 2 == out_channel and in_channel == out_channel  # stride==1 config
    ks = jax.random.split(key, 6)

    def bn(k, c):
        k0, k1, k2, k3 = jax.random.split(k, 4)
        gamma = 0.5 + jax.random.uniform(k0, (c,), jnp.float32)
        beta = 0.1 * jax.random.normal(k1, (c,), jnp.float32)
        mean = 0.1 * jax.random.normal(k2, (c,), jnp.float32)
        var = 0.5 + jax.random.uniform(k3, (c,), jnp.float32)
        return _fold_bn(gamma, beta, mean, var)

    # conv1: 1x1, Cin -> gc
    w1 = 0.1 * jax.random.normal(ks[0], (in_channel, gc), jnp.float32)
    s1, b1 = bn(ks[1], gc)
    # conv2: 3x3 grouped, gc -> gc, groups = cardinality
    w2_pt = 0.1 * jax.random.normal(ks[2], (gc, gc // cardinality, 3, 3), jnp.float32)
    w2_dense = _grouped_to_dense(w2_pt, cardinality)        # (3,3,gc,gc) HWIO
    s2, b2 = bn(ks[3], gc)
    # conv3: 1x1, gc -> Cout
    w3 = 0.1 * jax.random.normal(ks[4], (gc, out_channel), jnp.float32)
    s3, b3 = bn(ks[5], out_channel)

    ref_params = (w1, s1, b1, w2_dense, s2, b2, w3, s3, b3)

    # Fold BN scales into the conv weights; cast weights to bf16 for the MXU.
    w1_k = (w1 * s1[None, :]).astype(jnp.bfloat16)
    w2_k = (w2_dense * s2[None, None, None, :]).reshape(9 * gc, gc).astype(jnp.bfloat16)
    w3_k = (w3 * s3[None, :]).astype(jnp.bfloat16)
    kernel_params = (w1_k, b1.reshape(1, -1).astype(jnp.float32),
                     w2_k, b2.reshape(1, -1).astype(jnp.float32),
                     w3_k, b3.reshape(1, -1).astype(jnp.float32))
    return kernel_params, ref_params


def _ref_forward(x_nhwc, ref_params):
    """Pure-JAX f32 reference (inference-mode BN), for correctness check."""
    (w1, s1, b1, w2, s2, b2, w3, s3, b3) = ref_params
    y = jnp.einsum('nhwc,cd->nhwd', x_nhwc, w1,
                   precision=lax.Precision.HIGHEST) * s1 + b1
    y = jax.nn.relu(y)
    y = lax.conv_general_dilated(
        y, w2, window_strides=(1, 1), padding=((1, 1), (1, 1)),
        dimension_numbers=('NHWC', 'HWIO', 'NHWC'),
        precision=lax.Precision.HIGHEST)
    y = jax.nn.relu(y * s2 + b2)
    y = jnp.einsum('nhwc,cd->nhwd', y, w3,
                   precision=lax.Precision.HIGHEST) * s3 + b3
    return jax.nn.relu(x_nhwc + y)


if __name__ == "__main__":
    # Small but lane-dense config: cardinality=4, bottleneck_width=16 ->
    # group_channel = 64, in = out = 128 (stride=1 => identity shortcut).
    N, H, W = 4, 8, 8
    cardinality, bottleneck_width = 4, 16
    in_channel = out_channel = 2 * cardinality * bottleneck_width   # 128

    key = jax.random.PRNGKey(0)
    kx, kp = jax.random.split(key)
    # Torch-convention input would be NCHW (N, 128, 8, 8); kernel uses NHWC.
    x_nhwc = jax.random.normal(kx, (N, H, W, in_channel), jnp.float32)
    kernel_params, ref_params = _make_params(
        kp, in_channel, out_channel, cardinality, bottleneck_width)

    out = aggregated_residual_block(x_nhwc, kernel_params)
    out = jax.block_until_ready(out)

    ref = _ref_forward(x_nhwc, ref_params)
    assert out.shape == (N, H, W, out_channel)
    # Tolerance leaves room for bf16 MXU inputs (f32 accumulation) vs f32 ref.
    assert jnp.allclose(out, ref, rtol=5e-2, atol=5e-2), "mismatch vs JAX reference"

    print("KERNEL_OK")
</pallas_src>

<mosaic_0001>
module attributes {stable_mosaic.version = 11 : i64} {
  func.func @_agg_res_block_kernel(%arg0: i32, %arg1: memref<4x8x8x128xf32, #tpu.memory_space<vmem>>, %arg2: memref<128x64xbf16, #tpu.memory_space<vmem>>, %arg3: memref<1x64xf32, #tpu.memory_space<vmem>>, %arg4: memref<576x64xbf16, #tpu.memory_space<vmem>>, %arg5: memref<1x64xf32, #tpu.memory_space<vmem>>, %arg6: memref<64x128xbf16, #tpu.memory_space<vmem>>, %arg7: memref<1x128xf32, #tpu.memory_space<vmem>>, %arg8: memref<4x8x8x128xf32, #tpu.memory_space<vmem>>, %arg9: memref<4x10x10x64xbf16, #tpu.memory_space<vmem>>) attributes {dimension_semantics = [#tpu.dimension_semantics<parallel>], iteration_bounds = array<i64: 1>, scalar_prefetch = 0 : i64, scratch_operands = 1 : i64, tpu.core_type = #tpu.core_type<tc>, window_params = [{transform_indices = @transform_0, window_bounds = array<i64: 4, 8, 8, 128>}, {pipeline_mode = #tpu.pipeline_mode<synchronous>, transform_indices = @transform_1, window_bounds = array<i64: 128, 64>}, {pipeline_mode = #tpu.pipeline_mode<synchronous>, transform_indices = @transform_2, window_bounds = array<i64: 1, 64>}, {pipeline_mode = #tpu.pipeline_mode<synchronous>, transform_indices = @transform_3, window_bounds = array<i64: 576, 64>}, {pipeline_mode = #tpu.pipeline_mode<synchronous>, transform_indices = @transform_4, window_bounds = array<i64: 1, 64>}, {pipeline_mode = #tpu.pipeline_mode<synchronous>, transform_indices = @transform_5, window_bounds = array<i64: 64, 128>}, {pipeline_mode = #tpu.pipeline_mode<synchronous>, transform_indices = @transform_6, window_bounds = array<i64: 1, 128>}, {transform_indices = @transform_7, window_bounds = array<i64: 4, 8, 8, 128>}]} {
    %c0 = arith.constant 0 : index
    %c0_0 = arith.constant 0 : index
    %c0_1 = arith.constant 0 : index
    %c0_2 = arith.constant 0 : index
    %0 = vector.load %arg1[%c0, %c0_0, %c0_1, %c0_2] : memref<4x8x8x128xf32, #tpu.memory_space<vmem>>, vector<4x8x8x128xf32>
    %1 = vector.shape_cast %0 : vector<4x8x8x128xf32> to vector<256x128xf32>
    %2 = arith.truncf %1 : vector<256x128xf32> to vector<256x128xbf16>
    %c0_3 = arith.constant 0 : index
    %c0_4 = arith.constant 0 : index
    %3 = vector.load %arg2[%c0_3, %c0_4] : memref<128x64xbf16, #tpu.memory_space<vmem>>, vector<128x64xbf16>
    %cst = arith.constant dense<0.000000e+00> : vector<256x64xf32>
    %4 = tpu.matmul %2, %3, %cst {dimension_numbers = #tpu.dot_dimension_numbers<[1], [0], [0], [1], [0, 0, 1, 1], [], []>} : vector<256x128xbf16>, vector<128x64xbf16>, vector<256x64xf32> -> vector<256x64xf32>
    %c0_5 = arith.constant 0 : index
    %c0_6 = arith.constant 0 : index
    %5 = vector.load %arg3[%c0_5, %c0_6] : memref<1x64xf32, #tpu.memory_space<vmem>>, vector<1x64xf32>
    %6 = vector.broadcast %5 : vector<1x64xf32> to vector<256x64xf32>
    %7 = arith.addf %4, %6 : vector<256x64xf32>
    %cst_7 = arith.constant 0.000000e+00 : f32
    %8 = vector.broadcast %cst_7 : f32 to vector<256x64xf32>
    %9 = arith.maximumf %7, %8 : vector<256x64xf32>
    %cst_8 = arith.constant 0.000000e+00 : bf16
    %10 = vector.broadcast %cst_8 : bf16 to vector<4x1x10x64xbf16>
    %cst_9 = arith.constant 0.000000e+00 : bf16
    %11 = vector.broadcast %cst_9 : bf16 to vector<4x8x1x64xbf16>
    %c0_10 = arith.constant 0 : index
    %c0_11 = arith.constant 0 : index
    %c0_12 = arith.constant 0 : index
    %c0_13 = arith.constant 0 : index
    %12 = vector.load %arg9[%c0_10, %c0_11, %c0_12, %c0_13] : memref<4x10x10x64xbf16, #tpu.memory_space<vmem>>, vector<4x1x10x64xbf16>
    tpu.vector_store %arg9[%c0_10, %c0_11, %c0_12, %c0_13], %10 {strides = array<i32>} : memref<4x10x10x64xbf16, #tpu.memory_space<vmem>>, vector<4x1x10x64xbf16>,
    %c0_14 = arith.constant 0 : index
    %c9 = arith.constant 9 : index
    %c0_15 = arith.constant 0 : index
    %c0_16 = arith.constant 0 : index
    %13 = vector.load %arg9[%c0_14, %c9, %c0_15, %c0_16] : memref<4x10x10x64xbf16, #tpu.memory_space<vmem>>, vector<4x1x10x64xbf16>
    tpu.vector_store %arg9[%c0_14, %c9, %c0_15, %c0_16], %10 {strides = array<i32>} : memref<4x10x10x64xbf16, #tpu.memory_space<vmem>>, vector<4x1x10x64xbf16>,
    %c0_17 = arith.constant 0 : index
    %c1 = arith.constant 1 : index
    %c0_18 = arith.constant 0 : index
    %c0_19 = arith.constant 0 : index
    %14 = vector.load %arg9[%c0_17, %c1, %c0_18, %c0_19] : memref<4x10x10x64xbf16, #tpu.memory_space<vmem>>, vector<4x8x1x64xbf16>
    tpu.vector_store %arg9[%c0_17, %c1, %c0_18, %c0_19], %11 {strides = array<i32>} : memref<4x10x10x64xbf16, #tpu.memory_space<vmem>>, vector<4x8x1x64xbf16>,
    %c0_20 = arith.constant 0 : index
    %c1_21 = arith.constant 1 : index
    %c9_22 = arith.constant 9 : index
    %c0_23 = arith.constant 0 : index
    %15 = vector.load %arg9[%c0_20, %c1_21, %c9_22, %c0_23] : memref<4x10x10x64xbf16, #tpu.memory_space<vmem>>, vector<4x8x1x64xbf16>
    tpu.vector_store %arg9[%c0_20, %c1_21, %c9_22, %c0_23], %11 {strides = array<i32>} : memref<4x10x10x64xbf16, #tpu.memory_space<vmem>>, vector<4x8x1x64xbf16>,
    %16 = vector.shape_cast %9 : vector<256x64xf32> to vector<4x8x8x64xf32>
    %17 = arith.truncf %16 : vector<4x8x8x64xf32> to vector<4x8x8x64xbf16>
    %c0_24 = arith.constant 0 : index
    %c1_25 = arith.constant 1 : index
    %c1_26 = arith.constant 1 : index
    %c0_27 = arith.constant 0 : index
    %18 = vector.load %arg9[%c0_24, %c1_25, %c1_26, %c0_27] : memref<4x10x10x64xbf16, #tpu.memory_space<vmem>>, vector<4x8x8x64xbf16>
    tpu.vector_store %arg9[%c0_24, %c1_25, %c1_26, %c0_27], %17 {strides = array<i32>} : memref<4x10x10x64xbf16, #tpu.memory_space<vmem>>, vector<4x8x8x64xbf16>,
    %cst_28 = arith.constant 0.000000e+00 : f32
    %19 = vector.broadcast %cst_28 : f32 to vector<256x64xf32>
    %c0_29 = arith.constant 0 : index
    %c0_30 = arith.constant 0 : index
    %c0_31 = arith.constant 0 : index
    %c0_32 = arith.constant 0 : index
    %20 = vector.load %arg9[%c0_29, %c0_30, %c0_31, %c0_32] : memref<4x10x10x64xbf16, #tpu.memory_space<vmem>>, vector<4x8x8x64xbf16>
    %21 = vector.shape_cast %20 : vector<4x8x8x64xbf16> to vector<256x64xbf16>
    %c0_33 = arith.constant 0 : index
    %c0_34 = arith.constant 0 : index
    %22 = vector.load %arg4[%c0_33, %c0_34] : memref<576x64xbf16, #tpu.memory_space<vmem>>, vector<64x64xbf16>
    %cst_35 = arith.constant dense<0.000000e+00> : vector<256x64xf32>
    %23 = tpu.matmul %21, %22, %cst_35 {dimension_numbers = #tpu.dot_dimension_numbers<[1], [0], [0], [1], [0, 0, 1, 1], [], []>} : vector<256x64xbf16>, vector<64x64xbf16>, vector<256x64xf32> -> vector<256x64xf32>
    %24 = arith.addf %19, %23 : vector<256x64xf32>
    %c0_36 = arith.constant 0 : index
    %c0_37 = arith.constant 0 : index
    %c1_38 = arith.constant 1 : index
    %c0_39 = arith.constant 0 : index
    %25 = vector.load %arg9[%c0_36, %c0_37, %c1_38, %c0_39] : memref<4x10x10x64xbf16, #tpu.memory_space<vmem>>, vector<4x8x8x64xbf16>
    %26 = vector.shape_cast %25 : vector<4x8x8x64xbf16> to vector<256x64xbf16>
    %c64 = arith.constant 64 : index
    %c0_40 = arith.constant 0 : index
    %27 = vector.load %arg4[%c64, %c0_40] : memref<576x64xbf16, #tpu.memory_space<vmem>>, vector<64x64xbf16>
    %cst_41 = arith.constant dense<0.000000e+00> : vector<256x64xf32>
    %28 = tpu.matmul %26, %27, %cst_41 {dimension_numbers = #tpu.dot_dimension_numbers<[1], [0], [0], [1], [0, 0, 1, 1], [], []>} : vector<256x64xbf16>, vector<64x64xbf16>, vector<256x64xf32> -> vector<256x64xf32>
    %29 = arith.addf %24, %28 : vector<256x64xf32>
    %c0_42 = arith.constant 0 : index
    %c0_43 = arith.constant 0 : index
    %c2 = arith.constant 2 : index
    %c0_44 = arith.constant 0 : index
    %30 = vector.load %arg9[%c0_42, %c0_43, %c2, %c0_44] : memref<4x10x10x64xbf16, #tpu.memory_space<vmem>>, vector<4x8x8x64xbf16>
    %31 = vector.shape_cast %30 : vector<4x8x8x64xbf16> to vector<256x64xbf16>
    %c128 = arith.constant 128 : index
    %c0_45 = arith.constant 0 : index
    %32 = vector.load %arg4[%c128, %c0_45] : memref<576x64xbf16, #tpu.memory_space<vmem>>, vector<64x64xbf16>
    %cst_46 = arith.constant dense<0.000000e+00> : vector<256x64xf32>
    %33 = tpu.matmul %31, %32, %cst_46 {dimension_numbers = #tpu.dot_dimension_numbers<[1], [0], [0], [1], [0, 0, 1, 1], [], []>} : vector<256x64xbf16>, vector<64x64xbf16>, vector<256x64xf32> -> vector<256x64xf32>
    %34 = arith.addf %29, %33 : vector<256x64xf32>
    %c0_47 = arith.constant 0 : index
    %c1_48 = arith.constant 1 : index
    %c0_49 = arith.constant 0 : index
    %c0_50 = arith.constant 0 : index
    %35 = vector.load %arg9[%c0_47, %c1_48, %c0_49, %c0_50] : memref<4x10x10x64xbf16, #tpu.memory_space<vmem>>, vector<4x8x8x64xbf16>
    %36 = vector.shape_cast %35 : vector<4x8x8x64xbf16> to vector<256x64xbf16>
    %c192 = arith.constant 192 : index
    %c0_51 = arith.constant 0 : index
    %37 = vector.load %arg4[%c192, %c0_51] : memref<576x64xbf16, #tpu.memory_space<vmem>>, vector<64x64xbf16>
    %cst_52 = arith.constant dense<0.000000e+00> : vector<256x64xf32>
    %38 = tpu.matmul %36, %37, %cst_52 {dimension_numbers = #tpu.dot_dimension_numbers<[1], [0], [0], [1], [0, 0, 1, 1], [], []>} : vector<256x64xbf16>, vector<64x64xbf16>, vector<256x64xf32> -> vector<256x64xf32>
    %39 = arith.addf %34, %38 : vector<256x64xf32>
    %c0_53 = arith.constant 0 : index
    %c1_54 = arith.constant 1 : index
    %c1_55 = arith.constant 1 : index
    %c0_56 = arith.constant 0 : index
    %40 = vector.load %arg9[%c0_53, %c1_54, %c1_55, %c0_56] : memref<4x10x10x64xbf16, #tpu.memory_space<vmem>>, vector<4x8x8x64xbf16>
    %41 = vector.shape_cast %40 : vector<4x8x8x64xbf16> to vector<256x64xbf16>
    %c256 = arith.constant 256 : index
    %c0_57 = arith.constant 0 : index
    %42 = vector.load %arg4[%c256, %c0_57] : memref<576x64xbf16, #tpu.memory_space<vmem>>, vector<64x64xbf16>
    %cst_58 = arith.constant dense<0.000000e+00> : vector<256x64xf32>
    %43 = tpu.matmul %41, %42, %cst_58 {dimension_numbers = #tpu.dot_dimension_numbers<[1], [0], [0], [1], [0, 0, 1, 1], [], []>} : vector<256x64xbf16>, vector<64x64xbf16>, vector<256x64xf32> -> vector<256x64xf32>
    %44 = arith.addf %39, %43 : vector<256x64xf32>
    %c0_59 = arith.constant 0 : index
    %c1_60 = arith.constant 1 : index
    %c2_61 = arith.constant 2 : index
    %c0_62 = arith.constant 0 : index
    %45 = vector.load %arg9[%c0_59, %c1_60, %c2_61, %c0_62] : memref<4x10x10x64xbf16, #tpu.memory_space<vmem>>, vector<4x8x8x64xbf16>
    %46 = vector.shape_cast %45 : vector<4x8x8x64xbf16> to vector<256x64xbf16>
    %c320 = arith.constant 320 : index
    %c0_63 = arith.constant 0 : index
    %47 = vector.load %arg4[%c320, %c0_63] : memref<576x64xbf16, #tpu.memory_space<vmem>>, vector<64x64xbf16>
    %cst_64 = arith.constant dense<0.000000e+00> : vector<256x64xf32>
    %48 = tpu.matmul %46, %47, %cst_64 {dimension_numbers = #tpu.dot_dimension_numbers<[1], [0], [0], [1], [0, 0, 1, 1], [], []>} : vector<256x64xbf16>, vector<64x64xbf16>, vector<256x64xf32> -> vector<256x64xf32>
    %49 = arith.addf %44, %48 : vector<256x64xf32>
    %c0_65 = arith.constant 0 : index
    %c2_66 = arith.constant 2 : index
    %c0_67 = arith.constant 0 : index
    %c0_68 = arith.constant 0 : index
    %50 = vector.load %arg9[%c0_65, %c2_66, %c0_67, %c0_68] : memref<4x10x10x64xbf16, #tpu.memory_space<vmem>>, vector<4x8x8x64xbf16>
    %51 = vector.shape_cast %50 : vector<4x8x8x64xbf16> to vector<256x64xbf16>
    %c384 = arith.constant 384 : index
    %c0_69 = arith.constant 0 : index
    %52 = vector.load %arg4[%c384, %c0_69] : memref<576x64xbf16, #tpu.memory_space<vmem>>, vector<64x64xbf16>
    %cst_70 = arith.constant dense<0.000000e+00> : vector<256x64xf32>
    %53 = tpu.matmul %51, %52, %cst_70 {dimension_numbers = #tpu.dot_dimension_numbers<[1], [0], [0], [1], [0, 0, 1, 1], [], []>} : vector<256x64xbf16>, vector<64x64xbf16>, vector<256x64xf32> -> vector<256x64xf32>
    %54 = arith.addf %49, %53 : vector<256x64xf32>
    %c0_71 = arith.constant 0 : index
    %c2_72 = arith.constant 2 : index
    %c1_73 = arith.constant 1 : index
    %c0_74 = arith.constant 0 : index
    %55 = vector.load %arg9[%c0_71, %c2_72, %c1_73, %c0_74] : memref<4x10x10x64xbf16, #tpu.memory_space<vmem>>, vector<4x8x8x64xbf16>
    %56 = vector.shape_cast %55 : vector<4x8x8x64xbf16> to vector<256x64xbf16>
    %c448 = arith.constant 448 : index
    %c0_75 = arith.constant 0 : index
    %57 = vector.load %arg4[%c448, %c0_75] : memref<576x64xbf16, #tpu.memory_space<vmem>>, vector<64x64xbf16>
    %cst_76 = arith.constant dense<0.000000e+00> : vector<256x64xf32>
    %58 = tpu.matmul %56, %57, %cst_76 {dimension_numbers = #tpu.dot_dimension_numbers<[1], [0], [0], [1], [0, 0, 1, 1], [], []>} : vector<256x64xbf16>, vector<64x64xbf16>, vector<256x64xf32> -> vector<256x64xf32>
    %59 = arith.addf %54, %58 : vector<256x64xf32>
    %c0_77 = arith.constant 0 : index
    %c2_78 = arith.constant 2 : index
    %c2_79 = arith.constant 2 : index
    %c0_80 = arith.constant 0 : index
    %60 = vector.load %arg9[%c0_77, %c2_78, %c2_79, %c0_80] : memref<4x10x10x64xbf16, #tpu.memory_space<vmem>>, vector<4x8x8x64xbf16>
    %61 = vector.shape_cast %60 : vector<4x8x8x64xbf16> to vector<256x64xbf16>
    %c512 = arith.constant 512 : index
    %c0_81 = arith.constant 0 : index
    %62 = vector.load %arg4[%c512, %c0_81] : memref<576x64xbf16, #tpu.memory_space<vmem>>, vector<64x64xbf16>
    %cst_82 = arith.constant dense<0.000000e+00> : vector<256x64xf32>
    %63 = tpu.matmul %61, %62, %cst_82 {dimension_numbers = #tpu.dot_dimension_numbers<[1], [0], [0], [1], [0, 0, 1, 1], [], []>} : vector<256x64xbf16>, vector<64x64xbf16>, vector<256x64xf32> -> vector<256x64xf32>
    %64 = arith.addf %59, %63 : vector<256x64xf32>
    %c0_83 = arith.constant 0 : index
    %c0_84 = arith.constant 0 : index
    %65 = vector.load %arg5[%c0_83, %c0_84] : memref<1x64xf32, #tpu.memory_space<vmem>>, vector<1x64xf32>
    %66 = vector.broadcast %65 : vector<1x64xf32> to vector<256x64xf32>
    %67 = arith.addf %64, %66 : vector<256x64xf32>
    %cst_85 = arith.constant 0.000000e+00 : f32
    %68 = vector.broadcast %cst_85 : f32 to vector<256x64xf32>
    %69 = arith.maximumf %67, %68 : vector<256x64xf32>
    %70 = arith.truncf %69 : vector<256x64xf32> to vector<256x64xbf16>
    %c0_86 = arith.constant 0 : index
    %c0_87 = arith.constant 0 : index
    %71 = vector.load %arg6[%c0_86, %c0_87] : memref<64x128xbf16, #tpu.memory_space<vmem>>, vector<64x128xbf16>
    %cst_88 = arith.constant dense<0.000000e+00> : vector<256x128xf32>
    %72 = tpu.matmul %70, %71, %cst_88 {dimension_numbers = #tpu.dot_dimension_numbers<[1], [0], [0], [1], [0, 0, 1, 1], [], []>} : vector<256x64xbf16>, vector<64x128xbf16>, vector<256x128xf32> -> vector<256x128xf32>
    %c0_89 = arith.constant 0 : index
    %c0_90 = arith.constant 0 : index
    %73 = vector.load %arg7[%c0_89, %c0_90] : memref<1x128xf32, #tpu.memory_space<vmem>>, vector<1x128xf32>
    %74 = vector.broadcast %73 : vector<1x128xf32> to vector<256x128xf32>
    %75 = arith.addf %72, %74 : vector<256x128xf32>
    %c0_91 = arith.constant 0 : index
    %c0_92 = arith.constant 0 : index
    %c0_93 = arith.constant 0 : index
    %c0_94 = arith.constant 0 : index
    %76 = vector.load %arg1[%c0_91, %c0_92, %c0_93, %c0_94] : memref<4x8x8x128xf32, #tpu.memory_space<vmem>>, vector<4x8x8x128xf32>
    %77 = vector.shape_cast %76 : vector<4x8x8x128xf32> to vector<256x128xf32>
    %78 = arith.addf %77, %75 : vector<256x128xf32>
    %cst_95 = arith.constant 0.000000e+00 : f32
    %79 = vector.broadcast %cst_95 : f32 to vector<256x128xf32>
    %80 = arith.maximumf %78, %79 : vector<256x128xf32>
    %81 = vector.shape_cast %80 : vector<256x128xf32> to vector<4x8x8x128xf32>
    %c0_96 = arith.constant 0 : index
    %c0_97 = arith.constant 0 : index
    %c0_98 = arith.constant 0 : index
    %c0_99 = arith.constant 0 : index
    %82 = vector.load %arg8[%c0_96, %c0_97, %c0_98, %c0_99] : memref<4x8x8x128xf32, #tpu.memory_space<vmem>>, vector<4x8x8x128xf32>
    tpu.vector_store %arg8[%c0_96, %c0_97, %c0_98, %c0_99], %81 {strides = array<i32>} : memref<4x8x8x128xf32, #tpu.memory_space<vmem>>, vector<4x8x8x128xf32>,
    return
  }
  func.func @transform_0(%arg0: i32) -> (i32, i32, i32, i32) {
    %c0_i32 = arith.constant 0 : i32
    %c0_i32_0 = arith.constant 0 : i32
    %c0_i32_1 = arith.constant 0 : i32
    %c0_i32_2 = arith.constant 0 : i32
    return %arg0, %c0_i32, %c0_i32_0, %c0_i32_1 : i32, i32, i32, i32
  }
  func.func @transform_1(%arg0: i32) -> (i32, i32) {
    %c0_i32 = arith.constant 0 : i32
    %c0_i32_0 = arith.constant 0 : i32
    %c0_i32_1 = arith.constant 0 : i32
    return %c0_i32, %c0_i32_0 : i32, i32
  }
  func.func @transform_2(%arg0: i32) -> (i32, i32) {
    %c0_i32 = arith.constant 0 : i32
    %c0_i32_0 = arith.constant 0 : i32
    %c0_i32_1 = arith.constant 0 : i32
    return %c0_i32, %c0_i32_0 : i32, i32
  }
  func.func @transform_3(%arg0: i32) -> (i32, i32) {
    %c0_i32 = arith.constant 0 : i32
    %c0_i32_0 = arith.constant 0 : i32
    %c0_i32_1 = arith.constant 0 : i32
    return %c0_i32, %c0_i32_0 : i32, i32
  }
  func.func @transform_4(%arg0: i32) -> (i32, i32) {
    %c0_i32 = arith.constant 0 : i32
    %c0_i32_0 = arith.constant 0 : i32
    %c0_i32_1 = arith.constant 0 : i32
    return %c0_i32, %c0_i32_0 : i32, i32
  }
  func.func @transform_5(%arg0: i32) -> (i32, i32) {
    %c0_i32 = arith.constant 0 : i32
    %c0_i32_0 = arith.constant 0 : i32
    %c0_i32_1 = arith.constant 0 : i32
    return %c0_i32, %c0_i32_0 : i32, i32
  }
  func.func @transform_6(%arg0: i32) -> (i32, i32) {
    %c0_i32 = arith.constant 0 : i32
    %c0_i32_0 = arith.constant 0 : i32
    %c0_i32_1 = arith.constant 0 : i32
    return %c0_i32, %c0_i32_0 : i32, i32
  }
  func.func @transform_7(%arg0: i32) -> (i32, i32, i32, i32) {
    %c0_i32 = arith.constant 0 : i32
    %c0_i32_0 = arith.constant 0 : i32
    %c0_i32_1 = arith.constant 0 : i32
    %c0_i32_2 = arith.constant 0 : i32
    return %arg0, %c0_i32, %c0_i32_0, %c0_i32_1 : i32, i32, i32, i32
  }
}

module attributes {stable_mosaic.version = 11 : i64} {
  func.func @_agg_res_block_kernel(%arg0: i32, %arg1: memref<4x8x8x128xf32, #tpu.memory_space<vmem>>, %arg2: memref<128x64xbf16, #tpu.memory_space<vmem>>, %arg3: memref<1x64xf32, #tpu.memory_space<vmem>>, %arg4: memref<576x64xbf16, #tpu.memory_space<vmem>>, %arg5: memref<1x64xf32, #tpu.memory_space<vmem>>, %arg6: memref<64x128xbf16, #tpu.memory_space<vmem>>, %arg7: memref<1x128xf32, #tpu.memory_space<vmem>>, %arg8: memref<4x8x8x128xf32, #tpu.memory_space<vmem>>, %arg9: memref<4x10x10x64xbf16, #tpu.memory_space<vmem>>) attributes {dimension_semantics = [#tpu.dimension_semantics<parallel>], iteration_bounds = array<i64: 1>, scalar_prefetch = 0 : i64, scratch_operands = 1 : i64, tpu.core_type = #tpu.core_type<tc>, window_params = [{transform_indices = @transform_0, window_bounds = array<i64: 4, 8, 8, 128>}, {pipeline_mode = #tpu.pipeline_mode<synchronous>, transform_indices = @transform_1, window_bounds = array<i64: 128, 64>}, {pipeline_mode = #tpu.pipeline_mode<synchronous>, transform_indices = @transform_2, window_bounds = array<i64: 1, 64>}, {pipeline_mode = #tpu.pipeline_mode<synchronous>, transform_indices = @transform_3, window_bounds = array<i64: 576, 64>}, {pipeline_mode = #tpu.pipeline_mode<synchronous>, transform_indices = @transform_4, window_bounds = array<i64: 1, 64>}, {pipeline_mode = #tpu.pipeline_mode<synchronous>, transform_indices = @transform_5, window_bounds = array<i64: 64, 128>}, {pipeline_mode = #tpu.pipeline_mode<synchronous>, transform_indices = @transform_6, window_bounds = array<i64: 1, 128>}, {transform_indices = @transform_7, window_bounds = array<i64: 4, 8, 8, 128>}]} {
    %c0 = arith.constant 0 : index
    %c0_0 = arith.constant 0 : index
    %c0_1 = arith.constant 0 : index
    %c0_2 = arith.constant 0 : index
    %0 = vector.load %arg1[%c0, %c0_0, %c0_1, %c0_2] : memref<4x8x8x128xf32, #tpu.memory_space<vmem>>, vector<4x8x8x128xf32>
    %1 = vector.shape_cast %0 : vector<4x8x8x128xf32> to vector<256x128xf32>
    %2 = arith.truncf %1 : vector<256x128xf32> to vector<256x128xbf16>
    %c0_3 = arith.constant 0 : index
    %c0_4 = arith.constant 0 : index
    %3 = vector.load %arg2[%c0_3, %c0_4] : memref<128x64xbf16, #tpu.memory_space<vmem>>, vector<128x64xbf16>
    %cst = arith.constant dense<0.000000e+00> : vector<256x64xf32>
    %4 = tpu.matmul %2, %3, %cst {dimension_numbers = #tpu.dot_dimension_numbers<[1], [0], [0], [1], [0, 0, 1, 1], [], []>} : vector<256x128xbf16>, vector<128x64xbf16>, vector<256x64xf32> -> vector<256x64xf32>
    %c0_5 = arith.constant 0 : index
    %c0_6 = arith.constant 0 : index
    %5 = vector.load %arg3[%c0_5, %c0_6] : memref<1x64xf32, #tpu.memory_space<vmem>>, vector<1x64xf32>
    %6 = vector.broadcast %5 : vector<1x64xf32> to vector<256x64xf32>
    %7 = arith.addf %4, %6 : vector<256x64xf32>
    %cst_7 = arith.constant 0.000000e+00 : f32
    %8 = vector.broadcast %cst_7 : f32 to vector<256x64xf32>
    %9 = arith.maximumf %7, %8 : vector<256x64xf32>
    %cst_8 = arith.constant 0.000000e+00 : bf16
    %10 = vector.broadcast %cst_8 : bf16 to vector<4x1x10x64xbf16>
    %cst_9 = arith.constant 0.000000e+00 : bf16
    %11 = vector.broadcast %cst_9 : bf16 to vector<4x8x1x64xbf16>
    %c0_10 = arith.constant 0 : index
    %c0_11 = arith.constant 0 : index
    %c0_12 = arith.constant 0 : index
    %c0_13 = arith.constant 0 : index
    %12 = vector.load %arg9[%c0_10, %c0_11, %c0_12, %c0_13] : memref<4x10x10x64xbf16, #tpu.memory_space<vmem>>, vector<4x1x10x64xbf16>
    tpu.vector_store %arg9[%c0_10, %c0_11, %c0_12, %c0_13], %10 {strides = array<i32>} : memref<4x10x10x64xbf16, #tpu.memory_space<vmem>>, vector<4x1x10x64xbf16>,
    %c0_14 = arith.constant 0 : index
    %c9 = arith.constant 9 : index
    %c0_15 = arith.constant 0 : index
    %c0_16 = arith.constant 0 : index
    %13 = vector.load %arg9[%c0_14, %c9, %c0_15, %c0_16] : memref<4x10x10x64xbf16, #tpu.memory_space<vmem>>, vector<4x1x10x64xbf16>
    tpu.vector_store %arg9[%c0_14, %c9, %c0_15, %c0_16], %10 {strides = array<i32>} : memref<4x10x10x64xbf16, #tpu.memory_space<vmem>>, vector<4x1x10x64xbf16>,
    %c0_17 = arith.constant 0 : index
    %c1 = arith.constant 1 : index
    %c0_18 = arith.constant 0 : index
    %c0_19 = arith.constant 0 : index
    %14 = vector.load %arg9[%c0_17, %c1, %c0_18, %c0_19] : memref<4x10x10x64xbf16, #tpu.memory_space<vmem>>, vector<4x8x1x64xbf16>
    tpu.vector_store %arg9[%c0_17, %c1, %c0_18, %c0_19], %11 {strides = array<i32>} : memref<4x10x10x64xbf16, #tpu.memory_space<vmem>>, vector<4x8x1x64xbf16>,
    %c0_20 = arith.constant 0 : index
    %c1_21 = arith.constant 1 : index
    %c9_22 = arith.constant 9 : index
    %c0_23 = arith.constant 0 : index
    %15 = vector.load %arg9[%c0_20, %c1_21, %c9_22, %c0_23] : memref<4x10x10x64xbf16, #tpu.memory_space<vmem>>, vector<4x8x1x64xbf16>
    tpu.vector_store %arg9[%c0_20, %c1_21, %c9_22, %c0_23], %11 {strides = array<i32>} : memref<4x10x10x64xbf16, #tpu.memory_space<vmem>>, vector<4x8x1x64xbf16>,
    %16 = vector.shape_cast %9 : vector<256x64xf32> to vector<4x8x8x64xf32>
    %17 = arith.truncf %16 : vector<4x8x8x64xf32> to vector<4x8x8x64xbf16>
    %c0_24 = arith.constant 0 : index
    %c1_25 = arith.constant 1 : index
    %c1_26 = arith.constant 1 : index
    %c0_27 = arith.constant 0 : index
    %18 = vector.load %arg9[%c0_24, %c1_25, %c1_26, %c0_27] : memref<4x10x10x64xbf16, #tpu.memory_space<vmem>>, vector<4x8x8x64xbf16>
    tpu.vector_store %arg9[%c0_24, %c1_25, %c1_26, %c0_27], %17 {strides = array<i32>} : memref<4x10x10x64xbf16, #tpu.memory_space<vmem>>, vector<4x8x8x64xbf16>,
    %cst_28 = arith.constant 0.000000e+00 : f32
    %19 = vector.broadcast %cst_28 : f32 to vector<256x64xf32>
    %c0_29 = arith.constant 0 : index
    %c0_30 = arith.constant 0 : index
    %c0_31 = arith.constant 0 : index
    %c0_32 = arith.constant 0 : index
    %20 = vector.load %arg9[%c0_29, %c0_30, %c0_31, %c0_32] : memref<4x10x10x64xbf16, #tpu.memory_space<vmem>>, vector<4x8x8x64xbf16>
    %21 = vector.shape_cast %20 : vector<4x8x8x64xbf16> to vector<256x64xbf16>
    %c0_33 = arith.constant 0 : index
    %c0_34 = arith.constant 0 : index
    %22 = vector.load %arg4[%c0_33, %c0_34] : memref<576x64xbf16, #tpu.memory_space<vmem>>, vector<64x64xbf16>
    %cst_35 = arith.constant dense<0.000000e+00> : vector<256x64xf32>
    %23 = tpu.matmul %21, %22, %cst_35 {dimension_numbers = #tpu.dot_dimension_numbers<[1], [0], [0], [1], [0, 0, 1, 1], [], []>} : vector<256x64xbf16>, vector<64x64xbf16>, vector<256x64xf32> -> vector<256x64xf32>
    %24 = arith.addf %19, %23 : vector<256x64xf32>
    %c0_36 = arith.constant 0 : index
    %c0_37 = arith.constant 0 : index
    %c1_38 = arith.constant 1 : index
    %c0_39 = arith.constant 0 : index
    %25 = vector.load %arg9[%c0_36, %c0_37, %c1_38, %c0_39] : memref<4x10x10x64xbf16, #tpu.memory_space<vmem>>, vector<4x8x8x64xbf16>
    %26 = vector.shape_cast %25 : vector<4x8x8x64xbf16> to vector<256x64xbf16>
    %c64 = arith.constant 64 : index
    %c0_40 = arith.constant 0 : index
    %27 = vector.load %arg4[%c64, %c0_40] : memref<576x64xbf16, #tpu.memory_space<vmem>>, vector<64x64xbf16>
    %cst_41 = arith.constant dense<0.000000e+00> : vector<256x64xf32>
    %28 = tpu.matmul %26, %27, %cst_41 {dimension_numbers = #tpu.dot_dimension_numbers<[1], [0], [0], [1], [0, 0, 1, 1], [], []>} : vector<256x64xbf16>, vector<64x64xbf16>, vector<256x64xf32> -> vector<256x64xf32>
    %29 = arith.addf %24, %28 : vector<256x64xf32>
    %c0_42 = arith.constant 0 : index
    %c0_43 = arith.constant 0 : index
    %c2 = arith.constant 2 : index
    %c0_44 = arith.constant 0 : index
    %30 = vector.load %arg9[%c0_42, %c0_43, %c2, %c0_44] : memref<4x10x10x64xbf16, #tpu.memory_space<vmem>>, vector<4x8x8x64xbf16>
    %31 = vector.shape_cast %30 : vector<4x8x8x64xbf16> to vector<256x64xbf16>
    %c128 = arith.constant 128 : index
    %c0_45 = arith.constant 0 : index
    %32 = vector.load %arg4[%c128, %c0_45] : memref<576x64xbf16, #tpu.memory_space<vmem>>, vector<64x64xbf16>
    %cst_46 = arith.constant dense<0.000000e+00> : vector<256x64xf32>
    %33 = tpu.matmul %31, %32, %cst_46 {dimension_numbers = #tpu.dot_dimension_numbers<[1], [0], [0], [1], [0, 0, 1, 1], [], []>} : vector<256x64xbf16>, vector<64x64xbf16>, vector<256x64xf32> -> vector<256x64xf32>
    %34 = arith.addf %29, %33 : vector<256x64xf32>
    %c0_47 = arith.constant 0 : index
    %c1_48 = arith.constant 1 : index
    %c0_49 = arith.constant 0 : index
    %c0_50 = arith.constant 0 : index
    %35 = vector.load %arg9[%c0_47, %c1_48, %c0_49, %c0_50] : memref<4x10x10x64xbf16, #tpu.memory_space<vmem>>, vector<4x8x8x64xbf16>
    %36 = vector.shape_cast %35 : vector<4x8x8x64xbf16> to vector<256x64xbf16>
    %c192 = arith.constant 192 : index
    %c0_51 = arith.constant 0 : index
    %37 = vector.load %arg4[%c192, %c0_51] : memref<576x64xbf16, #tpu.memory_space<vmem>>, vector<64x64xbf16>
    %cst_52 = arith.constant dense<0.000000e+00> : vector<256x64xf32>
    %38 = tpu.matmul %36, %37, %cst_52 {dimension_numbers = #tpu.dot_dimension_numbers<[1], [0], [0], [1], [0, 0, 1, 1], [], []>} : vector<256x64xbf16>, vector<64x64xbf16>, vector<256x64xf32> -> vector<256x64xf32>
    %39 = arith.addf %34, %38 : vector<256x64xf32>
    %c0_53 = arith.constant 0 : index
    %c1_54 = arith.constant 1 : index
    %c1_55 = arith.constant 1 : index
    %c0_56 = arith.constant 0 : index
    %40 = vector.load %arg9[%c0_53, %c1_54, %c1_55, %c0_56] : memref<4x10x10x64xbf16, #tpu.memory_space<vmem>>, vector<4x8x8x64xbf16>
    %41 = vector.shape_cast %40 : vector<4x8x8x64xbf16> to vector<256x64xbf16>
    %c256 = arith.constant 256 : index
    %c0_57 = arith.constant 0 : index
    %42 = vector.load %arg4[%c256, %c0_57] : memref<576x64xbf16, #tpu.memory_space<vmem>>, vector<64x64xbf16>
    %cst_58 = arith.constant dense<0.000000e+00> : vector<256x64xf32>
    %43 = tpu.matmul %41, %42, %cst_58 {dimension_numbers = #tpu.dot_dimension_numbers<[1], [0], [0], [1], [0, 0, 1, 1], [], []>} : vector<256x64xbf16>, vector<64x64xbf16>, vector<256x64xf32> -> vector<256x64xf32>
    %44 = arith.addf %39, %43 : vector<256x64xf32>
    %c0_59 = arith.constant 0 : index
    %c1_60 = arith.constant 1 : index
    %c2_61 = arith.constant 2 : index
    %c0_62 = arith.constant 0 : index
    %45 = vector.load %arg9[%c0_59, %c1_60, %c2_61, %c0_62] : memref<4x10x10x64xbf16, #tpu.memory_space<vmem>>, vector<4x8x8x64xbf16>
    %46 = vector.shape_cast %45 : vector<4x8x8x64xbf16> to vector<256x64xbf16>
    %c320 = arith.constant 320 : index
    %c0_63 = arith.constant 0 : index
    %47 = vector.load %arg4[%c320, %c0_63] : memref<576x64xbf16, #tpu.memory_space<vmem>>, vector<64x64xbf16>
    %cst_64 = arith.constant dense<0.000000e+00> : vector<256x64xf32>
    %48 = tpu.matmul %46, %47, %cst_64 {dimension_numbers = #tpu.dot_dimension_numbers<[1], [0], [0], [1], [0, 0, 1, 1], [], []>} : vector<256x64xbf16>, vector<64x64xbf16>, vector<256x64xf32> -> vector<256x64xf32>
    %49 = arith.addf %44, %48 : vector<256x64xf32>
    %c0_65 = arith.constant 0 : index
    %c2_66 = arith.constant 2 : index
    %c0_67 = arith.constant 0 : index
    %c0_68 = arith.constant 0 : index
    %50 = vector.load %arg9[%c0_65, %c2_66, %c0_67, %c0_68] : memref<4x10x10x64xbf16, #tpu.memory_space<vmem>>, vector<4x8x8x64xbf16>
    %51 = vector.shape_cast %50 : vector<4x8x8x64xbf16> to vector<256x64xbf16>
    %c384 = arith.constant 384 : index
    %c0_69 = arith.constant 0 : index
    %52 = vector.load %arg4[%c384, %c0_69] : memref<576x64xbf16, #tpu.memory_space<vmem>>, vector<64x64xbf16>
    %cst_70 = arith.constant dense<0.000000e+00> : vector<256x64xf32>
    %53 = tpu.matmul %51, %52, %cst_70 {dimension_numbers = #tpu.dot_dimension_numbers<[1], [0], [0], [1], [0, 0, 1, 1], [], []>} : vector<256x64xbf16>, vector<64x64xbf16>, vector<256x64xf32> -> vector<256x64xf32>
    %54 = arith.addf %49, %53 : vector<256x64xf32>
    %c0_71 = arith.constant 0 : index
    %c2_72 = arith.constant 2 : index
    %c1_73 = arith.constant 1 : index
    %c0_74 = arith.constant 0 : index
    %55 = vector.load %arg9[%c0_71, %c2_72, %c1_73, %c0_74] : memref<4x10x10x64xbf16, #tpu.memory_space<vmem>>, vector<4x8x8x64xbf16>
    %56 = vector.shape_cast %55 : vector<4x8x8x64xbf16> to vector<256x64xbf16>
    %c448 = arith.constant 448 : index
    %c0_75 = arith.constant 0 : index
    %57 = vector.load %arg4[%c448, %c0_75] : memref<576x64xbf16, #tpu.memory_space<vmem>>, vector<64x64xbf16>
    %cst_76 = arith.constant dense<0.000000e+00> : vector<256x64xf32>
    %58 = tpu.matmul %56, %57, %cst_76 {dimension_numbers = #tpu.dot_dimension_numbers<[1], [0], [0], [1], [0, 0, 1, 1], [], []>} : vector<256x64xbf16>, vector<64x64xbf16>, vector<256x64xf32> -> vector<256x64xf32>
    %59 = arith.addf %54, %58 : vector<256x64xf32>
    %c0_77 = arith.constant 0 : index
    %c2_78 = arith.constant 2 : index
    %c2_79 = arith.constant 2 : index
    %c0_80 = arith.constant 0 : index
    %60 = vector.load %arg9[%c0_77, %c2_78, %c2_79, %c0_80] : memref<4x10x10x64xbf16, #tpu.memory_space<vmem>>, vector<4x8x8x64xbf16>
    %61 = vector.shape_cast %60 : vector<4x8x8x64xbf16> to vector<256x64xbf16>
    %c512 = arith.constant 512 : index
    %c0_81 = arith.constant 0 : index
    %62 = vector.load %arg4[%c512, %c0_81] : memref<576x64xbf16, #tpu.memory_space<vmem>>, vector<64x64xbf16>
    %cst_82 = arith.constant dense<0.000000e+00> : vector<256x64xf32>
    %63 = tpu.matmul %61, %62, %cst_82 {dimension_numbers = #tpu.dot_dimension_numbers<[1], [0], [0], [1], [0, 0, 1, 1], [], []>} : vector<256x64xbf16>, vector<64x64xbf16>, vector<256x64xf32> -> vector<256x64xf32>
    %64 = arith.addf %59, %63 : vector<256x64xf32>
    %c0_83 = arith.constant 0 : index
    %c0_84 = arith.constant 0 : index
    %65 = vector.load %arg5[%c0_83, %c0_84] : memref<1x64xf32, #tpu.memory_space<vmem>>, vector<1x64xf32>
    %66 = vector.broadcast %65 : vector<1x64xf32> to vector<256x64xf32>
    %67 = arith.addf %64, %66 : vector<256x64xf32>
    %cst_85 = arith.constant 0.000000e+00 : f32
    %68 = vector.broadcast %cst_85 : f32 to vector<256x64xf32>
    %69 = arith.maximumf %67, %68 : vector<256x64xf32>
    %70 = arith.truncf %69 : vector<256x64xf32> to vector<256x64xbf16>
    %c0_86 = arith.constant 0 : index
    %c0_87 = arith.constant 0 : index
    %71 = vector.load %arg6[%c0_86, %c0_87] : memref<64x128xbf16, #tpu.memory_space<vmem>>, vector<64x128xbf16>
    %cst_88 = arith.constant dense<0.000000e+00> : vector<256x128xf32>
    %72 = tpu.matmul %70, %71, %cst_88 {dimension_numbers = #tpu.dot_dimension_numbers<[1], [0], [0], [1], [0, 0, 1, 1], [], []>} : vector<256x64xbf16>, vector<64x128xbf16>, vector<256x128xf32> -> vector<256x128xf32>
    %c0_89 = arith.constant 0 : index
    %c0_90 = arith.constant 0 : index
    %73 = vector.load %arg7[%c0_89, %c0_90] : memref<1x128xf32, #tpu.memory_space<vmem>>, vector<1x128xf32>
    %74 = vector.broadcast %73 : vector<1x128xf32> to vector<256x128xf32>
    %75 = arith.addf %72, %74 : vector<256x128xf32>
    %c0_91 = arith.constant 0 : index
    %c0_92 = arith.constant 0 : index
    %c0_93 = arith.constant 0 : index
    %c0_94 = arith.constant 0 : index
    %76 = vector.load %arg1[%c0_91, %c0_92, %c0_93, %c0_94] : memref<4x8x8x128xf32, #tpu.memory_space<vmem>>, vector<4x8x8x128xf32>
    %77 = vector.shape_cast %76 : vector<4x8x8x128xf32> to vector<256x128xf32>
    %78 = arith.addf %77, %75 : vector<256x128xf32>
    %cst_95 = arith.constant 0.000000e+00 : f32
    %79 = vector.broadcast %cst_95 : f32 to vector<256x128xf32>
    %80 = arith.maximumf %78, %79 : vector<256x128xf32>
    %81 = vector.shape_cast %80 : vector<256x128xf32> to vector<4x8x8x128xf32>
    %c0_96 = arith.constant 0 : index
    %c0_97 = arith.constant 0 : index
    %c0_98 = arith.constant 0 : index
    %c0_99 = arith.constant 0 : index
    %82 = vector.load %arg8[%c0_96, %c0_97, %c0_98, %c0_99] : memref<4x8x8x128xf32, #tpu.memory_space<vmem>>, vector<4x8x8x128xf32>
    tpu.vector_store %arg8[%c0_96, %c0_97, %c0_98, %c0_99], %81 {strides = array<i32>} : memref<4x8x8x128xf32, #tpu.memory_space<vmem>>, vector<4x8x8x128xf32>,
    return
  }
  func.func @transform_0(%arg0: i32) -> (i32, i32, i32, i32) {
    %c0_i32 = arith.constant 0 : i32
    %c0_i32_0 = arith.constant 0 : i32
    %c0_i32_1 = arith.constant 0 : i32
    %c0_i32_2 = arith.constant 0 : i32
    return %arg0, %c0_i32, %c0_i32_0, %c0_i32_1 : i32, i32, i32, i32
  }
  func.func @transform_1(%arg0: i32) -> (i32, i32) {
    %c0_i32 = arith.constant 0 : i32
    %c0_i32_0 = arith.constant 0 : i32
    %c0_i32_1 = arith.constant 0 : i32
    return %c0_i32, %c0_i32_0 : i32, i32
  }
  func.func @transform_2(%arg0: i32) -> (i32, i32) {
    %c0_i32 = arith.constant 0 : i32
    %c0_i32_0 = arith.constant 0 : i32
    %c0_i32_1 = arith.constant 0 : i32
    return %c0_i32, %c0_i32_0 : i32, i32
  }
  func.func @transform_3(%arg0: i32) -> (i32, i32) {
    %c0_i32 = arith.constant 0 : i32
    %c0_i32_0 = arith.constant 0 : i32
    %c0_i32_1 = arith.constant 0 : i32
    return %c0_i32, %c0_i32_0 : i32, i32
  }
  func.func @transform_4(%arg0: i32) -> (i32, i32) {
    %c0_i32 = arith.constant 0 : i32
    %c0_i32_0 = arith.constant 0 : i32
    %c0_i32_1 = arith.constant 0 : i32
    return %c0_i32, %c0_i32_0 : i32, i32
  }
  func.func @transform_5(%arg0: i32) -> (i32, i32) {
    %c0_i32 = arith.constant 0 : i32
    %c0_i32_0 = arith.constant 0 : i32
    %c0_i32_1 = arith.constant 0 : i32
    return %c0_i32, %c0_i32_0 : i32, i32
  }
  func.func @transform_6(%arg0: i32) -> (i32, i32) {
    %c0_i32 = arith.constant 0 : i32
    %c0_i32_0 = arith.constant 0 : i32
    %c0_i32_1 = arith.constant 0 : i32
    return %c0_i32, %c0_i32_0 : i32, i32
  }
  func.func @transform_7(%arg0: i32) -> (i32, i32, i32, i32) {
    %c0_i32 = arith.constant 0 : i32
    %c0_i32_0 = arith.constant 0 : i32
    %c0_i32_1 = arith.constant 0 : i32
    %c0_i32_2 = arith.constant 0 : i32
    return %arg0, %c0_i32, %c0_i32_0, %c0_i32_1 : i32, i32, i32, i32
  }
}

</mosaic_0001>

<bundles_post_ra>
// kernel: tpu_custom_call.1
= control target key start
LH: loop header
LB: loop body
LE: loop exit
PB: predicated region body
PF: predicated region fallthrough
CT: control target
= control target key end

     0   :  { %s10640_s0 = inlined_call_operand.vmem [shape: f32[4,8,8,128], index: 0, kind: input, shape index: {}]   ;;  %s10641_s1 = inlined_call_operand.vmem [shape: bf16[128,64], index: 1, kind: input, shape index: {}]   ;;  %s10642_s2 = inlined_call_operand.vmem [shape: f32[1,64], index: 2, kind: input, shape index: {}]   ;;  %s10643_s3 = inlined_call_operand.vmem [shape: bf16[576,64], index: 3, kind: input, shape index: {}]   ;;  %s10644_s4 = inlined_call_operand.vmem [shape: f32[1,64], index: 4, kind: input, shape index: {}]   ;;  %s10645_s5 = inlined_call_operand.vmem [shape: bf16[64,128], index: 5, kind: input, shape index: {}]   ;;  %s10646_s6 = inlined_call_operand.vmem [shape: f32[1,128], index: 6, kind: input, shape index: {}]   ;;  %s10647_s7 = inlined_call_operand.hbm [shape: f32[4,8,8,128], index: 7, kind: output, shape index: {}]  }
   0x1   :  { %v8334_v0 = vld [vmem:[%s10641_s1] sm:$0xff]   ;;  %v8335_v1 = vld [vmem:[%s10641_s1 + $0x8] sm:$0xff]   ;;  %v8336_v2 = vld [vmem:[%s10641_s1 + $0x10] sm:$0xff]  }
   0x2   :  { %7618 = vmatprep.subr.bf16.mxu0 %v8334_v0  ;;  %v8337_v3 = vld [vmem:[%s10641_s1 + $0x18] sm:$0xff]   ;;  %v28_v4 = vld [vmem:[%s10640_s0] sm:$0xff]  ;;  %v29_v5 = vld [vmem:[%s10640_s0 + $0x8] sm:$0xff] }
   0x3   :  { %7619 = vmatpush3.bf16.msra.mxu0 %v8334_v0  ;;  %v60_v6 = vpack.c.bf16 %v29_v5, %v28_v4  ;;  %v8338_v7 = vld [vmem:[%s10641_s1 + $0x20] sm:$0xff]   ;;  %v8339_v8 = vld [vmem:[%s10641_s1 + $0x28] sm:$0xff]   ;;  %v8340_v9 = vld [vmem:[%s10641_s1 + $0x30] sm:$0xff]  }
   0x4   :  { %7620 = vmatprep.subr.bf16.mxu0 %v8335_v1  ;;  %v8341_v10 = vld [vmem:[%s10641_s1 + $0x38] sm:$0xff]   ;;  %v30_v11 = vld [vmem:[%s10640_s0 + $0x10] sm:$0xff]  ;;  %v32_v13 = vld [vmem:[%s10640_s0 + $0x20] sm:$0xff] }
   0x5   :  { %7634 = vmatprep.mubr.bf16.mxu0 %v60_v6  ;;  %v31_v12 = vld [vmem:[%s10640_s0 + $0x18] sm:$0xff]  ;;  %v33_v14 = vld [vmem:[%s10640_s0 + $0x28] sm:$0xff]  ;;  %v34_v17 = vld [vmem:[%s10640_s0 + $0x30] sm:$0xff] }
   0x6   :  { %v61_v15 = vpack.c.bf16 %v31_v12, %v30_v11  ;;  %v62_v16 = vpack.c.bf16 %v33_v14, %v32_v13  ;;  %v35_v18 = vld [vmem:[%s10640_s0 + $0x38] sm:$0xff]  ;;  %v36_v19 = vld [vmem:[%s10640_s0 + $0x40] sm:$0xff]  ;;  %v37_v20 = vld [vmem:[%s10640_s0 + $0x48] sm:$0xff] }
   0x7   :  { %7621 = vmatpush3.bf16.msra.mxu0 %v8335_v1  ;;  %v63_v21 = vpack.c.bf16 %v35_v18, %v34_v17  ;;  %v64_v22 = vpack.c.bf16 %v37_v20, %v36_v19  ;;  %v38_v23 = vld [vmem:[%s10640_s0 + $0x50] sm:$0xff]  ;;  %v39_v24 = vld [vmem:[%s10640_s0 + $0x58] sm:$0xff]  ;;  %v40_v25 = vld [vmem:[%s10640_s0 + $0x60] sm:$0xff] }
   0x8   :  { %7622 = vmatprep.subr.bf16.mxu0 %v8336_v2  ;;  %v41_v26 = vld [vmem:[%s10640_s0 + $0x68] sm:$0xff] }
   0xb   :  { %7623 = vmatpush3.bf16.msra.mxu0 %v8336_v2 }
   0xc   :  { %7624 = vmatprep.subr.bf16.mxu0 %v8337_v3 }
   0xf   :  { %7625 = vmatpush3.bf16.msra.mxu0 %v8337_v3 }
  0x10   :  { %7626 = vmatprep.subr.bf16.mxu0 %v8338_v7 }
  0x13   :  { %7627 = vmatpush3.bf16.msra.mxu0 %v8338_v7 }
  0x14   :  { %7628 = vmatprep.subr.bf16.mxu0 %v8339_v8 }
  0x17   :  { %7629 = vmatpush3.bf16.msra.mxu0 %v8339_v8 }
  0x18   :  { %7630 = vmatprep.subr.bf16.mxu0 %v8340_v9 }
  0x1b   :  { %7631 = vmatpush3.bf16.msra.mxu0 %v8340_v9 }
  0x1c   :  { %7632 = vmatprep.subr.bf16.mxu0 %v8341_v10 }
  0x1f   :  { %7633 = vmatpush3.bf16.msra.mxu0 %v8341_v10 }
  0x22   :  { %7635 = vmatmul.mubr.bf16.vlgmr.msra.gmra.mrb[0].mxu0 %v61_v15 }
  0x23   :  { %7638 = vmatprep.mubr.bf16.mxu0 %v62_v16 }
  0x2a   :  { %7639 = vmatmul.mubr.bf16.gmra.mrb[4].mxu0 %v63_v21 }
  0x2b   :  { %7642 = vmatprep.mubr.bf16.mxu0 %v64_v22 }
  0x2c   :  { %12 = vsyncpa [#allocation4], 0  ;;  %v65_v27 = vpack.c.bf16 %v39_v24, %v38_v23  ;;  %v66_v28 = vpack.c.bf16 %v41_v26, %v40_v25  ;;  %v42_v29 = vld [vmem:[%s10640_s0 + $0x70] sm:$0xff]  ;;  %v43_v30 = vld [vmem:[%s10640_s0 + $0x78] sm:$0xff]  ;;  %vm342_vm0 = vcmask 516096   ;;  %vm340_vm5 = vcmask 519168  }
  0x2d   :  { %v44_v31 = vld [vmem:[%s10640_s0 + $0x80] sm:$0xff]  ;;  %v45_v32 = vld [vmem:[%s10640_s0 + $0x88] sm:$0xff]  ;;  %v67_v33 = vpack.c.bf16 %v43_v30, %v42_v29  ;;  %v46_v35 = vld [vmem:[%s10640_s0 + $0x90] sm:$0xff]  ;;  %vm361_vm1 = vsmask.f32 256  ;;  %vm1802_vm10 = vcmask 523264  }
  0x2e   :  { %v68_v34 = vpack.c.bf16 %v45_v32, %v44_v31  ;;  %v47_v36 = vld [vmem:[%s10640_s0 + $0x98] sm:$0xff]  ;;  %v48_v37 = vld [vmem:[%s10640_s0 + $0xa0] sm:$0xff]  ;;  %v49_v38 = vld [vmem:[%s10640_s0 + $0xa8] sm:$0xff]  ;;  %vm459_vm2 = vsmask.f32 7938  ;;  %vm2421_vm11 = vcmask 1042432  }
  0x2f   :  { %v69_v39 = vpack.c.bf16 %v47_v36, %v46_v35  ;;  %v70_v40 = vpack.c.bf16 %v49_v38, %v48_v37  ;;  %v50_v41 = vld [vmem:[%s10640_s0 + $0xb0] sm:$0xff]  ;;  %v51_v42 = vld [vmem:[%s10640_s0 + $0xb8] sm:$0xff]  ;;  %v52_v43 = vld [vmem:[%s10640_s0 + $0xc0] sm:$0xff]  ;;  %vm1271_vm7 = vsmask.f32 3328  ;;  %vm2422_vm12 = vcmask 1046532  }
  0x30   :  { %v53_v44 = vld [vmem:[%s10640_s0 + $0xc8] sm:$0xff]  ;;  %v71_v45 = vpack.c.bf16 %v51_v42, %v50_v41  ;;  %v54_v47 = vld [vmem:[%s10640_s0 + $0xd0] sm:$0xff]  ;;  %v55_v48 = vld [vmem:[%s10640_s0 + $0xd8] sm:$0xff]  ;;  %vm1272_vm8 = vsmask.f32 7440 }
  0x31   :  { %v72_v46 = vpack.c.bf16 %v53_v44, %v52_v43  ;;  %v56_v49 = vld [vmem:[%s10640_s0 + $0xe0] sm:$0xff]  ;;  %v57_v50 = vld [vmem:[%s10640_s0 + $0xe8] sm:$0xff]  ;;  %v73_v51 = vpack.c.bf16 %v55_v48, %v54_v47  ;;  %v58_v53 = vld [vmem:[%s10640_s0 + $0xf0] sm:$0xff] }
  0x32   :  { %7643 = vmatmul.mubr.bf16.gmra.mrb[8].mxu0 %v65_v27  ;;  %v74_v52 = vpack.c.bf16 %v57_v50, %v56_v49  ;;  %v59_v54 = vld [vmem:[%s10640_s0 + $0xf8] sm:$0xff]  ;;  %vm8680_vm3 = vmand %vm342_vm0, %vm361_vm1  ;;  %v363_v61 = vld [vmem:[#allocation2 + $0x8] sm:$0x1] }
  0x33   :  { %7646 = vmatprep.mubr.bf16.mxu0 %v66_v28  ;;  %v75_v55 = vpack.c.bf16 %v59_v54, %v58_v53  ;;  %v369_v57 = vld [vmem:[#allocation2 + $0x18] sm:$0x1]  ;;  %v467_v58 = vld [vmem:[#allocation2 + $0x1c] sm:$0x1]  ;;  %vm8688_vm4 = vmand %vm342_vm0, %vm459_vm2  ;;  %v364_v0 = vsel %vm8680_vm3, 0, %v363_v61 }
  0x34   :  { %v370_v59 = vsel %vm8680_vm3, 0, %v369_v57  ;;  %v461_v62 = vld [vmem:[#allocation2 + $0xc] sm:$0x1]  ;;  %v468_v63 = vsel %vm8688_vm4, 0, %v467_v58  ;;  %v372_v2 = vld [vmem:[#allocation2 + $0x20] sm:$0x1]  ;;  %vm8708_vm6 = vmand %vm340_vm5, %vm459_vm2 }
  0x35   :  { %371 = vst [vmem:[#allocation2 + $0x18] sm:$0x1] %v370_v59  ;;  %v462_v1 = vsel %vm8688_vm4, 0, %v461_v62  ;;  %469 = vst [vmem:[#allocation2 + $0x1c] sm:$0x1] %v468_v63  ;;  %v373_v3 = vsel %vm8680_vm3, 0, %v372_v2 }
  0x36   :  { %365 = vst [vmem:[#allocation2 + $0x8] sm:$0x1] %v364_v0  ;;  %463 = vst [vmem:[#allocation2 + $0xc] sm:$0x1] %v462_v1  ;;  %v470_v4 = vld [vmem:[#allocation2 + $0x24] sm:$0x1] }
  0x37   :  { %v366_v5 = vld [vmem:[#allocation2 + $0x10] sm:$0x1]  ;;  %374 = vst [vmem:[#allocation2 + $0x20] sm:$0x1] %v373_v3  ;;  %v471_v6 = vsel %vm8688_vm4, 0, %v470_v4  ;;  %v8345_v58 = vld [vmem:[%s10643_s3 + $0x38] sm:$0xff]   ;;  %vm8886_vm9 = vmor %vm1271_vm7, %vm1272_vm8 }
  0x38   :  { %v367_v7 = vsel %vm8680_vm3, 0, %v366_v5  ;;  %v464_v8 = vld [vmem:[#allocation2 + $0x14] sm:$0x1]  ;;  %472 = vst [vmem:[#allocation2 + $0x24] sm:$0x1] %v471_v6  ;;  %vm9535_vm13 = vmor %vm2421_vm11, %vm2422_vm12 }
  0x39   :  { %368 = vst [vmem:[#allocation2 + $0x10] sm:$0x1] %v367_v7  ;;  %v465_v9 = vsel %vm8688_vm4, 0, %v464_v8  ;;  %v381_v11 = vld [vmem:[#allocation2 + $0x38] sm:$0x1] }
  0x3a   :  { %7647 = vmatmul.mubr.bf16.gmra.mrb[12].mxu0 %v67_v33  ;;  %466 = vst [vmem:[#allocation2 + $0x14] sm:$0x1] %v465_v9  ;;  %v479_v12 = vld [vmem:[#allocation2 + $0x3c] sm:$0x1]  ;;  %v382_v13 = vsel %vm8680_vm3, 0, %v381_v11  ;;  %v8515_v33 = vmov 0  }
  0x3b   :  { %7650 = vmatprep.mubr.bf16.mxu0 %v68_v34  ;;  %v480_v14 = vsel %vm8688_vm4, 0, %v479_v12  ;;  %383 = vst [vmem:[#allocation2 + $0x38] sm:$0x1] %v382_v13  ;;  %v375_v15 = vld [vmem:[#allocation2 + $0x28] sm:$0x1] }
  0x3c   :  { %481 = vst [vmem:[#allocation2 + $0x3c] sm:$0x1] %v480_v14  ;;  %v473_v16 = vld [vmem:[#allocation2 + $0x2c] sm:$0x1]  ;;  %v376_v17 = vsel %vm8680_vm3, 0, %v375_v15  ;;  %v8346_v15 = vld [vmem:[%s10643_s3 + $0x60] sm:$0xff]  }
  0x3d   :  { %v474_v18 = vsel %vm8688_vm4, 0, %v473_v16  ;;  %377 = vst [vmem:[#allocation2 + $0x28] sm:$0x1] %v376_v17  ;;  %v384_v19 = vld [vmem:[#allocation2 + $0x40] sm:$0x1]  ;;  %8066 = vmatprep.subr.bf16.mxu1 %v8346_v15 }
  0x3e   :  { %475 = vst [vmem:[#allocation2 + $0x2c] sm:$0x1] %v474_v18  ;;  %v482_v20 = vld [vmem:[#allocation2 + $0x44] sm:$0x1]  ;;  %v385_v21 = vsel %vm8680_vm3, 0, %v384_v19  ;;  %8070 = vmatpush3.bf16.msra.mxu1 %v8346_v15 }
  0x3f   :  { %v483_v22 = vsel %vm8688_vm4, 0, %v482_v20  ;;  %v378_v23 = vld [vmem:[#allocation2 + $0x30] sm:$0x1]  ;;  %v476_v24 = vld [vmem:[#allocation2 + $0x34] sm:$0x1]  ;;  %v8347_v20 = vld [vmem:[%s10643_s3 + $0x68] sm:$0xff]  }
  0x40   :  { %386 = vst [vmem:[#allocation2 + $0x40] sm:$0x1] %v385_v21  ;;  %484 = vst [vmem:[#allocation2 + $0x44] sm:$0x1] %v483_v22  ;;  %v379_v25 = vsel %vm8680_vm3, 0, %v378_v23  ;;  %v477_v26 = vsel %vm8688_vm4, 0, %v476_v24  ;;  %8067 = vmatprep.subr.bf16.mxu1 %v8347_v20 }
  0x41   :  { %380 = vst [vmem:[#allocation2 + $0x30] sm:$0x1] %v379_v25  ;;  %478 = vst [vmem:[#allocation2 + $0x34] sm:$0x1] %v477_v26  ;;  %v393_v27 = vld [vmem:[#allocation2 + $0x68] sm:$0x1] }
  0x42   :  { %7651 = vmatmul.mubr.bf16.gmra.mrb[16].mxu0 %v69_v39  ;;  %v491_v28 = vld [vmem:[#allocation2 + $0x6c] sm:$0x1]  ;;  %v394_v29 = vsel %vm8680_vm3, 0, %v393_v27  ;;  %v387_v31 = vld [vmem:[#allocation2 + $0x58] sm:$0x1]  ;;  %8071 = vmatpush3.bf16.msra.mxu1 %v8347_v20 }
  0x43   :  { %7654 = vmatprep.mubr.bf16.mxu0 %v70_v40  ;;  %v492_v30 = vsel %vm8688_vm4, 0, %v491_v28  ;;  %v485_v32 = vld [vmem:[#allocation2 + $0x5c] sm:$0x1]  ;;  %341 = vst.msk [vmem:[#allocation2] sm:$0xf] %vm340_vm5, %v8515_v33  ;;  %v388_v34 = vsel %vm8680_vm3, 0, %v387_v31 }
  0x44   :  { %343 = vst.msk [vmem:[#allocation2 + $0x4] sm:$0x1] %vm342_vm0, %v8515_v33  ;;  %345 = vst.msk [vmem:[#allocation2 + $0x54] sm:$0x1] %vm342_vm0, %v8515_v33  ;;  %v486_v35 = vsel %vm8688_vm4, 0, %v485_v32  ;;  %v8342_v40 = vld [vmem:[%s10643_s3 + $0x20] sm:$0xff]  }
  0x45   :  { %344 = vst.msk [vmem:[#allocation2 + $0x50] sm:$0xf] %vm340_vm5, %v8515_v33  ;;  %346 = vst.msk [vmem:[#allocation2 + $0xa0] sm:$0xf] %vm340_vm5, %v8515_v33  ;;  %v396_v36 = vld [vmem:[#allocation2 + $0x70] sm:$0x1]  ;;  %7666 = vmatprep.subr.bf16.mxu0 %v8342_v40 }
  0x46   :  { %347 = vst.msk [vmem:[#allocation2 + $0xa4] sm:$0x1] %vm342_vm0, %v8515_v33  ;;  %349 = vst.msk [vmem:[#allocation2 + $0xf4] sm:$0x1] %vm342_vm0, %v8515_v33  ;;  %v494_v37 = vld [vmem:[#allocation2 + $0x74] sm:$0x1]  ;;  %7667 = vmatpush3.bf16.msra.mxu0 %v8342_v40 }
  0x47   :  { %348 = vst.msk [vmem:[#allocation2 + $0xf0] sm:$0xf] %vm340_vm5, %v8515_v33  ;;  %351 = vst.msk [vmem:[#allocation2 + $0x48] sm:$0xf] %vm340_vm5, %v8515_v33  ;;  %v397_v38 = vsel %vm8680_vm3, 0, %v396_v36  ;;  %v495_v39 = vsel %vm8688_vm4, 0, %v494_v37 }
  0x48   :  { %352 = vst.msk [vmem:[#allocation2 + $0x4c] sm:$0x1] %vm342_vm0, %v8515_v33  ;;  %354 = vst.msk [vmem:[#allocation2 + $0x9c] sm:$0x1] %vm342_vm0, %v8515_v33  ;;  %v390_v41 = vld [vmem:[#allocation2 + $0x60] sm:$0x1] }
  0x49   :  { %353 = vst.msk [vmem:[#allocation2 + $0x98] sm:$0xf] %vm340_vm5, %v8515_v33  ;;  %355 = vst.msk [vmem:[#allocation2 + $0xe8] sm:$0xf] %vm340_vm5, %v8515_v33  ;;  %v488_v42 = vld [vmem:[#allocation2 + $0x64] sm:$0x1] }
  0x4a   :  { %7655 = vmatmul.mubr.bf16.gmra.mrb[20].mxu0 %v71_v45  ;;  %356 = vst.msk [vmem:[#allocation2 + $0xec] sm:$0x1] %vm342_vm0, %v8515_v33  ;;  %358 = vst.msk [vmem:[#allocation2 + $0x13c] sm:$0x1] %vm342_vm0, %v8515_v33  ;;  %v391_v43 = vsel %vm8680_vm3, 0, %v390_v41  ;;  %v489_v44 = vsel %vm8688_vm4, 0, %v488_v42 }
  0x4b   :  { %7658 = vmatprep.mubr.bf16.mxu0 %v72_v46  ;;  %357 = vst.msk [vmem:[#allocation2 + $0x138] sm:$0xf] %vm340_vm5, %v8515_v33  ;;  %395 = vst [vmem:[#allocation2 + $0x68] sm:$0x1] %v394_v29  ;;  %v8343_v45 = vld [vmem:[%s10643_s3 + $0x28] sm:$0xff]   ;;  %v8344_v46 = vld [vmem:[%s10643_s3 + $0x30] sm:$0xff]  }
  0x4c   :  { %493 = vst [vmem:[#allocation2 + $0x6c] sm:$0x1] %v492_v30  ;;  %389 = vst [vmem:[#allocation2 + $0x58] sm:$0x1] %v388_v34  ;;  %7668 = vmatprep.subr.bf16.mxu0 %v8343_v45  ;;  %v405_v47 = vld [vmem:[#allocation2 + $0x88] sm:$0x1] }
  0x4d   :  { %487 = vst [vmem:[#allocation2 + $0x5c] sm:$0x1] %v486_v35  ;;  %398 = vst [vmem:[#allocation2 + $0x70] sm:$0x1] %v397_v38  ;;  %v503_v48 = vld [vmem:[#allocation2 + $0x8c] sm:$0x1]  ;;  %7669 = vmatpush3.bf16.msra.mxu0 %v8343_v45 }
  0x4e   :  { %496 = vst [vmem:[#allocation2 + $0x74] sm:$0x1] %v495_v39  ;;  %392 = vst [vmem:[#allocation2 + $0x60] sm:$0x1] %v391_v43  ;;  %v406_v49 = vsel %vm8680_vm3, 0, %v405_v47  ;;  %v504_v50 = vsel %vm8688_vm4, 0, %v503_v48  ;;  %7670 = vmatprep.subr.bf16.mxu0 %v8344_v46 }
  0x4f   :  { %490 = vst [vmem:[#allocation2 + $0x64] sm:$0x1] %v489_v44  ;;  %407 = vst [vmem:[#allocation2 + $0x88] sm:$0x1] %v406_v49  ;;  %v497_v53 = vld [vmem:[#allocation2 + $0x7c] sm:$0x1] }
  0x50   :  { %505 = vst [vmem:[#allocation2 + $0x8c] sm:$0x1] %v504_v50  ;;  %v498_v54 = vsel %vm8688_vm4, 0, %v497_v53  ;;  %v506_v57 = vld [vmem:[#allocation2 + $0x94] sm:$0x1]  ;;  %v8349_v38 = vld [vmem:[%s10643_s3 + $0x78] sm:$0xff]  }
  0x51   :  { %499 = vst [vmem:[#allocation2 + $0x7c] sm:$0x1] %v498_v54  ;;  %v507_v61 = vsel %vm8688_vm4, 0, %v506_v57  ;;  %7671 = vmatpush3.bf16.msra.mxu0 %v8344_v46  ;;  %v402_v62 = vld [vmem:[#allocation2 + $0x80] sm:$0x1]  ;;  %v8348_v37 = vld [vmem:[%s10643_s3 + $0x70] sm:$0xff]  }
  0x52   :  { %7659 = vmatmul.mubr.bf16.gmra.mrb[24].mxu0 %v73_v51  ;;  %v399_v51 = vld [vmem:[#allocation2 + $0x78] sm:$0x1]  ;;  %508 = vst [vmem:[#allocation2 + $0x94] sm:$0x1] %v507_v61  ;;  %v500_v63 = vld [vmem:[#allocation2 + $0x84] sm:$0x1]  ;;  %7672 = vmatprep.subr.bf16.mxu0 %v8345_v58 }
  0x53   :  { %7662 = vmatprep.mubr.bf16.mxu0 %v74_v52  ;;  %v400_v52 = vsel %vm8680_vm3, 0, %v399_v51  ;;  %v403_v0 = vsel %vm8680_vm3, 0, %v402_v62  ;;  %v501_v1 = vsel %vm8688_vm4, 0, %v500_v63  ;;  %v417_v2 = vld [vmem:[#allocation2 + $0xb8] sm:$0x1]  ;;  %8068 = vmatprep.subr.bf16.mxu1 %v8348_v37 }
  0x54   :  { %401 = vst [vmem:[#allocation2 + $0x78] sm:$0x1] %v400_v52  ;;  %404 = vst [vmem:[#allocation2 + $0x80] sm:$0x1] %v403_v0  ;;  %v515_v3 = vld [vmem:[#allocation2 + $0xbc] sm:$0x1]  ;;  %8072 = vmatpush3.bf16.msra.mxu1 %v8348_v37 }
  0x55   :  { %502 = vst [vmem:[#allocation2 + $0x84] sm:$0x1] %v501_v1  ;;  %7673 = vmatpush3.bf16.msra.mxu0 %v8345_v58  ;;  %v418_v4 = vsel %vm8680_vm3, 0, %v417_v2  ;;  %v516_v5 = vsel %vm8688_vm4, 0, %v515_v3  ;;  %v411_v6 = vld [vmem:[#allocation2 + $0xa8] sm:$0x1]  ;;  %8069 = vmatprep.subr.bf16.mxu1 %v8349_v38 }
  0x56   :  { %419 = vst [vmem:[#allocation2 + $0xb8] sm:$0x1] %v418_v4  ;;  %517 = vst [vmem:[#allocation2 + $0xbc] sm:$0x1] %v516_v5  ;;  %v509_v7 = vld [vmem:[#allocation2 + $0xac] sm:$0x1] }
  0x57   :  { %v412_v8 = vsel %vm8680_vm3, 0, %v411_v6  ;;  %v510_v9 = vsel %vm8688_vm4, 0, %v509_v7  ;;  %v420_v11 = vld [vmem:[#allocation2 + $0xc0] sm:$0x1]  ;;  %v518_v13 = vld [vmem:[#allocation2 + $0xc4] sm:$0x1] }
  0x58   :  { %413 = vst [vmem:[#allocation2 + $0xa8] sm:$0x1] %v412_v8  ;;  %511 = vst [vmem:[#allocation2 + $0xac] sm:$0x1] %v510_v9  ;;  %v421_v12 = vsel %vm8680_vm3, 0, %v420_v11  ;;  %v519_v14 = vsel %vm8688_vm4, 0, %v518_v13  ;;  %8073 = vmatpush3.bf16.msra.mxu1 %v8349_v38 }
  0x59   :  { %422 = vst [vmem:[#allocation2 + $0xc0] sm:$0x1] %v421_v12  ;;  %520 = vst [vmem:[#allocation2 + $0xc4] sm:$0x1] %v519_v14  ;;  %v414_v16 = vld [vmem:[#allocation2 + $0xb0] sm:$0x1] }
  0x5a   :  { %7663 = vmatmul.mubr.bf16.gmra.mrb[28].mxu0 %v75_v55  ;;  %v408_v55 = vld [vmem:[#allocation2 + $0x90] sm:$0x1]  ;;  %v512_v17 = vld [vmem:[#allocation2 + $0xb4] sm:$0x1]  ;;  %v415_v18 = vsel %vm8680_vm3, 0, %v414_v16 }
  0x5b   :  { %v409_v59 = vsel %vm8680_vm3, 0, %v408_v55  ;;  %v513_v19 = vsel %vm8688_vm4, 0, %v512_v17  ;;  %416 = vst [vmem:[#allocation2 + $0xb0] sm:$0x1] %v415_v18  ;;  %v429_v21 = vld [vmem:[#allocation2 + $0xd8] sm:$0x1] }
  0x5c   :  { %410 = vst [vmem:[#allocation2 + $0x90] sm:$0x1] %v409_v59  ;;  %514 = vst [vmem:[#allocation2 + $0xb4] sm:$0x1] %v513_v19  ;;  %v527_v22 = vld [vmem:[#allocation2 + $0xdc] sm:$0x1] }
  0x5d   :  { %v430_v23 = vsel %vm8680_vm3, 0, %v429_v21  ;;  %v528_v24 = vsel %vm8688_vm4, 0, %v527_v22  ;;  %v423_v25 = vld [vmem:[#allocation2 + $0xc8] sm:$0x1]  ;;  %v521_v26 = vld [vmem:[#allocation2 + $0xcc] sm:$0x1] }
  0x5e   :  { %431 = vst [vmem:[#allocation2 + $0xd8] sm:$0x1] %v430_v23  ;;  %529 = vst [vmem:[#allocation2 + $0xdc] sm:$0x1] %v528_v24  ;;  %v432_v27 = vld [vmem:[#allocation2 + $0xe0] sm:$0x1] }
  0x5f   :  { %v424_v28 = vsel %vm8680_vm3, 0, %v423_v25  ;;  %v522_v29 = vsel %vm8688_vm4, 0, %v521_v26  ;;  %v433_v30 = vsel %vm8680_vm3, 0, %v432_v27  ;;  %v530_v31 = vld [vmem:[#allocation2 + $0xe4] sm:$0x1] }
  0x60   :  { %425 = vst [vmem:[#allocation2 + $0xc8] sm:$0x1] %v424_v28  ;;  %523 = vst [vmem:[#allocation2 + $0xcc] sm:$0x1] %v522_v29  ;;  %v531_v32 = vsel %vm8688_vm4, 0, %v530_v31  ;;  %v8851_v55 = vld [vmem:[%s10643_s3 + $0x80] sm:$0xff]  }
  0x61   :  { %434 = vst [vmem:[#allocation2 + $0xe0] sm:$0x1] %v433_v30  ;;  %532 = vst [vmem:[#allocation2 + $0xe4] sm:$0x1] %v531_v32  ;;  %v426_v33 = vld [vmem:[#allocation2 + $0xd0] sm:$0x1]  ;;  %7826 = vmatprep.subr.bf16.mxu1 %v8851_v55 }
  0x62   :  { %v524_v34 = vld [vmem:[#allocation2 + $0xd4] sm:$0x1]  ;;  %v427_v35 = vsel %vm8680_vm3, 0, %v426_v33  ;;  %v441_v39 = vld [vmem:[#allocation2 + $0x108] sm:$0x1] }
  0x63   :  { %v525_v36 = vsel %vm8688_vm4, 0, %v524_v34  ;;  %428 = vst [vmem:[#allocation2 + $0xd0] sm:$0x1] %v427_v35  ;;  %v539_v40 = vld [vmem:[#allocation2 + $0x10c] sm:$0x1]  ;;  %v442_v41 = vsel %vm8680_vm3, 0, %v441_v39 }
  0x64   :  { %526 = vst [vmem:[#allocation2 + $0xd4] sm:$0x1] %v525_v36  ;;  %v540_v42 = vsel %vm8688_vm4, 0, %v539_v40  ;;  %443 = vst [vmem:[#allocation2 + $0x108] sm:$0x1] %v442_v41 }
  0x65   :  { %541 = vst [vmem:[#allocation2 + $0x10c] sm:$0x1] %v540_v42  ;;  %v435_v43 = vld [vmem:[#allocation2 + $0xf8] sm:$0x1]  ;;  %v533_v45 = vld [vmem:[#allocation2 + $0xfc] sm:$0x1] }
  0x66   :  { %v436_v44 = vsel %vm8680_vm3, 0, %v435_v43  ;;  %v444_v46 = vld [vmem:[#allocation2 + $0x110] sm:$0x1]  ;;  %v534_v47 = vsel %vm8688_vm4, 0, %v533_v45  ;;  %v542_v49 = vld [vmem:[#allocation2 + $0x114] sm:$0x1] }
  0x67   :  { %437 = vst [vmem:[#allocation2 + $0xf8] sm:$0x1] %v436_v44  ;;  %v445_v48 = vsel %vm8680_vm3, 0, %v444_v46  ;;  %535 = vst [vmem:[#allocation2 + $0xfc] sm:$0x1] %v534_v47  ;;  %v543_v50 = vsel %vm8688_vm4, 0, %v542_v49 }
  0x68   :  { %446 = vst [vmem:[#allocation2 + $0x110] sm:$0x1] %v445_v48  ;;  %544 = vst [vmem:[#allocation2 + $0x114] sm:$0x1] %v543_v50  ;;  %v438_v51 = vld [vmem:[#allocation2 + $0x100] sm:$0x1] }
  0x69   :  { %v439_v52 = vsel %vm8680_vm3, 0, %v438_v51  ;;  %v536_v53 = vld [vmem:[#allocation2 + $0x104] sm:$0x1]  ;;  %v453_v57 = vld [vmem:[#allocation2 + $0x128] sm:$0x1] }
  0x6a   :  { %440 = vst [vmem:[#allocation2 + $0x100] sm:$0x1] %v439_v52  ;;  %v537_v54 = vsel %vm8688_vm4, 0, %v536_v53  ;;  %v551_v58 = vld [vmem:[#allocation2 + $0x12c] sm:$0x1]  ;;  %v454_v59 = vsel %vm8680_vm3, 0, %v453_v57 }
  0x6b   :  { %538 = vst [vmem:[#allocation2 + $0x104] sm:$0x1] %v537_v54  ;;  %v552_v61 = vsel %vm8688_vm4, 0, %v551_v58  ;;  %455 = vst [vmem:[#allocation2 + $0x128] sm:$0x1] %v454_v59 }
  0x6c   :  { %553 = vst [vmem:[#allocation2 + $0x12c] sm:$0x1] %v552_v61  ;;  %v447_v62 = vld [vmem:[#allocation2 + $0x118] sm:$0x1]  ;;  %v545_v63 = vld [vmem:[#allocation2 + $0x11c] sm:$0x1] }
  0x6d   :  { %v456_v0 = vld [vmem:[#allocation2 + $0x130] sm:$0x1]  ;;  %v448_v1 = vsel %vm8680_vm3, 0, %v447_v62  ;;  %v546_v2 = vsel %vm8688_vm4, 0, %v545_v63  ;;  %v554_v4 = vld [vmem:[#allocation2 + $0x134] sm:$0x1] }
  0x6e   :  { %v457_v3 = vsel %vm8680_vm3, 0, %v456_v0  ;;  %449 = vst [vmem:[#allocation2 + $0x118] sm:$0x1] %v448_v1  ;;  %547 = vst [vmem:[#allocation2 + $0x11c] sm:$0x1] %v546_v2  ;;  %v555_v5 = vsel %vm8688_vm4, 0, %v554_v4 }
  0x6f   :  { %458 = vst [vmem:[#allocation2 + $0x130] sm:$0x1] %v457_v3  ;;  %556 = vst [vmem:[#allocation2 + $0x134] sm:$0x1] %v555_v5  ;;  %v1199_v6 = vld [vmem:[#allocation2] sm:$0xf] }
  0x70   :  { %v1207_v7 = vld [vmem:[#allocation2 + $0x50] sm:$0xf]  ;;  %v1275_v8 = vshrl.u32 %v1199_v6, 16  ;;  %v1278_v9 = vshll.u32 %v1199_v6, 16  ;;  %v450_v13 = vld [vmem:[#allocation2 + $0x120] sm:$0x1] }
  0x71   :  { %v1387_v11 = vshrl.u32 %v1207_v7, 16  ;;  %v1390_v12 = vshll.u32 %v1207_v7, 16  ;;  %v548_v14 = vld [vmem:[#allocation2 + $0x124] sm:$0x1]  ;;  %v451_v15 = vsel %vm8680_vm3, 0, %v450_v13 }
  0x72   :  { %v549_v16 = vsel %vm8688_vm4, 0, %v548_v14  ;;  %v1277_v17 = vrot.slane %v1275_v8, 4  ;;  %v1280_v18 = vrot.slane %v1278_v9, 5  ;;  %452 = vst [vmem:[#allocation2 + $0x120] sm:$0x1] %v451_v15 }
  0x73   :  { %550 = vst [vmem:[#allocation2 + $0x124] sm:$0x1] %v549_v16  ;;  %v1389_v19 = vrot.slane %v1387_v11, 4  ;;  %v1392_v20 = vrot.slane %v1390_v12, 5  ;;  %v1215_v21 = vld [vmem:[#allocation2 + $0xa0] sm:$0xf] }
  0x74   :  { %v1239_v22 = vld [vmem:[#allocation2 + $0x4] sm:$0x1]  ;;  %v1499_v23 = vshrl.u32 %v1215_v21, 16  ;;  %v1502_v24 = vshll.u32 %v1215_v21, 16  ;;  %v8873_v25 = vld [vmem:[%s10642_s2] ss:$0 sm:$0xff]  ;;  %v1281_v26 = vor.u32 %v1280_v18, %v1277_v17 }
  0x75   :  { %v1284_v27 = vshll.u32 %v1239_v22, 16  ;;  %v1247_v28 = vld [vmem:[#allocation2 + $0x54] sm:$0x1]  ;;  %v1393_v60 = vor.u32 %v1392_v20, %v1389_v19  ;;  %v1255_v30 = vld [vmem:[#allocation2 + $0xa4] sm:$0x1] }
  0x76   :  { %v1396_v29 = vshll.u32 %v1247_v28, 16  ;;  %v1501_v31 = vrot.slane %v1499_v23, 4  ;;  %v1504_v32 = vrot.slane %v1502_v24, 5  ;;  %v1508_v33 = vshll.u32 %v1255_v30, 16  ;;  %v1019_v1 = vld [vmem:[#allocation2 + $0x18] sm:$0xf] }
  0x77   :  { %v8876_v38 = vrot.slane %v1281_v26, 4  ;;  %v8879_v41 = vrot.slane %v1284_v27, 5  ;;  %v8881_v42 = vrot.slane %v1393_v60, 4  ;;  %v1022_v2 = vld [vmem:[#allocation2 + $0x1c] sm:$0x1] }
  0x78   :  { %v1505_v35 = vor.u32 %v1504_v32, %v1501_v31  ;;  %v8883_v43 = vrot.slane %v1396_v29, 5  ;;  %v8892_v49 = vrot.slane %v1508_v33, 5  ;;  %v1007_v8 = vld [vmem:[#allocation2 + $0x8] sm:$0xf]  ;;  %v1010_v15 = vld [vmem:[#allocation2 + $0xc] sm:$0x1] }
  0x79   :  { %v1287_v58 = vsel %vm8886_vm9, %v8876_v38, %v8879_v41  ;;  %v1025_v23 = vld [vmem:[#allocation2 + $0x20] sm:$0xf]  ;;  %v1028_v60 = vld [vmem:[#allocation2 + $0x24] sm:$0x1] }
  0x7a   :  { %v8890_v48 = vrot.slane %v1505_v35, 4  ;;  %v1399_v62 = vsel %vm8886_vm9, %v8881_v42, %v8883_v43  ;;  %v1013_v35 = vld [vmem:[#allocation2 + $0x10] sm:$0xf] }
  0x7c   :  { %v1511_v63 = vsel %vm8886_vm9, %v8890_v48, %v8892_v49 }
  0xf5   :  { %v7636_v34 = vpop.f32.mrb[0].mxu0 }
  0xf6   :  { %v190_v36 = vadd.f32 %v7636_v34, %v8873_v25  ;;  %v181_v37 = vpop.f32.mrb[1].mxu0 }
  0xf7   :  { %v182_v39 = vadd.f32 %v8873_v25, %v181_v37  ;;  %v7637_v40 = vpop.f32.mrb[2].mxu0 }
  0xf8   :  { %v310_v44 = vmax.f32 %v190_v36, 0.0  ;;  %v193_v45 = vadd.f32 %v7637_v40, %v8873_v25  ;;  %v184_v46 = vpop.f32.mrb[3].mxu0  ;;  %v1016_v36 = vld [vmem:[#allocation2 + $0x14] sm:$0x1] }
  0xf9   :  { %v308_v50 = vmax.f32 %v182_v39, 0.0  ;;  %v185_v51 = vadd.f32 %v8873_v25, %v184_v46 }
  0xfa   :  { %v7364_v52 = vpack.c.bf16 %v310_v44, %v310_v44  ;;  %v311_v53 = vmax.f32 %v193_v45, 0.0 }
  0xfb   :  { %v7362_v54 = vpack.c.bf16 %v308_v50, %v308_v50  ;;  %v309_v57 = vmax.f32 %v185_v51, 0.0 }
  0xfc   :  { %v702_v59 = vshrl.u32 %v7364_v52, 16  ;;  %v7365_v61 = vpack.c.bf16 %v311_v53, %v311_v53  ;;  %v705_v0 = vshll.u32 %v7364_v52, 16 }
  0xfd   :  { %v686_v3 = vshrl.u32 %v7362_v54, 16  ;;  %v689_v4 = vshll.u32 %v7362_v54, 16  ;;  %v7363_v5 = vpack.c.bf16 %v309_v57, %v309_v57  ;;  %v7640_v6 = vpop.f32.mrb[4].mxu0 }
  0xfe   :  { %v704_v7 = vrot.slane %v702_v59, 7  ;;  %v710_v9 = vshrl.u32 %v7365_v61, 16  ;;  %v713_v11 = vshll.u32 %v7365_v61, 16  ;;  %v206_v12 = vadd.f32 %v7640_v6, %v8873_v25  ;;  %v197_v13 = vpop.f32.mrb[5].mxu0  ;;  %v8927_v61 = vld [vmem:[#allocation2 + $0xf0] sm:$0xf] }
  0xff   :  { %v688_v14 = vrot.slane %v686_v3, 7  ;;  %v694_v16 = vshrl.u32 %v7363_v5, 16  ;;  %v697_v17 = vshll.u32 %v7363_v5, 16  ;;  %v198_v18 = vadd.f32 %v8873_v25, %v197_v13  ;;  %v7641_v19 = vpop.f32.mrb[6].mxu0  ;;  %v1043_v5 = vld [vmem:[#allocation2 + $0x38] sm:$0xf] }
 0x100   :  { %v707_v20 = vor.u32 %v705_v0, %v704_v7  ;;  %v708_v21 = vrot.slane %v704_v7, 4  ;;  %v712_v22 = vrot.slane %v710_v9, 7  ;;  %v314_v24 = vmax.f32 %v206_v12, 0.0  ;;  %v200_v26 = vpop.f32.mrb[7].mxu0  ;;  %v1046_v13 = vld [vmem:[#allocation2 + $0x3c] sm:$0x1] }
 0x101   :  { %v691_v27 = vor.u32 %v689_v4, %v688_v14  ;;  %v692_v28 = vrot.slane %v688_v14, 4  ;;  %v696_v29 = vrot.slane %v694_v16, 7  ;;  %v312_v30 = vmax.f32 %v198_v18, 0.0  ;;  %v1031_v18 = vld [vmem:[#allocation2 + $0x28] sm:$0xf] }
 0x102   :  { %v1020_v31 = vsel %vm8708_vm6, %v707_v20, %v1019_v1  ;;  %v1023_v32 = vsel %vm8680_vm3, %v708_v21, %v1022_v2  ;;  %v715_v33 = vor.u32 %v713_v11, %v712_v22  ;;  %v716_v34 = vrot.slane %v712_v22, 4 }
 0x103   :  { %1021 = vst [vmem:[#allocation2 + $0x18] sm:$0xf] %v1020_v31  ;;  %1024 = vst [vmem:[#allocation2 + $0x1c] sm:$0x1] %v1023_v32  ;;  %v1008_v37 = vsel %vm8708_vm6, %v691_v27, %v1007_v8  ;;  %v1011_v39 = vsel %vm8680_vm3, %v692_v28, %v1010_v15  ;;  %v699_v40 = vor.u32 %v697_v17, %v696_v29  ;;  %v700_v44 = vrot.slane %v696_v29, 4 }
 0x104   :  { %1009 = vst [vmem:[#allocation2 + $0x8] sm:$0xf] %v1008_v37  ;;  %1012 = vst [vmem:[#allocation2 + $0xc] sm:$0x1] %v1011_v39  ;;  %v1026_v45 = vsel %vm8708_vm6, %v715_v33, %v1025_v23  ;;  %v1029_v46 = vsel %vm8680_vm3, %v716_v34, %v1028_v60  ;;  %v7368_v50 = vpack.c.bf16 %v314_v24, %v314_v24  ;;  %v1611_v17 = vshrl.u32 %v8927_v61, 16 }
 0x105   :  { %v7366_v51 = vpack.c.bf16 %v312_v30, %v312_v30  ;;  %1027 = vst [vmem:[#allocation2 + $0x20] sm:$0xf] %v1026_v45  ;;  %1030 = vst [vmem:[#allocation2 + $0x24] sm:$0x1] %v1029_v46  ;;  %v1014_v52 = vsel %vm8708_vm6, %v699_v40, %v1013_v35  ;;  %v1017_v53 = vsel %vm8680_vm3, %v700_v44, %v1016_v36  ;;  %v7644_v59 = vpop.f32.mrb[8].mxu0 }
 0x106   :  { %v209_v54 = vadd.f32 %v7641_v19, %v8873_v25  ;;  %v201_v57 = vadd.f32 %v8873_v25, %v200_v26  ;;  %1015 = vst [vmem:[#allocation2 + $0x10] sm:$0xf] %v1014_v52  ;;  %1018 = vst [vmem:[#allocation2 + $0x14] sm:$0x1] %v1017_v53  ;;  %v734_v0 = vshrl.u32 %v7368_v50, 16  ;;  %v737_v1 = vshll.u32 %v7368_v50, 16 }
 0x107   :  { %v718_v2 = vshrl.u32 %v7366_v51, 16  ;;  %v721_v3 = vshll.u32 %v7366_v51, 16  ;;  %v213_v4 = vpop.f32.mrb[9].mxu0  ;;  %v222_v8 = vadd.f32 %v7644_v59, %v8873_v25  ;;  %v1034_v19 = vld [vmem:[#allocation2 + $0x2c] sm:$0x1]  ;;  %v8948_v52 = vld [vmem:[%s10643_s3] sm:$0xff]  }
 0x108   :  { %v315_v6 = vmax.f32 %v209_v54, 0.0  ;;  %v313_v7 = vmax.f32 %v201_v57, 0.0  ;;  %v214_v9 = vadd.f32 %v8873_v25, %v213_v4  ;;  %v7645_v11 = vpop.f32.mrb[10].mxu0  ;;  %v736_v12 = vrot.slane %v734_v0, 7  ;;  %v1049_v37 = vld [vmem:[#allocation2 + $0x40] sm:$0xf]  ;;  %7706 = vmatprep.subr.bf16.mxu0 %v8948_v52 }
 0x109   :  { %v720_v14 = vrot.slane %v718_v2, 7  ;;  %v8932_v15 = vadd.f32 %v7645_v11, %v8873_v25  ;;  %v216_v16 = vpop.f32.mrb[11].mxu0  ;;  %v318_v22 = vmax.f32 %v222_v8, 0.0  ;;  %v1052_v39 = vld [vmem:[#allocation2 + $0x44] sm:$0x1] }
 0x10a   :  { %v7369_v20 = vpack.c.bf16 %v315_v6, %v315_v6  ;;  %v7367_v21 = vpack.c.bf16 %v313_v7, %v313_v7  ;;  %v316_v23 = vmax.f32 %v214_v9, 0.0  ;;  %v739_v24 = vor.u32 %v737_v1, %v736_v12  ;;  %v1037_v45 = vld [vmem:[#allocation2 + $0x30] sm:$0xf]  ;;  %v1040_v53 = vld [vmem:[#allocation2 + $0x34] sm:$0x1] }
 0x10b   :  { %v740_v26 = vrot.slane %v736_v12, 4  ;;  %v723_v27 = vor.u32 %v721_v3, %v720_v14  ;;  %v724_v28 = vrot.slane %v720_v14, 4  ;;  %v8935_v32 = vld [vmem:[#allocation2 + $0x8] sm:$0xf]  ;;  %v7372_v46 = vpack.c.bf16 %v318_v22, %v318_v22 }
 0x10c   :  { %v742_v60 = vshrl.u32 %v7369_v20, 16  ;;  %v745_v29 = vshll.u32 %v7369_v20, 16  ;;  %v726_v30 = vshrl.u32 %v7367_v21, 16  ;;  %v729_v31 = vshll.u32 %v7367_v21, 16  ;;  %v1070_v20 = vld [vmem:[#allocation2 + $0x6c] sm:$0x1] }
 0x10d   :  { %v1044_v33 = vsel %vm8708_vm6, %v739_v24, %v1043_v5  ;;  %v1047_v34 = vsel %vm8680_vm3, %v740_v26, %v1046_v13  ;;  %v1032_v35 = vsel %vm8708_vm6, %v723_v27, %v1031_v18  ;;  %v1035_v36 = vsel %vm8680_vm3, %v724_v28, %v1034_v19  ;;  %v7648_v51 = vpop.f32.mrb[12].mxu0  ;;  %v1067_v18 = vld [vmem:[#allocation2 + $0x68] sm:$0xf]  ;;  %v1055_v24 = vld [vmem:[#allocation2 + $0x58] sm:$0xf] }
 0x10e   :  { %1045 = vst [vmem:[#allocation2 + $0x38] sm:$0xf] %v1044_v33  ;;  %1048 = vst [vmem:[#allocation2 + $0x3c] sm:$0x1] %v1047_v34  ;;  %v744_v40 = vrot.slane %v742_v60, 7  ;;  %v728_v44 = vrot.slane %v726_v30, 7  ;;  %v7370_v50 = vpack.c.bf16 %v316_v23, %v316_v23  ;;  %v217_v57 = vadd.f32 %v8873_v25, %v216_v16 }
 0x10f   :  { %1033 = vst [vmem:[#allocation2 + $0x28] sm:$0xf] %v1032_v35  ;;  %1036 = vst [vmem:[#allocation2 + $0x2c] sm:$0x1] %v1035_v36  ;;  %v319_v54 = vmax.f32 %v8932_v15, 0.0  ;;  %v238_v59 = vadd.f32 %v7648_v51, %v8873_v25  ;;  %v229_v0 = vpop.f32.mrb[13].mxu0 }
 0x110   :  { %v1289_v1 = vshrl.u32 %v8935_v32, 16  ;;  %v747_v2 = vor.u32 %v745_v29, %v744_v40  ;;  %v748_v3 = vrot.slane %v744_v40, 4  ;;  %v731_v4 = vor.u32 %v729_v31, %v728_v44  ;;  %v7649_v6 = vpop.f32.mrb[14].mxu0  ;;  %v1058_v26 = vld [vmem:[#allocation2 + $0x5c] sm:$0x1] }
 0x111   :  { %v732_v5 = vrot.slane %v728_v44, 4  ;;  %v766_v7 = vshrl.u32 %v7372_v46, 16  ;;  %v769_v8 = vshll.u32 %v7372_v46, 16  ;;  %v750_v9 = vshrl.u32 %v7370_v50, 16  ;;  %v232_v12 = vpop.f32.mrb[15].mxu0 }
 0x112   :  { %v753_v11 = vshll.u32 %v7370_v50, 16  ;;  %v1050_v13 = vsel %vm8708_vm6, %v747_v2, %v1049_v37  ;;  %v1053_v14 = vsel %vm8680_vm3, %v748_v3, %v1052_v39  ;;  %v1038_v15 = vsel %vm8708_vm6, %v731_v4, %v1037_v45  ;;  %v1073_v51 = vld [vmem:[#allocation2 + $0x70] sm:$0xf]  ;;  %v1061_v4 = vld [vmem:[#allocation2 + $0x60] sm:$0xf] }
 0x113   :  { %v1041_v16 = vsel %vm8680_vm3, %v732_v5, %v1040_v53  ;;  %1051 = vst [vmem:[#allocation2 + $0x40] sm:$0xf] %v1050_v13  ;;  %1054 = vst [vmem:[#allocation2 + $0x44] sm:$0x1] %v1053_v14  ;;  %v768_v19 = vrot.slane %v766_v7, 7  ;;  %v752_v21 = vrot.slane %v750_v9, 7  ;;  %v7373_v22 = vpack.c.bf16 %v319_v54, %v319_v54 }
 0x114   :  { %1039 = vst [vmem:[#allocation2 + $0x30] sm:$0xf] %v1038_v15  ;;  %1042 = vst [vmem:[#allocation2 + $0x34] sm:$0x1] %v1041_v16  ;;  %v317_v23 = vmax.f32 %v217_v57, 0.0  ;;  %v322_v27 = vmax.f32 %v238_v59, 0.0  ;;  %v230_v28 = vadd.f32 %v8873_v25, %v229_v0  ;;  %v241_v60 = vadd.f32 %v7649_v6, %v8873_v25 }
 0x115   :  { %v233_v29 = vadd.f32 %v8873_v25, %v232_v12  ;;  %v771_v30 = vor.u32 %v769_v8, %v768_v19  ;;  %v772_v31 = vrot.slane %v768_v19, 4  ;;  %v755_v33 = vor.u32 %v753_v11, %v752_v21  ;;  %v7652_v40 = vpop.f32.mrb[16].mxu0  ;;  %v1076_v53 = vld [vmem:[#allocation2 + $0x74] sm:$0x1]  ;;  %v1064_v5 = vld [vmem:[#allocation2 + $0x64] sm:$0x1] }
 0x116   :  { %v756_v34 = vrot.slane %v752_v21, 4  ;;  %v774_v35 = vshrl.u32 %v7373_v22, 16  ;;  %v777_v36 = vshll.u32 %v7373_v22, 16  ;;  %v7371_v37 = vpack.c.bf16 %v317_v23, %v317_v23  ;;  %v245_v54 = vpop.f32.mrb[17].mxu0  ;;  %v1091_v16 = vld [vmem:[#allocation2 + $0x88] sm:$0xf] }
 0x117   :  { %v7376_v39 = vpack.c.bf16 %v322_v27, %v322_v27  ;;  %v1068_v44 = vsel %vm8708_vm6, %v771_v30, %v1067_v18  ;;  %v1071_v45 = vsel %vm8680_vm3, %v772_v31, %v1070_v20  ;;  %v1056_v46 = vsel %vm8708_vm6, %v755_v33, %v1055_v24  ;;  %v7653_v3 = vpop.f32.mrb[18].mxu0  ;;  %v1094_v18 = vld [vmem:[#allocation2 + $0x8c] sm:$0x1] }
 0x118   :  { %v1059_v50 = vsel %vm8680_vm3, %v756_v34, %v1058_v26  ;;  %1069 = vst [vmem:[#allocation2 + $0x68] sm:$0xf] %v1068_v44  ;;  %1072 = vst [vmem:[#allocation2 + $0x6c] sm:$0x1] %v1071_v45  ;;  %v776_v57 = vrot.slane %v774_v35, 7  ;;  %v758_v59 = vshrl.u32 %v7371_v37, 16  ;;  %v254_v22 = vadd.f32 %v7652_v40, %v8873_v25 }
 0x119   :  { %1057 = vst [vmem:[#allocation2 + $0x58] sm:$0xf] %v1056_v46  ;;  %1060 = vst [vmem:[#allocation2 + $0x5c] sm:$0x1] %v1059_v50  ;;  %v761_v0 = vshll.u32 %v7371_v37, 16  ;;  %v798_v2 = vshrl.u32 %v7376_v39, 16 }
 0x11a   :  { %v801_v6 = vshll.u32 %v7376_v39, 16  ;;  %v320_v7 = vmax.f32 %v230_v28, 0.0  ;;  %v323_v8 = vmax.f32 %v241_v60, 0.0  ;;  %v321_v9 = vmax.f32 %v233_v29, 0.0  ;;  %v8974_v11 = vpop.f32.mrb[19].mxu0 }
 0x11b   :  { %v779_v12 = vor.u32 %v777_v36, %v776_v57  ;;  %v780_v13 = vrot.slane %v776_v57, 4  ;;  %v760_v14 = vrot.slane %v758_v59, 7  ;;  %v800_v15 = vrot.slane %v798_v2, 7  ;;  %v1079_v34 = vld [vmem:[#allocation2 + $0x78] sm:$0xf] }
 0x11c   :  { %v7374_v19 = vpack.c.bf16 %v320_v7, %v320_v7  ;;  %v7377_v20 = vpack.c.bf16 %v323_v8, %v323_v8  ;;  %v7375_v21 = vpack.c.bf16 %v321_v9, %v321_v9  ;;  %v1082_v45 = vld [vmem:[#allocation2 + $0x7c] sm:$0x1]  ;;  %v326_v59 = vmax.f32 %v254_v22, 0.0  ;;  %v1240_v22 = vld [vmem:[#allocation2 + $0xc] sm:$0x1] }
 0x11d   :  { %v1074_v23 = vsel %vm8708_vm6, %v779_v12, %v1073_v51  ;;  %v1077_v24 = vsel %vm8680_vm3, %v780_v13, %v1076_v53  ;;  %v763_v26 = vor.u32 %v761_v0, %v760_v14  ;;  %v764_v27 = vrot.slane %v760_v14, 4  ;;  %v8985_v37 = vpop.f32.mrb[20].mxu0  ;;  %v1097_v53 = vld [vmem:[#allocation2 + $0x90] sm:$0xf]  ;;  %v1085_v14 = vld [vmem:[#allocation2 + $0x80] sm:$0xf] }
 0x11e   :  { %1075 = vst [vmem:[#allocation2 + $0x70] sm:$0xf] %v1074_v23  ;;  %1078 = vst [vmem:[#allocation2 + $0x74] sm:$0x1] %v1077_v24  ;;  %v803_v28 = vor.u32 %v801_v6, %v800_v15  ;;  %v804_v60 = vrot.slane %v800_v15, 4  ;;  %v782_v29 = vshrl.u32 %v7374_v19, 16  ;;  %v246_v0 = vadd.f32 %v8873_v25, %v245_v54 }
 0x11f   :  { %v785_v30 = vshll.u32 %v7374_v19, 16  ;;  %v1062_v31 = vsel %vm8708_vm6, %v763_v26, %v1061_v4  ;;  %v1065_v33 = vsel %vm8680_vm3, %v764_v27, %v1064_v5  ;;  %v806_v35 = vshrl.u32 %v7377_v20, 16  ;;  %v8991_v50 = vpop.f32.mrb[21].mxu0  ;;  %v1100_v6 = vld [vmem:[#allocation2 + $0x94] sm:$0x1] }
 0x120   :  { %v809_v36 = vshll.u32 %v7377_v20, 16  ;;  %1063 = vst [vmem:[#allocation2 + $0x60] sm:$0xf] %v1062_v31  ;;  %1066 = vst [vmem:[#allocation2 + $0x64] sm:$0x1] %v1065_v33  ;;  %v1092_v39 = vsel %vm8708_vm6, %v803_v28, %v1091_v16  ;;  %v1095_v40 = vsel %vm8680_vm3, %v804_v60, %v1094_v18  ;;  %v784_v44 = vrot.slane %v782_v29, 7 }
 0x121   :  { %v790_v46 = vshrl.u32 %v7375_v21, 16  ;;  %1093 = vst [vmem:[#allocation2 + $0x88] sm:$0xf] %v1092_v39  ;;  %1096 = vst [vmem:[#allocation2 + $0x8c] sm:$0x1] %v1095_v40  ;;  %v808_v51 = vrot.slane %v806_v35, 7  ;;  %v257_v8 = vadd.f32 %v7653_v3, %v8873_v25  ;;  %v7380_v16 = vpack.c.bf16 %v326_v59, %v326_v59 }
 0x122   :  { %v793_v57 = vshll.u32 %v7375_v21, 16  ;;  %v8994_v2 = vpop.f32.mrb[22].mxu0  ;;  %v787_v4 = vor.u32 %v785_v30, %v784_v44  ;;  %v788_v5 = vrot.slane %v784_v44, 4  ;;  %v1088_v15 = vld [vmem:[#allocation2 + $0x84] sm:$0x1]  ;;  %v324_v18 = vmax.f32 %v246_v0, 0.0 }
 0x123   :  { %v792_v7 = vrot.slane %v790_v46, 7  ;;  %v8997_v9 = vpop.f32.mrb[23].mxu0  ;;  %v811_v12 = vor.u32 %v809_v36, %v808_v51  ;;  %v812_v13 = vrot.slane %v808_v51, 4  ;;  %v830_v24 = vshrl.u32 %v7380_v16, 16  ;;  %v1115_v60 = vld [vmem:[#allocation2 + $0xb8] sm:$0xf] }
 0x124   :  { %v1080_v19 = vsel %vm8708_vm6, %v787_v4, %v1079_v34  ;;  %v1083_v54 = vsel %vm8680_vm3, %v788_v5, %v1082_v45  ;;  %v833_v26 = vshll.u32 %v7380_v16, 16  ;;  %v1118_v29 = vld [vmem:[#allocation2 + $0xbc] sm:$0x1]  ;;  %v7378_v30 = vpack.c.bf16 %v324_v18, %v324_v18  ;;  %v1201_v51 = vld [vmem:[#allocation2 + $0x10] sm:$0xf] }
 0x125   :  { %v795_v20 = vor.u32 %v793_v57, %v792_v7  ;;  %v796_v21 = vrot.slane %v792_v7, 4  ;;  %1081 = vst [vmem:[#allocation2 + $0x78] sm:$0xf] %v1080_v19  ;;  %1084 = vst [vmem:[#allocation2 + $0x7c] sm:$0x1] %v1083_v54  ;;  %v1098_v3 = vsel %vm8708_vm6, %v811_v12, %v1097_v53  ;;  %v1101_v23 = vsel %vm8680_vm3, %v812_v13, %v1100_v6  ;;  %v9014_v39 = vpop.f32.mrb[24].mxu0 }
 0x126   :  { %1099 = vst [vmem:[#allocation2 + $0x90] sm:$0xf] %v1098_v3  ;;  %1102 = vst [vmem:[#allocation2 + $0x94] sm:$0x1] %v1101_v23  ;;  %v327_v31 = vmax.f32 %v257_v8, 0.0  ;;  %v832_v33 = vrot.slane %v830_v24, 7  ;;  %v249_v46 = vadd.f32 %v8873_v25, %v8974_v11  ;;  %v270_v41 = vadd.f32 %v8985_v37, %v8873_v25 }
 0x127   :  { %v1086_v27 = vsel %vm8708_vm6, %v795_v20, %v1085_v14  ;;  %v1089_v28 = vsel %vm8680_vm3, %v796_v21, %v1088_v15  ;;  %v1291_v34 = vrot.slane %v1289_v1, 4  ;;  %v1292_v35 = vshll.u32 %v8935_v32, 16  ;;  %v9018_v53 = vpop.f32.mrb[25].mxu0  ;;  %v1103_v0 = vld [vmem:[#allocation2 + $0xa8] sm:$0xf]  ;;  %v8358_v37 = vld [vmem:[%s10643_s3 + $0x90] sm:$0xff]  }
 0x128   :  { %1087 = vst [vmem:[#allocation2 + $0x80] sm:$0xf] %v1086_v27  ;;  %1090 = vst [vmem:[#allocation2 + $0x84] sm:$0x1] %v1089_v28  ;;  %v1298_v36 = vshll.u32 %v1240_v22, 16  ;;  %v814_v40 = vshrl.u32 %v7378_v30, 16  ;;  %v7381_v45 = vpack.c.bf16 %v327_v31, %v327_v31  ;;  %v835_v57 = vor.u32 %v833_v26, %v832_v33 }
 0x129   :  { %v817_v44 = vshll.u32 %v7378_v30, 16  ;;  %v836_v59 = vrot.slane %v832_v33, 4  ;;  %v1106_v4 = vld [vmem:[#allocation2 + $0xac] sm:$0x1]  ;;  %v1294_v1 = vrot.slane %v1292_v35, 5  ;;  %v9020_v6 = vpop.f32.mrb[26].mxu0 }
 0x12a   :  { %v1300_v5 = vrot.slane %v1298_v36, 5  ;;  %v1241_v32 = vld [vmem:[#allocation2 + $0x14] sm:$0x1]  ;;  %v816_v7 = vrot.slane %v814_v40, 7  ;;  %v838_v8 = vshrl.u32 %v7381_v45, 16  ;;  %v841_v12 = vshll.u32 %v7381_v45, 16 }
 0x12b   :  { %v325_v13 = vmax.f32 %v249_v46, 0.0  ;;  %v9022_v14 = vpop.f32.mrb[27].mxu0  ;;  %v1116_v11 = vsel %vm8708_vm6, %v835_v57, %v1115_v60  ;;  %v1119_v15 = vsel %vm8680_vm3, %v836_v59, %v1118_v29  ;;  %v1121_v16 = vld [vmem:[#allocation2 + $0xc0] sm:$0xf]  ;;  %v1124_v18 = vld [vmem:[#allocation2 + $0xc4] sm:$0x1]  ;;  %v1295_v19 = vor.u32 %v1294_v1, %v1291_v34 }
 0x12c   :  { %v1303_v54 = vshrl.u32 %v1201_v51, 16  ;;  %1117 = vst [vmem:[#allocation2 + $0xb8] sm:$0xf] %v1116_v11  ;;  %1120 = vst [vmem:[#allocation2 + $0xbc] sm:$0x1] %v1119_v15  ;;  %v819_v20 = vor.u32 %v817_v44, %v816_v7  ;;  %v820_v21 = vrot.slane %v816_v7, 4  ;;  %v273_v15 = vadd.f32 %v8994_v2, %v8873_v25 }
 0x12d   :  { %v840_v22 = vrot.slane %v838_v8, 7  ;;  %v7379_v3 = vpack.c.bf16 %v325_v13, %v325_v13  ;;  %v1202_v23 = vld [vmem:[#allocation2 + $0x18] sm:$0xf]  ;;  %v1296_v24 = vrot.slane %v1295_v19, 4  ;;  %v1242_v26 = vld [vmem:[#allocation2 + $0x1c] sm:$0x1] }
 0x12e   :  { %v1305_v27 = vrot.slane %v1303_v54, 4  ;;  %v1306_v28 = vshll.u32 %v1201_v51, 16  ;;  %v1312_v30 = vshll.u32 %v1241_v32, 16  ;;  %v1104_v60 = vsel %vm8708_vm6, %v819_v20, %v1103_v0  ;;  %v8355_v35 = vld [vmem:[%s10643_s3 + $0x88] sm:$0xff]   ;;  %v9037_v51 = vpop.f32.mrb[28].mxu0 }
 0x12f   :  { %v1107_v29 = vsel %vm8680_vm3, %v820_v21, %v1106_v4  ;;  %v843_v31 = vor.u32 %v841_v12, %v840_v22  ;;  %v844_v33 = vrot.slane %v840_v22, 4  ;;  %v8350_v34 = vld [vmem:[#allocation2 + $0x78] ss:$8 sps:$4 sm:$0xff]   ;;  %1105 = vst [vmem:[#allocation2 + $0xa8] sm:$0xf] %v1104_v60  ;;  %v1301_v36 = vsel %vm8886_vm9, %v1296_v24, %v1300_v5  ;;  %v9051_v5 = vpop.f32.mrb[29].mxu0 }
 0x130   :  { %1108 = vst [vmem:[#allocation2 + $0xac] sm:$0x1] %v1107_v29  ;;  %v822_v40 = vshrl.u32 %v7379_v3, 16  ;;  %v825_v44 = vshll.u32 %v7379_v3, 16  ;;  %v1308_v45 = vrot.slane %v1306_v28, 5  ;;  %v6920_v0 = vcombine.low %v1287_v58, %v1301_v36  ;;  %7806 = vmatprep.mubr.msk.bf16.mxu1 %vm1802_vm10, %v8350_v34  ;;  %v9054_v11 = vpop.f32.mrb[30].mxu0 }
 0x131   :  { %v8352_v46 = vld [vmem:[#allocation2 + $0x88] ss:$8 sps:$4 sm:$0xff]   ;;  %v1122_v57 = vsel %vm8708_vm6, %v843_v31, %v1121_v16  ;;  %v1125_v59 = vsel %vm8680_vm3, %v844_v33, %v1124_v18  ;;  %v9048_v1 = vrot.slane %v1312_v30, 5  ;;  %v1112_v7 = vld [vmem:[#allocation2 + $0xb4] sm:$0x1]  ;;  %v1317_v12 = vshrl.u32 %v1202_v23, 16 }
 0x132   :  { %v1109_v4 = vld [vmem:[#allocation2 + $0xb0] sm:$0xf]  ;;  %1123 = vst [vmem:[#allocation2 + $0xc0] sm:$0xf] %v1122_v57  ;;  %1126 = vst [vmem:[#allocation2 + $0xc4] sm:$0x1] %v1125_v59  ;;  %v1309_v8 = vor.u32 %v1308_v45, %v1305_v27  ;;  %7807 = vmatmul.mubr.msk.bf16.vlgmr.msra.gmra.mrb[0].mxu1 %vm1802_vm10, %v8352_v46  ;;  %7674 = vmatprep.mubr.msk.bf16.mxu0 %vm1802_vm10, %v6920_v0  ;;  %v262_v58 = vadd.f32 %v8873_v25, %v8991_v50 }
 0x133   :  { %v824_v32 = vrot.slane %v822_v40, 7  ;;  %v1320_v13 = vshll.u32 %v1202_v23, 16  ;;  %v1326_v38 = vshll.u32 %v1242_v26, 16  ;;  %v1203_v16 = vld [vmem:[#allocation2 + $0x20] sm:$0xf]  ;;  %7827 = vmatpush3.bf16.msra.mxu1 %v8851_v55  ;;  %v9064_v19 = vpop.f32.mrb[31].mxu0 }
 0x134   :  { %v1243_v18 = vld [vmem:[#allocation2 + $0x24] sm:$0x1]  ;;  %v1310_v21 = vrot.slane %v1309_v8, 4  ;;  %v1319_v22 = vrot.slane %v1317_v12, 4  ;;  %7828 = vmatprep.subr.bf16.mxu1 %v8355_v35  ;;  %v330_v23 = vmax.f32 %v270_v41, 0.0  ;;  %v328_v24 = vmax.f32 %v262_v58, 0.0 }
 0x135   :  { %v827_v54 = vor.u32 %v825_v44, %v824_v32  ;;  %v828_v20 = vrot.slane %v824_v32, 4  ;;  %v1322_v3 = vrot.slane %v1320_v13, 5  ;;  %v1328_v50 = vrot.slane %v1326_v38, 5  ;;  %v9069_v2 = vld [vmem:[#allocation2 + $0x28] sm:$0xf]  ;;  %v8361_v44 = vld [vmem:[%s10643_s3 + $0x98] sm:$0xff]  }
 0x136   :  { %v1315_v27 = vsel %vm8886_vm9, %v1310_v21, %v9048_v1  ;;  %v331_v28 = vmax.f32 %v273_v15, 0.0  ;;  %v7384_v60 = vpack.c.bf16 %v330_v23, %v330_v23  ;;  %v7382_v29 = vpack.c.bf16 %v328_v24, %v328_v24  ;;  %v1139_v0 = vld [vmem:[#allocation2 + $0xd8] sm:$0xf]  ;;  %v1127_v32 = vld [vmem:[#allocation2 + $0xc8] sm:$0xf] }
 0x137   :  { %v1110_v55 = vsel %vm8708_vm6, %v827_v54, %v1109_v4  ;;  %v1113_v26 = vsel %vm8680_vm3, %v828_v20, %v1112_v7  ;;  %v1323_v30 = vor.u32 %v1322_v3, %v1319_v22  ;;  %v1331_v31 = vshrl.u32 %v1203_v16, 16  ;;  %7829 = vmatpush3.bf16.msra.mxu1 %v8355_v35  ;;  %v1142_v4 = vld [vmem:[#allocation2 + $0xdc] sm:$0x1]  ;;  %v1130_v7 = vld [vmem:[#allocation2 + $0xcc] sm:$0x1] }
 0x138   :  { %1111 = vst [vmem:[#allocation2 + $0xb0] sm:$0xf] %v1110_v55  ;;  %1114 = vst [vmem:[#allocation2 + $0xb4] sm:$0x1] %v1113_v26  ;;  %v7385_v33 = vpack.c.bf16 %v331_v28, %v331_v28  ;;  %v1334_v34 = vshll.u32 %v1203_v16, 16  ;;  %v1340_v36 = vshll.u32 %v1243_v18, 16  ;;  %7830 = vmatprep.subr.bf16.mxu1 %v8358_v37 }
 0x139   :  { %v1345_v40 = vshrl.u32 %v9069_v2, 16  ;;  %v1324_v45 = vrot.slane %v1323_v30, 4  ;;  %v862_v46 = vshrl.u32 %v7384_v60, 16  ;;  %v865_v57 = vshll.u32 %v7384_v60, 16  ;;  %v1145_v58 = vld [vmem:[#allocation2 + $0xe0] sm:$0xf] }
 0x13a   :  { %v846_v59 = vshrl.u32 %v7382_v29, 16  ;;  %v849_v1 = vshll.u32 %v7382_v29, 16  ;;  %v870_v35 = vshrl.u32 %v7385_v33, 16  ;;  %v873_v8 = vshll.u32 %v7385_v33, 16  ;;  %v1148_v15 = vld [vmem:[#allocation2 + $0xe4] sm:$0x1] }
 0x13b   :  { %v1333_v12 = vrot.slane %v1331_v31, 4  ;;  %v1329_v13 = vsel %vm8886_vm9, %v1324_v45, %v1328_v50  ;;  %v864_v38 = vrot.slane %v862_v46, 7  ;;  %v1336_v16 = vrot.slane %v1334_v34, 5  ;;  %7831 = vmatpush3.bf16.msra.mxu1 %v8358_v37  ;;  %v1244_v20 = vld [vmem:[#allocation2 + $0x2c] sm:$0x1]  ;;  %v8366_v37 = vld [vmem:[%s10643_s3 + $0xa0] sm:$0xff]  }
 0x13c   :  { %v848_v41 = vrot.slane %v846_v59, 7  ;;  %v6921_v18 = vcombine.low %v1315_v27, %v1329_v13  ;;  %v872_v54 = vrot.slane %v870_v35, 7  ;;  %v9084_v21 = vrot.slane %v1340_v36, 5  ;;  %7832 = vmatprep.subr.bf16.mxu1 %v8361_v44  ;;  %v1205_v26 = vld [vmem:[#allocation2 + $0x30] sm:$0xf]  ;;  %v8365_v50 = vld [vmem:[%s10643_s3 + $0x8] sm:$0xff]  }
 0x13d   :  { %v1347_v22 = vrot.slane %v1345_v40, 4  ;;  %v867_v3 = vor.u32 %v865_v57, %v864_v38  ;;  %v868_v23 = vrot.slane %v864_v38, 4  ;;  %v1337_v30 = vor.u32 %v1336_v16, %v1333_v12  ;;  %v1206_v40 = vld [vmem:[#allocation2 + $0x38] sm:$0xf]  ;;  %v1245_v45 = vld [vmem:[#allocation2 + $0x34] sm:$0x1] }
 0x13e   :  { %v851_v24 = vor.u32 %v849_v1, %v848_v41  ;;  %v852_v55 = vrot.slane %v848_v41, 4  ;;  %7675 = vmatmul.mubr.msk.bf16.vlgmr.msra.gmra.mrb[32].mxu0 %vm1802_vm10, %v6921_v18  ;;  %v875_v27 = vor.u32 %v873_v8, %v872_v54  ;;  %v876_v28 = vrot.slane %v872_v54, 4  ;;  %v8354_v46 = vld [vmem:[#allocation2 + $0xb8] ss:$8 sps:$4 sm:$0xff]   ;;  %v1246_v8 = vld [vmem:[#allocation2 + $0x3c] sm:$0x1] }
 0x13f   :  { %v1348_v60 = vshll.u32 %v9069_v2, 16  ;;  %v8353_v29 = vld [vmem:[#allocation2 + $0xa8] ss:$8 sps:$4 sm:$0xff]   ;;  %v1140_v31 = vsel %vm8708_vm6, %v867_v3, %v1139_v0  ;;  %v1143_v33 = vsel %vm8680_vm3, %v868_v23, %v1142_v4  ;;  %7833 = vmatpush3.bf16.msra.mxu1 %v8361_v44  ;;  %v1338_v59 = vrot.slane %v1337_v30, 4  ;;  %7707 = vmatpush3.bf16.msra.mxu0 %v8948_v52 }
 0x140   :  { %v1128_v34 = vsel %vm8708_vm6, %v851_v24, %v1127_v32  ;;  %v1131_v36 = vsel %vm8680_vm3, %v852_v55, %v1130_v7  ;;  %1141 = vst [vmem:[#allocation2 + $0xd8] sm:$0xf] %v1140_v31  ;;  %1144 = vst [vmem:[#allocation2 + $0xdc] sm:$0x1] %v1143_v33  ;;  %v1146_v2 = vsel %vm8708_vm6, %v875_v27, %v1145_v58  ;;  %7810 = vmatprep.mubr.msk.bf16.mxu1 %vm1802_vm10, %v8353_v29  ;;  %v8367_v7 = vld [vmem:[%s10643_s3 + $0x10] sm:$0xff]  }
 0x141   :  { %1129 = vst [vmem:[#allocation2 + $0xc8] sm:$0xf] %v1128_v34  ;;  %1132 = vst [vmem:[#allocation2 + $0xcc] sm:$0x1] %v1131_v36  ;;  %v1149_v57 = vsel %vm8680_vm3, %v876_v28, %v1148_v15  ;;  %v1350_v0 = vrot.slane %v1348_v60, 5  ;;  %v1354_v4 = vshll.u32 %v1244_v20, 16  ;;  %v265_v44 = vadd.f32 %v8873_v25, %v8997_v9  ;;  %7811 = vmatmul.mubr.msk.bf16.gmra.mrb[4].mxu1 %vm1802_vm10, %v8354_v46 }
 0x142   :  { %1147 = vst [vmem:[#allocation2 + $0xe0] sm:$0xf] %v1146_v2  ;;  %1150 = vst [vmem:[#allocation2 + $0xe4] sm:$0x1] %v1149_v57  ;;  %v1359_v1 = vshrl.u32 %v1205_v26, 16  ;;  %v1362_v32 = vshll.u32 %v1205_v26, 16  ;;  %7708 = vmatprep.subr.bf16.mxu0 %v8365_v50  ;;  %v1343_v35 = vsel %vm8886_vm9, %v1338_v59, %v9084_v21  ;;  %7866 = vmatprep.subr.bf16.mxu1 %v8366_v37 }
 0x143   :  { %v1351_v52 = vor.u32 %v1350_v0, %v1347_v22  ;;  %v1368_v12 = vshll.u32 %v1245_v45, 16  ;;  %v1373_v13 = vshrl.u32 %v1206_v40, 16  ;;  %v1356_v38 = vrot.slane %v1354_v4, 5  ;;  %7709 = vmatpush3.bf16.msra.mxu0 %v8365_v50  ;;  %v8368_v22 = vld [vmem:[%s10643_s3 + $0x18] sm:$0xff]  }
 0x144   :  { %v329_v9 = vmax.f32 %v265_v44, 0.0  ;;  %v1361_v41 = vrot.slane %v1359_v1, 4  ;;  %v1364_v58 = vrot.slane %v1362_v32, 5  ;;  %v1376_v54 = vshll.u32 %v1206_v40, 16  ;;  %7710 = vmatprep.subr.bf16.mxu0 %v8367_v7  ;;  %v1208_v37 = vld [vmem:[#allocation2 + $0x58] sm:$0xf] }
 0x145   :  { %v1352_v15 = vrot.slane %v1351_v52, 4  ;;  %v1370_v16 = vrot.slane %v1368_v12, 5  ;;  %v1375_v18 = vrot.slane %v1373_v13, 4  ;;  %v1382_v23 = vshll.u32 %v1246_v8, 16  ;;  %v1248_v44 = vld [vmem:[#allocation2 + $0x5c] sm:$0x1] }
 0x146   :  { %v7383_v20 = vpack.c.bf16 %v329_v9, %v329_v9  ;;  %v1365_v3 = vor.u32 %v1364_v58, %v1361_v41  ;;  %v286_v21 = vadd.f32 %v9014_v39, %v8873_v25  ;;  %v1378_v55 = vrot.slane %v1376_v54, 5  ;;  %v1209_v8 = vld [vmem:[#allocation2 + $0x60] sm:$0xf]  ;;  %v1163_v9 = vld [vmem:[#allocation2 + $0x108] sm:$0xf] }
 0x147   :  { %v1357_v24 = vsel %vm8886_vm9, %v1352_v15, %v1356_v38  ;;  %v278_v26 = vadd.f32 %v8873_v25, %v9018_v53  ;;  %v289_v50 = vadd.f32 %v9020_v6, %v8873_v25  ;;  %v1384_v29 = vrot.slane %v1382_v23, 5  ;;  %7711 = vmatpush3.bf16.msra.mxu0 %v8367_v7  ;;  %v1133_v25 = vld [vmem:[#allocation2 + $0xd0] sm:$0xf]  ;;  %v1136_v6 = vld [vmem:[#allocation2 + $0xd4] sm:$0x1] }
 0x148   :  { %v6922_v27 = vcombine.low %v1343_v35, %v1357_v24  ;;  %v854_v28 = vshrl.u32 %v7383_v20, 16  ;;  %v857_v30 = vshll.u32 %v7383_v20, 16  ;;  %v1366_v39 = vrot.slane %v1365_v3, 4  ;;  %7712 = vmatprep.subr.bf16.mxu0 %v8368_v22  ;;  %v1166_v41 = vld [vmem:[#allocation2 + $0x10c] sm:$0x1] }
 0x149   :  { %v1379_v60 = vor.u32 %v1378_v55, %v1375_v18  ;;  %v334_v31 = vmax.f32 %v286_v21, 0.0  ;;  %v332_v33 = vmax.f32 %v278_v26, 0.0  ;;  %v335_v53 = vmax.f32 %v289_v50, 0.0  ;;  %v1151_v18 = vld [vmem:[#allocation2 + $0xf8] sm:$0xf] }
 0x14a   :  { %7678 = vmatprep.mubr.msk.bf16.mxu0 %vm1802_vm10, %v6922_v27  ;;  %v856_v34 = vrot.slane %v854_v28, 7  ;;  %v1371_v36 = vsel %vm8886_vm9, %v1366_v39, %v1370_v16  ;;  %v1401_v40 = vshrl.u32 %v1208_v37, 16  ;;  %v1404_v57 = vshll.u32 %v1208_v37, 16  ;;  %v1154_v3 = vld [vmem:[#allocation2 + $0xfc] sm:$0x1] }
 0x14b   :  { %v1380_v45 = vrot.slane %v1379_v60, 4  ;;  %v7388_v46 = vpack.c.bf16 %v334_v31, %v334_v31  ;;  %v7386_v2 = vpack.c.bf16 %v332_v33, %v332_v33  ;;  %v7389_v4 = vpack.c.bf16 %v335_v53, %v335_v53  ;;  %7713 = vmatpush3.bf16.msra.mxu0 %v8368_v22  ;;  %v9141_v22 = vld [vmem:[%s10642_s2] ss:$0 sm:$0xff]  ;;  %v1210_v28 = vld [vmem:[#allocation2 + $0x68] sm:$0xf] }
 0x14c   :  { %v859_v59 = vor.u32 %v857_v30, %v856_v34  ;;  %v860_v0 = vrot.slane %v856_v34, 4  ;;  %v1403_v1 = vrot.slane %v1401_v40, 4  ;;  %v1406_v23 = vrot.slane %v1404_v57, 5  ;;  %v1249_v31 = vld [vmem:[#allocation2 + $0x64] sm:$0x1] }
 0x14d   :  { %v1385_v32 = vsel %vm8886_vm9, %v1380_v45, %v1384_v29  ;;  %v894_v7 = vshrl.u32 %v7388_v46, 16  ;;  %v897_v35 = vshll.u32 %v7388_v46, 16  ;;  %v878_v52 = vshrl.u32 %v7386_v2, 16  ;;  %v1169_v53 = vld [vmem:[#allocation2 + $0x110] sm:$0xf] }
 0x14e   :  { %v1134_v12 = vsel %vm8708_vm6, %v859_v59, %v1133_v25  ;;  %v1137_v13 = vsel %vm8680_vm3, %v860_v0, %v1136_v6  ;;  %v6923_v38 = vcombine.low %v1371_v36, %v1385_v32  ;;  %v881_v58 = vshll.u32 %v7386_v2, 16  ;;  %v1172_v40 = vld [vmem:[#allocation2 + $0x114] sm:$0x1]  ;;  %v1250_v2 = vld [vmem:[#allocation2 + $0x6c] sm:$0x1] }
 0x14f   :  { %1135 = vst [vmem:[#allocation2 + $0xd0] sm:$0xf] %v1134_v12  ;;  %1138 = vst [vmem:[#allocation2 + $0xd4] sm:$0x1] %v1137_v13  ;;  %v896_v15 = vrot.slane %v894_v7, 7  ;;  %v880_v16 = vrot.slane %v878_v52, 7  ;;  %v281_v24 = vadd.f32 %v9141_v22, %v9022_v14  ;;  %v1407_v39 = vor.u32 %v1406_v23, %v1403_v1 }
 0x150   :  { %v902_v54 = vshrl.u32 %v7389_v4, 16  ;;  %v905_v20 = vshll.u32 %v7389_v4, 16  ;;  %7679 = vmatmul.mubr.msk.bf16.gmra.mrb[36].mxu0 %vm1802_vm10, %v6923_v38  ;;  %v1410_v21 = vshll.u32 %v1248_v44, 16  ;;  %v1415_v55 = vshrl.u32 %v1209_v8, 16  ;;  %v1260_v10 = vld [vmem:[#allocation2 + $0xcc] sm:$0x1] }
 0x151   :  { %v899_v26 = vor.u32 %v897_v35, %v896_v15  ;;  %v900_v50 = vrot.slane %v896_v15, 4  ;;  %v883_v37 = vor.u32 %v881_v58, %v880_v16  ;;  %v884_v27 = vrot.slane %v880_v16, 4  ;;  %v8357_v15 = vld [vmem:[#allocation2 + $0xd8] ss:$8 sps:$4 sm:$0xff]  }
 0x152   :  { %v904_v30 = vrot.slane %v902_v54, 7  ;;  %v1412_v60 = vrot.slane %v1410_v21, 5  ;;  %v333_v29 = vmax.f32 %v281_v24, 0.0  ;;  %v1408_v45 = vrot.slane %v1407_v39, 4  ;;  %v1157_v16 = vld [vmem:[#allocation2 + $0x100] sm:$0xf] }
 0x153   :  { %v1164_v33 = vsel %vm8708_vm6, %v899_v26, %v1163_v9  ;;  %v1167_v34 = vsel %vm8680_vm3, %v900_v50, %v1166_v41  ;;  %v1152_v14 = vsel %vm8708_vm6, %v883_v37, %v1151_v18  ;;  %v1155_v36 = vsel %vm8680_vm3, %v884_v27, %v1154_v3  ;;  %v1160_v18 = vld [vmem:[#allocation2 + $0x104] sm:$0x1] }
 0x154   :  { %1165 = vst [vmem:[#allocation2 + $0x108] sm:$0xf] %v1164_v33  ;;  %1168 = vst [vmem:[#allocation2 + $0x10c] sm:$0x1] %v1167_v34  ;;  %v907_v25 = vor.u32 %v905_v20, %v904_v30  ;;  %v908_v6 = vrot.slane %v904_v30, 4  ;;  %v7387_v46 = vpack.c.bf16 %v333_v29, %v333_v29  ;;  %v1417_v57 = vrot.slane %v1415_v55, 4 }
 0x155   :  { %1153 = vst [vmem:[#allocation2 + $0xf8] sm:$0xf] %v1152_v14  ;;  %1156 = vst [vmem:[#allocation2 + $0xfc] sm:$0x1] %v1155_v36  ;;  %v1418_v59 = vshll.u32 %v1209_v8, 16  ;;  %v1424_v0 = vshll.u32 %v1249_v31, 16  ;;  %v1413_v32 = vsel %vm8886_vm9, %v1408_v45, %v1412_v60  ;;  %v302_v20 = vadd.f32 %v9141_v22, %v9037_v51 }
 0x156   :  { %v1429_v4 = vshrl.u32 %v1210_v28, 16  ;;  %v1170_v44 = vsel %vm8708_vm6, %v907_v25, %v1169_v53  ;;  %v1173_v1 = vsel %vm8680_vm3, %v908_v6, %v1172_v40  ;;  %v886_v7 = vshrl.u32 %v7387_v46, 16  ;;  %v8356_v35 = vld [vmem:[#allocation2 + $0xc8] ss:$8 sps:$4 sm:$0xff]   ;;  %v1251_v55 = vld [vmem:[#allocation2 + $0x74] sm:$0x1] }
 0x157   :  { %1171 = vst [vmem:[#allocation2 + $0x110] sm:$0xf] %v1170_v44  ;;  %1174 = vst [vmem:[#allocation2 + $0x114] sm:$0x1] %v1173_v1  ;;  %v6924_v52 = vcombine.low %v1399_v62, %v1413_v32  ;;  %v889_v8 = vshll.u32 %v7387_v46, 16  ;;  %v1420_v12 = vrot.slane %v1418_v59, 5  ;;  %7814 = vmatprep.mubr.msk.bf16.mxu1 %vm1802_vm10, %v8356_v35  ;;  %v294_v42 = vadd.f32 %v9141_v22, %v9051_v5 }
 0x158   :  { %v1426_v13 = vrot.slane %v1424_v0, 5  ;;  %v888_v38 = vrot.slane %v886_v7, 7  ;;  %v1431_v9 = vrot.slane %v1429_v4, 4  ;;  %v1432_v41 = vshll.u32 %v1210_v28, 16  ;;  %v1211_v62 = vld [vmem:[#allocation2 + $0x70] sm:$0xf]  ;;  %7815 = vmatmul.mubr.msk.bf16.gmra.mrb[8].mxu1 %vm1802_vm10, %v8357_v15 }
 0x159   :  { %v1438_v58 = vshll.u32 %v1250_v2, 16  ;;  %7682 = vmatprep.mubr.msk.bf16.mxu0 %vm1802_vm10, %v6924_v52  ;;  %v1421_v54 = vor.u32 %v1420_v12, %v1417_v57  ;;  %v305_v43 = vadd.f32 %v9141_v22, %v9054_v11  ;;  %v338_v50 = vmax.f32 %v302_v20, 0.0  ;;  %v9179_v6 = vld [vmem:[#allocation2 + $0x78] sm:$0xf]  ;;  %v1187_v46 = vld [vmem:[#allocation2 + $0x128] sm:$0xf] }
 0x15a   :  { %v891_v3 = vor.u32 %v889_v8, %v888_v38  ;;  %v892_v23 = vrot.slane %v888_v38, 4  ;;  %v1434_v21 = vrot.slane %v1432_v41, 5  ;;  %v336_v37 = vmax.f32 %v294_v42, 0.0  ;;  %v1190_v2 = vld [vmem:[#allocation2 + $0x12c] sm:$0x1] }
 0x15b   :  { %v1440_v24 = vrot.slane %v1438_v58, 5  ;;  %v1422_v26 = vrot.slane %v1421_v54, 4  ;;  %v339_v27 = vmax.f32 %v305_v43, 0.0  ;;  %v1443_v11 = vshrl.u32 %v1211_v62, 16  ;;  %v1175_v57 = vld [vmem:[#allocation2 + $0x118] sm:$0xf] }
 0x15c   :  { %v1158_v51 = vsel %vm8708_vm6, %v891_v3, %v1157_v16  ;;  %v1161_v5 = vsel %vm8680_vm3, %v892_v23, %v1160_v18  ;;  %v1435_v28 = vor.u32 %v1434_v21, %v1431_v9  ;;  %v7392_v39 = vpack.c.bf16 %v338_v50, %v338_v50  ;;  %v1178_v59 = vld [vmem:[#allocation2 + $0x11c] sm:$0x1]  ;;  %v1193_v35 = vld [vmem:[#allocation2 + $0x130] sm:$0xf]  ;;  %v1196_v12 = vld [vmem:[#allocation2 + $0x134] sm:$0x1] }
 0x15d   :  { %1159 = vst [vmem:[#allocation2 + $0x100] sm:$0xf] %v1158_v51  ;;  %1162 = vst [vmem:[#allocation2 + $0x104] sm:$0x1] %v1161_v5  ;;  %v1427_v30 = vsel %vm8886_vm9, %v1422_v26, %v1426_v13  ;;  %v7390_v60 = vpack.c.bf16 %v336_v37, %v336_v37  ;;  %v7393_v29 = vpack.c.bf16 %v339_v27, %v339_v27  ;;  %v1445_v33 = vrot.slane %v1443_v11, 4  ;;  %v9210_v11 = vld [vmem:[%s10643_s3 + $0x40] sm:$0xff]  }
 0x15e   :  { %v1436_v31 = vrot.slane %v1435_v28, 4  ;;  %v1446_v34 = vshll.u32 %v1211_v62, 16  ;;  %v1452_v14 = vshll.u32 %v1251_v55, 16  ;;  %v926_v36 = vshrl.u32 %v7392_v39, 16  ;;  %v1252_v18 = vld [vmem:[#allocation2 + $0x7c] sm:$0x1]  ;;  %7746 = vmatprep.subr.bf16.mxu0 %v9210_v11 }
 0x15f   :  { %v929_v53 = vshll.u32 %v7392_v39, 16  ;;  %v910_v40 = vshrl.u32 %v7390_v60, 16  ;;  %v913_v25 = vshll.u32 %v7390_v60, 16  ;;  %v934_v0 = vshrl.u32 %v7393_v29, 16  ;;  %v9188_v54 = vld [vmem:[#allocation2 + $0x80] sm:$0xf] }
 0x160   :  { %v1441_v45 = vsel %vm8886_vm9, %v1436_v31, %v1440_v24  ;;  %v937_v4 = vshll.u32 %v7393_v29, 16  ;;  %v1448_v44 = vrot.slane %v1446_v34, 5  ;;  %v928_v32 = vrot.slane %v926_v36, 7  ;;  %v9198_v55 = vld [vmem:[#allocation2 + $0x88] sm:$0xf] }
 0x161   :  { %v6925_v1 = vcombine.low %v1427_v30, %v1441_v45  ;;  %v912_v7 = vrot.slane %v910_v40, 7  ;;  %v9183_v52 = vrot.slane %v1452_v14, 5  ;;  %v936_v8 = vrot.slane %v934_v0, 7  ;;  %v1253_v26 = vld [vmem:[#allocation2 + $0x84] sm:$0x1] }
 0x162   :  { %v1449_v13 = vor.u32 %v1448_v44, %v1445_v33  ;;  %v1457_v38 = vshrl.u32 %v9179_v6, 16  ;;  %v1460_v9 = vshll.u32 %v9179_v6, 16  ;;  %v931_v41 = vor.u32 %v929_v53, %v928_v32  ;;  %v8360_v28 = vld [vmem:[#allocation2 + $0x108] ss:$8 sps:$4 sm:$0xff]   ;;  %v1254_v60 = vld [vmem:[#allocation2 + $0x8c] sm:$0x1] }
 0x163   :  { %7683 = vmatmul.mubr.msk.bf16.gmra.mrb[40].mxu0 %vm1802_vm10, %v6925_v1  ;;  %v932_v58 = vrot.slane %v928_v32, 4  ;;  %v915_v15 = vor.u32 %v913_v25, %v912_v7  ;;  %v916_v16 = vrot.slane %v912_v7, 4  ;;  %v939_v20 = vor.u32 %v937_v4, %v936_v8  ;;  %v9219_v53 = vld [vmem:[#allocation2 + $0xa8] sm:$0xf]  ;;  %v1256_v45 = vld [vmem:[#allocation2 + $0xac] sm:$0x1] }
 0x164   :  { %v940_v42 = vrot.slane %v936_v8, 4  ;;  %v1450_v43 = vrot.slane %v1449_v13, 4  ;;  %v1459_v62 = vrot.slane %v1457_v38, 4  ;;  %v1188_v3 = vsel %vm8708_vm6, %v931_v41, %v1187_v46  ;;  %v8359_v50 = vld [vmem:[#allocation2 + $0xf8] ss:$8 sps:$4 sm:$0xff]  }
 0x165   :  { %v1191_v23 = vsel %vm8680_vm3, %v932_v58, %v1190_v2  ;;  %v1176_v21 = vsel %vm8708_vm6, %v915_v15, %v1175_v57  ;;  %v1179_v24 = vsel %vm8680_vm3, %v916_v16, %v1178_v59  ;;  %1189 = vst [vmem:[#allocation2 + $0x128] sm:$0xf] %v1188_v3  ;;  %v1194_v37 = vsel %vm8708_vm6, %v939_v20, %v1193_v35  ;;  %v1217_v8 = vld [vmem:[#allocation2 + $0xb0] sm:$0xf]  ;;  %v9227_v58 = vld [vmem:[#allocation2 + $0xb8] sm:$0xf] }
 0x166   :  { %1192 = vst [vmem:[#allocation2 + $0x12c] sm:$0x1] %v1191_v23  ;;  %1177 = vst [vmem:[#allocation2 + $0x118] sm:$0xf] %v1176_v21  ;;  %v1197_v27 = vsel %vm8680_vm3, %v940_v42, %v1196_v12  ;;  %v1455_v51 = vsel %vm8886_vm9, %v1450_v43, %v9183_v52  ;;  %v1462_v5 = vrot.slane %v1460_v9, 5  ;;  %v1466_v30 = vshll.u32 %v1252_v18, 16  ;;  %7818 = vmatprep.mubr.msk.bf16.mxu1 %vm1802_vm10, %v8359_v50 }
 0x167   :  { %1180 = vst [vmem:[#allocation2 + $0x11c] sm:$0x1] %v1179_v24  ;;  %1195 = vst [vmem:[#allocation2 + $0x130] sm:$0xf] %v1194_v37  ;;  %v297_v39 = vadd.f32 %v9141_v22, %v9064_v19  ;;  %v1471_v29 = vshrl.u32 %v9188_v54, 16  ;;  %v1474_v31 = vshll.u32 %v9188_v54, 16  ;;  %7819 = vmatmul.mubr.msk.bf16.gmra.mrb[12].mxu1 %vm1802_vm10, %v8360_v28 }
 0x168   :  { %1198 = vst [vmem:[#allocation2 + $0x134] sm:$0x1] %v1197_v27  ;;  %v1463_v33 = vor.u32 %v1462_v5, %v1459_v62  ;;  %v1480_v34 = vshll.u32 %v1253_v26, 16  ;;  %v1485_v14 = vshrl.u32 %v9198_v55, 16  ;;  %v1488_v36 = vshll.u32 %v9198_v55, 16 }
 0x169   :  { %v1468_v19 = vrot.slane %v1466_v30, 5  ;;  %v337_v22 = vmax.f32 %v297_v39, 0.0  ;;  %v1473_v40 = vrot.slane %v1471_v29, 4  ;;  %v1476_v25 = vrot.slane %v1474_v31, 5  ;;  %v1257_v12 = vld [vmem:[#allocation2 + $0xb4] sm:$0x1] }
 0x16a   :  { %v1464_v46 = vrot.slane %v1463_v33, 4  ;;  %v1482_v2 = vrot.slane %v1480_v34, 5  ;;  %v1487_v57 = vrot.slane %v1485_v14, 4  ;;  %v1490_v59 = vrot.slane %v1488_v36, 5  ;;  %v1181_v15 = vld [vmem:[#allocation2 + $0x120] sm:$0xf] }
 0x16b   :  { %v7391_v0 = vpack.c.bf16 %v337_v22, %v337_v22  ;;  %v1477_v4 = vor.u32 %v1476_v25, %v1473_v40  ;;  %v1494_v44 = vshll.u32 %v1254_v60, 16  ;;  %v1513_v1 = vshrl.u32 %v9219_v53, 16  ;;  %v1184_v21 = vld [vmem:[#allocation2 + $0x124] sm:$0x1]  ;;  %v1258_v50 = vld [vmem:[#allocation2 + $0xbc] sm:$0x1] }
 0x16c   :  { %v1469_v32 = vsel %vm8886_vm9, %v1464_v46, %v1468_v19  ;;  %v1491_v7 = vor.u32 %v1490_v59, %v1487_v57  ;;  %v1516_v35 = vshll.u32 %v9219_v53, 16  ;;  %v1522_v52 = vshll.u32 %v1256_v45, 16  ;;  %v1219_v39 = vld [vmem:[#allocation2 + $0xc0] sm:$0xf]  ;;  %v9241_v22 = vld [vmem:[#allocation2 + $0xc8] sm:$0xf] }
 0x16d   :  { %v6926_v13 = vcombine.low %v1455_v51, %v1469_v32  ;;  %v918_v38 = vshrl.u32 %v7391_v0, 16  ;;  %v921_v9 = vshll.u32 %v7391_v0, 16  ;;  %v1478_v41 = vrot.slane %v1477_v4, 4  ;;  %v1259_v40 = vld [vmem:[#allocation2 + $0xc4] sm:$0x1] }
 0x16e   :  { %v1492_v16 = vrot.slane %v1491_v7, 4  ;;  %v1496_v18 = vrot.slane %v1494_v44, 5  ;;  %v1515_v20 = vrot.slane %v1513_v1, 4  ;;  %v1518_v42 = vrot.slane %v1516_v35, 5  ;;  %v1221_v4 = vld [vmem:[#allocation2 + $0xd0] sm:$0xf] }
 0x16f   :  { %7686 = vmatprep.mubr.msk.bf16.mxu0 %vm1802_vm10, %v6926_v13  ;;  %v920_v43 = vrot.slane %v918_v38, 7  ;;  %v1483_v62 = vsel %vm8886_vm9, %v1478_v41, %v1482_v2  ;;  %v1524_v3 = vrot.slane %v1522_v52, 5  ;;  %v1527_v23 = vshrl.u32 %v1217_v8, 16  ;;  %v1222_v35 = vld [vmem:[#allocation2 + $0xd8] sm:$0xf] }
 0x170   :  { %v1497_v24 = vsel %vm8886_vm9, %v1492_v16, %v1496_v18  ;;  %v1519_v26 = vor.u32 %v1518_v42, %v1515_v20  ;;  %v1530_v37 = vshll.u32 %v1217_v8, 16  ;;  %v1536_v27 = vshll.u32 %v1257_v12, 16  ;;  %v1261_v38 = vld [vmem:[#allocation2 + $0xd4] sm:$0x1]  ;;  %v1262_v20 = vld [vmem:[#allocation2 + $0xdc] sm:$0x1] }
 0x171   :  { %v923_v51 = vor.u32 %v921_v9, %v920_v43  ;;  %v924_v5 = vrot.slane %v920_v43, 4  ;;  %v6927_v28 = vcombine.low %v1483_v62, %v1497_v24  ;;  %v1529_v30 = vrot.slane %v1527_v23, 4  ;;  %v1224_v23 = vld [vmem:[#allocation2 + $0xf8] sm:$0xf]  ;;  %v1265_v61 = vld [vmem:[#allocation2 + $0x104] sm:$0x1] }
 0x172   :  { %v1520_v60 = vrot.slane %v1519_v26, 4  ;;  %v1532_v29 = vrot.slane %v1530_v37, 5  ;;  %v1538_v31 = vrot.slane %v1536_v27, 5  ;;  %v1541_v33 = vshrl.u32 %v9227_v58, 16 }
 0x173   :  { %v1182_v34 = vsel %vm8708_vm6, %v923_v51, %v1181_v15  ;;  %v1185_v14 = vsel %vm8680_vm3, %v924_v5, %v1184_v21  ;;  %7687 = vmatmul.mubr.msk.bf16.gmra.mrb[44].mxu0 %vm1802_vm10, %v6927_v28  ;;  %v1544_v36 = vshll.u32 %v9227_v58, 16  ;;  %v1550_v19 = vshll.u32 %v1258_v50, 16 }
 0x174   :  { %1183 = vst [vmem:[#allocation2 + $0x120] sm:$0xf] %v1182_v34  ;;  %1186 = vst [vmem:[#allocation2 + $0x124] sm:$0x1] %v1185_v14  ;;  %v1525_v25 = vsel %vm8886_vm9, %v1520_v60, %v1524_v3  ;;  %v1533_v45 = vor.u32 %v1532_v29, %v1529_v30  ;;  %v1543_v46 = vrot.slane %v1541_v33, 4  ;;  %v1555_v2 = vshrl.u32 %v1219_v39, 16 }
 0x175   :  { %v6928_v56 = vcombine.low %v1511_v63, %v1525_v25  ;;  %v1546_v57 = vrot.slane %v1544_v36, 5  ;;  %v1552_v59 = vrot.slane %v1550_v19, 5  ;;  %v1558_v0 = vshll.u32 %v1219_v39, 16  ;;  %v8364_v30 = vld [vmem:[#allocation2 + $0x128] ss:$8 sps:$4 sm:$0xff]  }
 0x176   :  { %v1534_v44 = vrot.slane %v1533_v45, 4  ;;  %v1557_v1 = vrot.slane %v1555_v2, 4  ;;  %v1564_v32 = vshll.u32 %v1259_v40, 16  ;;  %v1569_v7 = vshrl.u32 %v9241_v22, 16  ;;  %v1263_v33 = vld [vmem:[#allocation2 + $0xf4] sm:$0x1] }
 0x177   :  { %7690 = vmatprep.mubr.msk.bf16.mxu0 %vm1802_vm10, %v6928_v56  ;;  %v1547_v52 = vor.u32 %v1546_v57, %v1543_v46  ;;  %v1560_v8 = vrot.slane %v1558_v0, 5  ;;  %v1572_v12 = vshll.u32 %v9241_v22, 16  ;;  %v1578_v13 = vshll.u32 %v1260_v10, 16  ;;  %v1264_v14 = vld [vmem:[#allocation2 + $0xfc] sm:$0x1] }
 0x178   :  { %v1539_v48 = vsel %vm8886_vm9, %v1534_v44, %v1538_v31  ;;  %v1566_v49 = vrot.slane %v1564_v32, 5  ;;  %v1571_v63 = vrot.slane %v1569_v7, 4  ;;  %v1583_v9 = vshrl.u32 %v1221_v4, 16  ;;  %v9263_v19 = vld [vmem:[#allocation2 + $0xf0] sm:$0xf] }
 0x179   :  { %v1548_v41 = vrot.slane %v1547_v52, 4  ;;  %v1561_v15 = vor.u32 %v1560_v8, %v1557_v1  ;;  %v1574_v16 = vrot.slane %v1572_v12, 5  ;;  %v1580_v18 = vrot.slane %v1578_v13, 5  ;;  %v1225_v56 = vld [vmem:[#allocation2 + $0x100] sm:$0xf] }
 0x17a   :  { %v1585_v42 = vrot.slane %v1583_v9, 4  ;;  %v1586_v43 = vshll.u32 %v1221_v4, 16  ;;  %v1592_v62 = vshll.u32 %v1261_v38, 16  ;;  %v1597_v3 = vshrl.u32 %v1222_v35, 16  ;;  %v1226_v52 = vld [vmem:[#allocation2 + $0x108] sm:$0xf] }
 0x17b   :  { %v1553_v21 = vsel %vm8886_vm9, %v1548_v41, %v1552_v59  ;;  %v1562_v24 = vrot.slane %v1561_v15, 4  ;;  %v1575_v26 = vor.u32 %v1574_v16, %v1571_v63  ;;  %v1600_v50 = vshll.u32 %v1222_v35, 16  ;;  %v8362_v37 = vld [vmem:[#allocation2 + $0x118] ss:$8 sps:$4 sm:$0xff]   ;;  %v3258_v63 = vld [vmem:[#allocation2 + $0x8] sm:$0xf] }
 0x17c   :  { %v6929_v27 = vcombine.low %v1539_v48, %v1553_v21  ;;  %v1588_v51 = vrot.slane %v1586_v43, 5  ;;  %v1594_v5 = vrot.slane %v1592_v62, 5  ;;  %v1599_v28 = vrot.slane %v1597_v3, 4  ;;  %7822 = vmatprep.mubr.msk.bf16.mxu1 %vm1802_vm10, %v8362_v37  ;;  %v1266_v48 = vld [vmem:[#allocation2 + $0x10c] sm:$0x1] }
 0x17d   :  { %v1567_v39 = vsel %vm8886_vm9, %v1562_v24, %v1566_v49  ;;  %v1576_v60 = vrot.slane %v1575_v26, 4  ;;  %v1602_v29 = vrot.slane %v1600_v50, 5  ;;  %v1606_v31 = vshll.u32 %v1262_v20, 16  ;;  %7823 = vmatmul.mubr.msk.bf16.gmra.mrb[16].mxu1 %vm1802_vm10, %v8364_v30  ;;  %v3260_v21 = vld [vmem:[#allocation2 + $0x10] sm:$0xf] }
 0x17e   :  { %7691 = vmatmul.mubr.msk.bf16.gmra.mrb[48].mxu0 %vm1802_vm10, %v6929_v27  ;;  %v1589_v34 = vor.u32 %v1588_v51, %v1585_v42  ;;  %v1613_v36 = vrot.slane %v1611_v17, 4  ;;  %v1614_v40 = vshll.u32 %v9263_v19, 16  ;;  %v1620_v25 = vshll.u32 %v1263_v33, 16  ;;  %v3259_v27 = vld [vmem:[#allocation2 + $0xc] sm:$0x1] }
 0x17f   :  { %v1581_v45 = vsel %vm8886_vm9, %v1576_v60, %v1580_v18  ;;  %v1603_v46 = vor.u32 %v1602_v29, %v1599_v28  ;;  %v1608_v10 = vrot.slane %v1606_v31, 5  ;;  %v1625_v2 = vshrl.u32 %v1224_v23, 16 }
 0x180   :  { %v6930_v57 = vcombine.low %v1567_v39, %v1581_v45  ;;  %v1590_v59 = vrot.slane %v1589_v34, 4  ;;  %v1616_v0 = vrot.slane %v1614_v40, 5  ;;  %v1622_v4 = vrot.slane %v1620_v25, 5  ;;  %v3261_v39 = vld [vmem:[#allocation2 + $0x14] sm:$0x1] }
 0x181   :  { %v1604_v17 = vrot.slane %v1603_v46, 4  ;;  %v1627_v44 = vrot.slane %v1625_v2, 4  ;;  %v1628_v1 = vshll.u32 %v1224_v23, 16  ;;  %v1634_v32 = vshll.u32 %v1264_v14, 16  ;;  %v9279_v14 = vld [vmem:[#allocation2 + $0x110] sm:$0xf] }
 0x182   :  { %7694 = vmatprep.mubr.msk.bf16.mxu0 %vm1802_vm10, %v6930_v57  ;;  %v1595_v7 = vsel %vm8886_vm9, %v1590_v59, %v1594_v5  ;;  %v1617_v35 = vor.u32 %v1616_v0, %v1613_v36  ;;  %v1639_v8 = vshrl.u32 %v1225_v56, 16  ;;  %v1642_v12 = vshll.u32 %v1225_v56, 16  ;;  %v9283_v46 = vld [vmem:[#allocation2 + $0x118] sm:$0xf] }
 0x183   :  { %v1609_v13 = vsel %vm8886_vm9, %v1604_v17, %v1608_v10  ;;  %v1630_v38 = vrot.slane %v1628_v1, 5  ;;  %v1648_v49 = vshll.u32 %v1265_v61, 16  ;;  %v1636_v20 = vrot.slane %v1634_v32, 5  ;;  %v1267_v10 = vld [vmem:[#allocation2 + $0x114] sm:$0x1] }
 0x184   :  { %v6931_v9 = vcombine.low %v1595_v7, %v1609_v13  ;;  %v1618_v41 = vrot.slane %v1617_v35, 4  ;;  %v1641_v15 = vrot.slane %v1639_v8, 4  ;;  %v1644_v16 = vrot.slane %v1642_v12, 5  ;;  %v9291_v35 = vld [vmem:[#allocation2 + $0x120] sm:$0xf] }
 0x185   :  { %v1631_v18 = vor.u32 %v1630_v38, %v1627_v44  ;;  %v1653_v42 = vshrl.u32 %v1226_v52, 16  ;;  %v1656_v43 = vshll.u32 %v1226_v52, 16  ;;  %v1662_v23 = vshll.u32 %v1266_v48, 16  ;;  %v9293_v38 = vld [vmem:[#allocation2 + $0x128] sm:$0xf] }
 0x186   :  { %7695 = vmatmul.mubr.msk.bf16.gmra.mrb[52].mxu0 %vm1802_vm10, %v6931_v9  ;;  %v1623_v62 = vsel %vm8886_vm9, %v1618_v41, %v1622_v4  ;;  %v1645_v3 = vor.u32 %v1644_v16, %v1641_v15  ;;  %v3323_v24 = vshrl.u32 %v3258_v63, 16  ;;  %v3326_v51 = vshll.u32 %v3258_v63, 16  ;;  %v1268_v4 = vld [vmem:[#allocation2 + $0x11c] sm:$0x1] }
 0x187   :  { %v1632_v26 = vrot.slane %v1631_v18, 4  ;;  %v1655_v50 = vrot.slane %v1653_v42, 4  ;;  %v1658_v37 = vrot.slane %v1656_v43, 5  ;;  %v1650_v28 = vrot.slane %v1648_v49, 5  ;;  %v1269_v18 = vld [vmem:[#allocation2 + $0x124] sm:$0x1] }
 0x188   :  { %v1646_v5 = vrot.slane %v1645_v3, 4  ;;  %v1664_v30 = vrot.slane %v1662_v23, 5  ;;  %v3325_v60 = vrot.slane %v3323_v24, 4  ;;  %v3328_v33 = vrot.slane %v3326_v51, 5 }
 0x189   :  { %v1637_v29 = vsel %vm8886_vm9, %v1632_v26, %v1636_v20  ;;  %v1659_v31 = vor.u32 %v1658_v37, %v1655_v50  ;;  %v3337_v34 = vshrl.u32 %v3260_v21, 16  ;;  %v3332_v25 = vshll.u32 %v3259_v27, 16  ;;  %v3262_v37 = vld [vmem:[#allocation2 + $0x18] sm:$0xf] }
 0x18a   :  { %v6932_v36 = vcombine.low %v1623_v62, %v1637_v29  ;;  %v1651_v40 = vsel %vm8886_vm9, %v1646_v5, %v1650_v28  ;;  %v3340_v45 = vshll.u32 %v3260_v21, 16  ;;  %v3329_v56 = vor.u32 %v3328_v33, %v3325_v60  ;;  %v1270_v62 = vld [vmem:[#allocation2 + $0x12c] sm:$0x1] }
 0x18b   :  { %v1660_v2 = vrot.slane %v1659_v31, 4  ;;  %v3339_v57 = vrot.slane %v3337_v34, 4  ;;  %v3346_v59 = vshll.u32 %v3261_v39, 16  ;;  %v1667_v61 = vshrl.u32 %v9279_v14, 16  ;;  %v3264_v39 = vld [vmem:[#allocation2 + $0x20] sm:$0xf] }
 0x18c   :  { %7698 = vmatprep.mubr.msk.bf16.mxu0 %vm1802_vm10, %v6932_v36  ;;  %v3342_v0 = vrot.slane %v3340_v45, 5  ;;  %v1670_v17 = vshll.u32 %v9279_v14, 16  ;;  %v3330_v1 = vrot.slane %v3329_v56, 4  ;;  %v1676_v32 = vshll.u32 %v1267_v10, 16 }
 0x18d   :  { %v1665_v44 = vsel %vm8886_vm9, %v1660_v2, %v1664_v30  ;;  %v1681_v7 = vshrl.u32 %v9283_v46, 16  ;;  %v1669_v12 = vrot.slane %v1667_v61, 4  ;;  %v3334_v48 = vrot.slane %v3332_v25, 5  ;;  %v9304_v30 = vld [vmem:[#allocation2 + $0x1c] sm:$0x1] }
 0x18e   :  { %v6933_v52 = vcombine.low %v1651_v40, %v1665_v44  ;;  %v3343_v8 = vor.u32 %v3342_v0, %v3339_v57  ;;  %v1672_v13 = vrot.slane %v1670_v17, 5  ;;  %v3348_v49 = vrot.slane %v3346_v59, 5  ;;  %v9310_v2 = vld [vmem:[#allocation2 + $0x24] sm:$0x1]  ;;  %v3266_v17 = vld [vmem:[#allocation2 + $0x28] sm:$0xf] }
 0x18f   :  { %v1683_v63 = vrot.slane %v1681_v7, 4  ;;  %v1684_v9 = vshll.u32 %v9283_v46, 16  ;;  %v1690_v16 = vshll.u32 %v1268_v4, 16  ;;  %v1695_v20 = vshrl.u32 %v9291_v35, 16 }
 0x190   :  { %7699 = vmatmul.mubr.msk.bf16.gmra.mrb[56].mxu0 %vm1802_vm10, %v6933_v52  ;;  %v3344_v41 = vrot.slane %v3343_v8, 4  ;;  %v1673_v15 = vor.u32 %v1672_v13, %v1669_v12  ;;  %v3335_v42 = vsel %vm8886_vm9, %v3330_v1, %v3334_v48  ;;  %v1698_v3 = vshll.u32 %v9291_v35, 16  ;;  %v9315_v52 = vld [vmem:[#allocation2 + $0x2c] sm:$0x1] }
 0x191   :  { %v1686_v43 = vrot.slane %v1684_v9, 5  ;;  %v1709_v23 = vshrl.u32 %v9293_v38, 16  ;;  %v1678_v26 = vrot.slane %v1676_v32, 5  ;;  %v1697_v50 = vrot.slane %v1695_v20, 4 }
 0x192   :  { %v3349_v21 = vsel %vm8886_vm9, %v3344_v41, %v3348_v49  ;;  %v1674_v24 = vrot.slane %v1673_v15, 4  ;;  %v1700_v5 = vrot.slane %v1698_v3, 5  ;;  %v1704_v28 = vshll.u32 %v1269_v18, 16  ;;  %v3268_v49 = vld [vmem:[#allocation2 + $0x30] sm:$0xf] }
 0x193   :  { %v7096_v27 = vcombine.low %v3335_v42, %v3349_v21  ;;  %v1687_v51 = vor.u32 %v1686_v43, %v1683_v63  ;;  %v1692_v60 = vrot.slane %v1690_v16, 5  ;;  %v1711_v29 = vrot.slane %v1709_v23, 4  ;;  %v9321_v42 = vld [vmem:[#allocation2 + $0x34] sm:$0x1] }
 0x194   :  { %v1712_v31 = vshll.u32 %v9293_v38, 16  ;;  %v1718_v33 = vshll.u32 %v1270_v62, 16  ;;  %v1701_v36 = vor.u32 %v1700_v5, %v1697_v50  ;;  %v3351_v40 = vshrl.u32 %v3262_v37, 16 }
 0x195   :  { %7834 = vmatprep.mubr.msk.bf16.mxu1 %vm1802_vm10, %v7096_v27  ;;  %v1688_v34 = vrot.slane %v1687_v51, 4  ;;  %v3354_v25 = vshll.u32 %v3262_v37, 16  ;;  %v1679_v45 = vsel %vm8886_vm9, %v1674_v24, %v1678_v26  ;;  %v3360_v56 = vshll.u32 %v9304_v30, 16  ;;  %v3270_v24 = vld [vmem:[#allocation2 + $0x38] sm:$0xf] }
 0x196   :  { %v1714_v10 = vrot.slane %v1712_v31, 5  ;;  %v3365_v57 = vshrl.u32 %v3264_v39, 16  ;;  %v1702_v0 = vrot.slane %v1701_v36, 4  ;;  %v3353_v4 = vrot.slane %v3351_v40, 4  ;;  %v8431_v27 = vld [vmem:[#allocation2] sm:$0xf] }
 0x197   :  { %v1693_v59 = vsel %vm8886_vm9, %v1688_v34, %v1692_v60  ;;  %v3356_v61 = vrot.slane %v3354_v25, 5  ;;  %v1706_v1 = vrot.slane %v1704_v28, 5  ;;  %v1720_v7 = vrot.slane %v1718_v33, 5  ;;  %v8432_v51 = vld [vmem:[#allocation2 + $0x8] sm:$0xf] }
 0x198   :  { %v6934_v44 = vcombine.low %v1679_v45, %v1693_v59  ;;  %v1715_v32 = vor.u32 %v1714_v10, %v1711_v29  ;;  %v3367_v12 = vrot.slane %v3365_v57, 4  ;;  %v3368_v13 = vshll.u32 %v3264_v39, 16  ;;  %v3272_v31 = vld [vmem:[#allocation2 + $0x40] sm:$0xf]  ;;  %v9330_v36 = vld [vmem:[#allocation2 + $0x3c] sm:$0x1] }
 0x199   :  { %v3357_v8 = vor.u32 %v3356_v61, %v3353_v4  ;;  %v3374_v48 = vshll.u32 %v9310_v2, 16  ;;  %v1707_v63 = vsel %vm8886_vm9, %v1702_v0, %v1706_v1  ;;  %v3379_v41 = vshrl.u32 %v3266_v17, 16  ;;  %v8433_v57 = vld [vmem:[#allocation2 + $0x10] sm:$0xf]  ;;  %v8434_v59 = vld [vmem:[#allocation2 + $0x18] sm:$0xf] }
 0x19a   :  { %7702 = vmatprep.mubr.msk.bf16.mxu0 %vm1802_vm10, %v6934_v44  ;;  %v1716_v9 = vrot.slane %v1715_v32, 4  ;;  %v3382_v15 = vshll.u32 %v3266_v17, 16  ;;  %v3362_v18 = vrot.slane %v3360_v56, 5  ;;  %v3370_v20 = vrot.slane %v3368_v13, 5  ;;  %v9333_v4 = vld [vmem:[#allocation2 + $0x44] sm:$0x1] }
 0x19b   :  { %v3358_v16 = vrot.slane %v3357_v8, 4  ;;  %v3388_v43 = vshll.u32 %v9315_v52, 16  ;;  %v3381_v3 = vrot.slane %v3379_v41, 4  ;;  %v3393_v21 = vshrl.u32 %v3268_v49, 16  ;;  %v3274_v32 = vld [vmem:[#allocation2 + $0x58] sm:$0xf] }
 0x19c   :  { %v1721_v62 = vsel %vm8886_vm9, %v1716_v9, %v1720_v7  ;;  %v3384_v23 = vrot.slane %v3382_v15, 5  ;;  %v3371_v50 = vor.u32 %v3370_v20, %v3367_v12  ;;  %v3376_v37 = vrot.slane %v3374_v48, 5  ;;  %v9338_v48 = vld [vmem:[#allocation2 + $0x5c] sm:$0x1] }
 0x19d   :  { %v6935_v26 = vcombine.low %v1707_v63, %v1721_v62  ;;  %v6956_v5 = vcombine.low %v8431_v27, %v8432_v51  ;;  %v3395_v39 = vrot.slane %v3393_v21, 4  ;;  %v3396_v60 = vshll.u32 %v3268_v49, 16  ;;  %v8371_v49 = vld [vmem:[%s10643_s3 + $0xa8] sm:$0xff]  }
 0x19e   :  { %v3385_v28 = vor.u32 %v3384_v23, %v3381_v3  ;;  %v3402_v29 = vshll.u32 %v9321_v42, 16  ;;  %v3363_v33 = vsel %vm8886_vm9, %v3358_v16, %v3362_v18  ;;  %v3372_v34 = vrot.slane %v3371_v50, 4  ;;  %v3276_v16 = vld [vmem:[#allocation2 + $0x60] sm:$0xf]  ;;  %v8437_v50 = vld [vmem:[#allocation2 + $0x28] sm:$0xf] }
 0x19f   :  { %7703 = vmatmul.mubr.msk.bf16.gmra.mrb[60].mxu0 %vm1802_vm10, %v6935_v26  ;;  %v3407_v40 = vshrl.u32 %v3270_v24, 16  ;;  %v3410_v25 = vshll.u32 %v3270_v24, 16  ;;  %v3390_v10 = vrot.slane %v3388_v43, 5  ;;  %v3398_v56 = vrot.slane %v3396_v60, 5  ;;  %v9347_v43 = vld [vmem:[#allocation2 + $0x64] sm:$0x1] }
 0x1a0   :  { %7714 = vmatprep.mubr.msk.bf16.mxu0 %vm1802_vm10, %v6956_v5  ;;  %v3386_v45 = vrot.slane %v3385_v28, 4  ;;  %v6957_v0 = vcombine.low %v8433_v57, %v8434_v59  ;;  %v3377_v61 = vsel %vm8886_vm9, %v3372_v34, %v3376_v37  ;;  %v3421_v1 = vshrl.u32 %v3272_v31, 16  ;;  %v8435_v23 = vld [vmem:[%s10643_s3 + $0xa0] sm:$0xff]   ;;  %v3278_v51 = vld [vmem:[#allocation2 + $0x68] sm:$0xf] }
 0x1a1   :  { %v3409_v17 = vrot.slane %v3407_v40, 4  ;;  %v3412_v44 = vrot.slane %v3410_v25, 5  ;;  %v7097_v7 = vcombine.low %v3363_v33, %v3377_v61  ;;  %v3399_v8 = vor.u32 %v3398_v56, %v3395_v39  ;;  %v8436_v26 = vld [vmem:[#allocation2 + $0x20] sm:$0xf]  ;;  %v3280_v59 = vld [vmem:[#allocation2 + $0x70] sm:$0xf] }
 0x1a2   :  { %v3404_v12 = vrot.slane %v3402_v29, 5  ;;  %v3416_v13 = vshll.u32 %v9330_v36, 16  ;;  %v3423_v9 = vrot.slane %v3421_v1, 4  ;;  %v3424_v41 = vshll.u32 %v3272_v31, 16  ;;  %v8376_v29 = vld [vmem:[%s10643_s3 + $0xb0] sm:$0xff]   ;;  %v8387_v31 = vld [vmem:[%s10643_s3 + $0x48] sm:$0xff]  }
 0x1a3   :  { %v3413_v63 = vor.u32 %v3412_v44, %v3409_v17  ;;  %v3430_v15 = vshll.u32 %v9333_v4, 16  ;;  %7835 = vmatmul.mubr.msk.bf16.vlgmr.msra.gmra.mrb[20].mxu1 %vm1802_vm10, %v7097_v7  ;;  %v3391_v18 = vsel %vm8886_vm9, %v3386_v45, %v3390_v10  ;;  %v3400_v20 = vrot.slane %v3399_v8, 4 }
 0x1a4   :  { %v3435_v62 = vshrl.u32 %v3274_v32, 16  ;;  %v3438_v3 = vshll.u32 %v3274_v32, 16  ;;  %7867 = vmatpush3.bf16.msra.mxu1 %v8435_v23  ;;  %v3426_v24 = vrot.slane %v3424_v41, 5  ;;  %v6958_v37 = vcombine.low %v8436_v26, %v8437_v50  ;;  %v8390_v32 = vld [vmem:[%s10643_s3 + $0x50] sm:$0xff]   ;;  %v8381_v41 = vld [vmem:[%s10643_s3 + $0xb8] sm:$0xff]  }
 0x1a5   :  { %v3414_v21 = vrot.slane %v3413_v63, 4  ;;  %v3444_v27 = vshll.u32 %v9338_v48, 16  ;;  %v3405_v5 = vsel %vm8886_vm9, %v3400_v20, %v3404_v12  ;;  %v3449_v60 = vshrl.u32 %v3276_v16, 16  ;;  %7868 = vmatprep.subr.bf16.mxu1 %v8371_v49  ;;  %v3282_v20 = vld [vmem:[#allocation2 + $0x78] sm:$0xf] }
 0x1a6   :  { %v3437_v28 = vrot.slane %v3435_v62, 4  ;;  %v3440_v39 = vrot.slane %v3438_v3, 5  ;;  %v7098_v33 = vcombine.low %v3391_v18, %v3405_v5  ;;  %v3418_v34 = vrot.slane %v3416_v13, 5  ;;  %v8438_v13 = vld [vmem:[#allocation2 + $0x30] sm:$0xf] }
 0x1a7   :  { %7715 = vmatmul.mubr.msk.bf16.vlgmr.msra.gmra.mrb[32].mxu0 %vm1802_vm10, %v6957_v0  ;;  %v3427_v40 = vor.u32 %v3426_v24, %v3423_v9  ;;  %v3432_v25 = vrot.slane %v3430_v15, 5  ;;  %v3451_v10 = vrot.slane %v3449_v60, 4  ;;  %v3452_v56 = vshll.u32 %v3276_v16, 16  ;;  %v9368_v0 = vld [vmem:[#allocation2 + $0x6c] sm:$0x1] }
 0x1a8   :  { %7718 = vmatprep.mubr.msk.bf16.mxu0 %vm1802_vm10, %v6958_v37  ;;  %v3441_v45 = vor.u32 %v3440_v39, %v3437_v28  ;;  %v3458_v57 = vshll.u32 %v9347_v43, 16  ;;  %7747 = vmatpush3.bf16.msra.mxu0 %v9210_v11  ;;  %v3419_v61 = vsel %vm8886_vm9, %v3414_v21, %v3418_v34  ;;  %v3463_v44 = vshrl.u32 %v3278_v51, 16  ;;  %v8439_v11 = vld [vmem:[#allocation2 + $0x38] sm:$0xf]  ;;  %v9373_v9 = vld [vmem:[#allocation2 + $0x74] sm:$0x1] }
 0x1a9   :  { %7838 = vmatprep.mubr.msk.bf16.mxu1 %vm1802_vm10, %v7098_v33  ;;  %v3428_v17 = vrot.slane %v3427_v40, 4  ;;  %v3466_v1 = vshll.u32 %v3278_v51, 16  ;;  %7869 = vmatpush3.bf16.msra.mxu1 %v8371_v49  ;;  %v3446_v8 = vrot.slane %v3444_v27, 5  ;;  %v3454_v12 = vrot.slane %v3452_v56, 5  ;;  %v9381_v24 = vld [vmem:[#allocation2 + $0x7c] sm:$0x1] }
 0x1aa   :  { %v3442_v7 = vrot.slane %v3441_v45, 4  ;;  %v6959_v63 = vcombine.low %v8438_v13, %v8439_v11  ;;  %7870 = vmatprep.subr.bf16.mxu1 %v8376_v29  ;;  %7748 = vmatprep.subr.bf16.mxu0 %v8387_v31  ;;  %v3465_v15 = vrot.slane %v3463_v44, 4  ;;  %v3477_v18 = vshrl.u32 %v3280_v59, 16  ;;  %v3284_v26 = vld [vmem:[#allocation2 + $0x80] sm:$0xf]  ;;  %v8391_v28 = vld [vmem:[%s10643_s3 + $0x58] sm:$0xff]  }
 0x1ab   :  { %v3433_v49 = vsel %vm8886_vm9, %v3428_v17, %v3432_v25  ;;  %v3468_v16 = vrot.slane %v3466_v1, 5  ;;  %v3455_v3 = vor.u32 %v3454_v12, %v3451_v10  ;;  %v3460_v23 = vrot.slane %v3458_v57, 5  ;;  %v9384_v5 = vld [vmem:[#allocation2 + $0x84] sm:$0x1]  ;;  %v8440_v60 = vld [vmem:[#allocation2 + $0x50] sm:$0xf] }
 0x1ac   :  { %v7099_v62 = vcombine.low %v3419_v61, %v3433_v49  ;;  %v3472_v21 = vshll.u32 %v9368_v0, 16  ;;  %7749 = vmatpush3.bf16.msra.mxu0 %v8387_v31  ;;  %v3479_v37 = vrot.slane %v3477_v18, 4  ;;  %v3480_v27 = vshll.u32 %v3280_v59, 16  ;;  %v8441_v33 = vld [vmem:[#allocation2 + $0x58] sm:$0xf]  ;;  %v9393_v45 = vld [vmem:[%s10643_s3 + $0xc0] sm:$0xff]  }
 0x1ad   :  { %v3469_v50 = vor.u32 %v3468_v16, %v3465_v15  ;;  %v3486_v51 = vshll.u32 %v9373_v9, 16  ;;  %7871 = vmatpush3.bf16.msra.mxu1 %v8376_v29  ;;  %7750 = vmatprep.subr.bf16.mxu0 %v8390_v32  ;;  %v3456_v39 = vrot.slane %v3455_v3, 4  ;;  %v6960_v34 = vcombine.low %v8440_v60, %v8441_v33  ;;  %v3286_v25 = vld [vmem:[#allocation2 + $0x88] sm:$0xf]  ;;  %v3288_v1 = vld [vmem:[#allocation2 + $0x90] sm:$0xf] }
 0x1ae   :  { %7839 = vmatmul.mubr.msk.bf16.gmra.mrb[24].mxu1 %vm1802_vm10, %v7099_v62  ;;  %v3491_v31 = vshrl.u32 %v3282_v20, 16  ;;  %v3494_v40 = vshll.u32 %v3282_v20, 16  ;;  %7872 = vmatprep.subr.bf16.mxu1 %v8381_v41  ;;  %v3447_v29 = vsel %vm8886_vm9, %v3442_v7, %v3446_v8  ;;  %v3482_v56 = vrot.slane %v3480_v27, 5  ;;  %v9402_v8 = vld [vmem:[#allocation2 + $0x8c] sm:$0x1] }
 0x1af   :  { %7719 = vmatmul.mubr.msk.bf16.gmra.mrb[36].mxu0 %vm1802_vm10, %v6959_v63  ;;  %v3470_v10 = vrot.slane %v3469_v50, 4  ;;  %v3500_v57 = vshll.u32 %v9381_v24, 16  ;;  %v3461_v59 = vsel %vm8886_vm9, %v3456_v39, %v3460_v23  ;;  %v3505_v44 = vshrl.u32 %v3284_v26, 16  ;;  %v9405_v18 = vld [vmem:[#allocation2 + $0x94] sm:$0x1] }
 0x1b0   :  { %7722 = vmatprep.mubr.msk.bf16.mxu0 %vm1802_vm10, %v6960_v34  ;;  %v3493_v61 = vrot.slane %v3491_v31, 4  ;;  %v3496_v17 = vrot.slane %v3494_v40, 5  ;;  %7751 = vmatpush3.bf16.msra.mxu0 %v8390_v32  ;;  %v7100_v12 = vcombine.low %v3447_v29, %v3461_v59  ;;  %v3474_v13 = vrot.slane %v3472_v21, 5  ;;  %v3290_v23 = vld [vmem:[#allocation2 + $0xa8] sm:$0xf]  ;;  %v9418_v31 = vld [vmem:[%s10643_s3 + $0x60] sm:$0xff]  }
 0x1b1   :  { %v3483_v11 = vor.u32 %v3482_v56, %v3479_v37  ;;  %v3488_v7 = vrot.slane %v3486_v51, 5  ;;  %7873 = vmatpush3.bf16.msra.mxu1 %v8381_v41  ;;  %7752 = vmatprep.subr.bf16.mxu0 %v8391_v28  ;;  %v3507_v49 = vrot.slane %v3505_v44, 4  ;;  %v3508_v15 = vshll.u32 %v3284_v26, 16  ;;  %v8442_v37 = vld [vmem:[#allocation2 + $0x60] sm:$0xf] }
 0x1b2   :  { %v3497_v63 = vor.u32 %v3496_v17, %v3493_v61  ;;  %v3514_v16 = vshll.u32 %v9384_v5, 16  ;;  %7906 = vmatprep.subr.bf16.mxu1 %v9393_v45  ;;  %7842 = vmatprep.mubr.msk.bf16.mxu1 %vm1802_vm10, %v7100_v12  ;;  %v3475_v32 = vsel %vm8886_vm9, %v3470_v10, %v3474_v13  ;;  %v3519_v62 = vshrl.u32 %v3286_v25, 16  ;;  %v8443_v26 = vld [vmem:[#allocation2 + $0x68] sm:$0xf]  ;;  %v9413_v34 = vld [vmem:[#allocation2 + $0xac] sm:$0x1] }
 0x1b3   :  { %v3484_v20 = vrot.slane %v3483_v11, 4  ;;  %v3522_v3 = vshll.u32 %v3286_v25, 16  ;;  %v3502_v21 = vrot.slane %v3500_v57, 5  ;;  %v3510_v50 = vrot.slane %v3508_v15, 5  ;;  %v3292_v10 = vld [vmem:[#allocation2 + $0xb0] sm:$0xf] }
 0x1b4   :  { %v3498_v41 = vrot.slane %v3497_v63, 4  ;;  %v6961_v27 = vcombine.low %v8442_v37, %v8443_v26  ;;  %7753 = vmatpush3.bf16.msra.mxu0 %v8391_v28  ;;  %v3521_v39 = vrot.slane %v3519_v62, 4  ;;  %v3533_v33 = vshrl.u32 %v3288_v1, 16  ;;  %v9424_v17 = vld [vmem:[#allocation2 + $0xb4] sm:$0x1] }
 0x1b5   :  { %v3489_v51 = vsel %vm8886_vm9, %v3484_v20, %v3488_v7  ;;  %v3524_v60 = vrot.slane %v3522_v3, 5  ;;  %7786 = vmatprep.subr.bf16.mxu0 %v9418_v31  ;;  %v3511_v25 = vor.u32 %v3510_v50, %v3507_v49  ;;  %v3516_v29 = vrot.slane %v3514_v16, 5  ;;  %v8445_v12 = vld [vmem:[#allocation2 + $0x70] sm:$0xf]  ;;  %v9434_v26 = vld [vmem:[#allocation2 + $0xbc] sm:$0x1] }
 0x1b6   :  { %v7101_v40 = vcombine.low %v3475_v32, %v3489_v51  ;;  %v3528_v28 = vshll.u32 %v9402_v8, 16  ;;  %v3535_v57 = vrot.slane %v3533_v33, 4  ;;  %v3536_v59 = vshll.u32 %v3288_v1, 16  ;;  %v3294_v1 = vld [vmem:[#allocation2 + $0xb8] sm:$0xf] }
 0x1b7   :  { %7723 = vmatmul.mubr.msk.bf16.gmra.mrb[40].mxu0 %vm1802_vm10, %v6961_v27  ;;  %v3525_v56 = vor.u32 %v3524_v60, %v3521_v39  ;;  %v3542_v61 = vshll.u32 %v9405_v18, 16  ;;  %v3512_v44 = vrot.slane %v3511_v25, 4  ;;  %v6962_v13 = vcombine.low %v8445_v12, %v9179_v6  ;;  %v9437_v60 = vld [vmem:[#allocation2 + $0xc4] sm:$0x1] }
 0x1b8   :  { %7843 = vmatmul.mubr.msk.bf16.gmra.mrb[28].mxu1 %vm1802_vm10, %v7101_v40  ;;  %v3547_v11 = vshrl.u32 %v3290_v23, 16  ;;  %v3550_v7 = vshll.u32 %v3290_v23, 16  ;;  %v3503_v63 = vsel %vm8886_vm9, %v3498_v41, %v3502_v21  ;;  %v3538_v15 = vrot.slane %v3536_v59, 5  ;;  %v3296_v41 = vld [vmem:[#allocation2 + $0xc0] sm:$0xf] }
 0x1b9   :  { %v3526_v49 = vrot.slane %v3525_v56, 4  ;;  %v3556_v16 = vshll.u32 %v9413_v34, 16  ;;  %v3517_v32 = vsel %vm8886_vm9, %v3512_v44, %v3516_v29  ;;  %7726 = vmatprep.mubr.msk.bf16.mxu0 %vm1802_vm10, %v6962_v13  ;;  %v3561_v3 = vshrl.u32 %v3292_v10, 16 }
 0x1ba   :  { %v3549_v20 = vrot.slane %v3547_v11, 4  ;;  %v3552_v62 = vrot.slane %v3550_v7, 5  ;;  %v7102_v50 = vcombine.low %v3503_v63, %v3517_v32  ;;  %v3530_v6 = vrot.slane %v3528_v28, 5  ;;  %v3298_v28 = vld [vmem:[#allocation2 + $0xc8] sm:$0xf] }
 0x1bb   :  { %v3539_v37 = vor.u32 %v3538_v15, %v3535_v57  ;;  %v3544_v23 = vrot.slane %v3542_v61, 5  ;;  %v3563_v27 = vrot.slane %v3561_v3, 4  ;;  %v3564_v51 = vshll.u32 %v3292_v10, 16  ;;  %v9444_v10 = vld [vmem:[#allocation2 + $0xcc] sm:$0x1] }
 0x1bc   :  { %v3553_v21 = vor.u32 %v3552_v62, %v3549_v20  ;;  %v3570_v39 = vshll.u32 %v9424_v17, 16  ;;  %7846 = vmatprep.mubr.msk.bf16.mxu1 %vm1802_vm10, %v7102_v50  ;;  %v6963_v40 = vcombine.low %v9188_v54, %v9198_v55  ;;  %v3575_v25 = vshrl.u32 %v3294_v1, 16  ;;  %v3300_v15 = vld [vmem:[#allocation2 + $0xd0] sm:$0xf]  ;;  %v8446_v62 = vld [vmem:[#allocation2 + $0xa0] sm:$0xf] }
 0x1bd   :  { %v3540_v33 = vrot.slane %v3539_v37, 4  ;;  %v3578_v29 = vshll.u32 %v3294_v1, 16  ;;  %v3531_v56 = vsel %vm8886_vm9, %v3526_v49, %v3530_v6  ;;  %v3558_v59 = vrot.slane %v3556_v16, 5  ;;  %v3302_v37 = vld [vmem:[#allocation2 + $0xd8] sm:$0xf] }
 0x1be   :  { %v3554_v57 = vrot.slane %v3553_v21, 4  ;;  %v3566_v61 = vrot.slane %v3564_v51, 5  ;;  %v3577_v12 = vrot.slane %v3575_v25, 4  ;;  %v3589_v11 = vshrl.u32 %v3296_v41, 16  ;;  %v9455_v51 = vld [vmem:[#allocation2 + $0xd4] sm:$0x1] }
 0x1bf   :  { %v3545_v44 = vsel %vm8886_vm9, %v3540_v33, %v3544_v23  ;;  %7727 = vmatmul.mubr.msk.bf16.gmra.mrb[44].mxu0 %vm1802_vm10, %v6963_v40  ;;  %v3580_v13 = vrot.slane %v3578_v29, 5  ;;  %v3572_v7 = vrot.slane %v3570_v39, 5  ;;  %v3584_v63 = vshll.u32 %v9434_v26, 16 }
 0x1c0   :  { %v7103_v54 = vcombine.low %v3531_v56, %v3545_v44  ;;  %v3567_v55 = vor.u32 %v3566_v61, %v3563_v27  ;;  %v3591_v1 = vrot.slane %v3589_v11, 4  ;;  %v3592_v16 = vshll.u32 %v3296_v41, 16  ;;  %v9461_v61 = vld [vmem:[#allocation2 + $0xdc] sm:$0x1]  ;;  %v9464_v11 = vld [vmem:[#allocation2 + $0xe4] sm:$0x1] }
 0x1c1   :  { %v3581_v49 = vor.u32 %v3580_v13, %v3577_v12  ;;  %v3598_v32 = vshll.u32 %v9437_v60, 16  ;;  %v6964_v3 = vcombine.low %v8446_v62, %v9219_v53  ;;  %v3603_v50 = vshrl.u32 %v3298_v28, 16 }
 0x1c2   :  { %7847 = vmatmul.mubr.msk.bf16.gmra.mrb[0].mxu1 %vm1802_vm10, %v7103_v54  ;;  %v3568_v20 = vrot.slane %v3567_v55, 4  ;;  %v3606_v6 = vshll.u32 %v3298_v28, 16  ;;  %v3559_v23 = vsel %vm8886_vm9, %v3554_v57, %v3558_v59  ;;  %v3594_v27 = vrot.slane %v3592_v16, 5  ;;  %v3304_v57 = vld [vmem:[#allocation2 + $0xe0] sm:$0xf] }
 0x1c3   :  { %v3582_v21 = vrot.slane %v3581_v49, 4  ;;  %v3612_v41 = vshll.u32 %v9444_v10, 16  ;;  %7730 = vmatprep.mubr.msk.bf16.mxu0 %vm1802_vm10, %v6964_v3  ;;  %v3605_v33 = vrot.slane %v3603_v50, 4  ;;  %v3617_v53 = vshrl.u32 %v3300_v15, 16  ;;  %v8447_v55 = vld [vmem:[#allocation2 + $0xb0] sm:$0xf] }
 0x1c4   :  { %v3573_v39 = vsel %vm8886_vm9, %v3568_v20, %v3572_v7  ;;  %v3608_v40 = vrot.slane %v3606_v6, 5  ;;  %v3586_v29 = vrot.slane %v3584_v63, 5  ;;  %v3595_v28 = vor.u32 %v3594_v27, %v3591_v1  ;;  %v3306_v1 = vld [vmem:[#allocation2 + $0xf8] sm:$0xf] }
 0x1c5   :  { %v7104_v25 = vcombine.low %v3559_v23, %v3573_v39  ;;  %v3600_v56 = vrot.slane %v3598_v32, 5  ;;  %v3619_v44 = vrot.slane %v3617_v53, 4  ;;  %v3620_v12 = vshll.u32 %v3300_v15, 16  ;;  %v9470_v15 = vld [vmem:[#allocation2 + $0xfc] sm:$0x1] }
 0x1c6   :  { %v3609_v59 = vor.u32 %v3608_v40, %v3605_v33  ;;  %v3626_v13 = vshll.u32 %v9455_v51, 16  ;;  %v3596_v54 = vrot.slane %v3595_v28, 4  ;;  %v6965_v7 = vcombine.low %v8447_v55, %v9227_v58  ;;  %v3308_v33 = vld [vmem:[#allocation2 + $0x100] sm:$0xf] }
 0x1c7   :  { %7850 = vmatprep.mubr.msk.bf16.mxu1 %vm1802_vm10, %v7104_v25  ;;  %v3631_v49 = vshrl.u32 %v3302_v37, 16  ;;  %v3634_v63 = vshll.u32 %v3302_v37, 16  ;;  %v3587_v16 = vsel %vm8886_vm9, %v3582_v21, %v3586_v29  ;;  %v3614_v20 = vrot.slane %v3612_v41, 5  ;;  %v9477_v25 = vld [vmem:[#allocation2 + $0x104] sm:$0x1] }
 0x1c8   :  { %v3610_v32 = vrot.slane %v3609_v59, 4  ;;  %v3622_v62 = vrot.slane %v3620_v12, 5  ;;  %v3601_v3 = vsel %vm8886_vm9, %v3596_v54, %v3600_v56  ;;  %7731 = vmatmul.mubr.msk.bf16.gmra.mrb[48].mxu0 %vm1802_vm10, %v6965_v7  ;;  %v3645_v23 = vshrl.u32 %v3304_v57, 16  ;;  %v8448_v28 = vld [vmem:[#allocation2 + $0xc0] sm:$0xf] }
 0x1c9   :  { %v3633_v50 = vrot.slane %v3631_v49, 4  ;;  %v3636_v6 = vrot.slane %v3634_v63, 5  ;;  %v7105_v58 = vcombine.low %v3587_v16, %v3601_v3  ;;  %v3628_v37 = vrot.slane %v3626_v13, 5 }
 0x1ca   :  { %v3623_v27 = vor.u32 %v3622_v62, %v3619_v44  ;;  %v3640_v39 = vshll.u32 %v9461_v61, 16  ;;  %v3647_v40 = vrot.slane %v3645_v23, 4  ;;  %v3648_v41 = vshll.u32 %v3304_v57, 16  ;;  %v3310_v44 = vld [vmem:[#allocation2 + $0x108] sm:$0xf] }
 0x1cb   :  { %v3637_v21 = vor.u32 %v3636_v6, %v3633_v50  ;;  %v3654_v53 = vshll.u32 %v9464_v11, 16  ;;  %7851 = vmatmul.mubr.msk.bf16.gmra.mrb[4].mxu1 %vm1802_vm10, %v7105_v58  ;;  %v6966_v56 = vcombine.low %v8448_v28, %v9241_v22  ;;  %v3659_v59 = vshrl.u32 %v3306_v1, 16  ;;  %v9487_v50 = vld [vmem:[#allocation2 + $0x10c] sm:$0x1]  ;;  %v3312_v6 = vld [vmem:[#allocation2 + $0x110] sm:$0xf] }
 0x1cc   :  { %v3624_v29 = vrot.slane %v3623_v27, 4  ;;  %v3662_v12 = vshll.u32 %v3306_v1, 16  ;;  %v3615_v13 = vsel %vm8886_vm9, %v3610_v32, %v3614_v20  ;;  %v3650_v55 = vrot.slane %v3648_v41, 5  ;;  %v9490_v27 = vld [vmem:[#allocation2 + $0x114] sm:$0x1] }
 0x1cd   :  { %v3638_v54 = vrot.slane %v3637_v21, 4  ;;  %v3668_v57 = vshll.u32 %v9470_v15, 16  ;;  %7734 = vmatprep.mubr.msk.bf16.mxu0 %vm1802_vm10, %v6966_v56  ;;  %v3661_v49 = vrot.slane %v3659_v59, 4  ;;  %v3673_v16 = vshrl.u32 %v3308_v33, 16  ;;  %v8449_v21 = vld [vmem:[#allocation2 + $0xd0] sm:$0xf] }
 0x1ce   :  { %v3629_v7 = vsel %vm8886_vm9, %v3624_v29, %v3628_v37  ;;  %v3664_v63 = vrot.slane %v3662_v12, 5  ;;  %v3642_v22 = vrot.slane %v3640_v39, 5  ;;  %v3651_v3 = vor.u32 %v3650_v55, %v3647_v40  ;;  %v8450_v41 = vld [vmem:[#allocation2 + $0xd8] sm:$0xf] }
 0x1cf   :  { %v7106_v62 = vcombine.low %v3615_v13, %v3629_v7  ;;  %v3656_v1 = vrot.slane %v3654_v53, 5  ;;  %v3675_v20 = vrot.slane %v3673_v16, 4  ;;  %v3676_v23 = vshll.u32 %v3308_v33, 16  ;;  %v3314_v40 = vld [vmem:[#allocation2 + $0x118] sm:$0xf] }
 0x1d0   :  { %v3665_v32 = vor.u32 %v3664_v63, %v3661_v49  ;;  %v3682_v58 = vshll.u32 %v9477_v25, 16  ;;  %v3652_v37 = vrot.slane %v3651_v3, 4  ;;  %v6967_v29 = vcombine.low %v8449_v21, %v8450_v41  ;;  %v9495_v33 = vld [vmem:[#allocation2 + $0x11c] sm:$0x1]  ;;  %v3316_v63 = vld [vmem:[#allocation2 + $0x120] sm:$0xf] }
 0x1d1   :  { %7854 = vmatprep.mubr.msk.bf16.mxu1 %vm1802_vm10, %v7106_v62  ;;  %v3687_v28 = vshrl.u32 %v3310_v44, 16  ;;  %v3690_v39 = vshll.u32 %v3310_v44, 16  ;;  %v3643_v53 = vsel %vm8886_vm9, %v3638_v54, %v3642_v22  ;;  %v3670_v59 = vrot.slane %v3668_v57, 5 }
 0x1d2   :  { %v3666_v56 = vrot.slane %v3665_v32, 4  ;;  %v3678_v12 = vrot.slane %v3676_v23, 5  ;;  %v3657_v13 = vsel %vm8886_vm9, %v3652_v37, %v3656_v1  ;;  %7735 = vmatmul.mubr.msk.bf16.gmra.mrb[52].mxu0 %vm1802_vm10, %v6967_v29  ;;  %v3701_v49 = vshrl.u32 %v3312_v6, 16  ;;  %v9502_v23 = vld [vmem:[#allocation2 + $0x124] sm:$0x1] }
 0x1d3   :  { %v3689_v55 = vrot.slane %v3687_v28, 4  ;;  %v3692_v7 = vrot.slane %v3690_v39, 5  ;;  %v7107_v16 = vcombine.low %v3643_v53, %v3657_v13  ;;  %v3684_v62 = vrot.slane %v3682_v58, 5  ;;  %v8451_v37 = vld [vmem:[#allocation2 + $0xf8] sm:$0xf] }
 0x1d4   :  { %v3679_v44 = vor.u32 %v3678_v12, %v3675_v20  ;;  %v3696_v3 = vshll.u32 %v9487_v50, 16  ;;  %v3703_v22 = vrot.slane %v3701_v49, 4  ;;  %v3704_v57 = vshll.u32 %v3312_v6, 16 }
 0x1d5   :  { %v3693_v54 = vor.u32 %v3692_v7, %v3689_v55  ;;  %v3710_v32 = vshll.u32 %v9490_v27, 16  ;;  %7855 = vmatmul.mubr.msk.bf16.gmra.mrb[8].mxu1 %vm1802_vm10, %v7107_v16  ;;  %v6968_v21 = vcombine.low %v9263_v19, %v8451_v37  ;;  %v3715_v41 = vshrl.u32 %v3314_v40, 16  ;;  %v3318_v55 = vld [vmem:[#allocation2 + $0x128] sm:$0xf]  ;;  %v9512_v16 = vld [vmem:[#allocation2 + $0x12c] sm:$0x1] }
 0x1d6   :  { %v3680_v1 = vrot.slane %v3679_v44, 4  ;;  %v3718_v29 = vshll.u32 %v3314_v40, 16  ;;  %v3671_v20 = vsel %vm8886_vm9, %v3666_v56, %v3670_v59  ;;  %v3706_v28 = vrot.slane %v3704_v57, 5  ;;  %v3320_v57 = vld [vmem:[#allocation2 + $0x130] sm:$0xf] }
 0x1d7   :  { %v3694_v58 = vrot.slane %v3693_v54, 4  ;;  %v3724_v39 = vshll.u32 %v9495_v33, 16  ;;  %7738 = vmatprep.mubr.msk.bf16.mxu0 %vm1802_vm10, %v6968_v21  ;;  %v3717_v53 = vrot.slane %v3715_v41, 4  ;;  %v3729_v13 = vshrl.u32 %v3316_v63, 16  ;;  %v8453_v37 = vld [vmem:[#allocation2 + $0x108] sm:$0xf] }
 0x1d8   :  { %v3685_v6 = vsel %vm8886_vm9, %v3680_v1, %v3684_v62  ;;  %v3720_v12 = vrot.slane %v3718_v29, 5  ;;  %v3698_v19 = vrot.slane %v3696_v3, 5  ;;  %v3707_v49 = vor.u32 %v3706_v28, %v3703_v22  ;;  %v8452_v1 = vld [vmem:[#allocation2 + $0x100] sm:$0xf]  ;;  %v9518_v28 = vld [vmem:[#allocation2 + $0x134] sm:$0x1] }
 0x1d9   :  { %v7108_v7 = vcombine.low %v3671_v20, %v3685_v6  ;;  %v3712_v40 = vrot.slane %v3710_v32, 5  ;;  %v3731_v59 = vrot.slane %v3729_v13, 4  ;;  %v3732_v44 = vshll.u32 %v3316_v63, 16 }
 0x1da   :  { %v3721_v56 = vor.u32 %v3720_v12, %v3717_v53  ;;  %v3738_v54 = vshll.u32 %v9502_v23, 16  ;;  %v3708_v62 = vrot.slane %v3707_v49, 4  ;;  %v6969_v21 = vcombine.low %v8452_v1, %v8453_v37  ;;  %v4091_v1 = vld [vmem:[#allocation2 + $0x8] sm:$0xe] }
 0x1db   :  { %7858 = vmatprep.mubr.msk.bf16.mxu1 %vm1802_vm10, %v7108_v7  ;;  %v3743_v41 = vshrl.u32 %v3318_v55, 16  ;;  %v3746_v29 = vshll.u32 %v3318_v55, 16  ;;  %v3699_v3 = vsel %vm8886_vm9, %v3694_v58, %v3698_v19  ;;  %v3726_v32 = vrot.slane %v3724_v39, 5 }
 0x1dc   :  { %v3722_v22 = vrot.slane %v3721_v56, 4  ;;  %v3734_v20 = vrot.slane %v3732_v44, 5  ;;  %v3713_v63 = vsel %vm8886_vm9, %v3708_v62, %v3712_v40  ;;  %7739 = vmatmul.mubr.msk.bf16.gmra.mrb[56].mxu0 %vm1802_vm10, %v6969_v21  ;;  %v3757_v12 = vshrl.u32 %v3320_v57, 16  ;;  %v4092_v44 = vld [vmem:[#allocation2 + $0x10] sm:$0xe] }
 0x1dd   :  { %v3745_v6 = vrot.slane %v3743_v41, 4  ;;  %v3748_v53 = vrot.slane %v3746_v29, 5  ;;  %v7109_v13 = vcombine.low %v3699_v3, %v3713_v63  ;;  %v3740_v49 = vrot.slane %v3738_v54, 5  ;;  %v4093_v41 = vld [vmem:[#allocation2 + $0x18] sm:$0xe] }
 0x1de   :  { %v3735_v7 = vor.u32 %v3734_v20, %v3731_v59  ;;  %v3752_v55 = vshll.u32 %v9512_v16, 16  ;;  %v3759_v19 = vrot.slane %v3757_v12, 4  ;;  %v3760_v39 = vshll.u32 %v3320_v57, 16  ;;  %v8454_v29 = vld [vmem:[#allocation2 + $0xc] sm:$0x1] }
 0x1df   :  { %v3749_v58 = vor.u32 %v3748_v53, %v3745_v6  ;;  %v3766_v56 = vshll.u32 %v9518_v28, 16  ;;  %7859 = vmatmul.mubr.msk.bf16.gmra.mrb[12].mxu1 %vm1802_vm10, %v7109_v13  ;;  %v6970_v62 = vcombine.low %v9279_v14, %v9283_v46  ;;  %v3727_v59 = vsel %vm8886_vm9, %v3722_v22, %v3726_v32  ;;  %v8455_v63 = vld [vmem:[#allocation2 + $0x14] sm:$0x1]  ;;  %v4094_v14 = vld [vmem:[#allocation2 + $0x20] sm:$0xe] }
 0x1e0   :  { %v3736_v40 = vrot.slane %v3735_v7, 4  ;;  %v3762_v37 = vrot.slane %v3760_v39, 5  ;;  %v7132_v21 = vrot.slane %v4091_v1, 9  ;;  %v4189_v3 = vrot.slane %v8454_v29, 5  ;;  %v2325_v13 = vld [vmem:[#allocation2] sm:$0xe] }
 0x1e1   :  { %v3750_v54 = vrot.slane %v3749_v58, 4  ;;  %7742 = vmatprep.mubr.msk.bf16.mxu0 %vm1802_vm10, %v6970_v62  ;;  %v7133_v20 = vrot.slane %v4092_v44, 9  ;;  %v4193_v6 = vrot.slane %v8455_v63, 5  ;;  %v3754_v53 = vrot.slane %v3752_v55, 5  ;;  %v2326_v7 = vld [vmem:[#allocation2 + $0x8] sm:$0xe] }
 0x1e2   :  { %v3741_v57 = vsel %vm8886_vm9, %v3736_v40, %v3740_v49  ;;  %v3763_v12 = vor.u32 %v3762_v37, %v3759_v19  ;;  %v6971_v32 = vcombine.low %v9291_v35, %v9293_v38  ;;  %v3768_v49 = vrot.slane %v3766_v56, 5  ;;  %v4095_v55 = vld [vmem:[#allocation2 + $0x28] sm:$0xe]  ;;  %v4096_v38 = vld [vmem:[#allocation2 + $0x30] sm:$0xe] }
 0x1e3   :  { %v7110_v46 = vcombine.low %v3727_v59, %v3741_v57  ;;  %v4194_v1 = vsel %vm9535_vm13, %v7133_v20, %v4193_v6  ;;  %v7134_v58 = vrot.slane %v4093_v41, 9  ;;  %v4197_v39 = vrot.slane %v9304_v30, 5  ;;  %v8456_v59 = vld [vmem:[#allocation2 + $0x4] sm:$0x1]  ;;  %v2327_v41 = vld [vmem:[#allocation2 + $0x10] sm:$0xe] }
 0x1e4   :  { %v3755_v19 = vsel %vm8886_vm9, %v3750_v54, %v3754_v53  ;;  %v3764_v44 = vrot.slane %v3763_v12, 4  ;;  %7743 = vmatmul.mubr.msk.bf16.gmra.mrb[60].mxu0 %vm1802_vm10, %v6971_v32  ;;  %v7135_v40 = vrot.slane %v4094_v14, 9  ;;  %v4201_v35 = vrot.slane %v9310_v2, 5  ;;  %v8457_v20 = vld [vmem:[#allocation2 + $0xc] sm:$0x1] }
 0x1e5   :  { %7862 = vmatprep.mubr.msk.bf16.mxu1 %vm1802_vm10, %v7110_v46  ;;  %v4190_v56 = vsel %vm9535_vm13, %v7132_v21, %v4189_v3  ;;  %v6992_v62 = vrot.slane %v2325_v13, 9  ;;  %v2426_v37 = vrot.slane %v8456_v59, 5  ;;  %v6993_v30 = vrot.slane %v2326_v7, 9  ;;  %v2328_v2 = vld [vmem:[#allocation2 + $0x18] sm:$0xe] }
 0x1e6   :  { %v3769_v57 = vsel %vm8886_vm9, %v3764_v44, %v3768_v49  ;;  %v7164_v29 = vcombine.low %v4190_v56, %v4194_v1  ;;  %v9555_v54 = vsel %vm9535_vm13, %v7134_v58, %v4197_v39  ;;  %v2430_v63 = vrot.slane %v8457_v20, 5  ;;  %v4097_v46 = vld [vmem:[#allocation2 + $0x38] sm:$0xe]  ;;  %v4098_v7 = vld [vmem:[#allocation2 + $0x40] sm:$0xe] }
 0x1e7   :  { %v7111_v6 = vcombine.low %v3755_v19, %v3769_v57  ;;  %v4202_v21 = vsel %vm9535_vm13, %v7135_v40, %v4201_v35  ;;  %v2427_v3 = vsel %vm9535_vm13, %v6992_v62, %v2426_v37  ;;  %v7136_v14 = vrot.slane %v4095_v55, 9  ;;  %v8458_v58 = vld [vmem:[#allocation2 + $0x14] sm:$0x1]  ;;  %v2329_v44 = vld [vmem:[#allocation2 + $0x20] sm:$0xe] }
 0x1e8   :  { %v2431_v53 = vsel %vm9535_vm13, %v6993_v30, %v2430_v63  ;;  %v7137_v12 = vrot.slane %v4096_v38, 9  ;;  %v4209_v32 = vrot.slane %v9321_v42, 5  ;;  %v6994_v13 = vrot.slane %v2327_v41, 9  ;;  %v8459_v35 = vld [vmem:[#allocation2 + $0x1c] sm:$0x1] }
 0x1e9   :  { %7863 = vmatmul.mubr.msk.bf16.gmra.mrb[16].mxu1 %vm1802_vm10, %v7111_v6  ;;  %v7024_v49 = vcombine.low %v2427_v3, %v2431_v53  ;;  %v4205_v1 = vrot.slane %v9315_v52, 5  ;;  %v2434_v39 = vrot.slane %v8458_v58, 5  ;;  %v6995_v19 = vrot.slane %v2328_v2, 9  ;;  %v2330_v38 = vld [vmem:[#allocation2 + $0x28] sm:$0xe] }
 0x1ea   :  { %7874 = vmatprep.mubr.msk.bf16.mxu1 %vm1802_vm10, %v7164_v29  ;;  %v7165_v55 = vcombine.low %v9555_v54, %v4202_v21  ;;  %v4210_v40 = vsel %vm9535_vm13, %v7137_v12, %v4209_v32  ;;  %v2438_v42 = vrot.slane %v8459_v35, 5  ;;  %v4099_v56 = vld [vmem:[#allocation2 + $0x58] sm:$0xe]  ;;  %v7138_v62 = vrot.slane %v4097_v46, 9  ;;  %v4100_v30 = vld [vmem:[#allocation2 + $0x60] sm:$0xe] }
 0x1eb   :  { %7754 = vmatprep.mubr.msk.bf16.mxu0 %vm1802_vm10, %v7024_v49  ;;  %v2435_v52 = vsel %vm9535_vm13, %v6994_v13, %v2434_v39  ;;  %v7139_v59 = vrot.slane %v4098_v7, 9  ;;  %v4217_v37 = vrot.slane %v9333_v4, 5  ;;  %v4213_v57 = vrot.slane %v9330_v36, 5  ;;  %v8460_v54 = vld [vmem:[#allocation2 + $0x24] sm:$0x1]  ;;  %v8392_v49 = vld [vmem:[%s10643_s3 + $0xc8] sm:$0xff]  }
 0x1ec   :  { %v2439_v41 = vsel %vm9535_vm13, %v6995_v19, %v2438_v42  ;;  %v6996_v29 = vrot.slane %v2329_v44, 9  ;;  %v2442_v20 = vrot.slane %v8460_v54, 5  ;;  %v2331_v63 = vld [vmem:[#allocation2 + $0x30] sm:$0xe]  ;;  %v4206_v2 = vsel %vm9535_vm13, %v7136_v14, %v4205_v1  ;;  %v8461_v3 = vld [vmem:[#allocation2 + $0x2c] sm:$0x1] }
 0x1ed   :  { %v7025_v6 = vcombine.low %v2435_v52, %v2439_v41  ;;  %v6997_v21 = vrot.slane %v2330_v38, 9  ;;  %v2446_v46 = vrot.slane %v8461_v3, 5  ;;  %v2332_v53 = vld [vmem:[#allocation2 + $0x38] sm:$0xe]  ;;  %v7166_v12 = vcombine.low %v4206_v2, %v4210_v40  ;;  %v4102_v58 = vld [vmem:[#allocation2 + $0x70] sm:$0xe] }
 0x1ee   :  { %v9581_v4 = vsel %vm9535_vm13, %v7139_v59, %v4217_v37  ;;  %v7140_v32 = vrot.slane %v4099_v56, 9  ;;  %v4221_v36 = vrot.slane %v9338_v48, 5  ;;  %v7141_v7 = vrot.slane %v4100_v30, 9  ;;  %v8462_v19 = vld [vmem:[#allocation2 + $0x34] sm:$0x1]  ;;  %v8464_v37 = vld [vmem:[%s10643_s3 + $0x68] sm:$0xff]  }
 0x1ef   :  { %7755 = vmatmul.mubr.msk.bf16.vlgmr.msra.gmra.mrb[32].mxu0 %vm1802_vm10, %v7025_v6  ;;  %v2447_v13 = vsel %vm9535_vm13, %v6997_v21, %v2446_v46  ;;  %v4225_v14 = vrot.slane %v9347_v43, 5  ;;  %v6998_v1 = vrot.slane %v2331_v63, 9  ;;  %v9593_v39 = vsel %vm9535_vm13, %v7138_v62, %v4213_v57  ;;  %v4101_v35 = vld [vmem:[#allocation2 + $0x68] sm:$0xe]  ;;  %v2333_v42 = vld [vmem:[#allocation2 + $0x50] sm:$0xe] }
 0x1f0   :  { %v2443_v48 = vsel %vm9535_vm13, %v6996_v29, %v2442_v20  ;;  %v2450_v44 = vrot.slane %v8462_v19, 5  ;;  %v6999_v40 = vrot.slane %v2332_v53, 9  ;;  %7787 = vmatpush3.bf16.msra.mxu0 %v9418_v31  ;;  %v7167_v43 = vcombine.low %v9593_v39, %v9581_v4  ;;  %v8463_v52 = vld [vmem:[#allocation2 + $0x3c] sm:$0x1]  ;;  %v2334_v59 = vld [vmem:[#allocation2 + $0x58] sm:$0xe] }
 0x1f1   :  { %7875 = vmatmul.mubr.msk.bf16.vlgmr.msra.gmra.mrb[20].mxu1 %vm1802_vm10, %v7165_v55  ;;  %v7026_v38 = vcombine.low %v2443_v48, %v2447_v13  ;;  %v9603_v56 = vsel %vm9535_vm13, %v7140_v32, %v4221_v36  ;;  %v2454_v62 = vrot.slane %v8463_v52, 5  ;;  %7788 = vmatprep.subr.bf16.mxu0 %v8464_v37  ;;  %v4226_v31 = vsel %vm9535_vm13, %v7141_v7, %v4225_v14  ;;  %v4103_v57 = vld [vmem:[#allocation2 + $0x78] sm:$0xe]  ;;  %v4104_v29 = vld [vmem:[#allocation2 + $0x80] sm:$0xe]  ;;  %v8393_v21 = vld [vmem:[%s10643_s3 + $0xd0] sm:$0xff]  }
 0x1f2   :  { %7907 = vmatpush3.bf16.msra.mxu1 %v9393_v45  ;;  %7878 = vmatprep.mubr.msk.bf16.mxu1 %vm1802_vm10, %v7166_v12  ;;  %v2451_v55 = vsel %vm9535_vm13, %v6998_v1, %v2450_v44  ;;  %v7143_v30 = vrot.slane %v4102_v58, 9  ;;  %v4233_v41 = vrot.slane %v9373_v9, 5  ;;  %v7142_v45 = vrot.slane %v4101_v35, 9  ;;  %v8465_v63 = vld [vmem:[#allocation2 + $0x54] sm:$0x1] }
 0x1f3   :  { %7758 = vmatprep.mubr.msk.bf16.mxu0 %vm1802_vm10, %v7026_v38  ;;  %7908 = vmatprep.subr.bf16.mxu1 %v8392_v49  ;;  %v2455_v54 = vsel %vm9535_vm13, %v6999_v40, %v2454_v62  ;;  %v7000_v20 = vrot.slane %v2333_v42, 9  ;;  %v2458_v2 = vrot.slane %v8465_v63, 5  ;;  %v2335_v6 = vld [vmem:[#allocation2 + $0x60] sm:$0xe]  ;;  %v4229_v9 = vrot.slane %v9368_v0, 5  ;;  %v8467_v0 = vld [vmem:[%s10643_s3 + $0x70] sm:$0xff]  }
 0x1f4   :  { %v7027_v3 = vcombine.low %v2451_v55, %v2455_v54  ;;  %v7001_v46 = vrot.slane %v2334_v59, 9  ;;  %v8466_v53 = vld [vmem:[#allocation2 + $0x5c] sm:$0x1]  ;;  %v2336_v4 = vld [vmem:[#allocation2 + $0x68] sm:$0xe]  ;;  %7789 = vmatpush3.bf16.msra.mxu0 %v8464_v37  ;;  %v9624_v32 = vsel %vm9535_vm13, %v7143_v30, %v4233_v41  ;;  %v7144_v13 = vrot.slane %v4103_v57, 9 }
 0x1f5   :  { %v2462_v12 = vrot.slane %v8466_v53, 5  ;;  %v2459_v36 = vsel %vm9535_vm13, %v7000_v20, %v2458_v2  ;;  %v4237_v7 = vrot.slane %v9381_v24, 5  ;;  %v4105_v14 = vld [vmem:[#allocation2 + $0x88] sm:$0xe]  ;;  %7790 = vmatprep.subr.bf16.mxu0 %v8467_v0  ;;  %v7145_v58 = vrot.slane %v4104_v29, 9  ;;  %v9666_v53 = vld [vmem:[%s10643_s3 + $0xe0] sm:$0xff]  }
 0x1f6   :  { %7909 = vmatpush3.bf16.msra.mxu1 %v8392_v49  ;;  %v4241_v39 = vrot.slane %v9384_v5, 5  ;;  %v7002_v48 = vrot.slane %v2335_v6, 9  ;;  %v4106_v19 = vld [vmem:[#allocation2 + $0x90] sm:$0xe]  ;;  %v7168_v44 = vcombine.low %v9603_v56, %v4226_v31  ;;  %v8468_v40 = vld [vmem:[#allocation2 + $0x64] sm:$0x1]  ;;  %v9642_v52 = vsel %vm9535_vm13, %v7142_v45, %v4229_v9 }
 0x1f7   :  { %v2463_v1 = vsel %vm9535_vm13, %v7001_v46, %v2462_v12  ;;  %7759 = vmatmul.mubr.msk.bf16.gmra.mrb[36].mxu0 %vm1802_vm10, %v7027_v3  ;;  %v2466_v35 = vrot.slane %v8468_v40, 5  ;;  %v7003_v42 = vrot.slane %v2336_v4, 9  ;;  %v2337_v38 = vld [vmem:[#allocation2 + $0x70] sm:$0xe]  ;;  %7910 = vmatprep.subr.bf16.mxu1 %v8393_v21  ;;  %v8394_v49 = vld [vmem:[%s10643_s3 + $0xd8] sm:$0xff]   ;;  %v7146_v59 = vrot.slane %v4105_v14, 9 }
 0x1f8   :  { %v7028_v24 = vcombine.low %v2459_v36, %v2463_v1  ;;  %v8469_v5 = vld [vmem:[#allocation2 + $0x6c] sm:$0x1]  ;;  %v4245_v56 = vrot.slane %v9402_v8, 5  ;;  %v2338_v37 = vld [vmem:[#allocation2 + $0x78] sm:$0xe]  ;;  %7791 = vmatpush3.bf16.msra.mxu0 %v8467_v0  ;;  %v7169_v31 = vcombine.low %v9642_v52, %v9624_v32  ;;  %v7147_v30 = vrot.slane %v4106_v19, 9 }
 0x1f9   :  { %v2470_v62 = vrot.slane %v8469_v5, 5  ;;  %7879 = vmatmul.mubr.msk.bf16.gmra.mrb[24].mxu1 %vm1802_vm10, %v7167_v43  ;;  %v2467_v55 = vsel %vm9535_vm13, %v7002_v48, %v2466_v35  ;;  %v4249_v41 = vrot.slane %v9405_v18, 5  ;;  %v4107_v57 = vld [vmem:[#allocation2 + $0xa8] sm:$0xe]  ;;  %v4238_v8 = vsel %vm9535_vm13, %v7144_v13, %v4237_v7  ;;  %v8470_v54 = vld [vmem:[#allocation2 + $0x74] sm:$0x1] }
 0x1fa   :  { %7762 = vmatprep.mubr.msk.bf16.mxu0 %vm1802_vm10, %v7028_v24  ;;  %7882 = vmatprep.mubr.msk.bf16.mxu1 %vm1802_vm10, %v7168_v44  ;;  %v4242_v43 = vsel %vm9535_vm13, %v7145_v58, %v4241_v39  ;;  %v7004_v29 = vrot.slane %v2337_v38, 9  ;;  %v2474_v45 = vrot.slane %v8470_v54, 5  ;;  %v4108_v20 = vld [vmem:[#allocation2 + $0xb0] sm:$0xe]  ;;  %v2339_v63 = vld [vmem:[#allocation2 + $0x80] sm:$0xe]  ;;  %v9661_v18 = vsel %vm9535_vm13, %v7146_v59, %v4245_v56 }
 0x1fb   :  { %7911 = vmatpush3.bf16.msra.mxu1 %v8393_v21  ;;  %v2471_v2 = vsel %vm9535_vm13, %v7003_v42, %v2470_v62  ;;  %v7005_v6 = vrot.slane %v2338_v37, 9  ;;  %v8471_v3 = vld [vmem:[#allocation2 + $0x7c] sm:$0x1]  ;;  %v2340_v46 = vld [vmem:[#allocation2 + $0x88] sm:$0xe]  ;;  %v9673_v4 = vsel %vm9535_vm13, %v7147_v30, %v4249_v41  ;;  %v7148_v32 = vrot.slane %v4107_v57, 9 }
 0x1fc   :  { %v2478_v9 = vrot.slane %v8471_v3, 5  ;;  %7912 = vmatprep.subr.bf16.mxu1 %v8394_v49  ;;  %v8472_v21 = vld [vmem:[%s10643_s3 + $0x78] sm:$0xff]   ;;  %v7029_v12 = vcombine.low %v2467_v55, %v2471_v2  ;;  %v4253_v36 = vrot.slane %v9413_v34, 5  ;;  %v2475_v13 = vsel %vm9535_vm13, %v7004_v29, %v2474_v45  ;;  %v4110_v58 = vld [vmem:[#allocation2 + $0xc0] sm:$0xe] }
 0x1fd   :  { %7792 = vmatprep.subr.bf16.mxu0 %v8472_v21  ;;  %v7149_v14 = vrot.slane %v4108_v20, 9  ;;  %v4257_v0 = vrot.slane %v9424_v17, 5  ;;  %v4109_v1 = vld [vmem:[#allocation2 + $0xb8] sm:$0xe]  ;;  %v7006_v48 = vrot.slane %v2339_v63, 9  ;;  %v7007_v24 = vrot.slane %v2340_v46, 9 }
 0x1fe   :  { %7793 = vmatpush3.bf16.msra.mxu0 %v8472_v21  ;;  %v2479_v7 = vsel %vm9535_vm13, %v7005_v6, %v2478_v9  ;;  %v8473_v19 = vld [vmem:[#allocation2 + $0x84] sm:$0x1]  ;;  %v2341_v40 = vld [vmem:[#allocation2 + $0xa0] sm:$0xe]  ;;  %v7170_v34 = vcombine.low %v4238_v8, %v4242_v43  ;;  %v7171_v35 = vcombine.low %v9661_v18, %v9673_v4  ;;  %v8474_v17 = vld [vmem:[#allocation2 + $0x8c] sm:$0x1] }
 0x1ff   :  { %v7030_v39 = vcombine.low %v2475_v13, %v2479_v7  ;;  %v2482_v44 = vrot.slane %v8473_v19, 5  ;;  %7913 = vmatpush3.bf16.msra.mxu1 %v8394_v49  ;;  %7763 = vmatmul.mubr.msk.bf16.gmra.mrb[40].mxu0 %vm1802_vm10, %v7029_v12  ;;  %v9686_v42 = vsel %vm9535_vm13, %v7149_v14, %v4257_v0  ;;  %v2486_v38 = vrot.slane %v8474_v17, 5  ;;  %v2342_v52 = vld [vmem:[#allocation2 + $0xa8] sm:$0xe]  ;;  %v4112_v37 = vld [vmem:[#allocation2 + $0xd0] sm:$0xe] }
 0x200   :  { %v4111_v5 = vld [vmem:[#allocation2 + $0xc8] sm:$0xe]  ;;  %7946 = vmatprep.subr.bf16.mxu1 %v9666_v53  ;;  %v4254_v49 = vsel %vm9535_vm13, %v7148_v32, %v4253_v36  ;;  %v7150_v62 = vrot.slane %v4109_v1, 9  ;;  %v7151_v59 = vrot.slane %v4110_v58, 9  ;;  %v4265_v56 = vrot.slane %v9437_v60, 5 }
 0x201   :  { %7766 = vmatprep.mubr.msk.bf16.mxu0 %vm1802_vm10, %v7030_v39  ;;  %7883 = vmatmul.mubr.msk.bf16.gmra.mrb[28].mxu1 %vm1802_vm10, %v7169_v31  ;;  %v7172_v55 = vcombine.low %v4254_v49, %v9686_v42  ;;  %v4261_v30 = vrot.slane %v9434_v26, 5  ;;  %v7008_v41 = vrot.slane %v2341_v40, 9  ;;  %v8475_v57 = vld [vmem:[#allocation2 + $0xa4] sm:$0x1]  ;;  %v2343_v43 = vld [vmem:[#allocation2 + $0xb0] sm:$0xe]  ;;  %v2483_v29 = vsel %vm9535_vm13, %v7006_v48, %v2482_v44 }
 0x202   :  { %v2490_v8 = vrot.slane %v8475_v57, 5  ;;  %7886 = vmatprep.mubr.msk.bf16.mxu1 %vm1802_vm10, %v7170_v34  ;;  %v2487_v54 = vsel %vm9535_vm13, %v7007_v24, %v2486_v38  ;;  %v7009_v60 = vrot.slane %v2342_v52, 9  ;;  %v8476_v45 = vld [vmem:[#allocation2 + $0xac] sm:$0x1]  ;;  %v9703_v31 = vsel %vm9535_vm13, %v7151_v59, %v4265_v56  ;;  %v2344_v18 = vld [vmem:[#allocation2 + $0xb8] sm:$0xe] }
 0x203   :  { %v2494_v20 = vrot.slane %v8476_v45, 5  ;;  %v7152_v63 = vrot.slane %v4111_v5, 9  ;;  %v4269_v2 = vrot.slane %v9444_v10, 5  ;;  %v4113_v6 = vld [vmem:[#allocation2 + $0xd8] sm:$0xe]  ;;  %v7153_v9 = vrot.slane %v4112_v37, 9 }
 0x204   :  { %v2491_v26 = vsel %vm9535_vm13, %v7008_v41, %v2490_v8  ;;  %v4273_v46 = vrot.slane %v9455_v51, 5  ;;  %v7010_v21 = vrot.slane %v2343_v43, 9  ;;  %v4114_v12 = vld [vmem:[#allocation2 + $0xe0] sm:$0xe]  ;;  %v7031_v4 = vcombine.low %v2483_v29, %v2487_v54  ;;  %v8477_v13 = vld [vmem:[#allocation2 + $0xb4] sm:$0x1] }
 0x205   :  { %v2495_v3 = vsel %vm9535_vm13, %v7009_v60, %v2494_v20  ;;  %v9713_v32 = vsel %vm9535_vm13, %v7150_v62, %v4261_v30  ;;  %v2498_v7 = vrot.slane %v8477_v13, 5  ;;  %v2345_v14 = vld [vmem:[#allocation2 + $0xc0] sm:$0xe]  ;;  %v7011_v10 = vrot.slane %v2344_v18, 9  ;;  %v8478_v0 = vld [vmem:[#allocation2 + $0xbc] sm:$0x1] }
 0x206   :  { %v7032_v36 = vcombine.low %v2491_v26, %v2495_v3  ;;  %v2502_v1 = vrot.slane %v8478_v0, 5  ;;  %v7154_v58 = vrot.slane %v4113_v6, 9  ;;  %v4277_v39 = vrot.slane %v9461_v61, 5  ;;  %v2346_v48 = vld [vmem:[#allocation2 + $0xc8] sm:$0xe] }
 0x207   :  { %7767 = vmatmul.mubr.msk.bf16.gmra.mrb[44].mxu0 %vm1802_vm10, %v7031_v4  ;;  %v7173_v51 = vcombine.low %v9713_v32, %v9703_v31  ;;  %v9721_v19 = vsel %vm9535_vm13, %v7152_v63, %v4269_v2  ;;  %v7155_v44 = vrot.slane %v4114_v12, 9  ;;  %v4281_v24 = vrot.slane %v9464_v11, 5  ;;  %v4115_v40 = vld [vmem:[#allocation2 + $0xf8] sm:$0xe]  ;;  %v8479_v17 = vld [vmem:[#allocation2 + $0xc4] sm:$0x1] }
 0x208   :  { %7770 = vmatprep.mubr.msk.bf16.mxu0 %vm1802_vm10, %v7032_v36  ;;  %v4274_v34 = vsel %vm9535_vm13, %v7153_v9, %v4273_v46  ;;  %v2499_v61 = vsel %vm9535_vm13, %v7010_v21, %v2498_v7  ;;  %v7012_v42 = vrot.slane %v2345_v14, 9  ;;  %v2506_v38 = vrot.slane %v8479_v17, 5  ;;  %v4116_v52 = vld [vmem:[#allocation2 + $0x100] sm:$0xe]  ;;  %v8480_v62 = vld [vmem:[#allocation2 + $0xcc] sm:$0x1] }
 0x209   :  { %7887 = vmatmul.mubr.msk.bf16.gmra.mrb[0].mxu1 %vm1802_vm10, %v7171_v35  ;;  %v9732_v5 = vsel %vm9535_vm13, %v7154_v58, %v4277_v39  ;;  %v9736_v11 = vsel %vm9535_vm13, %v7155_v44, %v4281_v24  ;;  %v7013_v49 = vrot.slane %v2346_v48, 9  ;;  %v2510_v59 = vrot.slane %v8480_v62, 5  ;;  %v2347_v56 = vld [vmem:[#allocation2 + $0xd0] sm:$0xe]  ;;  %v4117_v57 = vld [vmem:[#allocation2 + $0x108] sm:$0xe] }
 0x20a   :  { %7890 = vmatprep.mubr.msk.bf16.mxu1 %vm1802_vm10, %v7172_v55  ;;  %v2503_v37 = vsel %vm9535_vm13, %v7011_v10, %v2502_v1  ;;  %v7175_v35 = vcombine.low %v9732_v5, %v9736_v11  ;;  %v7156_v30 = vrot.slane %v4115_v40, 9  ;;  %v4285_v41 = vrot.slane %v9470_v15, 5  ;;  %v4118_v55 = vld [vmem:[#allocation2 + $0x110] sm:$0xe]  ;;  %v2348_v31 = vld [vmem:[#allocation2 + $0xd8] sm:$0xe] }
 0x20b   :  { %v2507_v8 = vsel %vm9535_vm13, %v7012_v42, %v2506_v38  ;;  %v2511_v43 = vsel %vm9535_vm13, %v7013_v49, %v2510_v59  ;;  %v7157_v29 = vrot.slane %v4116_v52, 9  ;;  %v4289_v54 = vrot.slane %v9477_v25, 5  ;;  %v2349_v63 = vld [vmem:[#allocation2 + $0xf0] sm:$0xe]  ;;  %v2350_v25 = vld [vmem:[#allocation2 + $0xf8] sm:$0xe] }
 0x20c   :  { %v7174_v60 = vcombine.low %v9721_v19, %v4274_v34  ;;  %v7033_v45 = vcombine.low %v2499_v61, %v2503_v37  ;;  %v7034_v20 = vcombine.low %v2507_v8, %v2511_v43  ;;  %v7014_v26 = vrot.slane %v2347_v56, 9  ;;  %v8481_v9 = vld [vmem:[#allocation2 + $0xd4] sm:$0x1]  ;;  %v4119_v4 = vld [vmem:[#allocation2 + $0x118] sm:$0xe] }
 0x20d   :  { %v9752_v15 = vsel %vm9535_vm13, %v7156_v30, %v4285_v41  ;;  %v9756_v2 = vsel %vm9535_vm13, %v7157_v29, %v4289_v54  ;;  %v7158_v18 = vrot.slane %v4117_v57, 9  ;;  %v4293_v6 = vrot.slane %v9487_v50, 5  ;;  %v8482_v36 = vld [vmem:[#allocation2 + $0xdc] sm:$0x1]  ;;  %v8483_v14 = vld [vmem:[#allocation2 + $0xf4] sm:$0x1] }
 0x20e   :  { %v7176_v3 = vcombine.low %v9752_v15, %v9756_v2  ;;  %v2514_v46 = vrot.slane %v8481_v9, 5  ;;  %v7159_v21 = vrot.slane %v4118_v55, 9  ;;  %v4297_v12 = vrot.slane %v9490_v27, 5  ;;  %v4120_v0 = vld [vmem:[#allocation2 + $0x120] sm:$0xe] }
 0x20f   :  { %7771 = vmatmul.mubr.msk.bf16.gmra.mrb[48].mxu0 %vm1802_vm10, %v7033_v45  ;;  %v7015_v32 = vrot.slane %v2348_v31, 9  ;;  %v2518_v13 = vrot.slane %v8482_v36, 5  ;;  %v7016_v7 = vrot.slane %v2349_v63, 9  ;;  %v2522_v10 = vrot.slane %v8483_v14, 5  ;;  %v8484_v58 = vld [vmem:[#allocation2 + $0xfc] sm:$0x1] }
 0x210   :  { %7774 = vmatprep.mubr.msk.bf16.mxu0 %vm1802_vm10, %v7034_v20  ;;  %v9766_v50 = vsel %vm9535_vm13, %v7158_v18, %v4293_v6  ;;  %v9770_v1 = vsel %vm9535_vm13, %v7159_v21, %v4297_v12  ;;  %v7017_v27 = vrot.slane %v2350_v25, 9  ;;  %v2526_v39 = vrot.slane %v8484_v58, 5  ;;  %v4121_v24 = vld [vmem:[#allocation2 + $0x128] sm:$0xe]  ;;  %v4122_v42 = vld [vmem:[#allocation2 + $0x130] sm:$0xe] }
 0x211   :  { %7891 = vmatmul.mubr.msk.bf16.gmra.mrb[4].mxu1 %vm1802_vm10, %v7173_v51  ;;  %v7177_v48 = vcombine.low %v9766_v50, %v9770_v1  ;;  %v7160_v19 = vrot.slane %v4119_v4, 9  ;;  %v4301_v44 = vrot.slane %v9495_v33, 5  ;;  %v2515_v40 = vsel %vm9535_vm13, %v7014_v26, %v2514_v46  ;;  %v2351_v33 = vld [vmem:[#allocation2 + $0x100] sm:$0xe]  ;;  %v2354_v59 = vld [vmem:[#allocation2 + $0x118] sm:$0xe] }
 0x212   :  { %7894 = vmatprep.mubr.msk.bf16.mxu1 %vm1802_vm10, %v7174_v60  ;;  %v7161_v34 = vrot.slane %v4120_v0, 9  ;;  %v4305_v61 = vrot.slane %v9502_v23, 5  ;;  %v2519_v17 = vsel %vm9535_vm13, %v7015_v32, %v2518_v13  ;;  %v2523_v51 = vsel %vm9535_vm13, %v7016_v7, %v2522_v10  ;;  %v2352_v30 = vld [vmem:[#allocation2 + $0x108] sm:$0xe]  ;;  %v8485_v29 = vld [vmem:[#allocation2 + $0x104] sm:$0x1] }
 0x213   :  { %v2527_v38 = vsel %vm9535_vm13, %v7017_v27, %v2526_v39  ;;  %v4302_v52 = vsel %vm9535_vm13, %v7160_v19, %v4301_v44  ;;  %v7162_v62 = vrot.slane %v4121_v24, 9  ;;  %v4309_v23 = vrot.slane %v9512_v16, 5  ;;  %v2353_v55 = vld [vmem:[#allocation2 + $0x110] sm:$0xe]  ;;  %v8486_v20 = vld [vmem:[#allocation2 + $0x11c] sm:$0x1] }
 0x214   :  { %v4306_v49 = vsel %vm9535_vm13, %v7161_v34, %v4305_v61  ;;  %v7035_v56 = vcombine.low %v2515_v40, %v2519_v17  ;;  %v7163_v41 = vrot.slane %v4122_v42, 9  ;;  %v4313_v57 = vrot.slane %v9518_v28, 5  ;;  %v8487_v28 = vld [vmem:[#allocation2 + $0x10c] sm:$0x1]  ;;  %v8488_v25 = vld [vmem:[#allocation2 + $0x114] sm:$0x1] }
 0x215   :  { %v7178_v37 = vcombine.low %v4302_v52, %v4306_v49  ;;  %v7036_v8 = vcombine.low %v2523_v51, %v2527_v38  ;;  %v7018_v43 = vrot.slane %v2351_v33, 9  ;;  %v2530_v54 = vrot.slane %v8485_v29, 5  ;;  %v2355_v12 = vld [vmem:[#allocation2 + $0x120] sm:$0xe]  ;;  %v2356_v4 = vld [vmem:[#allocation2 + $0x128] sm:$0xe] }
 0x216   :  { %v4310_v60 = vsel %vm9535_vm13, %v7162_v62, %v4309_v23  ;;  %v4314_v16 = vsel %vm9535_vm13, %v7163_v41, %v4313_v57  ;;  %v7021_v45 = vrot.slane %v2354_v59, 9  ;;  %v2542_v31 = vrot.slane %v8486_v20, 5  ;;  %v8489_v15 = vld [vmem:[#allocation2 + $0x124] sm:$0x1]  ;;  %v8490_v13 = vld [vmem:[#allocation2 + $0x12c] sm:$0x1] }
 0x217   :  { %7775 = vmatmul.mubr.msk.bf16.gmra.mrb[52].mxu0 %vm1802_vm10, %v7035_v56  ;;  %v7019_v26 = vrot.slane %v2352_v30, 9  ;;  %v2534_v63 = vrot.slane %v8487_v28, 5  ;;  %v7179_v18 = vcombine.low %v4310_v60, %v4314_v16  ;;  %v7020_v6 = vrot.slane %v2353_v55, 9  ;;  %v8398_v50 = vld [vmem:[#allocation2 + $0x8] ss:$8 sps:$4 sm:$0xff]   ;;  %v8417_v42 = vld [vmem:[%s10643_s3 + $0xf8] sm:$0xff]  }
 0x218   :  { %7778 = vmatprep.mubr.msk.bf16.mxu0 %vm1802_vm10, %v7036_v8  ;;  %v2538_v9 = vrot.slane %v8488_v25, 5  ;;  %v2531_v46 = vsel %vm9535_vm13, %v7018_v43, %v2530_v54  ;;  %v2543_v21 = vsel %vm9535_vm13, %v7021_v45, %v2542_v31  ;;  %v7022_v36 = vrot.slane %v2355_v12, 9  ;;  %v8395_v1 = vld [vmem:[#allocation2 + $0x10] ss:$8 sps:$4 sm:$0xff]   ;;  %v8397_v39 = vld [vmem:[#allocation2 + $0x20] ss:$8 sps:$4 sm:$0xff]  }
 0x219   :  { %7895 = vmatmul.mubr.msk.bf16.gmra.mrb[8].mxu1 %vm1802_vm10, %v7175_v35  ;;  %v2535_v5 = vsel %vm9535_vm13, %v7019_v26, %v2534_v63  ;;  %v2546_v2 = vrot.slane %v8489_v15, 5  ;;  %v2550_v7 = vrot.slane %v8490_v13, 5  ;;  %v8400_v27 = vld [vmem:[#allocation2 + $0x18] ss:$8 sps:$4 sm:$0xff]   ;;  %v8402_v58 = vld [vmem:[#allocation2 + $0x28] ss:$8 sps:$4 sm:$0xff]  }
 0x21a   :  { %7898 = vmatprep.mubr.msk.bf16.mxu1 %vm1802_vm10, %v7176_v3  ;;  %v7037_v11 = vcombine.low %v2531_v46, %v2535_v5  ;;  %v2539_v35 = vsel %vm9535_vm13, %v7020_v6, %v2538_v9  ;;  %v7023_v3 = vrot.slane %v2356_v4, 9  ;;  %v8399_v19 = vld [vmem:[#allocation2 + $0x30] ss:$8 sps:$4 sm:$0xff]   ;;  %v8401_v61 = vld [vmem:[#allocation2 + $0x40] ss:$8 sps:$4 sm:$0xff]  }
 0x21b   :  { %v7038_v32 = vcombine.low %v2539_v35, %v2543_v21  ;;  %v2547_v14 = vsel %vm9535_vm13, %v7022_v36, %v2546_v2  ;;  %v8412_v44 = vld [vmem:[%s10643_s3 + $0xf0] sm:$0xff]   ;;  %v8405_v24 = vld [vmem:[#allocation2 + $0x38] ss:$8 sps:$4 sm:$0xff]   ;;  %v9854_v31 = vld [vmem:[#allocation2 + $0x1c] sm:$0x1] }
 0x21c   :  { %v2551_v10 = vsel %vm9535_vm13, %v7023_v3, %v2550_v7  ;;  %v5022_v40 = vld [vmem:[#allocation2 + $0x10] sm:$0xf]  ;;  %v8407_v34 = vld [vmem:[#allocation2 + $0x58] ss:$8 sps:$4 sm:$0xff]   ;;  %v9850_v54 = vld [vmem:[#allocation2 + $0x14] sm:$0x1] }
 0x21d   :  { %v7039_v0 = vcombine.low %v2547_v14, %v2551_v10  ;;  %v8403_v17 = vld [vmem:[#allocation2 + $0x60] ss:$8 sps:$4 sm:$0xff]   ;;  %v5087_v51 = vshrl.u32 %v5022_v40, 16  ;;  %v5090_v38 = vshll.u32 %v5022_v40, 16  ;;  %v8406_v43 = vld [vmem:[#allocation2 + $0x70] ss:$8 sps:$4 sm:$0xff]  }
 0x21e   :  { %v9847_v49 = vld [vmem:[%s10643_s3 + $0x100] sm:$0xff]   ;;  %v8409_v56 = vld [vmem:[#allocation2 + $0x68] ss:$8 sps:$4 sm:$0xff]   ;;  %v5032_v20 = vld [vmem:[#allocation2 + $0x38] sm:$0xf]  ;;  %v5096_v28 = vshll.u32 %v9850_v54, 16 }
 0x21f   :  { %7779 = vmatmul.mubr.msk.bf16.gmra.mrb[56].mxu0 %vm1802_vm10, %v7037_v11  ;;  %v5026_v62 = vld [vmem:[#allocation2 + $0x20] sm:$0xf]  ;;  %v5089_v23 = vrot.slane %v5087_v51, 4  ;;  %v5092_v59 = vrot.slane %v5090_v38, 5  ;;  %v5030_v45 = vld [vmem:[#allocation2 + $0x30] sm:$0xf] }
 0x220   :  { %7782 = vmatprep.mubr.msk.bf16.mxu0 %vm1802_vm10, %v7038_v32  ;;  %v5115_v57 = vshrl.u32 %v5026_v62, 16  ;;  %v5118_v8 = vshll.u32 %v5026_v62, 16  ;;  %v8408_v29 = vld [vmem:[#allocation2 + $0x80] ss:$8 sps:$4 sm:$0xff]   ;;  %v9858_v9 = vld [vmem:[#allocation2 + $0x24] sm:$0x1] }
 0x221   :  { %7899 = vmatmul.mubr.msk.bf16.gmra.mrb[12].mxu1 %vm1802_vm10, %v7177_v48  ;;  %v8404_v48 = vld [vmem:[%s10643_s3 + $0xe8] sm:$0xff]   ;;  %v5093_v55 = vor.u32 %v5092_v59, %v5089_v23  ;;  %v5034_v26 = vld [vmem:[#allocation2 + $0x40] sm:$0xf]  ;;  %v5143_v46 = vshrl.u32 %v5030_v45, 16  ;;  %v5146_v21 = vshll.u32 %v5030_v45, 16  ;;  %v5157_v12 = vshrl.u32 %v5032_v20, 16 }
 0x222   :  { %7902 = vmatprep.mubr.msk.bf16.mxu1 %vm1802_vm10, %v7178_v37  ;;  %v5028_v37 = vld [vmem:[#allocation2 + $0x28] sm:$0xf]  ;;  %v5120_v6 = vrot.slane %v5118_v8, 5  ;;  %v5160_v5 = vshll.u32 %v5032_v20, 16  ;;  %v5110_v35 = vshll.u32 %v9854_v31, 16  ;;  %v5171_v2 = vshrl.u32 %v5034_v26, 16 }
 0x223   :  { %v5129_v60 = vshrl.u32 %v5028_v37, 16  ;;  %v5132_v16 = vshll.u32 %v5028_v37, 16  ;;  %v5036_v25 = vld [vmem:[#allocation2 + $0x48] sm:$0xf]  ;;  %v5094_v11 = vrot.slane %v5093_v55, 4  ;;  %v5174_v3 = vshll.u32 %v5034_v26, 16 }
 0x224   :  { %v8410_v36 = vld [vmem:[#allocation2 + $0x90] ss:$8 sps:$4 sm:$0xff]   ;;  %v9861_v15 = vld [vmem:[#allocation2 + $0x2c] sm:$0x1]  ;;  %v5185_v13 = vshrl.u32 %v5036_v25, 16  ;;  %v5188_v7 = vshll.u32 %v5036_v25, 16 }
 0x225   :  { %v5131_v4 = vrot.slane %v5129_v60, 4  ;;  %v5134_v32 = vrot.slane %v5132_v16, 5  ;;  %v5098_v14 = vrot.slane %v5096_v28, 5  ;;  %v5112_v40 = vrot.slane %v5110_v35, 5  ;;  %v5040_v38 = vld [vmem:[#allocation2 + $0x68] sm:$0xf] }
 0x226   :  { %v5190_v51 = vrot.slane %v5188_v7, 5  ;;  %v9876_v37 = vld [vmem:[#allocation2 + $0x3c] sm:$0x1]  ;;  %v5213_v55 = vshrl.u32 %v5040_v38, 16  ;;  %v5216_v60 = vshll.u32 %v5040_v38, 16 }
 0x227   :  { %7783 = vmatmul.mubr.msk.bf16.gmra.mrb[60].mxu0 %vm1802_vm10, %v7039_v0  ;;  %v8413_v16 = vld [vmem:[#allocation2 + $0xc0] ss:$8 sps:$4 sm:$0xff]  }
 0x228   :  { %7794 = vmatprep.mubr.msk.bf16.mxu0 %vm1802_vm10, %v8398_v50  ;;  %v5124_v50 = vshll.u32 %v9858_v9, 16  ;;  %v8415_v38 = vld [vmem:[#allocation2 + $0xe0] ss:$8 sps:$4 sm:$0xff]  }
 0x229   :  { %7903 = vmatmul.mubr.msk.bf16.gmra.mrb[16].mxu1 %vm1802_vm10, %v7179_v18  ;;  %v5117_v18 = vrot.slane %v5115_v57, 4  ;;  %v9878_v57 = vld [vmem:[#allocation2 + $0x44] sm:$0x1] }
 0x22a   :  { %7914 = vmatprep.mubr.msk.bf16.mxu1 %vm1802_vm10, %v8395_v1  ;;  %v9864_v1 = vld [vmem:[#allocation2 + $0x34] sm:$0x1]  ;;  %v5180_v25 = vshll.u32 %v9878_v57, 16 }
 0x22b   :  { %v5121_v0 = vor.u32 %v5120_v6, %v5117_v18  ;;  %v8414_v18 = vld [vmem:[#allocation2 + $0xd0] ss:$8 sps:$4 sm:$0xff]   ;;  %v5166_v6 = vshll.u32 %v9876_v37, 16  ;;  %v5969_v47 = vrot.slane %v9864_v1, 5 }
 0x22f   :  { %7795 = vmatmul.mubr.msk.bf16.vlgmr.msra.gmra.mrb[32].mxu0 %vm1802_vm10, %v8400_v27  ;;  %v5145_v27 = vrot.slane %v5143_v46, 4  ;;  %v9887_v46 = vld [vmem:[#allocation2 + $0x64] sm:$0x1] }
 0x230   :  { %7798 = vmatprep.mubr.msk.bf16.mxu0 %vm1802_vm10, %v8402_v58  ;;  %v5148_v58 = vrot.slane %v5146_v21, 5 }
 0x231   :  { %7915 = vmatmul.mubr.msk.bf16.vlgmr.msra.gmra.mrb[20].mxu1 %vm1802_vm10, %v8397_v39  ;;  %v5159_v39 = vrot.slane %v5157_v12, 4 }
 0x232   :  { %7947 = vmatpush3.bf16.msra.mxu1 %v9666_v53  ;;  %7918 = vmatprep.mubr.msk.bf16.mxu1 %vm1802_vm10, %v8399_v19  ;;  %v5024_v53 = vld [vmem:[#allocation2 + $0x18] sm:$0xf]  ;;  %v5038_v19 = vld [vmem:[#allocation2 + $0x60] sm:$0xf] }
 0x233   :  { %7948 = vmatprep.subr.bf16.mxu1 %v8404_v48  ;;  %v5101_v33 = vshrl.u32 %v5024_v53, 16  ;;  %v5104_v52 = vshll.u32 %v5024_v53, 16  ;;  %v5176_v53 = vrot.slane %v5174_v3, 5  ;;  %v5199_v62 = vshrl.u32 %v5038_v19, 16  ;;  %v5044_v3 = vld [vmem:[#allocation2 + $0x78] sm:$0xf] }
 0x234   :  { %v5202_v23 = vshll.u32 %v5038_v19, 16  ;;  %v5046_v19 = vld [vmem:[#allocation2 + $0x80] sm:$0xf] }
 0x235   :  { %v5103_v30 = vrot.slane %v5101_v33, 4  ;;  %v5106_v41 = vrot.slane %v5104_v52, 5  ;;  %v9871_v33 = vrot.slane %v5124_v50, 5  ;;  %v5152_v52 = vshll.u32 %v9864_v1, 16  ;;  %v5863_v1 = vld [vmem:[#allocation2 + $0x60] sm:$0xe] }
 0x236   :  { %7949 = vmatpush3.bf16.msra.mxu1 %v8404_v48  ;;  %v5162_v48 = vrot.slane %v5160_v5, 5  ;;  %v5201_v21 = vrot.slane %v5199_v62, 4  ;;  %v5204_v12 = vrot.slane %v5202_v23, 5  ;;  %v9910_v62 = vld [vmem:[#allocation2 + $0x7c] sm:$0x1]  ;;  %v5255_v23 = vshrl.u32 %v5046_v19, 16 }
 0x237   :  { %7799 = vmatmul.mubr.msk.bf16.gmra.mrb[36].mxu0 %vm1802_vm10, %v8405_v24  ;;  %7950 = vmatprep.subr.bf16.mxu1 %v8412_v44  ;;  %v5107_v63 = vor.u32 %v5106_v41, %v5103_v30  ;;  %v5099_v24 = vsel %vm8886_vm9, %v5094_v11, %v5098_v14  ;;  %v5149_v30 = vor.u32 %v5148_v58, %v5145_v27  ;;  %v5154_v35 = vrot.slane %v5152_v52, 5 }
 0x238   :  { %7802 = vmatprep.mubr.msk.bf16.mxu0 %vm1802_vm10, %v8407_v34  ;;  %v5135_v34 = vor.u32 %v5134_v32, %v5131_v4  ;;  %v5163_v41 = vor.u32 %v5162_v48, %v5159_v39  ;;  %v9892_v32 = vld [vmem:[#allocation2 + $0x6c] sm:$0x1]  ;;  %v5168_v27 = vrot.slane %v5166_v6, 5  ;;  %v5182_v58 = vrot.slane %v5180_v25, 5 }
 0x239   :  { %7919 = vmatmul.mubr.msk.bf16.gmra.mrb[24].mxu1 %vm1802_vm10, %v8401_v61  ;;  %v5108_v10 = vrot.slane %v5107_v63, 4  ;;  %v5138_v61 = vshll.u32 %v9861_v15, 16  ;;  %v5042_v63 = vld [vmem:[#allocation2 + $0x70] sm:$0xf]  ;;  %v5150_v11 = vrot.slane %v5149_v30, 4  ;;  %10672 = vst [vmem:[#allocation6_spill] sm:$0xff] %v9892_v32  ;;  %v5205_v39 = vor.u32 %v5204_v12, %v5201_v21 }
 0x23a   :  { %7922 = vmatprep.mubr.msk.bf16.mxu1 %vm1802_vm10, %v8403_v17  ;;  %7951 = vmatpush3.bf16.msra.mxu1 %v8412_v44  ;;  %v8411_v44 = vld [vmem:[#allocation2 + $0xb0] ss:$8 sps:$4 sm:$0xff]   ;;  %v5187_v17 = vrot.slane %v5185_v13, 4  ;;  %v5136_v45 = vrot.slane %v5135_v34, 4  ;;  %v5164_v4 = vrot.slane %v5163_v41, 4  ;;  %v5227_v13 = vshrl.u32 %v5042_v63, 16 }
 0x23b   :  { %7952 = vmatprep.subr.bf16.mxu1 %v8417_v42  ;;  %v5113_v59 = vsel %vm8886_vm9, %v5108_v10, %v5112_v40  ;;  %v5230_v7 = vshll.u32 %v5042_v63, 16  ;;  %v5208_v48 = vshll.u32 %v9887_v46, 16  ;;  %v5241_v40 = vshrl.u32 %v5044_v3, 16  ;;  %v8416_v63 = vld [vmem:[#allocation2 + $0x100] ss:$8 sps:$4 sm:$0xff]  }
 0x23c   :  { %v9880_v8 = vcombine.low %v5099_v24, %v5113_v59  ;;  %v5191_v26 = vor.u32 %v5190_v51, %v5187_v17  ;;  %v5222_v24 = vshll.u32 %v9892_v32, 16  ;;  %v5244_v34 = vshll.u32 %v5044_v3, 16  ;;  %v5052_v12 = vld [vmem:[#allocation2 + $0x98] sm:$0xf]  ;;  %v5871_v32 = vld [vmem:[#allocation2 + $0xb0] sm:$0xe] }
 0x23d   :  { %v5229_v17 = vrot.slane %v5227_v13, 4  ;;  %v5232_v51 = vrot.slane %v5230_v7, 5  ;;  %v5258_v59 = vshll.u32 %v5046_v19, 16  ;;  %v5206_v41 = vrot.slane %v5205_v39, 4  ;;  %v9933_v39 = vld [vmem:[#allocation2 + $0x8c] sm:$0x1] }
 0x23e   :  { %7953 = vmatpush3.bf16.msra.mxu1 %v8417_v42  ;;  %v5173_v42 = vrot.slane %v5171_v2, 4  ;;  %v5218_v2 = vrot.slane %v5216_v60, 5  ;;  %v5048_v60 = vld [vmem:[#allocation2 + $0x88] sm:$0xf]  ;;  %v5250_v21 = vshll.u32 %v9910_v62, 16 }
 0x23f   :  { %7803 = vmatmul.mubr.msk.bf16.gmra.mrb[40].mxu0 %vm1802_vm10, %v8409_v56  ;;  %7986 = vmatprep.subr.bf16.mxu1 %v9847_v49  ;;  %v5122_v56 = vrot.slane %v5121_v0, 4  ;;  %v5192_v0 = vrot.slane %v5191_v26, 4  ;;  %v5246_v26 = vrot.slane %v5244_v34, 5  ;;  %v5233_v25 = vor.u32 %v5232_v51, %v5229_v17  ;;  %v8419_v17 = vld [vmem:[#allocation2 + $0x120] ss:$8 sps:$4 sm:$0xff]  }
 0x240   :  { %v5177_v20 = vor.u32 %v5176_v53, %v5173_v42  ;;  %v9904_v53 = vld [vmem:[#allocation2 + $0x74] sm:$0x1] }
 0x241   :  { %7923 = vmatmul.mubr.msk.bf16.gmra.mrb[28].mxu1 %vm1802_vm10, %v8406_v43  ;;  %v5140_v43 = vrot.slane %v5138_v61, 5  ;;  %v5127_v5 = vsel %vm8886_vm9, %v5122_v56, %v9871_v33  ;;  %v5169_v61 = vsel %vm8886_vm9, %v5164_v4, %v5168_v27  ;;  %v5272_v4 = vshll.u32 %v5048_v60, 16 }
 0x242   :  { %7926 = vmatprep.mubr.msk.bf16.mxu1 %vm1802_vm10, %v8408_v29  ;;  %v9882_v29 = vld [vmem:[#allocation2 + $0x4c] sm:$0x1]  ;;  %v5178_v10 = vrot.slane %v5177_v20, 4  ;;  %v5243_v20 = vrot.slane %v5241_v40, 4 }
 0x243   :  { %v5194_v28 = vshll.u32 %v9882_v29, 16  ;;  %v5141_v14 = vsel %vm8886_vm9, %v5136_v45, %v5140_v43  ;;  %v5210_v43 = vrot.slane %v5208_v48, 5  ;;  %v5236_v45 = vshll.u32 %v9904_v53, 16 }
 0x244   :  { %v5183_v33 = vsel %vm8886_vm9, %v5178_v10, %v5182_v58  ;;  %v9912_v56 = vcombine.low %v5127_v5, %v5141_v14  ;;  %v5257_v5 = vrot.slane %v5255_v23, 4  ;;  %v5247_v10 = vor.u32 %v5246_v26, %v5243_v20  ;;  %v5058_v23 = vld [vmem:[#allocation2 + $0xc0] sm:$0xf] }
 0x245   :  { %v5196_v50 = vrot.slane %v5194_v28, 5  ;;  %v5050_v28 = vld [vmem:[#allocation2 + $0x90] sm:$0xf]  ;;  %v9927_v14 = vrot.slane %v5236_v45, 5  ;;  %v9931_v58 = vrot.slane %v5233_v25, 4 }
 0x246   :  { %v5283_v13 = vshrl.u32 %v5050_v28, 16  ;;  %v5286_v7 = vshll.u32 %v5050_v28, 16  ;;  %v9940_v45 = vld [vmem:[#allocation2 + $0x94] sm:$0x1] }
 0x247   :  { %v5197_v52 = vsel %vm8886_vm9, %v5192_v0, %v5196_v50  ;;  %v5297_v0 = vshrl.u32 %v5052_v12, 16  ;;  %v5300_v50 = vshll.u32 %v5052_v12, 16  ;;  %v5342_v12 = vshll.u32 %v5058_v23, 16 }
 0x249   :  { %7927 = vmatmul.mubr.msk.bf16.gmra.mrb[0].mxu1 %vm1802_vm10, %v8410_v36  ;;  %v5215_v36 = vrot.slane %v5213_v55, 4  ;;  %v9916_v55 = vld [vmem:[#allocation2 + $0x84] sm:$0x1] }
 0x24a   :  { %7930 = vmatprep.mubr.msk.bf16.mxu1 %vm1802_vm10, %v8411_v44  ;;  %v5155_v44 = vsel %vm8886_vm9, %v5150_v11, %v5154_v35  ;;  %v5260_v11 = vrot.slane %v5258_v59, 5  ;;  %v5269_v35 = vshrl.u32 %v5048_v60, 16  ;;  %v5264_v3 = vshll.u32 %v9916_v55, 16 }
 0x24b   :  { %v5219_v42 = vor.u32 %v5218_v2, %v5215_v36  ;;  %v9914_v30 = vcombine.low %v5155_v44, %v5169_v61  ;;  %v5054_v36 = vld [vmem:[#allocation2 + $0xb0] sm:$0xf]  ;;  %v5211_v2 = vsel %vm8886_vm9, %v5206_v41, %v5210_v43  ;;  %v5274_v61 = vrot.slane %v5272_v4, 5 }
 0x24c   :  { %v5311_v48 = vshrl.u32 %v5054_v36, 16  ;;  %v5314_v19 = vshll.u32 %v5054_v36, 16  ;;  %v8418_v44 = vld [vmem:[#allocation2 + $0x110] ss:$8 sps:$4 sm:$0xff]   ;;  %v5261_v40 = vor.u32 %v5260_v11, %v5257_v5  ;;  %v5271_v34 = vrot.slane %v5269_v35, 4 }
 0x24d   :  { %v5220_v6 = vrot.slane %v5219_v42, 4  ;;  %v5056_v42 = vld [vmem:[#allocation2 + $0xb8] sm:$0xf]  ;;  %v5248_v59 = vrot.slane %v5247_v10, 4  ;;  %v5278_v41 = vshll.u32 %v9933_v39, 16  ;;  %v5299_v43 = vrot.slane %v5297_v0, 4 }
 0x24e   :  { %v5302_v60 = vrot.slane %v5300_v50, 5  ;;  %v5313_v20 = vrot.slane %v5311_v48, 4  ;;  %v5316_v26 = vrot.slane %v5314_v19, 5  ;;  %v5325_v28 = vshrl.u32 %v5056_v42, 16  ;;  %v9948_v11 = vld [vmem:[#allocation2 + $0x9c] sm:$0x1] }
 0x24f   :  { %v5275_v25 = vor.u32 %v5274_v61, %v5271_v34  ;;  %v5239_v5 = vsel %vm8886_vm9, %v9931_v58, %v9927_v14  ;;  %v9952_v10 = vld [vmem:[#allocation2 + $0xb4] sm:$0x1]  ;;  %v9956_v50 = vld [vmem:[#allocation2 + $0xbc] sm:$0x1]  ;;  %v9958_v48 = vld [vmem:[#allocation2 + $0xc4] sm:$0x1] }
 0x250   :  { %v5327_v14 = vrot.slane %v5325_v28, 4  ;;  %v8420_v19 = vld [vmem:[#allocation2 + $0x130] ss:$8 sps:$4 sm:$0xff]   ;;  %v5344_v61 = vrot.slane %v5342_v12, 5 }
 0x251   :  { %7931 = vmatmul.mubr.msk.bf16.gmra.mrb[4].mxu1 %vm1802_vm10, %v8413_v16  ;;  %v5224_v16 = vrot.slane %v5222_v24, 5  ;;  %v5252_v24 = vrot.slane %v5250_v21, 5  ;;  %v5339_v21 = vshrl.u32 %v5058_v23, 16 }
 0x252   :  { %7934 = vmatprep.mubr.msk.bf16.mxu1 %vm1802_vm10, %v8414_v18  ;;  %v9919_v18 = vcombine.low %v5183_v33, %v5197_v52  ;;  %v5285_v33 = vrot.slane %v5283_v13, 4  ;;  %v5288_v52 = vrot.slane %v5286_v7, 5  ;;  %v5303_v13 = vor.u32 %v5302_v60, %v5299_v43  ;;  %v5064_v60 = vld [vmem:[#allocation2 + $0xd8] sm:$0xf] }
 0x253   :  { %v5225_v27 = vsel %vm8886_vm9, %v5220_v6, %v5224_v16  ;;  %v5060_v16 = vld [vmem:[#allocation2 + $0xc8] sm:$0xf]  ;;  %v5262_v6 = vrot.slane %v5261_v40, 4  ;;  %v5306_v7 = vshll.u32 %v9948_v11, 16  ;;  %v5253_v0 = vsel %vm8886_vm9, %v5248_v59, %v5252_v24 }
 0x254   :  { %v9935_v51 = vcombine.low %v5211_v2, %v5225_v27  ;;  %v5289_v35 = vor.u32 %v5288_v52, %v5285_v33  ;;  %v5353_v4 = vshrl.u32 %v5060_v16, 16  ;;  %v5356_v36 = vshll.u32 %v5060_v16, 16  ;;  %v5062_v52 = vld [vmem:[#allocation2 + $0xd0] sm:$0xf] }
 0x255   :  { %v5280_v2 = vrot.slane %v5278_v41, 5  ;;  %v5317_v27 = vor.u32 %v5316_v26, %v5313_v20  ;;  %v5276_v40 = vrot.slane %v5275_v25, 4  ;;  %v5341_v34 = vrot.slane %v5339_v21, 4 }
 0x256   :  { %v5355_v24 = vrot.slane %v5353_v4, 4  ;;  %v5358_v33 = vrot.slane %v5356_v36, 5  ;;  %v9966_v23 = vrot.slane %v5303_v13, 4  ;;  %v9968_v59 = vrot.slane %v5306_v7, 5  ;;  %v9989_v4 = vld [vmem:[#allocation2 + $0xd4] sm:$0x1] }
 0x257   :  { %v5334_v41 = vshll.u32 %v9956_v50, 16  ;;  %v5348_v43 = vshll.u32 %v9958_v48, 16  ;;  %v9976_v20 = vrot.slane %v5317_v27, 4  ;;  %v5281_v28 = vsel %vm8886_vm9, %v5276_v40, %v5280_v2  ;;  %v5865_v27 = vld [vmem:[#allocation2 + $0x70] sm:$0xe] }
 0x258   :  { %v5367_v25 = vshrl.u32 %v5062_v52, 16  ;;  %v5370_v21 = vshll.u32 %v5062_v52, 16  ;;  %v5381_v36 = vshrl.u32 %v5064_v60, 16  ;;  %v5384_v40 = vshll.u32 %v5064_v60, 16  ;;  %v10084_v2 = vld [vmem:[#allocation2 + $0x104] sm:$0x1] }
 0x259   :  { %7935 = vmatmul.mubr.msk.bf16.gmra.mrb[8].mxu1 %vm1802_vm10, %v8415_v38  ;;  %v9937_v38 = vrot.slane %v5264_v3, 5  ;;  %v5292_v3 = vshll.u32 %v9940_v45, 16  ;;  %v10001_v13 = vrot.slane %v5334_v41, 5  ;;  %v10003_v7 = vrot.slane %v5348_v43, 5  ;;  %v5868_v41 = vld [vmem:[#allocation2 + $0x88] sm:$0xe] }
 0x25a   :  { %7938 = vmatprep.mubr.msk.bf16.mxu1 %vm1802_vm10, %v8416_v63  ;;  %v5328_v63 = vshll.u32 %v5056_v42, 16  ;;  %v9963_v42 = vrot.slane %v5289_v35, 4  ;;  %v5359_v35 = vor.u32 %v5358_v33, %v5355_v24  ;;  %v10019_v24 = vrot.slane %v5367_v25, 4 }
 0x25b   :  { %v9974_v16 = vrot.slane %v5292_v3, 5  ;;  %v9991_v3 = vld [vmem:[#allocation2 + $0xe0] sm:$0xf]  ;;  %v10021_v33 = vrot.slane %v5370_v21, 5  ;;  %v5993_v60 = vrot.slane %v9904_v53, 5  ;;  %v5997_v25 = vrot.slane %v9910_v62, 5 }
 0x25c   :  { %v5330_v58 = vrot.slane %v5328_v63, 5  ;;  %v9981_v63 = vld [vmem:[#allocation2 + $0xcc] sm:$0x1]  ;;  %v10024_v43 = vrot.slane %v5359_v35, 4  ;;  %v5870_v21 = vld [vmem:[#allocation2 + $0x98] sm:$0xe] }
 0x25d   :  { %v7285_v62 = vrot.slane %v5868_v41, 9  ;;  %v7287_v41 = vrot.slane %v5870_v21, 9 }
 0x25e   :  { %v5331_v26 = vor.u32 %v5330_v58, %v5327_v14  ;;  %v5866_v14 = vld [vmem:[#allocation2 + $0x78] sm:$0xe]  ;;  %v5869_v58 = vld [vmem:[#allocation2 + $0x90] sm:$0xe] }
 0x261   :  { %7939 = vmatmul.mubr.msk.bf16.gmra.mrb[12].mxu1 %vm1802_vm10, %v8418_v44  ;;  %v5267_v44 = vsel %vm8886_vm9, %v5262_v6, %v9937_v38  ;;  %v9972_v38 = vcombine.low %v5239_v5, %v5253_v0  ;;  %v5345_v6 = vor.u32 %v5344_v61, %v5341_v34  ;;  %v10005_v0 = vld [vmem:[#allocation2 + $0xe8] sm:$0xf]  ;;  %v5867_v34 = vld [vmem:[#allocation2 + $0x80] sm:$0xe] }
 0x262   :  { %7942 = vmatprep.mubr.msk.bf16.mxu1 %vm1802_vm10, %v8419_v17  ;;  %v5320_v17 = vshll.u32 %v9952_v10, 16  ;;  %v9985_v12 = vcombine.low %v5267_v44, %v5281_v28  ;;  %v8422_v61 = vld [vmem:[%s10643_s3 + $0x108] sm:$0xff]   ;;  %v7282_v28 = vrot.slane %v5865_v27, 9  ;;  %v10032_v44 = vrot.slane %v5384_v40, 5  ;;  %v5872_v40 = vld [vmem:[#allocation2 + $0xb8] sm:$0xe] }
 0x263   :  { %v7284_v35 = vrot.slane %v5867_v34, 9  ;;  %v7286_v34 = vrot.slane %v5869_v58, 9  ;;  %v10067_v58 = vld [vmem:[#allocation2 + $0xe4] sm:$0x1]  ;;  %v7289_v52 = vrot.slane %v5872_v40, 9 }
 0x264   :  { %v9987_v5 = vrot.slane %v5320_v17, 5  ;;  %v10017_v17 = vrot.slane %v5345_v6, 4  ;;  %v10040_v53 = vsel %vm9535_vm13, %v7282_v28, %v5993_v60  ;;  %v5873_v28 = vld [vmem:[#allocation2 + $0xc0] sm:$0xe]  ;;  %v6013_v60 = vrot.slane %v9948_v11, 5 }
 0x265   :  { %v5875_v6 = vld [vmem:[#allocation2 + $0xd0] sm:$0xe]  ;;  %v7290_v21 = vrot.slane %v5873_v28, 9 }
 0x266   :  { %v10080_v11 = vsel %vm9535_vm13, %v7287_v41, %v6013_v60  ;;  %v5877_v41 = vld [vmem:[#allocation2 + $0xe0] sm:$0xe]  ;;  %v5878_v60 = vld [vmem:[#allocation2 + $0xe8] sm:$0xe] }
 0x267   :  { %10677 = vst [vmem:[#allocation11_spill] sm:$0xff] %v10080_v11  ;;  %v10109_v11 = vld [vmem:[#allocation2 + $0x11c] sm:$0x1] }
 0x269   :  { %7943 = vmatmul.mubr.msk.bf16.gmra.mrb[16].mxu1 %vm1802_vm10, %v8420_v19  ;;  %v10011_v19 = vrot.slane %v5331_v26, 4  ;;  %v10026_v26 = vrot.slane %v5381_v36, 4  ;;  %v6001_v36 = vrot.slane %v9916_v55, 5 }
 0x26a   :  { %7954 = vmatprep.mubr.msk.bf16.mxu1 %vm1802_vm10, %v9880_v8  ;;  %v7283_v8 = vrot.slane %v5866_v14, 9  ;;  %v6005_v14 = vrot.slane %v9933_v39, 5  ;;  %v8423_v39 = vld [vmem:[%s10643_s3 + $0x110] sm:$0xff]  }
 0x26b   :  { %v10054_v55 = vsel %vm9535_vm13, %v7284_v35, %v6001_v36  ;;  %v5874_v35 = vld [vmem:[#allocation2 + $0xc8] sm:$0xe] }
 0x26c   :  { %v10044_v27 = vsel %vm9535_vm13, %v7283_v8, %v5997_v25  ;;  %10674 = vst [vmem:[#allocation8_spill] sm:$0xff] %v10054_v55  ;;  %v6009_v8 = vrot.slane %v9940_v45, 5  ;;  %v7288_v25 = vrot.slane %v5871_v32, 9  ;;  %v6021_v32 = vrot.slane %v9956_v50, 5  ;;  %v5876_v45 = vld [vmem:[#allocation2 + $0xd8] sm:$0xe] }
 0x26d   :  { %10673 = vst [vmem:[#allocation7_spill] sm:$0xff] %v10044_v27  ;;  %v10093_v50 = vld [vmem:[#allocation2 + $0x10c] sm:$0x1]  ;;  %v7293_v55 = vrot.slane %v5876_v45, 9  ;;  %v7295_v45 = vrot.slane %v5878_v60, 9 }
 0x26e   :  { %v10073_v36 = vsel %vm9535_vm13, %v7286_v34, %v6009_v8  ;;  %v7291_v34 = vrot.slane %v5874_v35, 9  ;;  %v6029_v8 = vrot.slane %v9981_v63, 5  ;;  %v10102_v28 = vsel %vm9535_vm13, %v7289_v52, %v6021_v32  ;;  %v5880_v32 = vld [vmem:[#allocation2 + $0x108] sm:$0xe]  ;;  %v10151_v27 = vld [vmem:[#allocation2 + $0x134] sm:$0x1] }
 0x26f   :  { %10676 = vst [vmem:[#allocation10_spill] sm:$0xff] %v10073_v36  ;;  %10679 = vst [vmem:[#allocation13_spill] sm:$0xff] %v10102_v28  ;;  %v6033_v35 = vrot.slane %v9989_v4, 5  ;;  %v7294_v36 = vrot.slane %v5877_v41, 9  ;;  %v6061_v41 = vrot.slane %v10109_v11, 5 }
 0x271   :  { %7955 = vmatmul.mubr.msk.bf16.vlgmr.msra.gmra.mrb[20].mxu1 %vm1802_vm10, %v9912_v56  ;;  %v6017_v56 = vrot.slane %v9952_v10, 5  ;;  %v5879_v10 = vld [vmem:[#allocation2 + $0x100] sm:$0xe] }
 0x272   :  { %7987 = vmatpush3.bf16.msra.mxu1 %v9847_v49  ;;  %7958 = vmatprep.mubr.msk.bf16.mxu1 %vm1802_vm10, %v9914_v30  ;;  %v10060_v49 = vld [vmem:[#allocation2 + $0xdc] sm:$0x1]  ;;  %v10064_v30 = vsel %vm9535_vm13, %v7285_v62, %v6005_v14  ;;  %v10076_v62 = vld [vmem:[#allocation2 + $0xec] sm:$0x1]  ;;  %v6025_v14 = vrot.slane %v9958_v48, 5 }
 0x273   :  { %7988 = vmatprep.subr.bf16.mxu1 %v8422_v61  ;;  %10675 = vst [vmem:[#allocation9_spill] sm:$0xff] %v10064_v30  ;;  %v10090_v40 = vsel %vm9535_vm13, %v7288_v25, %v6017_v56  ;;  %v8424_v48 = vld [vmem:[%s10643_s3 + $0x118] sm:$0xff]   ;;  %v7292_v25 = vrot.slane %v5875_v6, 9  ;;  %v10115_v30 = vsel %vm9535_vm13, %v7291_v34, %v6029_v8  ;;  %v6037_v52 = vrot.slane %v10060_v49, 5  ;;  %v10120_v6 = vld [vmem:[#allocation2 + $0x124] sm:$0x1] }
 0x274   :  { %10678 = vst [vmem:[#allocation12_spill] sm:$0xff] %v10090_v40  ;;  %v10106_v56 = vsel %vm9535_vm13, %v7290_v21, %v6025_v14  ;;  %10681 = vst [vmem:[#allocation15_spill] sm:$0xff] %v10115_v30  ;;  %v6041_v34 = vrot.slane %v10067_v58, 5  ;;  %v5881_v8 = vld [vmem:[#allocation2 + $0x110] sm:$0xe]  ;;  %v6045_v28 = vrot.slane %v10076_v62, 5 }
 0x275   :  { %10680 = vst [vmem:[#allocation14_spill] sm:$0xff] %v10106_v56  ;;  %v10126_v14 = vsel %vm9535_vm13, %v7292_v25, %v6033_v35  ;;  %v7296_v21 = vrot.slane %v5879_v10, 9  ;;  %v5882_v30 = vld [vmem:[#allocation2 + $0x118] sm:$0xe]  ;;  %v10136_v25 = vld [vmem:[#allocation2 + $0x12c] sm:$0x1] }
 0x276   :  { %7989 = vmatpush3.bf16.msra.mxu1 %v8422_v61  ;;  %v10098_v61 = vld [vmem:[#allocation2 + $0x114] sm:$0x1]  ;;  %v10142_v35 = vsel %vm9535_vm13, %v7294_v36, %v6041_v34  ;;  %v10147_v60 = vsel %vm9535_vm13, %v7295_v45, %v6045_v28  ;;  %v6053_v10 = vrot.slane %v10093_v50, 5  ;;  %v5884_v40 = vld [vmem:[#allocation2 + $0x128] sm:$0xe] }
 0x277   :  { %7990 = vmatprep.subr.bf16.mxu1 %v8423_v39  ;;  %10683 = vst [vmem:[#allocation17_spill] sm:$0xff] %v10142_v35  ;;  %10684 = vst [vmem:[#allocation18_spill] sm:$0xff] %v10147_v60  ;;  %v6057_v56 = vrot.slane %v10098_v61, 5  ;;  %v5885_v28 = vld [vmem:[#allocation2 + $0x130] sm:$0xe]  ;;  %v6065_v60 = vrot.slane %v10120_v6, 5 }
 0x278   :  { %v10160_v45 = vld [vmem:[#allocation2 + $0x13c] sm:$0x1]  ;;  %v7301_v35 = vrot.slane %v5884_v40, 9 }
 0x279   :  { %7959 = vmatmul.mubr.msk.bf16.gmra.mrb[24].mxu1 %vm1802_vm10, %v9919_v18  ;;  %v10133_v18 = vsel %vm9535_vm13, %v7293_v55, %v6037_v52  ;;  %v5883_v55 = vld [vmem:[#allocation2 + $0x120] sm:$0xe]  ;;  %v7298_v52 = vrot.slane %v5881_v8, 9 }
 0x27a   :  { %7962 = vmatprep.mubr.msk.bf16.mxu1 %vm1802_vm10, %v9935_v51  ;;  %7991 = vmatpush3.bf16.msra.mxu1 %v8423_v39  ;;  %10682 = vst [vmem:[#allocation16_spill] sm:$0xff] %v10133_v18  ;;  %v6049_v51 = vrot.slane %v10084_v2, 5  ;;  %v7297_v39 = vrot.slane %v5880_v32, 9  ;;  %v7299_v32 = vrot.slane %v5882_v30, 9  ;;  %v7300_v36 = vrot.slane %v5883_v55, 9 }
 0x27b   :  { %7992 = vmatprep.subr.bf16.mxu1 %v8424_v48  ;;  %v10168_v18 = vsel %vm9535_vm13, %v7298_v52, %v6057_v56  ;;  %v7302_v55 = vrot.slane %v5885_v28, 9  ;;  %v6073_v52 = vrot.slane %v10151_v27, 5  ;;  %v5412_v30 = vshll.u32 %v10005_v0, 16  ;;  %v10703_v22 = vld [vmem:[#allocation12_spill] sm:$0xff] }
 0x27c   :  { %v10157_v34 = vsel %vm9535_vm13, %v7296_v21, %v6049_v51  ;;  %v10164_v8 = vsel %vm9535_vm13, %v7297_v39, %v6053_v10  ;;  %v5886_v21 = vld [vmem:[#allocation2 + $0x138] sm:$0xe]  ;;  %v5070_v51 = vld [vmem:[#allocation2 + $0x100] sm:$0xf]  ;;  %v6069_v39 = vrot.slane %v10136_v25, 5  ;;  %v10182_v56 = vsel %vm9535_vm13, %v7300_v36, %v6065_v60 }
 0x27d   :  { %v5423_v60 = vshrl.u32 %v5070_v51, 16  ;;  %v5426_v36 = vshll.u32 %v5070_v51, 16  ;;  %v5072_v10 = vld [vmem:[#allocation2 + $0x108] sm:$0xf] }
 0x27e   :  { %7993 = vmatpush3.bf16.msra.mxu1 %v8424_v48  ;;  %v10175_v48 = vsel %vm9535_vm13, %v7299_v32, %v6061_v41  ;;  %v10190_v40 = vsel %vm9535_vm13, %v7301_v35, %v6069_v39  ;;  %v7303_v41 = vrot.slane %v5886_v21, 9  ;;  %v6077_v32 = vrot.slane %v10160_v45, 5 }
 0x27f   :  { %10685 = vst [vmem:[#allocation19_spill] sm:$0xff] %v10190_v40  ;;  %v5337_v35 = vsel %vm8886_vm9, %v10011_v19, %v10001_v13  ;;  %v10686_v21 = vshll.u32 %v9981_v63, 16  ;;  %v10688_v40 = vshll.u32 %v9991_v3, 16 }
 0x280   :  { %v10211_v51 = vsel %vm9535_vm13, %v7303_v41, %v6077_v32  ;;  %v5414_v32 = vrot.slane %v5412_v30, 5 }
 0x281   :  { %7963 = vmatmul.mubr.msk.bf16.gmra.mrb[28].mxu1 %vm1802_vm10, %v9972_v38  ;;  %v10199_v38 = vsel %vm9535_vm13, %v7302_v55, %v6073_v52  ;;  %v5364_v39 = vrot.slane %v10686_v21, 5  ;;  %v5387_v55 = vor.u32 %v10032_v44, %v10026_v26  ;;  %v10687_v52 = vshrl.u32 %v9991_v3, 16 }
 0x282   :  { %7966 = vmatprep.mubr.msk.bf16.mxu1 %vm1802_vm10, %v9985_v12  ;;  %v5373_v12 = vor.u32 %v10021_v33, %v10019_v24  ;;  %v5400_v13 = vrot.slane %v10688_v40, 5  ;;  %v7319_v63 = vcombine.low %v10199_v38, %v10211_v51  ;;  %v5390_v24 = vshll.u32 %v10060_v49, 16 }
 0x283   :  { %v5397_v28 = vrot.slane %v10687_v52, 4  ;;  %v5365_v19 = vsel %vm8886_vm9, %v10024_v43, %v5364_v39  ;;  %v10689_v33 = vshrl.u32 %v10005_v0, 16  ;;  %v5425_v44 = vrot.slane %v5423_v60, 4 }
 0x284   :  { %v5428_v26 = vrot.slane %v5426_v36, 5  ;;  %v5437_v21 = vshrl.u32 %v5072_v10, 16  ;;  %v5440_v52 = vshll.u32 %v5072_v10, 16  ;;  %v10690_v3 = vsel %vm8886_vm9, %v9966_v23, %v9968_v59 }
 0x285   :  { %v5411_v41 = vrot.slane %v10689_v33, 4  ;;  %v10691_v43 = vsel %vm8886_vm9, %v9963_v42, %v9974_v16  ;;  %v10692_v0 = vsel %vm8886_vm9, %v9976_v20, %v9987_v5  ;;  %v5374_v30 = vrot.slane %v5373_v12, 4  ;;  %v5076_v42 = vld [vmem:[#allocation2 + $0x118] sm:$0xf] }
 0x286   :  { %v7243_v40 = vcombine.low %v10691_v43, %v10690_v3  ;;  %v7244_v49 = vcombine.low %v10692_v0, %v5337_v35  ;;  %v5404_v10 = vshll.u32 %v10067_v58, 16  ;;  %v5351_v23 = vsel %vm8886_vm9, %v10017_v17, %v10003_v7  ;;  %v5074_v3 = vld [vmem:[#allocation2 + $0x110] sm:$0xf]  ;;  %v5078_v7 = vld [vmem:[#allocation2 + $0x120] sm:$0xf] }
 0x287   :  { %v5388_v59 = vrot.slane %v5387_v55, 4  ;;  %v5401_v60 = vor.u32 %v5400_v13, %v5397_v28  ;;  %v5418_v36 = vshll.u32 %v10076_v62, 16  ;;  %v7245_v16 = vcombine.low %v5351_v23, %v5365_v19  ;;  %v5080_v43 = vld [vmem:[#allocation2 + $0x128] sm:$0xf] }
 0x288   :  { %v10693_v39 = vshll.u32 %v9989_v4, 16  ;;  %v5392_v5 = vrot.slane %v5390_v24, 5  ;;  %v5415_v58 = vor.u32 %v5414_v32, %v5411_v41  ;;  %v5429_v35 = vor.u32 %v5428_v26, %v5425_v44 }
 0x289   :  { %7967 = vmatmul.mubr.msk.bf16.gmra.mrb[0].mxu1 %vm1802_vm10, %v7243_v40  ;;  %v5439_v12 = vrot.slane %v5437_v21, 4  ;;  %v5442_v33 = vrot.slane %v5440_v52, 5  ;;  %v5406_v62 = vrot.slane %v5404_v10, 5  ;;  %v5465_v28 = vshrl.u32 %v5076_v42, 16 }
 0x28a   :  { %v5378_v20 = vrot.slane %v10693_v39, 5  ;;  %7970 = vmatprep.mubr.msk.bf16.mxu1 %vm1802_vm10, %v7244_v49  ;;  %v5468_v55 = vshll.u32 %v5076_v42, 16  ;;  %v5393_v13 = vsel %vm8886_vm9, %v5388_v59, %v5392_v5  ;;  %v5402_v4 = vrot.slane %v5401_v60, 4  ;;  %v5082_v60 = vld [vmem:[#allocation2 + $0x130] sm:$0xf] }
 0x28b   :  { %v5420_v19 = vrot.slane %v5418_v36, 5  ;;  %v5432_v24 = vshll.u32 %v10084_v2, 16  ;;  %v5446_v41 = vshll.u32 %v10093_v50, 16  ;;  %v5451_v32 = vshrl.u32 %v5074_v3, 16 }
 0x28c   :  { %v5379_v17 = vsel %vm8886_vm9, %v5374_v30, %v5378_v20  ;;  %v5479_v44 = vshrl.u32 %v5078_v7, 16  ;;  %v5482_v26 = vshll.u32 %v5078_v7, 16  ;;  %v5416_v21 = vrot.slane %v5415_v58, 4  ;;  %v5084_v20 = vld [vmem:[#allocation2 + $0x138] sm:$0xf] }
 0x28d   :  { %v5430_v52 = vrot.slane %v5429_v35, 4  ;;  %v5443_v40 = vor.u32 %v5442_v33, %v5439_v12  ;;  %v5454_v0 = vshll.u32 %v5074_v3, 16  ;;  %v5467_v49 = vrot.slane %v5465_v28, 4 }
 0x28e   :  { %v5470_v30 = vrot.slane %v5468_v55, 5  ;;  %v5493_v10 = vshrl.u32 %v5080_v43, 16  ;;  %v5496_v23 = vshll.u32 %v5080_v43, 16  ;;  %v7246_v42 = vcombine.low %v5379_v17, %v5393_v13 }
 0x28f   :  { %v5434_v59 = vrot.slane %v5432_v24, 5  ;;  %v5407_v2 = vsel %vm8886_vm9, %v5402_v4, %v5406_v62  ;;  %v5448_v50 = vrot.slane %v5446_v41, 5  ;;  %v5481_v36 = vrot.slane %v5479_v44, 4  ;;  %v8426_v24 = vld [vmem:[%s10645_s5 + $0x8] sm:$0xff]  }
 0x290   :  { %v5484_v39 = vrot.slane %v5482_v26, 5  ;;  %v5421_v5 = vsel %vm8886_vm9, %v5416_v21, %v5420_v19  ;;  %v5444_v58 = vrot.slane %v5443_v40, 4  ;;  %v5453_v35 = vrot.slane %v5451_v32, 4  ;;  %v8425_v19 = vld [vmem:[%s10645_s5] sm:$0xff]  }
 0x291   :  { %7971 = vmatmul.mubr.msk.bf16.gmra.mrb[4].mxu1 %vm1802_vm10, %v7245_v16  ;;  %v5456_v12 = vrot.slane %v5454_v0, 5  ;;  %v5435_v33 = vsel %vm8886_vm9, %v5430_v52, %v5434_v59  ;;  %v5471_v3 = vor.u32 %v5470_v30, %v5467_v49  ;;  %v5495_v16 = vrot.slane %v5493_v10, 4  ;;  %8026 = vmatprep.subr.bf16.mxu0 %v8425_v19 }
 0x292   :  { %7974 = vmatprep.mubr.msk.bf16.mxu1 %vm1802_vm10, %v7246_v42  ;;  %v5498_v7 = vrot.slane %v5496_v23, 5  ;;  %v5507_v17 = vshrl.u32 %v5082_v60, 16  ;;  %v5510_v62 = vshll.u32 %v5082_v60, 16  ;;  %v5521_v28 = vshrl.u32 %v5084_v20, 16  ;;  %8027 = vmatpush3.bf16.msra.mxu0 %v8425_v19 }
 0x293   :  { %v5524_v55 = vshll.u32 %v5084_v20, 16  ;;  %v5460_v13 = vshll.u32 %v10098_v61, 16  ;;  %v5485_v4 = vor.u32 %v5484_v39, %v5481_v36  ;;  %v7247_v43 = vcombine.low %v5407_v2, %v5421_v5  ;;  %8028 = vmatprep.subr.bf16.mxu0 %v8426_v24 }
 0x294   :  { %v5449_v41 = vsel %vm8886_vm9, %v5444_v58, %v5448_v50  ;;  %v5457_v32 = vor.u32 %v5456_v12, %v5453_v35  ;;  %v5474_v44 = vshll.u32 %v10109_v11, 16  ;;  %v5472_v21 = vrot.slane %v5471_v3, 4  ;;  %v5855_v35 = vld [vmem:[#allocation2 + $0x10] sm:$0xe] }
 0x295   :  { %v7248_v26 = vcombine.low %v5435_v33, %v5449_v41  ;;  %v5488_v61 = vshll.u32 %v10120_v6, 16  ;;  %v5499_v52 = vor.u32 %v5498_v7, %v5495_v16  ;;  %v5509_v40 = vrot.slane %v5507_v17, 4  ;;  %v5859_v41 = vld [vmem:[#allocation2 + $0x30] sm:$0xe] }
 0x296   :  { %v5512_v0 = vrot.slane %v5510_v62, 5  ;;  %v5523_v49 = vrot.slane %v5521_v28, 4  ;;  %v5526_v30 = vrot.slane %v5524_v55, 5  ;;  %v5486_v10 = vrot.slane %v5485_v4, 4  ;;  %8029 = vmatpush3.bf16.msra.mxu0 %v8426_v24 }
 0x297   :  { %v5502_v23 = vshll.u32 %v10136_v25, 16  ;;  %v5458_v11 = vrot.slane %v5457_v32, 4  ;;  %v5476_v42 = vrot.slane %v5474_v44, 5  ;;  %v5462_v59 = vrot.slane %v5460_v13, 5  ;;  %v5857_v44 = vld [vmem:[#allocation2 + $0x20] sm:$0xe] }
 0x298   :  { %v5490_v60 = vrot.slane %v5488_v61, 5  ;;  %v5500_v6 = vrot.slane %v5499_v52, 4  ;;  %v5513_v50 = vor.u32 %v5512_v0, %v5509_v40  ;;  %v5527_v36 = vor.u32 %v5526_v30, %v5523_v49  ;;  %v5860_v61 = vld [vmem:[#allocation2 + $0x38] sm:$0xe] }
 0x299   :  { %7975 = vmatmul.mubr.msk.bf16.gmra.mrb[8].mxu1 %vm1802_vm10, %v7247_v43  ;;  %v5477_v2 = vsel %vm8886_vm9, %v5472_v21, %v5476_v42  ;;  %v5530_v39 = vshll.u32 %v10160_v45, 16  ;;  %v5504_v25 = vrot.slane %v5502_v23, 5  ;;  %v5463_v5 = vsel %vm8886_vm9, %v5458_v11, %v5462_v59  ;;  %v5856_v45 = vld [vmem:[#allocation2 + $0x18] sm:$0xe]  ;;  %v5858_v43 = vld [vmem:[#allocation2 + $0x28] sm:$0xe] }
 0x29a   :  { %7978 = vmatprep.mubr.msk.bf16.mxu1 %vm1802_vm10, %v7248_v26  ;;  %v5491_v20 = vsel %vm8886_vm9, %v5486_v10, %v5490_v60  ;;  %v5516_v58 = vshll.u32 %v10151_v27, 16  ;;  %v7249_v12 = vcombine.low %v5463_v5, %v5477_v2  ;;  %v5514_v16 = vrot.slane %v5513_v50, 4  ;;  %v5861_v23 = vld [vmem:[#allocation2 + $0x40] sm:$0xe]  ;;  %v5862_v11 = vld [vmem:[#allocation2 + $0x48] sm:$0xe] }
 0x29b   :  { %v5505_v33 = vsel %vm8886_vm9, %v5500_v6, %v5504_v25  ;;  %v5528_v7 = vrot.slane %v5527_v36, 4  ;;  %v5532_v17 = vrot.slane %v5530_v39, 5  ;;  %v7272_v62 = vrot.slane %v5855_v35, 9  ;;  %v5864_v36 = vld [vmem:[#allocation2 + $0x68] sm:$0xe]  ;;  %v10694_v5 = vld [vmem:[#allocation6_spill] sm:$0xff] }
 0x29c   :  { %v7250_v3 = vcombine.low %v5491_v20, %v5505_v33  ;;  %v5953_v28 = vrot.slane %v9850_v54, 5  ;;  %v5518_v55 = vrot.slane %v5516_v58, 5  ;;  %v7273_v13 = vrot.slane %v5856_v45, 9 }
 0x29d   :  { %v5957_v27 = vrot.slane %v9854_v31, 5  ;;  %v5533_v19 = vsel %vm8886_vm9, %v5528_v7, %v5532_v17  ;;  %v7275_v21 = vrot.slane %v5858_v43, 9  ;;  %v5965_v31 = vrot.slane %v9861_v15, 5  ;;  %v10697_v7 = vld [vmem:[#allocation8_spill] sm:$0xff]  ;;  %v10698_v17 = vld [vmem:[#allocation9_spill] sm:$0xff] }
 0x29e   :  { %v5519_v4 = vsel %vm8886_vm9, %v5514_v16, %v5518_v55  ;;  %v5954_v24 = vsel %vm9535_vm13, %v7272_v62, %v5953_v28  ;;  %v7276_v52 = vrot.slane %v5859_v41, 9  ;;  %v7274_v40 = vrot.slane %v5857_v44, 9  ;;  %v10700_v62 = vld [vmem:[#allocation10_spill] sm:$0xff]  ;;  %v10701_v28 = vld [vmem:[#allocation11_spill] sm:$0xff]  ;;  %v10711_v41 = vld [vmem:[#allocation17_spill] sm:$0xff] }
 0x29f   :  { %v7251_v32 = vcombine.low %v5519_v4, %v5533_v19  ;;  %v5958_v54 = vsel %vm9535_vm13, %v7273_v13, %v5957_v27  ;;  %v5961_v0 = vrot.slane %v9858_v9, 5  ;;  %v7277_v49 = vrot.slane %v5860_v61, 9  ;;  %v10704_v13 = vld [vmem:[#allocation13_spill] sm:$0xff]  ;;  %v10706_v4 = vld [vmem:[#allocation14_spill] sm:$0xff]  ;;  %v10707_v19 = vld [vmem:[#allocation15_spill] sm:$0xff] }
 0x2a0   :  { %v7304_v26 = vcombine.low %v5954_v24, %v5958_v54  ;;  %v5973_v30 = vrot.slane %v9876_v37, 5  ;;  %v5966_v10 = vsel %vm9535_vm13, %v7275_v21, %v5965_v31  ;;  %v5970_v15 = vsel %vm9535_vm13, %v7276_v52, %v5969_v47  ;;  %v10709_v24 = vld [vmem:[#allocation16_spill] sm:$0xff]  ;;  %v10716_v52 = vld [vmem:[#allocation19_spill] sm:$0xff] }
 0x2a1   :  { %7979 = vmatmul.mubr.msk.bf16.gmra.mrb[12].mxu1 %vm1802_vm10, %v7249_v12  ;;  %v5962_v42 = vsel %vm9535_vm13, %v7274_v40, %v5961_v0  ;;  %v7278_v9 = vrot.slane %v5861_v23, 9  ;;  %v5977_v37 = vrot.slane %v9878_v57, 5  ;;  %v7279_v2 = vrot.slane %v5862_v11, 9 }
 0x2a2   :  { %7982 = vmatprep.mubr.msk.bf16.mxu1 %vm1802_vm10, %v7250_v3  ;;  %v7305_v59 = vcombine.low %v5962_v42, %v5966_v10  ;;  %v5974_v60 = vsel %vm9535_vm13, %v7277_v49, %v5973_v30  ;;  %v5981_v50 = vrot.slane %v9882_v29, 5  ;;  %v7280_v39 = vrot.slane %v5863_v1, 9 }
 0x2a3   :  { %v7306_v6 = vcombine.low %v5970_v15, %v5974_v60  ;;  %v5985_v20 = vrot.slane %v9887_v46, 5  ;;  %v7281_v25 = vrot.slane %v5864_v36, 9  ;;  %v5989_v58 = vrot.slane %v10694_v5, 5  ;;  %v10695_v46 = vld [vmem:[#allocation7_spill] sm:$0xff]  ;;  %v8428_v36 = vld [vmem:[%s10645_s5 + $0x18] sm:$0xff]  }
 0x2a4   :  { %v5978_v35 = vsel %vm9535_vm13, %v7278_v9, %v5977_v37  ;;  %v5982_v57 = vsel %vm9535_vm13, %v7279_v2, %v5981_v50  ;;  %v10696_v16 = vcombine.low %v10040_v53, %v10695_v46  ;;  %v10699_v45 = vcombine.low %v10697_v7, %v10698_v17  ;;  %v8427_v9 = vld [vmem:[%s10645_s5 + $0x10] sm:$0xff]  }
 0x2a5   :  { %v5986_v29 = vsel %vm9535_vm13, %v7280_v39, %v5985_v20  ;;  %v7307_v12 = vcombine.low %v5978_v35, %v5982_v57  ;;  %v5990_v33 = vsel %vm9535_vm13, %v7281_v25, %v5989_v58  ;;  %v10702_v55 = vcombine.low %v10700_v62, %v10701_v28  ;;  %8030 = vmatprep.subr.bf16.mxu0 %v8427_v9  ;;  %v10425_v35 = vld [vmem:[%s10644_s4] ss:$0 sm:$0xff] }
 0x2a6   :  { %v7308_v3 = vcombine.low %v5986_v29, %v5990_v33  ;;  %v10705_v27 = vcombine.low %v10703_v22, %v10704_v13  ;;  %v10708_v53 = vcombine.low %v10706_v4, %v10707_v19  ;;  %v10710_v43 = vcombine.low %v10126_v14, %v10709_v24  ;;  %8031 = vmatpush3.bf16.msra.mxu0 %v8427_v9 }
 0x2a7   :  { %v10714_v44 = vcombine.low %v10157_v34, %v10164_v8  ;;  %v10715_v14 = vcombine.low %v10168_v18, %v10175_v48  ;;  %v10717_v47 = vcombine.low %v10182_v56, %v10716_v52  ;;  %8032 = vmatprep.subr.bf16.mxu0 %v8428_v36 }
 0x2a9   :  { %7983 = vmatmul.mubr.msk.bf16.gmra.mrb[16].mxu1 %vm1802_vm10, %v7251_v32  ;;  %v10712_v32 = vld [vmem:[#allocation18_spill] sm:$0xff] }
 0x2aa   :  { %7994 = vmatprep.mubr.msk.bf16.mxu1 %vm1802_vm10, %v7304_v26  ;;  %v10713_v54 = vcombine.low %v10711_v41, %v10712_v32  ;;  %8033 = vmatpush3.bf16.msra.mxu0 %v8428_v36 }
 0x2b1   :  { %7995 = vmatmul.mubr.msk.bf16.vlgmr.msra.gmra.mrb[20].mxu1 %vm1802_vm10, %v7305_v59 }
 0x2b2   :  { %7998 = vmatprep.mubr.msk.bf16.mxu1 %vm1802_vm10, %v7306_v6 }
 0x2b9   :  { %7999 = vmatmul.mubr.msk.bf16.gmra.mrb[24].mxu1 %vm1802_vm10, %v7307_v12 }
 0x2ba   :  { %8002 = vmatprep.mubr.msk.bf16.mxu1 %vm1802_vm10, %v7308_v3 }
 0x2c1   :  { %8003 = vmatmul.mubr.msk.bf16.gmra.mrb[28].mxu1 %vm1802_vm10, %v10696_v16 }
 0x2c2   :  { %8006 = vmatprep.mubr.msk.bf16.mxu1 %vm1802_vm10, %v10699_v45 }
 0x2c9   :  { %8007 = vmatmul.mubr.msk.bf16.gmra.mrb[0].mxu1 %vm1802_vm10, %v10702_v55 }
 0x2ca   :  { %8010 = vmatprep.mubr.msk.bf16.mxu1 %vm1802_vm10, %v10705_v27 }
 0x2d1   :  { %8011 = vmatmul.mubr.msk.bf16.gmra.mrb[4].mxu1 %vm1802_vm10, %v10708_v53 }
 0x2d2   :  { %8014 = vmatprep.mubr.msk.bf16.mxu1 %vm1802_vm10, %v10710_v43 }
 0x2d9   :  { %8015 = vmatmul.mubr.msk.bf16.gmra.mrb[8].mxu1 %vm1802_vm10, %v10713_v54 }
 0x2da   :  { %8018 = vmatprep.mubr.msk.bf16.mxu1 %vm1802_vm10, %v10714_v44  ;;  %v10364_v26 = vpop.f32.mrb[44].mxu0 }
 0x2db   :  { %v10366_v21 = vpop.f32.mrb[45].mxu0 }
 0x2dc   :  { %v10368_v31 = vpop.f32.mrb[46].mxu0 }
 0x2dd   :  { %v10370_v61 = vpop.f32.mrb[47].mxu0 }
 0x2e1   :  { %8019 = vmatmul.mubr.msk.bf16.gmra.mrb[12].mxu1 %vm1802_vm10, %v10715_v14 }
 0x2e2   :  { %8022 = vmatprep.mubr.msk.bf16.mxu1 %vm1802_vm10, %v10717_v47  ;;  %v10380_v34 = vpop.f32.mrb[48].mxu0 }
 0x2e3   :  { %v10382_v8 = vpop.f32.mrb[49].mxu0 }
 0x2e4   :  { %v10384_v40 = vpop.f32.mrb[50].mxu0 }
 0x2e5   :  { %v10386_v0 = vpop.f32.mrb[51].mxu0 }
 0x2e9   :  { %8023 = vmatmul.mubr.msk.bf16.gmra.mrb[16].mxu1 %vm1802_vm10, %v7319_v63 }
 0x2ea   :  { %v10392_v18 = vpop.f32.mrb[52].mxu0 }
 0x2eb   :  { %v10394_v48 = vpop.f32.mrb[53].mxu0 }
 0x2ec   :  { %v10396_v56 = vpop.f32.mrb[54].mxu0 }
 0x2ed   :  { %v10398_v49 = vpop.f32.mrb[55].mxu0 }
 0x2f2   :  { %v10400_v30 = vpop.f32.mrb[56].mxu0 }
 0x2f3   :  { %v10402_v10 = vpop.f32.mrb[57].mxu0 }
 0x2f4   :  { %v10404_v23 = vpop.f32.mrb[58].mxu0 }
 0x2f5   :  { %v10406_v15 = vpop.f32.mrb[59].mxu0 }
 0x2fa   :  { %v10408_v11 = vpop.f32.mrb[60].mxu0 }
 0x2fb   :  { %v10410_v38 = vpop.f32.mrb[61].mxu0 }
 0x2fc   :  { %v10412_v51 = vpop.f32.mrb[62].mxu0 }
 0x2fd   :  { %v10414_v63 = vpop.f32.mrb[63].mxu0 }
 0x302   :  { %v7796_v42 = vpop.f32.mrb[32].mxu0 }
 0x303   :  { %v3099_v1 = vpop.f32.mrb[33].mxu0 }
 0x304   :  { %v7797_v59 = vpop.f32.mrb[34].mxu0 }
 0x305   :  { %v3102_v60 = vpop.f32.mrb[35].mxu0 }
 0x30a   :  { %v7800_v6 = vpop.f32.mrb[36].mxu0 }
 0x30b   :  { %v3115_v37 = vpop.f32.mrb[37].mxu0 }
 0x30c   :  { %v7801_v2 = vpop.f32.mrb[38].mxu0 }
 0x30d   :  { %v3118_v50 = vpop.f32.mrb[39].mxu0 }
 0x312   :  { %v7804_v39 = vpop.f32.mrb[40].mxu0 }
 0x313   :  { %v3131_v20 = vpop.f32.mrb[41].mxu0 }
 0x314   :  { %v7805_v25 = vpop.f32.mrb[42].mxu0 }
 0x315   :  { %v3134_v5 = vpop.f32.mrb[43].mxu0 }
 0x384   :  { %v7996_v58 = vpop.f32.mrb[20].mxu1 }
 0x385   :  { %v8074_v57 = vadd.f32 %v7996_v58, %v7796_v42  ;;  %v6241_v29 = vpop.f32.mrb[21].mxu1 }
 0x386   :  { %v8075_v12 = vadd.f32 %v6241_v29, %v3099_v1  ;;  %v7997_v33 = vpop.f32.mrb[22].mxu1 }
 0x387   :  { %v6409_v3 = vadd.f32 %v8074_v57, %v10425_v35  ;;  %v8076_v46 = vadd.f32 %v7997_v33, %v7797_v59  ;;  %v6244_v16 = vpop.f32.mrb[23].mxu1 }
 0x388   :  { %v6407_v7 = vadd.f32 %v8075_v12, %v10425_v35  ;;  %v8077_v17 = vadd.f32 %v6244_v16, %v3102_v60 }
 0x389   :  { %v6410_v45 = vadd.f32 %v8076_v46, %v10425_v35  ;;  %v6441_v28 = vmax.f32 %v6409_v3, 0.0 }
 0x38a   :  { %v6408_v62 = vadd.f32 %v8077_v17, %v10425_v35  ;;  %v6439_v22 = vmax.f32 %v6407_v7, 0.0 }
 0x38b   :  { %v6442_v55 = vmax.f32 %v6410_v45, 0.0 }
 0x38c   :  { %v6440_v13 = vmax.f32 %v6408_v62, 0.0  ;;  %v8000_v27 = vpop.f32.mrb[24].mxu1 }
 0x38d   :  { %v6472_v4 = vpack.c.bf16 %v6442_v55, %v6441_v28  ;;  %v8078_v19 = vadd.f32 %v8000_v27, %v7800_v6  ;;  %v6257_v53 = vpop.f32.mrb[25].mxu1 }
 0x38e   :  { %v6471_v24 = vpack.c.bf16 %v6440_v13, %v6439_v22  ;;  %v8079_v43 = vadd.f32 %v6257_v53, %v3115_v37  ;;  %v8001_v41 = vpop.f32.mrb[26].mxu1 }
 0x38f   :  { %v6413_v32 = vadd.f32 %v8078_v19, %v10425_v35  ;;  %v8080_v54 = vadd.f32 %v8001_v41, %v7801_v2  ;;  %v6260_v44 = vpop.f32.mrb[27].mxu1 }
 0x390   :  { %v6411_v14 = vadd.f32 %v8079_v43, %v10425_v35  ;;  %v8081_v52 = vadd.f32 %v6260_v44, %v3118_v50  ;;  %8034 = vmatprep.mubr.msk.bf16.mxu0 %vm1802_vm10, %v6471_v24 }
 0x391   :  { %v6414_v47 = vadd.f32 %v8080_v54, %v10425_v35  ;;  %8035 = vmatmul.mubr.msk.bf16.vlgmr.msra.gmra.mrb[64].mxu0 %vm1802_vm10, %v6472_v4  ;;  %v6445_v1 = vmax.f32 %v6413_v32, 0.0 }
 0x392   :  { %v6412_v42 = vadd.f32 %v8081_v52, %v10425_v35  ;;  %v6443_v60 = vmax.f32 %v6411_v14, 0.0 }
 0x393   :  { %v6446_v59 = vmax.f32 %v6414_v47, 0.0 }
 0x394   :  { %v6444_v9 = vmax.f32 %v6412_v42, 0.0  ;;  %v8004_v6 = vpop.f32.mrb[28].mxu1 }
 0x395   :  { %v6474_v37 = vpack.c.bf16 %v6446_v59, %v6445_v1  ;;  %v8082_v36 = vadd.f32 %v8004_v6, %v7804_v39  ;;  %v6273_v2 = vpop.f32.mrb[29].mxu1 }
 0x396   :  { %v6473_v58 = vpack.c.bf16 %v6444_v9, %v6443_v60  ;;  %v8083_v57 = vadd.f32 %v6273_v2, %v3131_v20  ;;  %v8005_v29 = vpop.f32.mrb[30].mxu1 }
 0x397   :  { %v6417_v50 = vadd.f32 %v8082_v36, %v10425_v35  ;;  %v8084_v12 = vadd.f32 %v8005_v29, %v7805_v25  ;;  %v6276_v33 = vpop.f32.mrb[31].mxu1 }
 0x398   :  { %v6415_v3 = vadd.f32 %v8083_v57, %v10425_v35  ;;  %v8085_v46 = vadd.f32 %v6276_v33, %v3134_v5  ;;  %8038 = vmatprep.mubr.msk.bf16.mxu0 %vm1802_vm10, %v6473_v58 }
 0x399   :  { %v6418_v16 = vadd.f32 %v8084_v12, %v10425_v35  ;;  %8039 = vmatmul.mubr.msk.bf16.gmra.mrb[68].mxu0 %vm1802_vm10, %v6474_v37  ;;  %v6449_v39 = vmax.f32 %v6417_v50, 0.0 }
 0x39a   :  { %v6416_v7 = vadd.f32 %v8085_v46, %v10425_v35  ;;  %v6447_v45 = vmax.f32 %v6415_v3, 0.0 }
 0x39b   :  { %v6450_v17 = vmax.f32 %v6418_v16, 0.0 }
 0x39c   :  { %v6448_v20 = vmax.f32 %v6416_v7, 0.0  ;;  %v8008_v62 = vpop.f32.mrb[0].mxu1 }
 0x39d   :  { %v6476_v28 = vpack.c.bf16 %v6450_v17, %v6449_v39  ;;  %v8086_v25 = vadd.f32 %v8008_v62, %v10364_v26  ;;  %v6289_v55 = vpop.f32.mrb[1].mxu1 }
 0x39e   :  { %v6475_v22 = vpack.c.bf16 %v6448_v20, %v6447_v45  ;;  %v8087_v5 = vadd.f32 %v6289_v55, %v10366_v21  ;;  %v8009_v13 = vpop.f32.mrb[2].mxu1 }
 0x39f   :  { %v6421_v27 = vadd.f32 %v8086_v25, %v10425_v35  ;;  %v8088_v4 = vadd.f32 %v8009_v13, %v10368_v31  ;;  %v6292_v19 = vpop.f32.mrb[3].mxu1 }
 0x3a0   :  { %v6419_v53 = vadd.f32 %v8087_v5, %v10425_v35  ;;  %v8089_v24 = vadd.f32 %v6292_v19, %v10370_v61  ;;  %8042 = vmatprep.mubr.msk.bf16.mxu0 %vm1802_vm10, %v6475_v22 }
 0x3a1   :  { %v6422_v43 = vadd.f32 %v8088_v4, %v10425_v35  ;;  %8043 = vmatmul.mubr.msk.bf16.gmra.mrb[72].mxu0 %vm1802_vm10, %v6476_v28  ;;  %v6453_v41 = vmax.f32 %v6421_v27, 0.0 }
 0x3a2   :  { %v6420_v26 = vadd.f32 %v8089_v24, %v10425_v35  ;;  %v6451_v32 = vmax.f32 %v6419_v53, 0.0 }
 0x3a3   :  { %v6454_v21 = vmax.f32 %v6422_v43, 0.0 }
 0x3a4   :  { %v6452_v54 = vmax.f32 %v6420_v26, 0.0  ;;  %v8012_v44 = vpop.f32.mrb[4].mxu1 }
 0x3a5   :  { %v6478_v14 = vpack.c.bf16 %v6454_v21, %v6453_v41  ;;  %v8090_v31 = vadd.f32 %v8012_v44, %v10380_v34  ;;  %v6305_v52 = vpop.f32.mrb[5].mxu1 }
 0x3a6   :  { %v6477_v47 = vpack.c.bf16 %v6452_v54, %v6451_v32  ;;  %v8091_v61 = vadd.f32 %v6305_v52, %v10382_v8  ;;  %v8013_v42 = vpop.f32.mrb[6].mxu1 }
 0x3a7   :  { %v6425_v1 = vadd.f32 %v8090_v31, %v10425_v35  ;;  %v8092_v59 = vadd.f32 %v8013_v42, %v10384_v40  ;;  %v6308_v60 = vpop.f32.mrb[7].mxu1 }
 0x3a8   :  { %v6423_v9 = vadd.f32 %v8091_v61, %v10425_v35  ;;  %v8093_v6 = vadd.f32 %v6308_v60, %v10386_v0  ;;  %8046 = vmatprep.mubr.msk.bf16.mxu0 %vm1802_vm10, %v6477_v47 }
 0x3a9   :  { %v6426_v37 = vadd.f32 %v8092_v59, %v10425_v35  ;;  %8047 = vmatmul.mubr.msk.bf16.gmra.mrb[76].mxu0 %vm1802_vm10, %v6478_v14  ;;  %v6457_v36 = vmax.f32 %v6425_v1, 0.0 }
 0x3aa   :  { %v6424_v34 = vadd.f32 %v8093_v6, %v10425_v35  ;;  %v6455_v2 = vmax.f32 %v6423_v9, 0.0 }
 0x3ab   :  { %v6458_v8 = vmax.f32 %v6426_v37, 0.0 }
 0x3ac   :  { %v6456_v58 = vmax.f32 %v6424_v34, 0.0  ;;  %v8016_v57 = vpop.f32.mrb[8].mxu1 }
 0x3ad   :  { %v6480_v29 = vpack.c.bf16 %v6458_v8, %v6457_v36  ;;  %v8094_v40 = vadd.f32 %v8016_v57, %v10392_v18  ;;  %v6321_v50 = vpop.f32.mrb[9].mxu1  ;;  %v6735_v8 = vld [vmem:[%s10640_s0] sm:$0xff]  ;;  %v6738_v57 = vld [vmem:[%s10640_s0 + $0x18] sm:$0xff] }
 0x3ae   :  { %v6479_v12 = vpack.c.bf16 %v6456_v58, %v6455_v2  ;;  %v8095_v0 = vadd.f32 %v6321_v50, %v10394_v48  ;;  %v8017_v33 = vpop.f32.mrb[10].mxu1 }
 0x3af   :  { %v6429_v3 = vadd.f32 %v8094_v40, %v10425_v35  ;;  %v8096_v46 = vadd.f32 %v8017_v33, %v10396_v56  ;;  %v6324_v16 = vpop.f32.mrb[11].mxu1 }
 0x3b0   :  { %v6427_v7 = vadd.f32 %v8095_v0, %v10425_v35  ;;  %v8097_v39 = vadd.f32 %v6324_v16, %v10398_v49  ;;  %8050 = vmatprep.mubr.msk.bf16.mxu0 %vm1802_vm10, %v6479_v12  ;;  %v6736_v12 = vld [vmem:[%s10640_s0 + $0x8] sm:$0xff] }
 0x3b1   :  { %v6430_v17 = vadd.f32 %v8096_v46, %v10425_v35  ;;  %8051 = vmatmul.mubr.msk.bf16.gmra.mrb[80].mxu0 %vm1802_vm10, %v6480_v29  ;;  %v6461_v45 = vmax.f32 %v6429_v3, 0.0 }
 0x3b2   :  { %v6428_v18 = vadd.f32 %v8097_v39, %v10425_v35  ;;  %v6459_v20 = vmax.f32 %v6427_v7, 0.0 }
 0x3b3   :  { %v6462_v48 = vmax.f32 %v6430_v17, 0.0 }
 0x3b4   :  { %v6460_v62 = vmax.f32 %v6428_v18, 0.0  ;;  %v8020_v28 = vpop.f32.mrb[12].mxu1 }
 0x3b5   :  { %v6482_v25 = vpack.c.bf16 %v6462_v48, %v6461_v45  ;;  %v8098_v56 = vadd.f32 %v8020_v28, %v10400_v30  ;;  %v6337_v55 = vpop.f32.mrb[13].mxu1  ;;  %v6741_v45 = vld [vmem:[%s10640_s0 + $0x30] sm:$0xff] }
 0x3b6   :  { %v6481_v22 = vpack.c.bf16 %v6460_v62, %v6459_v20  ;;  %v8099_v49 = vadd.f32 %v6337_v55, %v10402_v10  ;;  %v8021_v5 = vpop.f32.mrb[14].mxu1  ;;  %v6739_v62 = vld [vmem:[%s10640_s0 + $0x20] sm:$0xff] }
 0x3b7   :  { %v6433_v13 = vadd.f32 %v8098_v56, %v10425_v35  ;;  %v8100_v27 = vadd.f32 %v8021_v5, %v10404_v23  ;;  %v6340_v4 = vpop.f32.mrb[15].mxu1  ;;  %v6742_v56 = vld [vmem:[%s10640_s0 + $0x38] sm:$0xff]  ;;  %v6740_v5 = vld [vmem:[%s10640_s0 + $0x28] sm:$0xff] }
 0x3b8   :  { %v6431_v19 = vadd.f32 %v8099_v49, %v10425_v35  ;;  %v8101_v53 = vadd.f32 %v6340_v4, %v10406_v15  ;;  %8054 = vmatprep.mubr.msk.bf16.mxu0 %vm1802_vm10, %v6481_v22 }
 0x3b9   :  { %v6434_v24 = vadd.f32 %v8100_v27, %v10425_v35  ;;  %8055 = vmatmul.mubr.msk.bf16.gmra.mrb[84].mxu0 %vm1802_vm10, %v6482_v25  ;;  %v6465_v43 = vmax.f32 %v6433_v13, 0.0 }
 0x3ba   :  { %v6432_v30 = vadd.f32 %v8101_v53, %v10425_v35  ;;  %v6463_v26 = vmax.f32 %v6431_v19, 0.0 }
 0x3bb   :  { %v6466_v10 = vmax.f32 %v6434_v24, 0.0 }
 0x3bc   :  { %v6464_v41 = vmax.f32 %v6432_v30, 0.0  ;;  %v8024_v21 = vpop.f32.mrb[16].mxu1 }
 0x3bd   :  { %v6484_v32 = vpack.c.bf16 %v6466_v10, %v6465_v43  ;;  %v8102_v23 = vadd.f32 %v8024_v21, %v10408_v11  ;;  %v6353_v54 = vpop.f32.mrb[17].mxu1 }
 0x3be   :  { %v6483_v44 = vpack.c.bf16 %v6464_v41, %v6463_v26  ;;  %v8103_v15 = vadd.f32 %v6353_v54, %v10410_v38  ;;  %v8025_v14 = vpop.f32.mrb[18].mxu1  ;;  %v6745_v26 = vld [vmem:[%s10640_s0 + $0x50] sm:$0xff] }
 0x3bf   :  { %v6437_v31 = vadd.f32 %v8102_v23, %v10425_v35  ;;  %v8104_v52 = vadd.f32 %v8025_v14, %v10412_v51  ;;  %v6356_v47 = vpop.f32.mrb[19].mxu1  ;;  %v10498_v51 = vld [vmem:[%s10646_s6] ss:$0 sm:$0xff]  ;;  %s8516_s6 = smov [#allocation3]  }
 0x3c0   :  { %v6435_v61 = vadd.f32 %v8103_v15, %v10425_v35  ;;  %v8105_v42 = vadd.f32 %v6356_v47, %v10414_v63  ;;  %8058 = vmatprep.mubr.msk.bf16.mxu0 %vm1802_vm10, %v6483_v44  ;;  %v6746_v44 = vld [vmem:[%s10640_s0 + $0x58] sm:$0xff]  ;;  %s6868_s11 = sshll.u32 %s8516_s6, 4  ;;  %s6869_s11 = int_to_ptr.vmem [resolvable:$true] %s6868_s11 }
 0x3c1   :  { %v6438_v1 = vadd.f32 %v8104_v52, %v10425_v35  ;;  %8059 = vmatmul.mubr.msk.bf16.gmra.mrb[88].mxu0 %vm1802_vm10, %v6484_v32  ;;  %v6469_v59 = vmax.f32 %v6437_v31, 0.0  ;;  %v6743_v32 = vld [vmem:[%s10640_s0 + $0x40] sm:$0xff]  ;;  %v6744_v52 = vld [vmem:[%s10640_s0 + $0x48] sm:$0xff]  ;;  %s8491_s12 = scalar_lea.vmem %s6869_s11, 4096  ;;  %p8496_p1 = scmp.lt.s32.totalorder %s6869_s11, %s6869_s11 }
 0x3c2   :  { %v6436_v11 = vadd.f32 %v8105_v42, %v10425_v35  ;;  %v6467_v60 = vmax.f32 %v6435_v61, 0.0  ;;  %v6737_v35 = vld [vmem:[%s10640_s0 + $0x10] sm:$0xff]  ;;  %p8492_p0 = scmp.ne.s32.totalorder %s6869_s11, %s8491_s12  ;;  %p8497_p2 = scmp.lt.s32.totalorder %s8491_s12, %s8491_s12 }
 0x3c3   :  { %v6470_v38 = vmax.f32 %v6438_v1, 0.0 }
 0x3c4   :  { %v6468_v9 = vmax.f32 %v6436_v11, 0.0  ;;  %p8498_p3 = por %p8497_p2, %p8496_p1 }
 0x3c5   :  { %v6486_v6 = vpack.c.bf16 %v6470_v38, %v6469_v59 }
 0x3c6   :  { %v6485_v37 = vpack.c.bf16 %v6468_v9, %v6467_v60  ;;  %p8499_p4 = pnand %p8498_p3, %p8492_p0 }
 0x3c8   :  { %8062 = vmatprep.mubr.msk.bf16.mxu0 %vm1802_vm10, %v6485_v37 }
 0x3c9   :  { %8063 = vmatmul.mubr.msk.bf16.gmra.mrb[92].mxu0 %vm1802_vm10, %v6486_v6  ;;  %v6749_v6 = vld [vmem:[%s10640_s0 + $0x70] sm:$0xff] }
 0x464   :  { %v8036_v63 = vpop.f32.mrb[64].mxu0 }
 0x465   :  { %v6617_v34 = vadd.f32 %v8036_v63, %v10498_v51  ;;  %v6608_v36 = vpop.f32.mrb[65].mxu0 }
 0x466   :  { %v6609_v2 = vadd.f32 %v10498_v51, %v6608_v36  ;;  %v8037_v58 = vpop.f32.mrb[66].mxu0 }
 0x467   :  { %v6769_v29 = vadd.f32 %v6737_v35, %v6617_v34  ;;  %v6620_v40 = vadd.f32 %v8037_v58, %v10498_v51  ;;  %v6611_v50 = vpop.f32.mrb[67].mxu0  ;;  %v6747_v35 = vld [vmem:[%s10640_s0 + $0x60] sm:$0xff] }
 0x468   :  { %v6767_v0 = vadd.f32 %v6735_v8, %v6609_v2  ;;  %v6612_v33 = vadd.f32 %v10498_v51, %v6611_v50  ;;  %v6750_v8 = vld [vmem:[%s10640_s0 + $0x78] sm:$0xff] }
 0x469   :  { %v6801_v3 = vmax.f32 %v6769_v29, 0.0  ;;  %v6770_v46 = vadd.f32 %v6738_v57, %v6620_v40  ;;  %v6748_v29 = vld [vmem:[%s10640_s0 + $0x68] sm:$0xff] }
 0x46a   :  { %v6799_v16 = vmax.f32 %v6767_v0, 0.0  ;;  %v6768_v7 = vadd.f32 %v6736_v12, %v6612_v33 }
 0x46b   :  { %6833 = vst [vmem:[#allocation3 + $0x10] sm:$0xff] %v6801_v3  ;;  %v6802_v39 = vmax.f32 %v6770_v46, 0.0 }
 0x46c   :  { %6831 = vst [vmem:[#allocation3] sm:$0xff] %v6799_v16  ;;  %v6800_v17 = vmax.f32 %v6768_v7, 0.0  ;;  %v8040_v18 = vpop.f32.mrb[68].mxu0 }
 0x46d   :  { %6834 = vst [vmem:[#allocation3 + $0x18] sm:$0xff] %v6802_v39  ;;  %v6633_v48 = vadd.f32 %v8040_v18, %v10498_v51  ;;  %v6624_v20 = vpop.f32.mrb[69].mxu0  ;;  %v6753_v39 = vld [vmem:[%s10640_s0 + $0x90] sm:$0xff] }
 0x46e   :  { %6832 = vst [vmem:[#allocation3 + $0x8] sm:$0xff] %v6800_v17  ;;  %v6625_v28 = vadd.f32 %v10498_v51, %v6624_v20  ;;  %v8041_v25 = vpop.f32.mrb[70].mxu0 }
 0x46f   :  { %v6773_v55 = vadd.f32 %v6741_v45, %v6633_v48  ;;  %v6636_v22 = vadd.f32 %v8041_v25, %v10498_v51  ;;  %v6627_v49 = vpop.f32.mrb[71].mxu0  ;;  %v6751_v45 = vld [vmem:[%s10640_s0 + $0x80] sm:$0xff] }
 0x470   :  { %v6771_v13 = vadd.f32 %v6739_v62, %v6625_v28  ;;  %v6628_v27 = vadd.f32 %v10498_v51, %v6627_v49  ;;  %v6754_v62 = vld [vmem:[%s10640_s0 + $0x98] sm:$0xff] }
 0x471   :  { %v6805_v4 = vmax.f32 %v6773_v55, 0.0  ;;  %v6774_v19 = vadd.f32 %v6742_v56, %v6636_v22  ;;  %v6752_v55 = vld [vmem:[%s10640_s0 + $0x88] sm:$0xff] }
 0x472   :  { %v6803_v53 = vmax.f32 %v6771_v13, 0.0  ;;  %v6772_v24 = vadd.f32 %v6740_v5, %v6628_v27 }
 0x473   :  { %6837 = vst [vmem:[#allocation3 + $0x30] sm:$0xff] %v6805_v4  ;;  %v6806_v30 = vmax.f32 %v6774_v19, 0.0 }
 0x474   :  { %6835 = vst [vmem:[#allocation3 + $0x20] sm:$0xff] %v6803_v53  ;;  %v6804_v43 = vmax.f32 %v6772_v24, 0.0  ;;  %v8044_v10 = vpop.f32.mrb[72].mxu0 }
 0x475   :  { %6838 = vst [vmem:[#allocation3 + $0x38] sm:$0xff] %v6806_v30  ;;  %v6649_v41 = vadd.f32 %v8044_v10, %v10498_v51  ;;  %v6640_v21 = vpop.f32.mrb[73].mxu0  ;;  %v6757_v30 = vld [vmem:[%s10640_s0 + $0xb0] sm:$0xff] }
 0x476   :  { %6836 = vst [vmem:[#allocation3 + $0x28] sm:$0xff] %v6804_v43  ;;  %v6641_v23 = vadd.f32 %v10498_v51, %v6640_v21  ;;  %v8045_v54 = vpop.f32.mrb[74].mxu0 }
 0x477   :  { %v6777_v15 = vadd.f32 %v6745_v26, %v6649_v41  ;;  %v6652_v14 = vadd.f32 %v8045_v54, %v10498_v51  ;;  %v6643_v31 = vpop.f32.mrb[75].mxu0  ;;  %v6755_v26 = vld [vmem:[%s10640_s0 + $0xa0] sm:$0xff] }
 0x478   :  { %v6775_v47 = vadd.f32 %v6743_v32, %v6641_v23  ;;  %v6644_v61 = vadd.f32 %v10498_v51, %v6643_v31  ;;  %v6758_v32 = vld [vmem:[%s10640_s0 + $0xb8] sm:$0xff] }
 0x479   :  { %v6809_v42 = vmax.f32 %v6777_v15, 0.0  ;;  %v6778_v1 = vadd.f32 %v6746_v44, %v6652_v14  ;;  %v6756_v15 = vld [vmem:[%s10640_s0 + $0xa8] sm:$0xff] }
 0x47a   :  { %v6807_v11 = vmax.f32 %v6775_v47, 0.0  ;;  %v6776_v59 = vadd.f32 %v6744_v52, %v6644_v61 }
 0x47b   :  { %6841 = vst [vmem:[#allocation3 + $0x50] sm:$0xff] %v6809_v42  ;;  %v6810_v38 = vmax.f32 %v6778_v1, 0.0 }
 0x47c   :  { %6839 = vst [vmem:[#allocation3 + $0x40] sm:$0xff] %v6807_v11  ;;  %v6808_v60 = vmax.f32 %v6776_v59, 0.0  ;;  %v8048_v9 = vpop.f32.mrb[76].mxu0 }
 0x47d   :  { %6842 = vst [vmem:[#allocation3 + $0x58] sm:$0xff] %v6810_v38  ;;  %v6665_v37 = vadd.f32 %v8048_v9, %v10498_v51  ;;  %v6656_v63 = vpop.f32.mrb[77].mxu0  ;;  %v6761_v38 = vld [vmem:[%s10640_s0 + $0xd0] sm:$0xff] }
 0x47e   :  { %6840 = vst [vmem:[#allocation3 + $0x48] sm:$0xff] %v6808_v60  ;;  %v6657_v34 = vadd.f32 %v10498_v51, %v6656_v63  ;;  %v8049_v36 = vpop.f32.mrb[78].mxu0 }
 0x47f   :  { %v6781_v2 = vadd.f32 %v6749_v6, %v6665_v37  ;;  %v6668_v58 = vadd.f32 %v8049_v36, %v10498_v51  ;;  %v6659_v57 = vpop.f32.mrb[79].mxu0  ;;  %v6759_v6 = vld [vmem:[%s10640_s0 + $0xc0] sm:$0xff] }
 0x480   :  { %v6779_v40 = vadd.f32 %v6747_v35, %v6657_v34  ;;  %v6660_v50 = vadd.f32 %v10498_v51, %v6659_v57  ;;  %v6762_v35 = vld [vmem:[%s10640_s0 + $0xd8] sm:$0xff] }
 0x481   :  { %v6813_v12 = vmax.f32 %v6781_v2, 0.0  ;;  %v6782_v0 = vadd.f32 %v6750_v8, %v6668_v58  ;;  %v6760_v2 = vld [vmem:[%s10640_s0 + $0xc8] sm:$0xff] }
 0x482   :  { %v6811_v33 = vmax.f32 %v6779_v40, 0.0  ;;  %v6780_v3 = vadd.f32 %v6748_v29, %v6660_v50 }
 0x483   :  { %6845 = vst [vmem:[#allocation3 + $0x70] sm:$0xff] %v6813_v12  ;;  %v6814_v46 = vmax.f32 %v6782_v0, 0.0 }
 0x484   :  { %6843 = vst [vmem:[#allocation3 + $0x60] sm:$0xff] %v6811_v33  ;;  %v6812_v16 = vmax.f32 %v6780_v3, 0.0  ;;  %v8052_v7 = vpop.f32.mrb[80].mxu0 }
 0x485   :  { %6846 = vst [vmem:[#allocation3 + $0x78] sm:$0xff] %v6814_v46  ;;  %v6681_v17 = vadd.f32 %v8052_v7, %v10498_v51  ;;  %v6672_v18 = vpop.f32.mrb[81].mxu0  ;;  %v6765_v46 = vld [vmem:[%s10640_s0 + $0xf0] sm:$0xff] }
 0x486   :  { %6844 = vst [vmem:[#allocation3 + $0x68] sm:$0xff] %v6812_v16  ;;  %v6673_v48 = vadd.f32 %v10498_v51, %v6672_v18  ;;  %v8053_v20 = vpop.f32.mrb[82].mxu0 }
 0x487   :  { %v6785_v28 = vadd.f32 %v6753_v39, %v6681_v17  ;;  %v6684_v25 = vadd.f32 %v8053_v20, %v10498_v51  ;;  %v6675_v56 = vpop.f32.mrb[83].mxu0  ;;  %v6763_v39 = vld [vmem:[%s10640_s0 + $0xe0] sm:$0xff] }
 0x488   :  { %v6783_v22 = vadd.f32 %v6751_v45, %v6673_v48  ;;  %v6676_v49 = vadd.f32 %v10498_v51, %v6675_v56  ;;  %v6766_v45 = vld [vmem:[%s10640_s0 + $0xf8] sm:$0xff] }
 0x489   :  { %v6817_v5 = vmax.f32 %v6785_v28, 0.0  ;;  %v6786_v13 = vadd.f32 %v6754_v62, %v6684_v25  ;;  %v6764_v28 = vld [vmem:[%s10640_s0 + $0xe8] sm:$0xff] }
 0x48a   :  { %v6815_v27 = vmax.f32 %v6783_v22, 0.0  ;;  %v6784_v4 = vadd.f32 %v6752_v55, %v6676_v49 }
 0x48b   :  { %6849 = vst [vmem:[#allocation3 + $0x90] sm:$0xff] %v6817_v5  ;;  %v6818_v19 = vmax.f32 %v6786_v13, 0.0 }
 0x48c   :  { %6847 = vst [vmem:[#allocation3 + $0x80] sm:$0xff] %v6815_v27  ;;  %v6816_v53 = vmax.f32 %v6784_v4, 0.0  ;;  %v8056_v24 = vpop.f32.mrb[84].mxu0 }
 0x48d   :  { %6850 = vst [vmem:[#allocation3 + $0x98] sm:$0xff] %v6818_v19  ;;  %v6697_v43 = vadd.f32 %v8056_v24, %v10498_v51  ;;  %v6688_v10 = vpop.f32.mrb[85].mxu0 }
 0x48e   :  { %6848 = vst [vmem:[#allocation3 + $0x88] sm:$0xff] %v6816_v53  ;;  %v6689_v41 = vadd.f32 %v10498_v51, %v6688_v10  ;;  %v8057_v21 = vpop.f32.mrb[86].mxu0 }
 0x48f   :  { %v6789_v23 = vadd.f32 %v6757_v30, %v6697_v43  ;;  %v6700_v54 = vadd.f32 %v8057_v21, %v10498_v51  ;;  %v6691_v44 = vpop.f32.mrb[87].mxu0 }
 0x490   :  { %v6787_v14 = vadd.f32 %v6755_v26, %v6689_v41  ;;  %v6692_v31 = vadd.f32 %v10498_v51, %v6691_v44 }
 0x491   :  { %v6821_v52 = vmax.f32 %v6789_v23, 0.0  ;;  %v6790_v47 = vadd.f32 %v6758_v32, %v6700_v54 }
 0x492   :  { %v6819_v61 = vmax.f32 %v6787_v14, 0.0  ;;  %v6788_v42 = vadd.f32 %v6756_v15, %v6692_v31 }
 0x493   :  { %6853 = vst [vmem:[#allocation3 + $0xb0] sm:$0xff] %v6821_v52  ;;  %v6822_v1 = vmax.f32 %v6790_v47, 0.0 }
 0x494   :  { %6851 = vst [vmem:[#allocation3 + $0xa0] sm:$0xff] %v6819_v61  ;;  %v6820_v11 = vmax.f32 %v6788_v42, 0.0  ;;  %v8060_v59 = vpop.f32.mrb[88].mxu0 }
 0x495   :  { %6854 = vst [vmem:[#allocation3 + $0xb8] sm:$0xff] %v6822_v1  ;;  %v6713_v60 = vadd.f32 %v8060_v59, %v10498_v51  ;;  %v6704_v9 = vpop.f32.mrb[89].mxu0 }
 0x496   :  { %6852 = vst [vmem:[#allocation3 + $0xa8] sm:$0xff] %v6820_v11  ;;  %v6705_v37 = vadd.f32 %v10498_v51, %v6704_v9  ;;  %v8061_v63 = vpop.f32.mrb[90].mxu0 }
 0x497   :  { %v6793_v34 = vadd.f32 %v6761_v38, %v6713_v60  ;;  %v6716_v36 = vadd.f32 %v8061_v63, %v10498_v51  ;;  %v6707_v8 = vpop.f32.mrb[91].mxu0 }
 0x498   :  { %v6791_v58 = vadd.f32 %v6759_v6, %v6705_v37  ;;  %v6708_v57 = vadd.f32 %v10498_v51, %v6707_v8 }
 0x499   :  { %v6825_v29 = vmax.f32 %v6793_v34, 0.0  ;;  %v6794_v40 = vadd.f32 %v6762_v35, %v6716_v36 }
 0x49a   :  { %v6823_v50 = vmax.f32 %v6791_v58, 0.0  ;;  %v6792_v12 = vadd.f32 %v6760_v2, %v6708_v57 }
 0x49b   :  { %6857 = vst [vmem:[#allocation3 + $0xd0] sm:$0xff] %v6825_v29  ;;  %v6826_v0 = vmax.f32 %v6794_v40, 0.0 }
 0x49c   :  { %6855 = vst [vmem:[#allocation3 + $0xc0] sm:$0xff] %v6823_v50  ;;  %v6824_v33 = vmax.f32 %v6792_v12, 0.0  ;;  %v8064_v3 = vpop.f32.mrb[92].mxu0 }
 0x49d   :  { %6858 = vst [vmem:[#allocation3 + $0xd8] sm:$0xff] %v6826_v0  ;;  %v6729_v16 = vadd.f32 %v8064_v3, %v10498_v51  ;;  %v6720_v7 = vpop.f32.mrb[93].mxu0 }
 0x49e   :  { %6856 = vst [vmem:[#allocation3 + $0xc8] sm:$0xff] %v6824_v33  ;;  %v6721_v17 = vadd.f32 %v10498_v51, %v6720_v7  ;;  %v8065_v18 = vpop.f32.mrb[94].mxu0 }
 0x49f   :  { %v6797_v48 = vadd.f32 %v6765_v46, %v6729_v16  ;;  %v6732_v20 = vadd.f32 %v8065_v18, %v10498_v51  ;;  %v6723_v62 = vpop.f32.mrb[95].mxu0 }
 0x4a0   :  { %v6795_v25 = vadd.f32 %v6763_v39, %v6721_v17  ;;  %v6724_v56 = vadd.f32 %v10498_v51, %v6723_v62 }
 0x4a1   :  { %v6829_v55 = vmax.f32 %v6797_v48, 0.0  ;;  %v6798_v22 = vadd.f32 %v6766_v45, %v6732_v20 }
 0x4a2   :  { %v6827_v49 = vmax.f32 %v6795_v25, 0.0  ;;  %v6796_v5 = vadd.f32 %v6764_v28, %v6724_v56 }
 0x4a3   :  { %6861 = vst [vmem:[#allocation3 + $0xf0] sm:$0xff] %v6829_v55  ;;  %v6830_v13 = vmax.f32 %v6798_v22, 0.0 }
 0x4a4   :  { %6859 = vst [vmem:[#allocation3 + $0xe0] sm:$0xff] %v6827_v49  ;;  %v6828_v27 = vmax.f32 %v6796_v5, 0.0 }
 0x4a5   :  { %6862 = vst [vmem:[#allocation3 + $0xf8] sm:$0xff] %v6830_v13 }
 0x4a6   :  { %6860 = vst [vmem:[#allocation3 + $0xe8] sm:$0xff] %v6828_v27 }
 0x4a7   :  { %8502 = shalt.err (!%p8499_p4)
}
 0x4a8   :  { %s8503_s14 = scalar_lea.hbm %s10647_s7, 4096 }
 0x4a9   :  { %p8504_p5 = scmp.ne.s32.totalorder %s10647_s7, %s8503_s14  ;;  %p8507_p6 = scmp.lt.u32.totalorder %s8503_s14, %s10647_s7 }
 0x4ab   :  { %p8509_p7 = pnand %p8507_p6, %p8504_p5 }
 0x4ad   :  { %8512 = shalt.err (!%p8509_p7)
}
 0x4ae   :  { %s8517_s19 = smov 128   ;;  %s8518_s20 = smov 8  }
 0x4af   :  { %6874 = dma.vmem_to_hbm [thread:$0]  %s6869_s11, 4096, %s10647_s7, [#allocation4], %s8517_s19, %s8517_s19, %s8518_s20  }
 0x4b0   :  { %8513 = dma.done.wait [#allocation4], 4096  }
 0x4b1   :  { %8514 = vsyncadd [#allocation4], 4294963200 }
 0x4b2   :  { %6878 = vsyncpa [#allocation4], 1 }

// kernel: tpu_custom_call.1
= control target key start
LH: loop header
LB: loop body
LE: loop exit
PB: predicated region body
PF: predicated region fallthrough
CT: control target
= control target key end

     0   :  { %s10640_s0 = inlined_call_operand.vmem [shape: f32[4,8,8,128], index: 0, kind: input, shape index: {}]   ;;  %s10641_s1 = inlined_call_operand.vmem [shape: bf16[128,64], index: 1, kind: input, shape index: {}]   ;;  %s10642_s2 = inlined_call_operand.vmem [shape: f32[1,64], index: 2, kind: input, shape index: {}]   ;;  %s10643_s3 = inlined_call_operand.vmem [shape: bf16[576,64], index: 3, kind: input, shape index: {}]   ;;  %s10644_s4 = inlined_call_operand.vmem [shape: f32[1,64], index: 4, kind: input, shape index: {}]   ;;  %s10645_s5 = inlined_call_operand.vmem [shape: bf16[64,128], index: 5, kind: input, shape index: {}]   ;;  %s10646_s6 = inlined_call_operand.vmem [shape: f32[1,128], index: 6, kind: input, shape index: {}]   ;;  %s10647_s7 = inlined_call_operand.hbm [shape: f32[4,8,8,128], index: 7, kind: output, shape index: {}]  }
   0x1   :  { %v8334_v0 = vld [vmem:[%s10641_s1] sm:$0xff]   ;;  %v8335_v1 = vld [vmem:[%s10641_s1 + $0x8] sm:$0xff]   ;;  %v8336_v2 = vld [vmem:[%s10641_s1 + $0x10] sm:$0xff]  }
   0x2   :  { %7618 = vmatprep.subr.bf16.mxu0 %v8334_v0  ;;  %v8337_v3 = vld [vmem:[%s10641_s1 + $0x18] sm:$0xff]   ;;  %v28_v4 = vld [vmem:[%s10640_s0] sm:$0xff]  ;;  %v29_v5 = vld [vmem:[%s10640_s0 + $0x8] sm:$0xff] }
   0x3   :  { %7619 = vmatpush3.bf16.msra.mxu0 %v8334_v0  ;;  %v60_v6 = vpack.c.bf16 %v29_v5, %v28_v4  ;;  %v8338_v7 = vld [vmem:[%s10641_s1 + $0x20] sm:$0xff]   ;;  %v8339_v8 = vld [vmem:[%s10641_s1 + $0x28] sm:$0xff]   ;;  %v8340_v9 = vld [vmem:[%s10641_s1 + $0x30] sm:$0xff]  }
   0x4   :  { %7620 = vmatprep.subr.bf16.mxu0 %v8335_v1  ;;  %v8341_v10 = vld [vmem:[%s10641_s1 + $0x38] sm:$0xff]   ;;  %v30_v11 = vld [vmem:[%s10640_s0 + $0x10] sm:$0xff]  ;;  %v32_v13 = vld [vmem:[%s10640_s0 + $0x20] sm:$0xff] }
   0x5   :  { %7634 = vmatprep.mubr.bf16.mxu0 %v60_v6  ;;  %v31_v12 = vld [vmem:[%s10640_s0 + $0x18] sm:$0xff]  ;;  %v33_v14 = vld [vmem:[%s10640_s0 + $0x28] sm:$0xff]  ;;  %v34_v17 = vld [vmem:[%s10640_s0 + $0x30] sm:$0xff] }
   0x6   :  { %v61_v15 = vpack.c.bf16 %v31_v12, %v30_v11  ;;  %v62_v16 = vpack.c.bf16 %v33_v14, %v32_v13  ;;  %v35_v18 = vld [vmem:[%s10640_s0 + $0x38] sm:$0xff]  ;;  %v36_v19 = vld [vmem:[%s10640_s0 + $0x40] sm:$0xff]  ;;  %v37_v20 = vld [vmem:[%s10640_s0 + $0x48] sm:$0xff] }
   0x7   :  { %7621 = vmatpush3.bf16.msra.mxu0 %v8335_v1  ;;  %v63_v21 = vpack.c.bf16 %v35_v18, %v34_v17  ;;  %v64_v22 = vpack.c.bf16 %v37_v20, %v36_v19  ;;  %v38_v23 = vld [vmem:[%s10640_s0 + $0x50] sm:$0xff]  ;;  %v39_v24 = vld [vmem:[%s10640_s0 + $0x58] sm:$0xff]  ;;  %v40_v25 = vld [vmem:[%s10640_s0 + $0x60] sm:$0xff] }
   0x8   :  { %7622 = vmatprep.subr.bf16.mxu0 %v8336_v2  ;;  %v41_v26 = vld [vmem:[%s10640_s0 + $0x68] sm:$0xff] }
   0xb   :  { %7623 = vmatpush3.bf16.msra.mxu0 %v8336_v2 }
   0xc   :  { %7624 = vmatprep.subr.bf16.mxu0 %v8337_v3 }
   0xf   :  { %7625 = vmatpush3.bf16.msra.mxu0 %v8337_v3 }
  0x10   :  { %7626 = vmatprep.subr.bf16.mxu0 %v8338_v7 }
  0x13   :  { %7627 = vmatpush3.bf16.msra.mxu0 %v8338_v7 }
  0x14   :  { %7628 = vmatprep.subr.bf16.mxu0 %v8339_v8 }
  0x17   :  { %7629 = vmatpush3.bf16.msra.mxu0 %v8339_v8 }
  0x18   :  { %7630 = vmatprep.subr.bf16.mxu0 %v8340_v9 }
  0x1b   :  { %7631 = vmatpush3.bf16.msra.mxu0 %v8340_v9 }
  0x1c   :  { %7632 = vmatprep.subr.bf16.mxu0 %v8341_v10 }
  0x1f   :  { %7633 = vmatpush3.bf16.msra.mxu0 %v8341_v10 }
  0x22   :  { %7635 = vmatmul.mubr.bf16.vlgmr.msra.gmra.mrb[0].mxu0 %v61_v15 }
  0x23   :  { %7638 = vmatprep.mubr.bf16.mxu0 %v62_v16 }
  0x2a   :  { %7639 = vmatmul.mubr.bf16.gmra.mrb[4].mxu0 %v63_v21 }
  0x2b   :  { %7642 = vmatprep.mubr.bf16.mxu0 %v64_v22 }
  0x2c   :  { %12 = vsyncpa [#allocation4], 0  ;;  %v65_v27 = vpack.c.bf16 %v39_v24, %v38_v23  ;;  %v66_v28 = vpack.c.bf16 %v41_v26, %v40_v25  ;;  %v42_v29 = vld [vmem:[%s10640_s0 + $0x70] sm:$0xff]  ;;  %v43_v30 = vld [vmem:[%s10640_s0 + $0x78] sm:$0xff]  ;;  %vm342_vm0 = vcmask 516096   ;;  %vm340_vm5 = vcmask 519168  }
  0x2d   :  { %v44_v31 = vld [vmem:[%s10640_s0 + $0x80] sm:$0xff]  ;;  %v45_v32 = vld [vmem:[%s10640_s0 + $0x88] sm:$0xff]  ;;  %v67_v33 = vpack.c.bf16 %v43_v30, %v42_v29  ;;  %v46_v35 = vld [vmem:[%s10640_s0 + $0x90] sm:$0xff]  ;;  %vm361_vm1 = vsmask.f32 256  ;;  %vm1802_vm10 = vcmask 523264  }
  0x2e   :  { %v68_v34 = vpack.c.bf16 %v45_v32, %v44_v31  ;;  %v47_v36 = vld [vmem:[%s10640_s0 + $0x98] sm:$0xff]  ;;  %v48_v37 = vld [vmem:[%s10640_s0 + $0xa0] sm:$0xff]  ;;  %v49_v38 = vld [vmem:[%s10640_s0 + $0xa8] sm:$0xff]  ;;  %vm459_vm2 = vsmask.f32 7938  ;;  %vm2421_vm11 = vcmask 1042432  }
  0x2f   :  { %v69_v39 = vpack.c.bf16 %v47_v36, %v46_v35  ;;  %v70_v40 = vpack.c.bf16 %v49_v38, %v48_v37  ;;  %v50_v41 = vld [vmem:[%s10640_s0 + $0xb0] sm:$0xff]  ;;  %v51_v42 = vld [vmem:[%s10640_s0 + $0xb8] sm:$0xff]  ;;  %v52_v43 = vld [vmem:[%s10640_s0 + $0xc0] sm:$0xff]  ;;  %vm1271_vm7 = vsmask.f32 3328  ;;  %vm2422_vm12 = vcmask 1046532  }
  0x30   :  { %v53_v44 = vld [vmem:[%s10640_s0 + $0xc8] sm:$0xff]  ;;  %v71_v45 = vpack.c.bf16 %v51_v42, %v50_v41  ;;  %v54_v47 = vld [vmem:[%s10640_s0 + $0xd0] sm:$0xff]  ;;  %v55_v48 = vld [vmem:[%s10640_s0 + $0xd8] sm:$0xff]  ;;  %vm1272_vm8 = vsmask.f32 7440 }
  0x31   :  { %v72_v46 = vpack.c.bf16 %v53_v44, %v52_v43  ;;  %v56_v49 = vld [vmem:[%s10640_s0 + $0xe0] sm:$0xff]  ;;  %v57_v50 = vld [vmem:[%s10640_s0 + $0xe8] sm:$0xff]  ;;  %v73_v51 = vpack.c.bf16 %v55_v48, %v54_v47  ;;  %v58_v53 = vld [vmem:[%s10640_s0 + $0xf0] sm:$0xff] }
  0x32   :  { %7643 = vmatmul.mubr.bf16.gmra.mrb[8].mxu0 %v65_v27  ;;  %v74_v52 = vpack.c.bf16 %v57_v50, %v56_v49  ;;  %v59_v54 = vld [vmem:[%s10640_s0 + $0xf8] sm:$0xff]  ;;  %vm8680_vm3 = vmand %vm342_vm0, %vm361_vm1  ;;  %v363_v61 = vld [vmem:[#allocation2 + $0x8] sm:$0x1] }
  0x33   :  { %7646 = vmatprep.mubr.bf16.mxu0 %v66_v28  ;;  %v75_v55 = vpack.c.bf16 %v59_v54, %v58_v53  ;;  %v369_v57 = vld [vmem:[#allocation2 + $0x18] sm:$0x1]  ;;  %v467_v58 = vld [vmem:[#allocation2 + $0x1c] sm:$0x1]  ;;  %vm8688_vm4 = vmand %vm342_vm0, %vm459_vm2  ;;  %v364_v0 = vsel %vm8680_vm3, 0, %v363_v61 }
  0x34   :  { %v370_v59 = vsel %vm8680_vm3, 0, %v369_v57  ;;  %v461_v62 = vld [vmem:[#allocation2 + $0xc] sm:$0x1]  ;;  %v468_v63 = vsel %vm8688_vm4, 0, %v467_v58  ;;  %v372_v2 = vld [vmem:[#allocation2 + $0x20] sm:$0x1]  ;;  %vm8708_vm6 = vmand %vm340_vm5, %vm459_vm2 }
  0x35   :  { %371 = vst [vmem:[#allocation2 + $0x18] sm:$0x1] %v370_v59  ;;  %v462_v1 = vsel %vm8688_vm4, 0, %v461_v62  ;;  %469 = vst [vmem:[#allocation2 + $0x1c] sm:$0x1] %v468_v63  ;;  %v373_v3 = vsel %vm8680_vm3, 0, %v372_v2 }
  0x36   :  { %365 = vst [vmem:[#allocation2 + $0x8] sm:$0x1] %v364_v0  ;;  %463 = vst [vmem:[#allocation2 + $0xc] sm:$0x1] %v462_v1  ;;  %v470_v4 = vld [vmem:[#allocation2 + $0x24] sm:$0x1] }
  0x37   :  { %v366_v5 = vld [vmem:[#allocation2 + $0x10] sm:$0x1]  ;;  %374 = vst [vmem:[#allocation2 + $0x20] sm:$0x1] %v373_v3  ;;  %v471_v6 = vsel %vm8688_vm4, 0, %v470_v4  ;;  %v8345_v58 = vld [vmem:[%s10643_s3 + $0x38] sm:$0xff]   ;;  %vm8886_vm9 = vmor %vm1271_vm7, %vm1272_vm8 }
  0x38   :  { %v367_v7 = vsel %vm8680_vm3, 0, %v366_v5  ;;  %v464_v8 = vld [vmem:[#allocation2 + $0x14] sm:$0x1]  ;;  %472 = vst [vmem:[#allocation2 + $0x24] sm:$0x1] %v471_v6  ;;  %vm9535_vm13 = vmor %vm2421_vm11, %vm2422_vm12 }
  0x39   :  { %368 = vst [vmem:[#allocation2 + $0x10] sm:$0x1] %v367_v7  ;;  %v465_v9 = vsel %vm8688_vm4, 0, %v464_v8  ;;  %v381_v11 = vld [vmem:[#allocation2 + $0x38] sm:$0x1] }
  0x3a   :  { %7647 = vmatmul.mubr.bf16.gmra.mrb[12].mxu0 %v67_v33  ;;  %466 = vst [vmem:[#allocation2 + $0x14] sm:$0x1] %v465_v9  ;;  %v479_v12 = vld [vmem:[#allocation2 + $0x3c] sm:$0x1]  ;;  %v382_v13 = vsel %vm8680_vm3, 0, %v381_v11  ;;  %v8515_v33 = vmov 0  }
  0x3b   :  { %7650 = vmatprep.mubr.bf16.mxu0 %v68_v34  ;;  %v480_v14 = vsel %vm8688_vm4, 0, %v479_v12  ;;  %383 = vst [vmem:[#allocation2 + $0x38] sm:$0x1] %v382_v13  ;;  %v375_v15 = vld [vmem:[#allocation2 + $0x28] sm:$0x1] }
  0x3c   :  { %481 = vst [vmem:[#allocation2 + $0x3c] sm:$0x1] %v480_v14  ;;  %v473_v16 = vld [vmem:[#allocation2 + $0x2c] sm:$0x1]  ;;  %v376_v17 = vsel %vm8680_vm3, 0, %v375_v15  ;;  %v8346_v15 = vld [vmem:[%s10643_s3 + $0x60] sm:$0xff]  }
  0x3d   :  { %v474_v18 = vsel %vm8688_vm4, 0, %v473_v16  ;;  %377 = vst [vmem:[#allocation2 + $0x28] sm:$0x1] %v376_v17  ;;  %v384_v19 = vld [vmem:[#allocation2 + $0x40] sm:$0x1]  ;;  %8066 = vmatprep.subr.bf16.mxu1 %v8346_v15 }
  0x3e   :  { %475 = vst [vmem:[#allocation2 + $0x2c] sm:$0x1] %v474_v18  ;;  %v482_v20 = vld [vmem:[#allocation2 + $0x44] sm:$0x1]  ;;  %v385_v21 = vsel %vm8680_vm3, 0, %v384_v19  ;;  %8070 = vmatpush3.bf16.msra.mxu1 %v8346_v15 }
  0x3f   :  { %v483_v22 = vsel %vm8688_vm4, 0, %v482_v20  ;;  %v378_v23 = vld [vmem:[#allocation2 + $0x30] sm:$0x1]  ;;  %v476_v24 = vld [vmem:[#allocation2 + $0x34] sm:$0x1]  ;;  %v8347_v20 = vld [vmem:[%s10643_s3 + $0x68] sm:$0xff]  }
  0x40   :  { %386 = vst [vmem:[#allocation2 + $0x40] sm:$0x1] %v385_v21  ;;  %484 = vst [vmem:[#allocation2 + $0x44] sm:$0x1] %v483_v22  ;;  %v379_v25 = vsel %vm8680_vm3, 0, %v378_v23  ;;  %v477_v26 = vsel %vm8688_vm4, 0, %v476_v24  ;;  %8067 = vmatprep.subr.bf16.mxu1 %v8347_v20 }
  0x41   :  { %380 = vst [vmem:[#allocation2 + $0x30] sm:$0x1] %v379_v25  ;;  %478 = vst [vmem:[#allocation2 + $0x34] sm:$0x1] %v477_v26  ;;  %v393_v27 = vld [vmem:[#allocation2 + $0x68] sm:$0x1] }
  0x42   :  { %7651 = vmatmul.mubr.bf16.gmra.mrb[16].mxu0 %v69_v39  ;;  %v491_v28 = vld [vmem:[#allocation2 + $0x6c] sm:$0x1]  ;;  %v394_v29 = vsel %vm8680_vm3, 0, %v393_v27  ;;  %v387_v31 = vld [vmem:[#allocation2 + $0x58] sm:$0x1]  ;;  %8071 = vmatpush3.bf16.msra.mxu1 %v8347_v20 }
  0x43   :  { %7654 = vmatprep.mubr.bf16.mxu0 %v70_v40  ;;  %v492_v30 = vsel %vm8688_vm4, 0, %v491_v28  ;;  %v485_v32 = vld [vmem:[#allocation2 + $0x5c] sm:$0x1]  ;;  %341 = vst.msk [vmem:[#allocation2] sm:$0xf] %vm340_vm5, %v8515_v33  ;;  %v388_v34 = vsel %vm8680_vm3, 0, %v387_v31 }
  0x44   :  { %343 = vst.msk [vmem:[#allocation2 + $0x4] sm:$0x1] %vm342_vm0, %v8515_v33  ;;  %345 = vst.msk [vmem:[#allocation2 + $0x54] sm:$0x1] %vm342_vm0, %v8515_v33  ;;  %v486_v35 = vsel %vm8688_vm4, 0, %v485_v32  ;;  %v8342_v40 = vld [vmem:[%s10643_s3 + $0x20] sm:$0xff]  }
  0x45   :  { %344 = vst.msk [vmem:[#allocation2 + $0x50] sm:$0xf] %vm340_vm5, %v8515_v33  ;;  %346 = vst.msk [vmem:[#allocation2 + $0xa0] sm:$0xf] %vm340_vm5, %v8515_v33  ;;  %v396_v36 = vld [vmem:[#allocation2 + $0x70] sm:$0x1]  ;;  %7666 = vmatprep.subr.bf16.mxu0 %v8342_v40 }
  0x46   :  { %347 = vst.msk [vmem:[#allocation2 + $0xa4] sm:$0x1] %vm342_vm0, %v8515_v33  ;;  %349 = vst.msk [vmem:[#allocation2 + $0xf4] sm:$0x1] %vm342_vm0, %v8515_v33  ;;  %v494_v37 = vld [vmem:[#allocation2 + $0x74] sm:$0x1]  ;;  %7667 = vmatpush3.bf16.msra.mxu0 %v8342_v40 }
  0x47   :  { %348 = vst.msk [vmem:[#allocation2 + $0xf0] sm:$0xf] %vm340_vm5, %v8515_v33  ;;  %351 = vst.msk [vmem:[#allocation2 + $0x48] sm:$0xf] %vm340_vm5, %v8515_v33  ;;  %v397_v38 = vsel %vm8680_vm3, 0, %v396_v36  ;;  %v495_v39 = vsel %vm8688_vm4, 0, %v494_v37 }
  0x48   :  { %352 = vst.msk [vmem:[#allocation2 + $0x4c] sm:$0x1] %vm342_vm0, %v8515_v33  ;;  %354 = vst.msk [vmem:[#allocation2 + $0x9c] sm:$0x1] %vm342_vm0, %v8515_v33  ;;  %v390_v41 = vld [vmem:[#allocation2 + $0x60] sm:$0x1] }
  0x49   :  { %353 = vst.msk [vmem:[#allocation2 + $0x98] sm:$0xf] %vm340_vm5, %v8515_v33  ;;  %355 = vst.msk [vmem:[#allocation2 + $0xe8] sm:$0xf] %vm340_vm5, %v8515_v33  ;;  %v488_v42 = vld [vmem:[#allocation2 + $0x64] sm:$0x1] }
  0x4a   :  { %7655 = vmatmul.mubr.bf16.gmra.mrb[20].mxu0 %v71_v45  ;;  %356 = vst.msk [vmem:[#allocation2 + $0xec] sm:$0x1] %vm342_vm0, %v8515_v33  ;;  %358 = vst.msk [vmem:[#allocation2 + $0x13c] sm:$0x1] %vm342_vm0, %v8515_v33  ;;  %v391_v43 = vsel %vm8680_vm3, 0, %v390_v41  ;;  %v489_v44 = vsel %vm8688_vm4, 0, %v488_v42 }
  0x4b   :  { %7658 = vmatprep.mubr.bf16.mxu0 %v72_v46  ;;  %357 = vst.msk [vmem:[#allocation2 + $0x138] sm:$0xf] %vm340_vm5, %v8515_v33  ;;  %395 = vst [vmem:[#allocation2 + $0x68] sm:$0x1] %v394_v29  ;;  %v8343_v45 = vld [vmem:[%s10643_s3 + $0x28] sm:$0xff]   ;;  %v8344_v46 = vld [vmem:[%s10643_s3 + $0x30] sm:$0xff]  }
  0x4c   :  { %493 = vst [vmem:[#allocation2 + $0x6c] sm:$0x1] %v492_v30  ;;  %389 = vst [vmem:[#allocation2 + $0x58] sm:$0x1] %v388_v34  ;;  %7668 = vmatprep.subr.bf16.mxu0 %v8343_v45  ;;  %v405_v47 = vld [vmem:[#allocation2 + $0x88] sm:$0x1] }
  0x4d   :  { %487 = vst [vmem:[#allocation2 + $0x5c] sm:$0x1] %v486_v35  ;;  %398 = vst [vmem:[#allocation2 + $0x70] sm:$0x1] %v397_v38  ;;  %v503_v48 = vld [vmem:[#allocation2 + $0x8c] sm:$0x1]  ;;  %7669 = vmatpush3.bf16.msra.mxu0 %v8343_v45 }
  0x4e   :  { %496 = vst [vmem:[#allocation2 + $0x74] sm:$0x1] %v495_v39  ;;  %392 = vst [vmem:[#allocation2 + $0x60] sm:$0x1] %v391_v43  ;;  %v406_v49 = vsel %vm8680_vm3, 0, %v405_v47  ;;  %v504_v50 = vsel %vm8688_vm4, 0, %v503_v48  ;;  %7670 = vmatprep.subr.bf16.mxu0 %v8344_v46 }
  0x4f   :  { %490 = vst [vmem:[#allocation2 + $0x64] sm:$0x1] %v489_v44  ;;  %407 = vst [vmem:[#allocation2 + $0x88] sm:$0x1] %v406_v49  ;;  %v497_v53 = vld [vmem:[#allocation2 + $0x7c] sm:$0x1] }
  0x50   :  { %505 = vst [vmem:[#allocation2 + $0x8c] sm:$0x1] %v504_v50  ;;  %v498_v54 = vsel %vm8688_vm4, 0, %v497_v53  ;;  %v506_v57 = vld [vmem:[#allocation2 + $0x94] sm:$0x1]  ;;  %v8349_v38 = vld [vmem:[%s10643_s3 + $0x78] sm:$0xff]  }
  0x51   :  { %499 = vst [vmem:[#allocation2 + $0x7c] sm:$0x1] %v498_v54  ;;  %v507_v61 = vsel %vm8688_vm4, 0, %v506_v57  ;;  %7671 = vmatpush3.bf16.msra.mxu0 %v8344_v46  ;;  %v402_v62 = vld [vmem:[#allocation2 + $0x80] sm:$0x1]  ;;  %v8348_v37 = vld [vmem:[%s10643_s3 + $0x70] sm:$0xff]  }
  0x52   :  { %7659 = vmatmul.mubr.bf16.gmra.mrb[24].mxu0 %v73_v51  ;;  %v399_v51 = vld [vmem:[#allocation2 + $0x78] sm:$0x1]  ;;  %508 = vst [vmem:[#allocation2 + $0x94] sm:$0x1] %v507_v61  ;;  %v500_v63 = vld [vmem:[#allocation2 + $0x84] sm:$0x1]  ;;  %7672 = vmatprep.subr.bf16.mxu0 %v8345_v58 }
  0x53   :  { %7662 = vmatprep.mubr.bf16.mxu0 %v74_v52  ;;  %v400_v52 = vsel %vm8680_vm3, 0, %v399_v51  ;;  %v403_v0 = vsel %vm8680_vm3, 0, %v402_v62  ;;  %v501_v1 = vsel %vm8688_vm4, 0, %v500_v63  ;;  %v417_v2 = vld [vmem:[#allocation2 + $0xb8] sm:$0x1]  ;;  %8068 = vmatprep.subr.bf16.mxu1 %v8348_v37 }
  0x54   :  { %401 = vst [vmem:[#allocation2 + $0x78] sm:$0x1] %v400_v52  ;;  %404 = vst [vmem:[#allocation2 + $0x80] sm:$0x1] %v403_v0  ;;  %v515_v3 = vld [vmem:[#allocation2 + $0xbc] sm:$0x1]  ;;  %8072 = vmatpush3.bf16.msra.mxu1 %v8348_v37 }
  0x55   :  { %502 = vst [vmem:[#allocation2 + $0x84] sm:$0x1] %v501_v1  ;;  %7673 = vmatpush3.bf16.msra.mxu0 %v8345_v58  ;;  %v418_v4 = vsel %vm8680_vm3, 0, %v417_v2  ;;  %v516_v5 = vsel %vm8688_vm4, 0, %v515_v3  ;;  %v411_v6 = vld [vmem:[#allocation2 + $0xa8] sm:$0x1]  ;;  %8069 = vmatprep.subr.bf16.mxu1 %v8349_v38 }
  0x56   :  { %419 = vst [vmem:[#allocation2 + $0xb8] sm:$0x1] %v418_v4  ;;  %517 = vst [vmem:[#allocation2 + $0xbc] sm:$0x1] %v516_v5  ;;  %v509_v7 = vld [vmem:[#allocation2 + $0xac] sm:$0x1] }
  0x57   :  { %v412_v8 = vsel %vm8680_vm3, 0, %v411_v6  ;;  %v510_v9 = vsel %vm8688_vm4, 0, %v509_v7  ;;  %v420_v11 = vld [vmem:[#allocation2 + $0xc0] sm:$0x1]  ;;  %v518_v13 = vld [vmem:[#allocation2 + $0xc4] sm:$0x1] }
  0x58   :  { %413 = vst [vmem:[#allocation2 + $0xa8] sm:$0x1] %v412_v8  ;;  %511 = vst [vmem:[#allocation2 + $0xac] sm:$0x1] %v510_v9  ;;  %v421_v12 = vsel %vm8680_vm3, 0, %v420_v11  ;;  %v519_v14 = vsel %vm8688_vm4, 0, %v518_v13  ;;  %8073 = vmatpush3.bf16.msra.mxu1 %v8349_v38 }
  0x59   :  { %422 = vst [vmem:[#allocation2 + $0xc0] sm:$0x1] %v421_v12  ;;  %520 = vst [vmem:[#allocation2 + $0xc4] sm:$0x1] %v519_v14  ;;  %v414_v16 = vld [vmem:[#allocation2 + $0xb0] sm:$0x1] }
  0x5a   :  { %7663 = vmatmul.mubr.bf16.gmra.mrb[28].mxu0 %v75_v55  ;;  %v408_v55 = vld [vmem:[#allocation2 + $0x90] sm:$0x1]  ;;  %v512_v17 = vld [vmem:[#allocation2 + $0xb4] sm:$0x1]  ;;  %v415_v18 = vsel %vm8680_vm3, 0, %v414_v16 }
  0x5b   :  { %v409_v59 = vsel %vm8680_vm3, 0, %v408_v55  ;;  %v513_v19 = vsel %vm8688_vm4, 0, %v512_v17  ;;  %416 = vst [vmem:[#allocation2 + $0xb0] sm:$0x1] %v415_v18  ;;  %v429_v21 = vld [vmem:[#allocation2 + $0xd8] sm:$0x1] }
  0x5c   :  { %410 = vst [vmem:[#allocation2 + $0x90] sm:$0x1] %v409_v59  ;;  %514 = vst [vmem:[#allocation2 + $0xb4] sm:$0x1] %v513_v19  ;;  %v527_v22 = vld [vmem:[#allocation2 + $0xdc] sm:$0x1] }
  0x5d   :  { %v430_v23 = vsel %vm8680_vm3, 0, %v429_v21  ;;  %v528_v24 = vsel %vm8688_vm4, 0, %v527_v22  ;;  %v423_v25 = vld [vmem:[#allocation2 + $0xc8] sm:$0x1]  ;;  %v521_v26 = vld [vmem:[#allocation2 + $0xcc] sm:$0x1] }
  0x5e   :  { %431 = vst [vmem:[#allocation2 + $0xd8] sm:$0x1] %v430_v23  ;;  %529 = vst [vmem:[#allocation2 + $0xdc] sm:$0x1] %v528_v24  ;;  %v432_v27 = vld [vmem:[#allocation2 + $0xe0] sm:$0x1] }
  0x5f   :  { %v424_v28 = vsel %vm8680_vm3, 0, %v423_v25  ;;  %v522_v29 = vsel %vm8688_vm4, 0, %v521_v26  ;;  %v433_v30 = vsel %vm8680_vm3, 0, %v432_v27  ;;  %v530_v31 = vld [vmem:[#allocation2 + $0xe4] sm:$0x1] }
  0x60   :  { %425 = vst [vmem:[#allocation2 + $0xc8] sm:$0x1] %v424_v28  ;;  %523 = vst [vmem:[#allocation2 + $0xcc] sm:$0x1] %v522_v29  ;;  %v531_v32 = vsel %vm8688_vm4, 0, %v530_v31  ;;  %v8851_v55 = vld [vmem:[%s10643_s3 + $0x80] sm:$0xff]  }
  0x61   :  { %434 = vst [vmem:[#allocation2 + $0xe0] sm:$0x1] %v433_v30  ;;  %532 = vst [vmem:[#allocation2 + $0xe4] sm:$0x1] %v531_v32  ;;  %v426_v33 = vld [vmem:[#allocation2 + $0xd0] sm:$0x1]  ;;  %7826 = vmatprep.subr.bf16.mxu1 %v8851_v55 }
  0x62   :  { %v524_v34 = vld [vmem:[#allocation2 + $0xd4] sm:$0x1]  ;;  %v427_v35 = vsel %vm8680_vm3, 0, %v426_v33  ;;  %v441_v39 = vld [vmem:[#allocation2 + $0x108] sm:$0x1] }
  0x63   :  { %v525_v36 = vsel %vm8688_vm4, 0, %v524_v34  ;;  %428 = vst [vmem:[#allocation2 + $0xd0] sm:$0x1] %v427_v35  ;;  %v539_v40 = vld [vmem:[#allocation2 + $0x10c] sm:$0x1]  ;;  %v442_v41 = vsel %vm8680_vm3, 0, %v441_v39 }
  0x64   :  { %526 = vst [vmem:[#allocation2 + $0xd4] sm:$0x1] %v525_v36  ;;  %v540_v42 = vsel %vm8688_vm4, 0, %v539_v40  ;;  %443 = vst [vmem:[#allocation2 + $0x108] sm:$0x1] %v442_v41 }
  0x65   :  { %541 = vst [vmem:[#allocation2 + $0x10c] sm:$0x1] %v540_v42  ;;  %v435_v43 = vld [vmem:[#allocation2 + $0xf8] sm:$0x1]  ;;  %v533_v45 = vld [vmem:[#allocation2 + $0xfc] sm:$0x1] }
  0x66   :  { %v436_v44 = vsel %vm8680_vm3, 0, %v435_v43  ;;  %v444_v46 = vld [vmem:[#allocation2 + $0x110] sm:$0x1]  ;;  %v534_v47 = vsel %vm8688_vm4, 0, %v533_v45  ;;  %v542_v49 = vld [vmem:[#allocation2 + $0x114] sm:$0x1] }
  0x67   :  { %437 = vst [vmem:[#allocation2 + $0xf8] sm:$0x1] %v436_v44  ;;  %v445_v48 = vsel %vm8680_vm3, 0, %v444_v46  ;;  %535 = vst [vmem:[#allocation2 + $0xfc] sm:$0x1] %v534_v47  ;;  %v543_v50 = vsel %vm8688_vm4, 0, %v542_v49 }
  0x68   :  { %446 = vst [vmem:[#allocation2 + $0x110] sm:$0x1] %v445_v48  ;;  %544 = vst [vmem:[#allocation2 + $0x114] sm:$0x1] %v543_v50  ;;  %v438_v51 = vld [vmem:[#allocation2 + $0x100] sm:$0x1] }
  0x69   :  { %v439_v52 = vsel %vm8680_vm3, 0, %v438_v51  ;;  %v536_v53 = vld [vmem:[#allocation2 + $0x104] sm:$0x1]  ;;  %v453_v57 = vld [vmem:[#allocation2 + $0x128] sm:$0x1] }
  0x6a   :  { %440 = vst [vmem:[#allocation2 + $0x100] sm:$0x1] %v439_v52  ;;  %v537_v54 = vsel %vm8688_vm4, 0, %v536_v53  ;;  %v551_v58 = vld [vmem:[#allocation2 + $0x12c] sm:$0x1]  ;;  %v454_v59 = vsel %vm8680_vm3, 0, %v453_v57 }
  0x6b   :  { %538 = vst [vmem:[#allocation2 + $0x104] sm:$0x1] %v537_v54  ;;  %v552_v61 = vsel %vm8688_vm4, 0, %v551_v58  ;;  %455 = vst [vmem:[#allocation2 + $0x128] sm:$0x1] %v454_v59 }
  0x6c   :  { %553 = vst [vmem:[#allocation2 + $0x12c] sm:$0x1] %v552_v61  ;;  %v447_v62 = vld [vmem:[#allocation2 + $0x118] sm:$0x1]  ;;  %v545_v63 = vld [vmem:[#allocation2 + $0x11c] sm:$0x1] }
  0x6d   :  { %v456_v0 = vld [vmem:[#allocation2 + $0x130] sm:$0x1]  ;;  %v448_v1 = vsel %vm8680_vm3, 0, %v447_v62  ;;  %v546_v2 = vsel %vm8688_vm4, 0, %v545_v63  ;;  %v554_v4 = vld [vmem:[#allocation2 + $0x134] sm:$0x1] }
  0x6e   :  { %v457_v3 = vsel %vm8680_vm3, 0, %v456_v0  ;;  %449 = vst [vmem:[#allocation2 + $0x118] sm:$0x1] %v448_v1  ;;  %547 = vst [vmem:[#allocation2 + $0x11c] sm:$0x1] %v546_v2  ;;  %v555_v5 = vsel %vm8688_vm4, 0, %v554_v4 }
  0x6f   :  { %458 = vst [vmem:[#allocation2 + $0x130] sm:$0x1] %v457_v3  ;;  %556 = vst [vmem:[#allocation2 + $0x134] sm:$0x1] %v555_v5  ;;  %v1199_v6 = vld [vmem:[#allocation2] sm:$0xf] }
  0x70   :  { %v1207_v7 = vld [vmem:[#allocation2 + $0x50] sm:$0xf]  ;;  %v1275_v8 = vshrl.u32 %v1199_v6, 16  ;;  %v1278_v9 = vshll.u32 %v1199_v6, 16  ;;  %v450_v13 = vld [vmem:[#allocation2 + $0x120] sm:$0x1] }
  0x71   :  { %v1387_v11 = vshrl.u32 %v1207_v7, 16  ;;  %v1390_v12 = vshll.u32 %v1207_v7, 16  ;;  %v548_v14 = vld [vmem:[#allocation2 + $0x124] sm:$0x1]  ;;  %v451_v15 = vsel %vm8680_vm3, 0, %v450_v13 }
  0x72   :  { %v549_v16 = vsel %vm8688_vm4, 0, %v548_v14  ;;  %v1277_v17 = vrot.slane %v1275_v8, 4  ;;  %v1280_v18 = vrot.slane %v1278_v9, 5  ;;  %452 = vst [vmem:[#allocation2 + $0x120] sm:$0x1] %v451_v15 }
  0x73   :  { %550 = vst [vmem:[#allocation2 + $0x124] sm:$0x1] %v549_v16  ;;  %v1389_v19 = vrot.slane %v1387_v11, 4  ;;  %v1392_v20 = vrot.slane %v1390_v12, 5  ;;  %v1215_v21 = vld [vmem:[#allocation2 + $0xa0] sm:$0xf] }
  0x74   :  { %v1239_v22 = vld [vmem:[#allocation2 + $0x4] sm:$0x1]  ;;  %v1499_v23 = vshrl.u32 %v1215_v21, 16  ;;  %v1502_v24 = vshll.u32 %v1215_v21, 16  ;;  %v8873_v25 = vld [vmem:[%s10642_s2] ss:$0 sm:$0xff]  ;;  %v1281_v26 = vor.u32 %v1280_v18, %v1277_v17 }
  0x75   :  { %v1284_v27 = vshll.u32 %v1239_v22, 16  ;;  %v1247_v28 = vld [vmem:[#allocation2 + $0x54] sm:$0x1]  ;;  %v1393_v60 = vor.u32 %v1392_v20, %v1389_v19  ;;  %v1255_v30 = vld [vmem:[#allocation2 + $0xa4] sm:$0x1] }
  0x76   :  { %v1396_v29 = vshll.u32 %v1247_v28, 16  ;;  %v1501_v31 = vrot.slane %v1499_v23, 4  ;;  %v1504_v32 = vrot.slane %v1502_v24, 5  ;;  %v1508_v33 = vshll.u32 %v1255_v30, 16  ;;  %v1019_v1 = vld [vmem:[#allocation2 + $0x18] sm:$0xf] }
  0x77   :  { %v8876_v38 = vrot.slane %v1281_v26, 4  ;;  %v8879_v41 = vrot.slane %v1284_v27, 5  ;;  %v8881_v42 = vrot.slane %v1393_v60, 4  ;;  %v1022_v2 = vld [vmem:[#allocation2 + $0x1c] sm:$0x1] }
  0x78   :  { %v1505_v35 = vor.u32 %v1504_v32, %v1501_v31  ;;  %v8883_v43 = vrot.slane %v1396_v29, 5  ;;  %v8892_v49 = vrot.slane %v1508_v33, 5  ;;  %v1007_v8 = vld [vmem:[#allocation2 + $0x8] sm:$0xf]  ;;  %v1010_v15 = vld [vmem:[#allocation2 + $0xc] sm:$0x1] }
  0x79   :  { %v1287_v58 = vsel %vm8886_vm9, %v8876_v38, %v8879_v41  ;;  %v1025_v23 = vld [vmem:[#allocation2 + $0x20] sm:$0xf]  ;;  %v1028_v60 = vld [vmem:[#allocation2 + $0x24] sm:$0x1] }
  0x7a   :  { %v8890_v48 = vrot.slane %v1505_v35, 4  ;;  %v1399_v62 = vsel %vm8886_vm9, %v8881_v42, %v8883_v43  ;;  %v1013_v35 = vld [vmem:[#allocation2 + $0x10] sm:$0xf] }
  0x7c   :  { %v1511_v63 = vsel %vm8886_vm9, %v8890_v48, %v8892_v49 }
  0xf5   :  { %v7636_v34 = vpop.f32.mrb[0].mxu0 }
  0xf6   :  { %v190_v36 = vadd.f32 %v7636_v34, %v8873_v25  ;;  %v181_v37 = vpop.f32.mrb[1].mxu0 }
  0xf7   :  { %v182_v39 = vadd.f32 %v8873_v25, %v181_v37  ;;  %v7637_v40 = vpop.f32.mrb[2].mxu0 }
  0xf8   :  { %v310_v44 = vmax.f32 %v190_v36, 0.0  ;;  %v193_v45 = vadd.f32 %v7637_v40, %v8873_v25  ;;  %v184_v46 = vpop.f32.mrb[3].mxu0  ;;  %v1016_v36 = vld [vmem:[#allocation2 + $0x14] sm:$0x1] }
  0xf9   :  { %v308_v50 = vmax.f32 %v182_v39, 0.0  ;;  %v185_v51 = vadd.f32 %v8873_v25, %v184_v46 }
  0xfa   :  { %v7364_v52 = vpack.c.bf16 %v310_v44, %v310_v44  ;;  %v311_v53 = vmax.f32 %v193_v45, 0.0 }
  0xfb   :  { %v7362_v54 = vpack.c.bf16 %v308_v50, %v308_v50  ;;  %v309_v57 = vmax.f32 %v185_v51, 0.0 }
  0xfc   :  { %v702_v59 = vshrl.u32 %v7364_v52, 16  ;;  %v7365_v61 = vpack.c.bf16 %v311_v53, %v311_v53  ;;  %v705_v0 = vshll.u32 %v7364_v52, 16 }
  0xfd   :  { %v686_v3 = vshrl.u32 %v7362_v54, 16  ;;  %v689_v4 = vshll.u32 %v7362_v54, 16  ;;  %v7363_v5 = vpack.c.bf16 %v309_v57, %v309_v57  ;;  %v7640_v6 = vpop.f32.mrb[4].mxu0 }
  0xfe   :  { %v704_v7 = vrot.slane %v702_v59, 7  ;;  %v710_v9 = vshrl.u32 %v7365_v61, 16  ;;  %v713_v11 = vshll.u32 %v7365_v61, 16  ;;  %v206_v12 = vadd.f32 %v7640_v6, %v8873_v25  ;;  %v197_v13 = vpop.f32.mrb[5].mxu0  ;;  %v8927_v61 = vld [vmem:[#allocation2 + $0xf0] sm:$0xf] }
  0xff   :  { %v688_v14 = vrot.slane %v686_v3, 7  ;;  %v694_v16 = vshrl.u32 %v7363_v5, 16  ;;  %v697_v17 = vshll.u32 %v7363_v5, 16  ;;  %v198_v18 = vadd.f32 %v8873_v25, %v197_v13  ;;  %v7641_v19 = vpop.f32.mrb[6].mxu0  ;;  %v1043_v5 = vld [vmem:[#allocation2 + $0x38] sm:$0xf] }
 0x100   :  { %v707_v20 = vor.u32 %v705_v0, %v704_v7  ;;  %v708_v21 = vrot.slane %v704_v7, 4  ;;  %v712_v22 = vrot.slane %v710_v9, 7  ;;  %v314_v24 = vmax.f32 %v206_v12, 0.0  ;;  %v200_v26 = vpop.f32.mrb[7].mxu0  ;;  %v1046_v13 = vld [vmem:[#allocation2 + $0x3c] sm:$0x1] }
 0x101   :  { %v691_v27 = vor.u32 %v689_v4, %v688_v14  ;;  %v692_v28 = vrot.slane %v688_v14, 4  ;;  %v696_v29 = vrot.slane %v694_v16, 7  ;;  %v312_v30 = vmax.f32 %v198_v18, 0.0  ;;  %v1031_v18 = vld [vmem:[#allocation2 + $0x28] sm:$0xf] }
 0x102   :  { %v1020_v31 = vsel %vm8708_vm6, %v707_v20, %v1019_v1  ;;  %v1023_v32 = vsel %vm8680_vm3, %v708_v21, %v1022_v2  ;;  %v715_v33 = vor.u32 %v713_v11, %v712_v22  ;;  %v716_v34 = vrot.slane %v712_v22, 4 }
 0x103   :  { %1021 = vst [vmem:[#allocation2 + $0x18] sm:$0xf] %v1020_v31  ;;  %1024 = vst [vmem:[#allocation2 + $0x1c] sm:$0x1] %v1023_v32  ;;  %v1008_v37 = vsel %vm8708_vm6, %v691_v27, %v1007_v8  ;;  %v1011_v39 = vsel %vm8680_vm3, %v692_v28, %v1010_v15  ;;  %v699_v40 = vor.u32 %v697_v17, %v696_v29  ;;  %v700_v44 = vrot.slane %v696_v29, 4 }
 0x104   :  { %1009 = vst [vmem:[#allocation2 + $0x8] sm:$0xf] %v1008_v37  ;;  %1012 = vst [vmem:[#allocation2 + $0xc] sm:$0x1] %v1011_v39  ;;  %v1026_v45 = vsel %vm8708_vm6, %v715_v33, %v1025_v23  ;;  %v1029_v46 = vsel %vm8680_vm3, %v716_v34, %v1028_v60  ;;  %v7368_v50 = vpack.c.bf16 %v314_v24, %v314_v24  ;;  %v1611_v17 = vshrl.u32 %v8927_v61, 16 }
 0x105   :  { %v7366_v51 = vpack.c.bf16 %v312_v30, %v312_v30  ;;  %1027 = vst [vmem:[#allocation2 + $0x20] sm:$0xf] %v1026_v45  ;;  %1030 = vst [vmem:[#allocation2 + $0x24] sm:$0x1] %v1029_v46  ;;  %v1014_v52 = vsel %vm8708_vm6, %v699_v40, %v1013_v35  ;;  %v1017_v53 = vsel %vm8680_vm3, %v700_v44, %v1016_v36  ;;  %v7644_v59 = vpop.f32.mrb[8].mxu0 }
 0x106   :  { %v209_v54 = vadd.f32 %v7641_v19, %v8873_v25  ;;  %v201_v57 = vadd.f32 %v8873_v25, %v200_v26  ;;  %1015 = vst [vmem:[#allocation2 + $0x10] sm:$0xf] %v1014_v52  ;;  %1018 = vst [vmem:[#allocation2 + $0x14] sm:$0x1] %v1017_v53  ;;  %v734_v0 = vshrl.u32 %v7368_v50, 16  ;;  %v737_v1 = vshll.u32 %v7368_v50, 16 }
 0x107   :  { %v718_v2 = vshrl.u32 %v7366_v51, 16  ;;  %v721_v3 = vshll.u32 %v7366_v51, 16  ;;  %v213_v4 = vpop.f32.mrb[9].mxu0  ;;  %v222_v8 = vadd.f32 %v7644_v59, %v8873_v25  ;;  %v1034_v19 = vld [vmem:[#allocation2 + $0x2c] sm:$0x1]  ;;  %v8948_v52 = vld [vmem:[%s10643_s3] sm:$0xff]  }
 0x108   :  { %v315_v6 = vmax.f32 %v209_v54, 0.0  ;;  %v313_v7 = vmax.f32 %v201_v57, 0.0  ;;  %v214_v9 = vadd.f32 %v8873_v25, %v213_v4  ;;  %v7645_v11 = vpop.f32.mrb[10].mxu0  ;;  %v736_v12 = vrot.slane %v734_v0, 7  ;;  %v1049_v37 = vld [vmem:[#allocation2 + $0x40] sm:$0xf]  ;;  %7706 = vmatprep.subr.bf16.mxu0 %v8948_v52 }
 0x109   :  { %v720_v14 = vrot.slane %v718_v2, 7  ;;  %v8932_v15 = vadd.f32 %v7645_v11, %v8873_v25  ;;  %v216_v16 = vpop.f32.mrb[11].mxu0  ;;  %v318_v22 = vmax.f32 %v222_v8, 0.0  ;;  %v1052_v39 = vld [vmem:[#allocation2 + $0x44] sm:$0x1] }
 0x10a   :  { %v7369_v20 = vpack.c.bf16 %v315_v6, %v315_v6  ;;  %v7367_v21 = vpack.c.bf16 %v313_v7, %v313_v7  ;;  %v316_v23 = vmax.f32 %v214_v9, 0.0  ;;  %v739_v24 = vor.u32 %v737_v1, %v736_v12  ;;  %v1037_v45 = vld [vmem:[#allocation2 + $0x30] sm:$0xf]  ;;  %v1040_v53 = vld [vmem:[#allocation2 + $0x34] sm:$0x1] }
 0x10b   :  { %v740_v26 = vrot.slane %v736_v12, 4  ;;  %v723_v27 = vor.u32 %v721_v3, %v720_v14  ;;  %v724_v28 = vrot.slane %v720_v14, 4  ;;  %v8935_v32 = vld [vmem:[#allocation2 + $0x8] sm:$0xf]  ;;  %v7372_v46 = vpack.c.bf16 %v318_v22, %v318_v22 }
 0x10c   :  { %v742_v60 = vshrl.u32 %v7369_v20, 16  ;;  %v745_v29 = vshll.u32 %v7369_v20, 16  ;;  %v726_v30 = vshrl.u32 %v7367_v21, 16  ;;  %v729_v31 = vshll.u32 %v7367_v21, 16  ;;  %v1070_v20 = vld [vmem:[#allocation2 + $0x6c] sm:$0x1] }
 0x10d   :  { %v1044_v33 = vsel %vm8708_vm6, %v739_v24, %v1043_v5  ;;  %v1047_v34 = vsel %vm8680_vm3, %v740_v26, %v1046_v13  ;;  %v1032_v35 = vsel %vm8708_vm6, %v723_v27, %v1031_v18  ;;  %v1035_v36 = vsel %vm8680_vm3, %v724_v28, %v1034_v19  ;;  %v7648_v51 = vpop.f32.mrb[12].mxu0  ;;  %v1067_v18 = vld [vmem:[#allocation2 + $0x68] sm:$0xf]  ;;  %v1055_v24 = vld [vmem:[#allocation2 + $0x58] sm:$0xf] }
 0x10e   :  { %1045 = vst [vmem:[#allocation2 + $0x38] sm:$0xf] %v1044_v33  ;;  %1048 = vst [vmem:[#allocation2 + $0x3c] sm:$0x1] %v1047_v34  ;;  %v744_v40 = vrot.slane %v742_v60, 7  ;;  %v728_v44 = vrot.slane %v726_v30, 7  ;;  %v7370_v50 = vpack.c.bf16 %v316_v23, %v316_v23  ;;  %v217_v57 = vadd.f32 %v8873_v25, %v216_v16 }
 0x10f   :  { %1033 = vst [vmem:[#allocation2 + $0x28] sm:$0xf] %v1032_v35  ;;  %1036 = vst [vmem:[#allocation2 + $0x2c] sm:$0x1] %v1035_v36  ;;  %v319_v54 = vmax.f32 %v8932_v15, 0.0  ;;  %v238_v59 = vadd.f32 %v7648_v51, %v8873_v25  ;;  %v229_v0 = vpop.f32.mrb[13].mxu0 }
 0x110   :  { %v1289_v1 = vshrl.u32 %v8935_v32, 16  ;;  %v747_v2 = vor.u32 %v745_v29, %v744_v40  ;;  %v748_v3 = vrot.slane %v744_v40, 4  ;;  %v731_v4 = vor.u32 %v729_v31, %v728_v44  ;;  %v7649_v6 = vpop.f32.mrb[14].mxu0  ;;  %v1058_v26 = vld [vmem:[#allocation2 + $0x5c] sm:$0x1] }
 0x111   :  { %v732_v5 = vrot.slane %v728_v44, 4  ;;  %v766_v7 = vshrl.u32 %v7372_v46, 16  ;;  %v769_v8 = vshll.u32 %v7372_v46, 16  ;;  %v750_v9 = vshrl.u32 %v7370_v50, 16  ;;  %v232_v12 = vpop.f32.mrb[15].mxu0 }
 0x112   :  { %v753_v11 = vshll.u32 %v7370_v50, 16  ;;  %v1050_v13 = vsel %vm8708_vm6, %v747_v2, %v1049_v37  ;;  %v1053_v14 = vsel %vm8680_vm3, %v748_v3, %v1052_v39  ;;  %v1038_v15 = vsel %vm8708_vm6, %v731_v4, %v1037_v45  ;;  %v1073_v51 = vld [vmem:[#allocation2 + $0x70] sm:$0xf]  ;;  %v1061_v4 = vld [vmem:[#allocation2 + $0x60] sm:$0xf] }
 0x113   :  { %v1041_v16 = vsel %vm8680_vm3, %v732_v5, %v1040_v53  ;;  %1051 = vst [vmem:[#allocation2 + $0x40] sm:$0xf] %v1050_v13  ;;  %1054 = vst [vmem:[#allocation2 + $0x44] sm:$0x1] %v1053_v14  ;;  %v768_v19 = vrot.slane %v766_v7, 7  ;;  %v752_v21 = vrot.slane %v750_v9, 7  ;;  %v7373_v22 = vpack.c.bf16 %v319_v54, %v319_v54 }
 0x114   :  { %1039 = vst [vmem:[#allocation2 + $0x30] sm:$0xf] %v1038_v15  ;;  %1042 = vst [vmem:[#allocation2 + $0x34] sm:$0x1] %v1041_v16  ;;  %v317_v23 = vmax.f32 %v217_v57, 0.0  ;;  %v322_v27 = vmax.f32 %v238_v59, 0.0  ;;  %v230_v28 = vadd.f32 %v8873_v25, %v229_v0  ;;  %v241_v60 = vadd.f32 %v7649_v6, %v8873_v25 }
 0x115   :  { %v233_v29 = vadd.f32 %v8873_v25, %v232_v12  ;;  %v771_v30 = vor.u32 %v769_v8, %v768_v19  ;;  %v772_v31 = vrot.slane %v768_v19, 4  ;;  %v755_v33 = vor.u32 %v753_v11, %v752_v21  ;;  %v7652_v40 = vpop.f32.mrb[16].mxu0  ;;  %v1076_v53 = vld [vmem:[#allocation2 + $0x74] sm:$0x1]  ;;  %v1064_v5 = vld [vmem:[#allocation2 + $0x64] sm:$0x1] }
 0x116   :  { %v756_v34 = vrot.slane %v752_v21, 4  ;;  %v774_v35 = vshrl.u32 %v7373_v22, 16  ;;  %v777_v36 = vshll.u32 %v7373_v22, 16  ;;  %v7371_v37 = vpack.c.bf16 %v317_v23, %v317_v23  ;;  %v245_v54 = vpop.f32.mrb[17].mxu0  ;;  %v1091_v16 = vld [vmem:[#allocation2 + $0x88] sm:$0xf] }
 0x117   :  { %v7376_v39 = vpack.c.bf16 %v322_v27, %v322_v27  ;;  %v1068_v44 = vsel %vm8708_vm6, %v771_v30, %v1067_v18  ;;  %v1071_v45 = vsel %vm8680_vm3, %v772_v31, %v1070_v20  ;;  %v1056_v46 = vsel %vm8708_vm6, %v755_v33, %v1055_v24  ;;  %v7653_v3 = vpop.f32.mrb[18].mxu0  ;;  %v1094_v18 = vld [vmem:[#allocation2 + $0x8c] sm:$0x1] }
 0x118   :  { %v1059_v50 = vsel %vm8680_vm3, %v756_v34, %v1058_v26  ;;  %1069 = vst [vmem:[#allocation2 + $0x68] sm:$0xf] %v1068_v44  ;;  %1072 = vst [vmem:[#allocation2 + $0x6c] sm:$0x1] %v1071_v45  ;;  %v776_v57 = vrot.slane %v774_v35, 7  ;;  %v758_v59 = vshrl.u32 %v7371_v37, 16  ;;  %v254_v22 = vadd.f32 %v7652_v40, %v8873_v25 }
 0x119   :  { %1057 = vst [vmem:[#allocation2 + $0x58] sm:$0xf] %v1056_v46  ;;  %1060 = vst [vmem:[#allocation2 + $0x5c] sm:$0x1] %v1059_v50  ;;  %v761_v0 = vshll.u32 %v7371_v37, 16  ;;  %v798_v2 = vshrl.u32 %v7376_v39, 16 }
 0x11a   :  { %v801_v6 = vshll.u32 %v7376_v39, 16  ;;  %v320_v7 = vmax.f32 %v230_v28, 0.0  ;;  %v323_v8 = vmax.f32 %v241_v60, 0.0  ;;  %v321_v9 = vmax.f32 %v233_v29, 0.0  ;;  %v8974_v11 = vpop.f32.mrb[19].mxu0 }
 0x11b   :  { %v779_v12 = vor.u32 %v777_v36, %v776_v57  ;;  %v780_v13 = vrot.slane %v776_v57, 4  ;;  %v760_v14 = vrot.slane %v758_v59, 7  ;;  %v800_v15 = vrot.slane %v798_v2, 7  ;;  %v1079_v34 = vld [vmem:[#allocation2 + $0x78] sm:$0xf] }
 0x11c   :  { %v7374_v19 = vpack.c.bf16 %v320_v7, %v320_v7  ;;  %v7377_v20 = vpack.c.bf16 %v323_v8, %v323_v8  ;;  %v7375_v21 = vpack.c.bf16 %v321_v9, %v321_v9  ;;  %v1082_v45 = vld [vmem:[#allocation2 + $0x7c] sm:$0x1]  ;;  %v326_v59 = vmax.f32 %v254_v22, 0.0  ;;  %v1240_v22 = vld [vmem:[#allocation2 + $0xc] sm:$0x1] }
 0x11d   :  { %v1074_v23 = vsel %vm8708_vm6, %v779_v12, %v1073_v51  ;;  %v1077_v24 = vsel %vm8680_vm3, %v780_v13, %v1076_v53  ;;  %v763_v26 = vor.u32 %v761_v0, %v760_v14  ;;  %v764_v27 = vrot.slane %v760_v14, 4  ;;  %v8985_v37 = vpop.f32.mrb[20].mxu0  ;;  %v1097_v53 = vld [vmem:[#allocation2 + $0x90] sm:$0xf]  ;;  %v1085_v14 = vld [vmem:[#allocation2 + $0x80] sm:$0xf] }
 0x11e   :  { %1075 = vst [vmem:[#allocation2 + $0x70] sm:$0xf] %v1074_v23  ;;  %1078 = vst [vmem:[#allocation2 + $0x74] sm:$0x1] %v1077_v24  ;;  %v803_v28 = vor.u32 %v801_v6, %v800_v15  ;;  %v804_v60 = vrot.slane %v800_v15, 4  ;;  %v782_v29 = vshrl.u32 %v7374_v19, 16  ;;  %v246_v0 = vadd.f32 %v8873_v25, %v245_v54 }
 0x11f   :  { %v785_v30 = vshll.u32 %v7374_v19, 16  ;;  %v1062_v31 = vsel %vm8708_vm6, %v763_v26, %v1061_v4  ;;  %v1065_v33 = vsel %vm8680_vm3, %v764_v27, %v1064_v5  ;;  %v806_v35 = vshrl.u32 %v7377_v20, 16  ;;  %v8991_v50 = vpop.f32.mrb[21].mxu0  ;;  %v1100_v6 = vld [vmem:[#allocation2 + $0x94] sm:$0x1] }
 0x120   :  { %v809_v36 = vshll.u32 %v7377_v20, 16  ;;  %1063 = vst [vmem:[#allocation2 + $0x60] sm:$0xf] %v1062_v31  ;;  %1066 = vst [vmem:[#allocation2 + $0x64] sm:$0x1] %v1065_v33  ;;  %v1092_v39 = vsel %vm8708_vm6, %v803_v28, %v1091_v16  ;;  %v1095_v40 = vsel %vm8680_vm3, %v804_v60, %v1094_v18  ;;  %v784_v44 = vrot.slane %v782_v29, 7 }
 0x121   :  { %v790_v46 = vshrl.u32 %v7375_v21, 16  ;;  %1093 = vst [vmem:[#allocation2 + $0x88] sm:$0xf] %v1092_v39  ;;  %1096 = vst [vmem:[#allocation2 + $0x8c] sm:$0x1] %v1095_v40  ;;  %v808_v51 = vrot.slane %v806_v35, 7  ;;  %v257_v8 = vadd.f32 %v7653_v3, %v8873_v25  ;;  %v7380_v16 = vpack.c.bf16 %v326_v59, %v326_v59 }
 0x122   :  { %v793_v57 = vshll.u32 %v7375_v21, 16  ;;  %v8994_v2 = vpop.f32.mrb[22].mxu0  ;;  %v787_v4 = vor.u32 %v785_v30, %v784_v44  ;;  %v788_v5 = vrot.slane %v784_v44, 4  ;;  %v1088_v15 = vld [vmem:[#allocation2 + $0x84] sm:$0x1]  ;;  %v324_v18 = vmax.f32 %v246_v0, 0.0 }
 0x123   :  { %v792_v7 = vrot.slane %v790_v46, 7  ;;  %v8997_v9 = vpop.f32.mrb[23].mxu0  ;;  %v811_v12 = vor.u32 %v809_v36, %v808_v51  ;;  %v812_v13 = vrot.slane %v808_v51, 4  ;;  %v830_v24 = vshrl.u32 %v7380_v16, 16  ;;  %v1115_v60 = vld [vmem:[#allocation2 + $0xb8] sm:$0xf] }
 0x124   :  { %v1080_v19 = vsel %vm8708_vm6, %v787_v4, %v1079_v34  ;;  %v1083_v54 = vsel %vm8680_vm3, %v788_v5, %v1082_v45  ;;  %v833_v26 = vshll.u32 %v7380_v16, 16  ;;  %v1118_v29 = vld [vmem:[#allocation2 + $0xbc] sm:$0x1]  ;;  %v7378_v30 = vpack.c.bf16 %v324_v18, %v324_v18  ;;  %v1201_v51 = vld [vmem:[#allocation2 + $0x10] sm:$0xf] }
 0x125   :  { %v795_v20 = vor.u32 %v793_v57, %v792_v7  ;;  %v796_v21 = vrot.slane %v792_v7, 4  ;;  %1081 = vst [vmem:[#allocation2 + $0x78] sm:$0xf] %v1080_v19  ;;  %1084 = vst [vmem:[#allocation2 + $0x7c] sm:$0x1] %v1083_v54  ;;  %v1098_v3 = vsel %vm8708_vm6, %v811_v12, %v1097_v53  ;;  %v1101_v23 = vsel %vm8680_vm3, %v812_v13, %v1100_v6  ;;  %v9014_v39 = vpop.f32.mrb[24].mxu0 }
 0x126   :  { %1099 = vst [vmem:[#allocation2 + $0x90] sm:$0xf] %v1098_v3  ;;  %1102 = vst [vmem:[#allocation2 + $0x94] sm:$0x1] %v1101_v23  ;;  %v327_v31 = vmax.f32 %v257_v8, 0.0  ;;  %v832_v33 = vrot.slane %v830_v24, 7  ;;  %v249_v46 = vadd.f32 %v8873_v25, %v8974_v11  ;;  %v270_v41 = vadd.f32 %v8985_v37, %v8873_v25 }
 0x127   :  { %v1086_v27 = vsel %vm8708_vm6, %v795_v20, %v1085_v14  ;;  %v1089_v28 = vsel %vm8680_vm3, %v796_v21, %v1088_v15  ;;  %v1291_v34 = vrot.slane %v1289_v1, 4  ;;  %v1292_v35 = vshll.u32 %v8935_v32, 16  ;;  %v9018_v53 = vpop.f32.mrb[25].mxu0  ;;  %v1103_v0 = vld [vmem:[#allocation2 + $0xa8] sm:$0xf]  ;;  %v8358_v37 = vld [vmem:[%s10643_s3 + $0x90] sm:$0xff]  }
 0x128   :  { %1087 = vst [vmem:[#allocation2 + $0x80] sm:$0xf] %v1086_v27  ;;  %1090 = vst [vmem:[#allocation2 + $0x84] sm:$0x1] %v1089_v28  ;;  %v1298_v36 = vshll.u32 %v1240_v22, 16  ;;  %v814_v40 = vshrl.u32 %v7378_v30, 16  ;;  %v7381_v45 = vpack.c.bf16 %v327_v31, %v327_v31  ;;  %v835_v57 = vor.u32 %v833_v26, %v832_v33 }
 0x129   :  { %v817_v44 = vshll.u32 %v7378_v30, 16  ;;  %v836_v59 = vrot.slane %v832_v33, 4  ;;  %v1106_v4 = vld [vmem:[#allocation2 + $0xac] sm:$0x1]  ;;  %v1294_v1 = vrot.slane %v1292_v35, 5  ;;  %v9020_v6 = vpop.f32.mrb[26].mxu0 }
 0x12a   :  { %v1300_v5 = vrot.slane %v1298_v36, 5  ;;  %v1241_v32 = vld [vmem:[#allocation2 + $0x14] sm:$0x1]  ;;  %v816_v7 = vrot.slane %v814_v40, 7  ;;  %v838_v8 = vshrl.u32 %v7381_v45, 16  ;;  %v841_v12 = vshll.u32 %v7381_v45, 16 }
 0x12b   :  { %v325_v13 = vmax.f32 %v249_v46, 0.0  ;;  %v9022_v14 = vpop.f32.mrb[27].mxu0  ;;  %v1116_v11 = vsel %vm8708_vm6, %v835_v57, %v1115_v60  ;;  %v1119_v15 = vsel %vm8680_vm3, %v836_v59, %v1118_v29  ;;  %v1121_v16 = vld [vmem:[#allocation2 + $0xc0] sm:$0xf]  ;;  %v1124_v18 = vld [vmem:[#allocation2 + $0xc4] sm:$0x1]  ;;  %v1295_v19 = vor.u32 %v1294_v1, %v1291_v34 }
 0x12c   :  { %v1303_v54 = vshrl.u32 %v1201_v51, 16  ;;  %1117 = vst [vmem:[#allocation2 + $0xb8] sm:$0xf] %v1116_v11  ;;  %1120 = vst [vmem:[#allocation2 + $0xbc] sm:$0x1] %v1119_v15  ;;  %v819_v20 = vor.u32 %v817_v44, %v816_v7  ;;  %v820_v21 = vrot.slane %v816_v7, 4  ;;  %v273_v15 = vadd.f32 %v8994_v2, %v8873_v25 }
 0x12d   :  { %v840_v22 = vrot.slane %v838_v8, 7  ;;  %v7379_v3 = vpack.c.bf16 %v325_v13, %v325_v13  ;;  %v1202_v23 = vld [vmem:[#allocation2 + $0x18] sm:$0xf]  ;;  %v1296_v24 = vrot.slane %v1295_v19, 4  ;;  %v1242_v26 = vld [vmem:[#allocation2 + $0x1c] sm:$0x1] }
 0x12e   :  { %v1305_v27 = vrot.slane %v1303_v54, 4  ;;  %v1306_v28 = vshll.u32 %v1201_v51, 16  ;;  %v1312_v30 = vshll.u32 %v1241_v32, 16  ;;  %v1104_v60 = vsel %vm8708_vm6, %v819_v20, %v1103_v0  ;;  %v8355_v35 = vld [vmem:[%s10643_s3 + $0x88] sm:$0xff]   ;;  %v9037_v51 = vpop.f32.mrb[28].mxu0 }
 0x12f   :  { %v1107_v29 = vsel %vm8680_vm3, %v820_v21, %v1106_v4  ;;  %v843_v31 = vor.u32 %v841_v12, %v840_v22  ;;  %v844_v33 = vrot.slane %v840_v22, 4  ;;  %v8350_v34 = vld [vmem:[#allocation2 + $0x78] ss:$8 sps:$4 sm:$0xff]   ;;  %1105 = vst [vmem:[#allocation2 + $0xa8] sm:$0xf] %v1104_v60  ;;  %v1301_v36 = vsel %vm8886_vm9, %v1296_v24, %v1300_v5  ;;  %v9051_v5 = vpop.f32.mrb[29].mxu0 }
 0x130   :  { %1108 = vst [vmem:[#allocation2 + $0xac] sm:$0x1] %v1107_v29  ;;  %v822_v40 = vshrl.u32 %v7379_v3, 16  ;;  %v825_v44 = vshll.u32 %v7379_v3, 16  ;;  %v1308_v45 = vrot.slane %v1306_v28, 5  ;;  %v6920_v0 = vcombine.low %v1287_v58, %v1301_v36  ;;  %7806 = vmatprep.mubr.msk.bf16.mxu1 %vm1802_vm10, %v8350_v34  ;;  %v9054_v11 = vpop.f32.mrb[30].mxu0 }
 0x131   :  { %v8352_v46 = vld [vmem:[#allocation2 + $0x88] ss:$8 sps:$4 sm:$0xff]   ;;  %v1122_v57 = vsel %vm8708_vm6, %v843_v31, %v1121_v16  ;;  %v1125_v59 = vsel %vm8680_vm3, %v844_v33, %v1124_v18  ;;  %v9048_v1 = vrot.slane %v1312_v30, 5  ;;  %v1112_v7 = vld [vmem:[#allocation2 + $0xb4] sm:$0x1]  ;;  %v1317_v12 = vshrl.u32 %v1202_v23, 16 }
 0x132   :  { %v1109_v4 = vld [vmem:[#allocation2 + $0xb0] sm:$0xf]  ;;  %1123 = vst [vmem:[#allocation2 + $0xc0] sm:$0xf] %v1122_v57  ;;  %1126 = vst [vmem:[#allocation2 + $0xc4] sm:$0x1] %v1125_v59  ;;  %v1309_v8 = vor.u32 %v1308_v45, %v1305_v27  ;;  %7807 = vmatmul.mubr.msk.bf16.vlgmr.msra.gmra.mrb[0].mxu1 %vm1802_vm10, %v8352_v46  ;;  %7674 = vmatprep.mubr.msk.bf16.mxu0 %vm1802_vm10, %v6920_v0  ;;  %v262_v58 = vadd.f32 %v8873_v25, %v8991_v50 }
 0x133   :  { %v824_v32 = vrot.slane %v822_v40, 7  ;;  %v1320_v13 = vshll.u32 %v1202_v23, 16  ;;  %v1326_v38 = vshll.u32 %v1242_v26, 16  ;;  %v1203_v16 = vld [vmem:[#allocation2 + $0x20] sm:$0xf]  ;;  %7827 = vmatpush3.bf16.msra.mxu1 %v8851_v55  ;;  %v9064_v19 = vpop.f32.mrb[31].mxu0 }
 0x134   :  { %v1243_v18 = vld [vmem:[#allocation2 + $0x24] sm:$0x1]  ;;  %v1310_v21 = vrot.slane %v1309_v8, 4  ;;  %v1319_v22 = vrot.slane %v1317_v12, 4  ;;  %7828 = vmatprep.subr.bf16.mxu1 %v8355_v35  ;;  %v330_v23 = vmax.f32 %v270_v41, 0.0  ;;  %v328_v24 = vmax.f32 %v262_v58, 0.0 }
 0x135   :  { %v827_v54 = vor.u32 %v825_v44, %v824_v32  ;;  %v828_v20 = vrot.slane %v824_v32, 4  ;;  %v1322_v3 = vrot.slane %v1320_v13, 5  ;;  %v1328_v50 = vrot.slane %v1326_v38, 5  ;;  %v9069_v2 = vld [vmem:[#allocation2 + $0x28] sm:$0xf]  ;;  %v8361_v44 = vld [vmem:[%s10643_s3 + $0x98] sm:$0xff]  }
 0x136   :  { %v1315_v27 = vsel %vm8886_vm9, %v1310_v21, %v9048_v1  ;;  %v331_v28 = vmax.f32 %v273_v15, 0.0  ;;  %v7384_v60 = vpack.c.bf16 %v330_v23, %v330_v23  ;;  %v7382_v29 = vpack.c.bf16 %v328_v24, %v328_v24  ;;  %v1139_v0 = vld [vmem:[#allocation2 + $0xd8] sm:$0xf]  ;;  %v1127_v32 = vld [vmem:[#allocation2 + $0xc8] sm:$0xf] }
 0x137   :  { %v1110_v55 = vsel %vm8708_vm6, %v827_v54, %v1109_v4  ;;  %v1113_v26 = vsel %vm8680_vm3, %v828_v20, %v1112_v7  ;;  %v1323_v30 = vor.u32 %v1322_v3, %v1319_v22  ;;  %v1331_v31 = vshrl.u32 %v1203_v16, 16  ;;  %7829 = vmatpush3.bf16.msra.mxu1 %v8355_v35  ;;  %v1142_v4 = vld [vmem:[#allocation2 + $0xdc] sm:$0x1]  ;;  %v1130_v7 = vld [vmem:[#allocation2 + $0xcc] sm:$0x1] }
 0x138   :  { %1111 = vst [vmem:[#allocation2 + $0xb0] sm:$0xf] %v1110_v55  ;;  %1114 = vst [vmem:[#allocation2 + $0xb4] sm:$0x1] %v1113_v26  ;;  %v7385_v33 = vpack.c.bf16 %v331_v28, %v331_v28  ;;  %v1334_v34 = vshll.u32 %v1203_v16, 16  ;;  %v1340_v36 = vshll.u32 %v1243_v18, 16  ;;  %7830 = vmatprep.subr.bf16.mxu1 %v8358_v37 }
 0x139   :  { %v1345_v40 = vshrl.u32 %v9069_v2, 16  ;;  %v1324_v45 = vrot.slane %v1323_v30, 4  ;;  %v862_v46 = vshrl.u32 %v7384_v60, 16  ;;  %v865_v57 = vshll.u32 %v7384_v60, 16  ;;  %v1145_v58 = vld [vmem:[#allocation2 + $0xe0] sm:$0xf] }
 0x13a   :  { %v846_v59 = vshrl.u32 %v7382_v29, 16  ;;  %v849_v1 = vshll.u32 %v7382_v29, 16  ;;  %v870_v35 = vshrl.u32 %v7385_v33, 16  ;;  %v873_v8 = vshll.u32 %v7385_v33, 16  ;;  %v1148_v15 = vld [vmem:[#allocation2 + $0xe4] sm:$0x1] }
 0x13b   :  { %v1333_v12 = vrot.slane %v1331_v31, 4  ;;  %v1329_v13 = vsel %vm8886_vm9, %v1324_v45, %v1328_v50  ;;  %v864_v38 = vrot.slane %v862_v46, 7  ;;  %v1336_v16 = vrot.slane %v1334_v34, 5  ;;  %7831 = vmatpush3.bf16.msra.mxu1 %v8358_v37  ;;  %v1244_v20 = vld [vmem:[#allocation2 + $0x2c] sm:$0x1]  ;;  %v8366_v37 = vld [vmem:[%s10643_s3 + $0xa0] sm:$0xff]  }
 0x13c   :  { %v848_v41 = vrot.slane %v846_v59, 7  ;;  %v6921_v18 = vcombine.low %v1315_v27, %v1329_v13  ;;  %v872_v54 = vrot.slane %v870_v35, 7  ;;  %v9084_v21 = vrot.slane %v1340_v36, 5  ;;  %7832 = vmatprep.subr.bf16.mxu1 %v8361_v44  ;;  %v1205_v26 = vld [vmem:[#allocation2 + $0x30] sm:$0xf]  ;;  %v8365_v50 = vld [vmem:[%s10643_s3 + $0x8] sm:$0xff]  }
 0x13d   :  { %v1347_v22 = vrot.slane %v1345_v40, 4  ;;  %v867_v3 = vor.u32 %v865_v57, %v864_v38  ;;  %v868_v23 = vrot.slane %v864_v38, 4  ;;  %v1337_v30 = vor.u32 %v1336_v16, %v1333_v12  ;;  %v1206_v40 = vld [vmem:[#allocation2 + $0x38] sm:$0xf]  ;;  %v1245_v45 = vld [vmem:[#allocation2 + $0x34] sm:$0x1] }
 0x13e   :  { %v851_v24 = vor.u32 %v849_v1, %v848_v41  ;;  %v852_v55 = vrot.slane %v848_v41, 4  ;;  %7675 = vmatmul.mubr.msk.bf16.vlgmr.msra.gmra.mrb[32].mxu0 %vm1802_vm10, %v6921_v18  ;;  %v875_v27 = vor.u32 %v873_v8, %v872_v54  ;;  %v876_v28 = vrot.slane %v872_v54, 4  ;;  %v8354_v46 = vld [vmem:[#allocation2 + $0xb8] ss:$8 sps:$4 sm:$0xff]   ;;  %v1246_v8 = vld [vmem:[#allocation2 + $0x3c] sm:$0x1] }
 0x13f   :  { %v1348_v60 = vshll.u32 %v9069_v2, 16  ;;  %v8353_v29 = vld [vmem:[#allocation2 + $0xa8] ss:$8 sps:$4 sm:$0xff]   ;;  %v1140_v31 = vsel %vm8708_vm6, %v867_v3, %v1139_v0  ;;  %v1143_v33 = vsel %vm8680_vm3, %v868_v23, %v1142_v4  ;;  %7833 = vmatpush3.bf16.msra.mxu1 %v8361_v44  ;;  %v1338_v59 = vrot.slane %v1337_v30, 4  ;;  %7707 = vmatpush3.bf16.msra.mxu0 %v8948_v52 }
 0x140   :  { %v1128_v34 = vsel %vm8708_vm6, %v851_v24, %v1127_v32  ;;  %v1131_v36 = vsel %vm8680_vm3, %v852_v55, %v1130_v7  ;;  %1141 = vst [vmem:[#allocation2 + $0xd8] sm:$0xf] %v1140_v31  ;;  %1144 = vst [vmem:[#allocation2 + $0xdc] sm:$0x1] %v1143_v33  ;;  %v1146_v2 = vsel %vm8708_vm6, %v875_v27, %v1145_v58  ;;  %7810 = vmatprep.mubr.msk.bf16.mxu1 %vm1802_vm10, %v8353_v29  ;;  %v8367_v7 = vld [vmem:[%s10643_s3 + $0x10] sm:$0xff]  }
 0x141   :  { %1129 = vst [vmem:[#allocation2 + $0xc8] sm:$0xf] %v1128_v34  ;;  %1132 = vst [vmem:[#allocation2 + $0xcc] sm:$0x1] %v1131_v36  ;;  %v1149_v57 = vsel %vm8680_vm3, %v876_v28, %v1148_v15  ;;  %v1350_v0 = vrot.slane %v1348_v60, 5  ;;  %v1354_v4 = vshll.u32 %v1244_v20, 16  ;;  %v265_v44 = vadd.f32 %v8873_v25, %v8997_v9  ;;  %7811 = vmatmul.mubr.msk.bf16.gmra.mrb[4].mxu1 %vm1802_vm10, %v8354_v46 }
 0x142   :  { %1147 = vst [vmem:[#allocation2 + $0xe0] sm:$0xf] %v1146_v2  ;;  %1150 = vst [vmem:[#allocation2 + $0xe4] sm:$0x1] %v1149_v57  ;;  %v1359_v1 = vshrl.u32 %v1205_v26, 16  ;;  %v1362_v32 = vshll.u32 %v1205_v26, 16  ;;  %7708 = vmatprep.subr.bf16.mxu0 %v8365_v50  ;;  %v1343_v35 = vsel %vm8886_vm9, %v1338_v59, %v9084_v21  ;;  %7866 = vmatprep.subr.bf16.mxu1 %v8366_v37 }
 0x143   :  { %v1351_v52 = vor.u32 %v1350_v0, %v1347_v22  ;;  %v1368_v12 = vshll.u32 %v1245_v45, 16  ;;  %v1373_v13 = vshrl.u32 %v1206_v40, 16  ;;  %v1356_v38 = vrot.slane %v1354_v4, 5  ;;  %7709 = vmatpush3.bf16.msra.mxu0 %v8365_v50  ;;  %v8368_v22 = vld [vmem:[%s10643_s3 + $0x18] sm:$0xff]  }
 0x144   :  { %v329_v9 = vmax.f32 %v265_v44, 0.0  ;;  %v1361_v41 = vrot.slane %v1359_v1, 4  ;;  %v1364_v58 = vrot.slane %v1362_v32, 5  ;;  %v1376_v54 = vshll.u32 %v1206_v40, 16  ;;  %7710 = vmatprep.subr.bf16.mxu0 %v8367_v7  ;;  %v1208_v37 = vld [vmem:[#allocation2 + $0x58] sm:$0xf] }
 0x145   :  { %v1352_v15 = vrot.slane %v1351_v52, 4  ;;  %v1370_v16 = vrot.slane %v1368_v12, 5  ;;  %v1375_v18 = vrot.slane %v1373_v13, 4  ;;  %v1382_v23 = vshll.u32 %v1246_v8, 16  ;;  %v1248_v44 = vld [vmem:[#allocation2 + $0x5c] sm:$0x1] }
 0x146   :  { %v7383_v20 = vpack.c.bf16 %v329_v9, %v329_v9  ;;  %v1365_v3 = vor.u32 %v1364_v58, %v1361_v41  ;;  %v286_v21 = vadd.f32 %v9014_v39, %v8873_v25  ;;  %v1378_v55 = vrot.slane %v1376_v54, 5  ;;  %v1209_v8 = vld [vmem:[#allocation2 + $0x60] sm:$0xf]  ;;  %v1163_v9 = vld [vmem:[#allocation2 + $0x108] sm:$0xf] }
 0x147   :  { %v1357_v24 = vsel %vm8886_vm9, %v1352_v15, %v1356_v38  ;;  %v278_v26 = vadd.f32 %v8873_v25, %v9018_v53  ;;  %v289_v50 = vadd.f32 %v9020_v6, %v8873_v25  ;;  %v1384_v29 = vrot.slane %v1382_v23, 5  ;;  %7711 = vmatpush3.bf16.msra.mxu0 %v8367_v7  ;;  %v1133_v25 = vld [vmem:[#allocation2 + $0xd0] sm:$0xf]  ;;  %v1136_v6 = vld [vmem:[#allocation2 + $0xd4] sm:$0x1] }
 0x148   :  { %v6922_v27 = vcombine.low %v1343_v35, %v1357_v24  ;;  %v854_v28 = vshrl.u32 %v7383_v20, 16  ;;  %v857_v30 = vshll.u32 %v7383_v20, 16  ;;  %v1366_v39 = vrot.slane %v1365_v3, 4  ;;  %7712 = vmatprep.subr.bf16.mxu0 %v8368_v22  ;;  %v1166_v41 = vld [vmem:[#allocation2 + $0x10c] sm:$0x1] }
 0x149   :  { %v1379_v60 = vor.u32 %v1378_v55, %v1375_v18  ;;  %v334_v31 = vmax.f32 %v286_v21, 0.0  ;;  %v332_v33 = vmax.f32 %v278_v26, 0.0  ;;  %v335_v53 = vmax.f32 %v289_v50, 0.0  ;;  %v1151_v18 = vld [vmem:[#allocation2 + $0xf8] sm:$0xf] }
 0x14a   :  { %7678 = vmatprep.mubr.msk.bf16.mxu0 %vm1802_vm10, %v6922_v27  ;;  %v856_v34 = vrot.slane %v854_v28, 7  ;;  %v1371_v36 = vsel %vm8886_vm9, %v1366_v39, %v1370_v16  ;;  %v1401_v40 = vshrl.u32 %v1208_v37, 16  ;;  %v1404_v57 = vshll.u32 %v1208_v37, 16  ;;  %v1154_v3 = vld [vmem:[#allocation2 + $0xfc] sm:$0x1] }
 0x14b   :  { %v1380_v45 = vrot.slane %v1379_v60, 4  ;;  %v7388_v46 = vpack.c.bf16 %v334_v31, %v334_v31  ;;  %v7386_v2 = vpack.c.bf16 %v332_v33, %v332_v33  ;;  %v7389_v4 = vpack.c.bf16 %v335_v53, %v335_v53  ;;  %7713 = vmatpush3.bf16.msra.mxu0 %v8368_v22  ;;  %v9141_v22 = vld [vmem:[%s10642_s2] ss:$0 sm:$0xff]  ;;  %v1210_v28 = vld [vmem:[#allocation2 + $0x68] sm:$0xf] }
 0x14c   :  { %v859_v59 = vor.u32 %v857_v30, %v856_v34  ;;  %v860_v0 = vrot.slane %v856_v34, 4  ;;  %v1403_v1 = vrot.slane %v1401_v40, 4  ;;  %v1406_v23 = vrot.slane %v1404_v57, 5  ;;  %v1249_v31 = vld [vmem:[#allocation2 + $0x64] sm:$0x1] }
 0x14d   :  { %v1385_v32 = vsel %vm8886_vm9, %v1380_v45, %v1384_v29  ;;  %v894_v7 = vshrl.u32 %v7388_v46, 16  ;;  %v897_v35 = vshll.u32 %v7388_v46, 16  ;;  %v878_v52 = vshrl.u32 %v7386_v2, 16  ;;  %v1169_v53 = vld [vmem:[#allocation2 + $0x110] sm:$0xf] }
 0x14e   :  { %v1134_v12 = vsel %vm8708_vm6, %v859_v59, %v1133_v25  ;;  %v1137_v13 = vsel %vm8680_vm3, %v860_v0, %v1136_v6  ;;  %v6923_v38 = vcombine.low %v1371_v36, %v1385_v32  ;;  %v881_v58 = vshll.u32 %v7386_v2, 16  ;;  %v1172_v40 = vld [vmem:[#allocation2 + $0x114] sm:$0x1]  ;;  %v1250_v2 = vld [vmem:[#allocation2 + $0x6c] sm:$0x1] }
 0x14f   :  { %1135 = vst [vmem:[#allocation2 + $0xd0] sm:$0xf] %v1134_v12  ;;  %1138 = vst [vmem:[#allocation2 + $0xd4] sm:$0x1] %v1137_v13  ;;  %v896_v15 = vrot.slane %v894_v7, 7  ;;  %v880_v16 = vrot.slane %v878_v52, 7  ;;  %v281_v24 = vadd.f32 %v9141_v22, %v9022_v14  ;;  %v1407_v39 = vor.u32 %v1406_v23, %v1403_v1 }
 0x150   :  { %v902_v54 = vshrl.u32 %v7389_v4, 16  ;;  %v905_v20 = vshll.u32 %v7389_v4, 16  ;;  %7679 = vmatmul.mubr.msk.bf16.gmra.mrb[36].mxu0 %vm1802_vm10, %v6923_v38  ;;  %v1410_v21 = vshll.u32 %v1248_v44, 16  ;;  %v1415_v55 = vshrl.u32 %v1209_v8, 16  ;;  %v1260_v10 = vld [vmem:[#allocation2 + $0xcc] sm:$0x1] }
 0x151   :  { %v899_v26 = vor.u32 %v897_v35, %v896_v15  ;;  %v900_v50 = vrot.slane %v896_v15, 4  ;;  %v883_v37 = vor.u32 %v881_v58, %v880_v16  ;;  %v884_v27 = vrot.slane %v880_v16, 4  ;;  %v8357_v15 = vld [vmem:[#allocation2 + $0xd8] ss:$8 sps:$4 sm:$0xff]  }
 0x152   :  { %v904_v30 = vrot.slane %v902_v54, 7  ;;  %v1412_v60 = vrot.slane %v1410_v21, 5  ;;  %v333_v29 = vmax.f32 %v281_v24, 0.0  ;;  %v1408_v45 = vrot.slane %v1407_v39, 4  ;;  %v1157_v16 = vld [vmem:[#allocation2 + $0x100] sm:$0xf] }
 0x153   :  { %v1164_v33 = vsel %vm8708_vm6, %v899_v26, %v1163_v9  ;;  %v1167_v34 = vsel %vm8680_vm3, %v900_v50, %v1166_v41  ;;  %v1152_v14 = vsel %vm8708_vm6, %v883_v37, %v1151_v18  ;;  %v1155_v36 = vsel %vm8680_vm3, %v884_v27, %v1154_v3  ;;  %v1160_v18 = vld [vmem:[#allocation2 + $0x104] sm:$0x1] }
 0x154   :  { %1165 = vst [vmem:[#allocation2 + $0x108] sm:$0xf] %v1164_v33  ;;  %1168 = vst [vmem:[#allocation2 + $0x10c] sm:$0x1] %v1167_v34  ;;  %v907_v25 = vor.u32 %v905_v20, %v904_v30  ;;  %v908_v6 = vrot.slane %v904_v30, 4  ;;  %v7387_v46 = vpack.c.bf16 %v333_v29, %v333_v29  ;;  %v1417_v57 = vrot.slane %v1415_v55, 4 }
 0x155   :  { %1153 = vst [vmem:[#allocation2 + $0xf8] sm:$0xf] %v1152_v14  ;;  %1156 = vst [vmem:[#allocation2 + $0xfc] sm:$0x1] %v1155_v36  ;;  %v1418_v59 = vshll.u32 %v1209_v8, 16  ;;  %v1424_v0 = vshll.u32 %v1249_v31, 16  ;;  %v1413_v32 = vsel %vm8886_vm9, %v1408_v45, %v1412_v60  ;;  %v302_v20 = vadd.f32 %v9141_v22, %v9037_v51 }
 0x156   :  { %v1429_v4 = vshrl.u32 %v1210_v28, 16  ;;  %v1170_v44 = vsel %vm8708_vm6, %v907_v25, %v1169_v53  ;;  %v1173_v1 = vsel %vm8680_vm3, %v908_v6, %v1172_v40  ;;  %v886_v7 = vshrl.u32 %v7387_v46, 16  ;;  %v8356_v35 = vld [vmem:[#allocation2 + $0xc8] ss:$8 sps:$4 sm:$0xff]   ;;  %v1251_v55 = vld [vmem:[#allocation2 + $0x74] sm:$0x1] }
 0x157   :  { %1171 = vst [vmem:[#allocation2 + $0x110] sm:$0xf] %v1170_v44  ;;  %1174 = vst [vmem:[#allocation2 + $0x114] sm:$0x1] %v1173_v1  ;;  %v6924_v52 = vcombine.low %v1399_v62, %v1413_v32  ;;  %v889_v8 = vshll.u32 %v7387_v46, 16  ;;  %v1420_v12 = vrot.slane %v1418_v59, 5  ;;  %7814 = vmatprep.mubr.msk.bf16.mxu1 %vm1802_vm10, %v8356_v35  ;;  %v294_v42 = vadd.f32 %v9141_v22, %v9051_v5 }
 0x158   :  { %v1426_v13 = vrot.slane %v1424_v0, 5  ;;  %v888_v38 = vrot.slane %v886_v7, 7  ;;  %v1431_v9 = vrot.slane %v1429_v4, 4  ;;  %v1432_v41 = vshll.u32 %v1210_v28, 16  ;;  %v1211_v62 = vld [vmem:[#allocation2 + $0x70] sm:$0xf]  ;;  %7815 = vmatmul.mubr.msk.bf16.gmra.mrb[8].mxu1 %vm1802_vm10, %v8357_v15 }
 0x159   :  { %v1438_v58 = vshll.u32 %v1250_v2, 16  ;;  %7682 = vmatprep.mubr.msk.bf16.mxu0 %vm1802_vm10, %v6924_v52  ;;  %v1421_v54 = vor.u32 %v1420_v12, %v1417_v57  ;;  %v305_v43 = vadd.f32 %v9141_v22, %v9054_v11  ;;  %v338_v50 = vmax.f32 %v302_v20, 0.0  ;;  %v9179_v6 = vld [vmem:[#allocation2 + $0x78] sm:$0xf]  ;;  %v1187_v46 = vld [vmem:[#allocation2 + $0x128] sm:$0xf] }
 0x15a   :  { %v891_v3 = vor.u32 %v889_v8, %v888_v38  ;;  %v892_v23 = vrot.slane %v888_v38, 4  ;;  %v1434_v21 = vrot.slane %v1432_v41, 5  ;;  %v336_v37 = vmax.f32 %v294_v42, 0.0  ;;  %v1190_v2 = vld [vmem:[#allocation2 + $0x12c] sm:$0x1] }
 0x15b   :  { %v1440_v24 = vrot.slane %v1438_v58, 5  ;;  %v1422_v26 = vrot.slane %v1421_v54, 4  ;;  %v339_v27 = vmax.f32 %v305_v43, 0.0  ;;  %v1443_v11 = vshrl.u32 %v1211_v62, 16  ;;  %v1175_v57 = vld [vmem:[#allocation2 + $0x118] sm:$0xf] }
 0x15c   :  { %v1158_v51 = vsel %vm8708_vm6, %v891_v3, %v1157_v16  ;;  %v1161_v5 = vsel %vm8680_vm3, %v892_v23, %v1160_v18  ;;  %v1435_v28 = vor.u32 %v1434_v21, %v1431_v9  ;;  %v7392_v39 = vpack.c.bf16 %v338_v50, %v338_v50  ;;  %v1178_v59 = vld [vmem:[#allocation2 + $0x11c] sm:$0x1]  ;;  %v1193_v35 = vld [vmem:[#allocation2 + $0x130] sm:$0xf]  ;;  %v1196_v12 = vld [vmem:[#allocation2 + $0x134] sm:$0x1] }
 0x15d   :  { %1159 = vst [vmem:[#allocation2 + $0x100] sm:$0xf] %v1158_v51  ;;  %1162 = vst [vmem:[#allocation2 + $0x104] sm:$0x1] %v1161_v5  ;;  %v1427_v30 = vsel %vm8886_vm9, %v1422_v26, %v1426_v13  ;;  %v7390_v60 = vpack.c.bf16 %v336_v37, %v336_v37  ;;  %v7393_v29 = vpack.c.bf16 %v339_v27, %v339_v27  ;;  %v1445_v33 = vrot.slane %v1443_v11, 4  ;;  %v9210_v11 = vld [vmem:[%s10643_s3 + $0x40] sm:$0xff]  }
 0x15e   :  { %v1436_v31 = vrot.slane %v1435_v28, 4  ;;  %v1446_v34 = vshll.u32 %v1211_v62, 16  ;;  %v1452_v14 = vshll.u32 %v1251_v55, 16  ;;  %v926_v36 = vshrl.u32 %v7392_v39, 16  ;;  %v1252_v18 = vld [vmem:[#allocation2 + $0x7c] sm:$0x1]  ;;  %7746 = vmatprep.subr.bf16.mxu0 %v9210_v11 }
 0x15f   :  { %v929_v53 = vshll.u32 %v7392_v39, 16  ;;  %v910_v40 = vshrl.u32 %v7390_v60, 16  ;;  %v913_v25 = vshll.u32 %v7390_v60, 16  ;;  %v934_v0 = vshrl.u32 %v7393_v29, 16  ;;  %v9188_v54 = vld [vmem:[#allocation2 + $0x80] sm:$0xf] }
 0x160   :  { %v1441_v45 = vsel %vm8886_vm9, %v1436_v31, %v1440_v24  ;;  %v937_v4 = vshll.u32 %v7393_v29, 16  ;;  %v1448_v44 = vrot.slane %v1446_v34, 5  ;;  %v928_v32 = vrot.slane %v926_v36, 7  ;;  %v9198_v55 = vld [vmem:[#allocation2 + $0x88] sm:$0xf] }
 0x161   :  { %v6925_v1 = vcombine.low %v1427_v30, %v1441_v45  ;;  %v912_v7 = vrot.slane %v910_v40, 7  ;;  %v9183_v52 = vrot.slane %v1452_v14, 5  ;;  %v936_v8 = vrot.slane %v934_v0, 7  ;;  %v1253_v26 = vld [vmem:[#allocation2 + $0x84] sm:$0x1] }
 0x162   :  { %v1449_v13 = vor.u32 %v1448_v44, %v1445_v33  ;;  %v1457_v38 = vshrl.u32 %v9179_v6, 16  ;;  %v1460_v9 = vshll.u32 %v9179_v6, 16  ;;  %v931_v41 = vor.u32 %v929_v53, %v928_v32  ;;  %v8360_v28 = vld [vmem:[#allocation2 + $0x108] ss:$8 sps:$4 sm:$0xff]   ;;  %v1254_v60 = vld [vmem:[#allocation2 + $0x8c] sm:$0x1] }
 0x163   :  { %7683 = vmatmul.mubr.msk.bf16.gmra.mrb[40].mxu0 %vm1802_vm10, %v6925_v1  ;;  %v932_v58 = vrot.slane %v928_v32, 4  ;;  %v915_v15 = vor.u32 %v913_v25, %v912_v7  ;;  %v916_v16 = vrot.slane %v912_v7, 4  ;;  %v939_v20 = vor.u32 %v937_v4, %v936_v8  ;;  %v9219_v53 = vld [vmem:[#allocation2 + $0xa8] sm:$0xf]  ;;  %v1256_v45 = vld [vmem:[#allocation2 + $0xac] sm:$0x1] }
 0x164   :  { %v940_v42 = vrot.slane %v936_v8, 4  ;;  %v1450_v43 = vrot.slane %v1449_v13, 4  ;;  %v1459_v62 = vrot.slane %v1457_v38, 4  ;;  %v1188_v3 = vsel %vm8708_vm6, %v931_v41, %v1187_v46  ;;  %v8359_v50 = vld [vmem:[#allocation2 + $0xf8] ss:$8 sps:$4 sm:$0xff]  }
 0x165   :  { %v1191_v23 = vsel %vm8680_vm3, %v932_v58, %v1190_v2  ;;  %v1176_v21 = vsel %vm8708_vm6, %v915_v15, %v1175_v57  ;;  %v1179_v24 = vsel %vm8680_vm3, %v916_v16, %v1178_v59  ;;  %1189 = vst [vmem:[#allocation2 + $0x128] sm:$0xf] %v1188_v3  ;;  %v1194_v37 = vsel %vm8708_vm6, %v939_v20, %v1193_v35  ;;  %v1217_v8 = vld [vmem:[#allocation2 + $0xb0] sm:$0xf]  ;;  %v9227_v58 = vld [vmem:[#allocation2 + $0xb8] sm:$0xf] }
 0x166   :  { %1192 = vst [vmem:[#allocation2 + $0x12c] sm:$0x1] %v1191_v23  ;;  %1177 = vst [vmem:[#allocation2 + $0x118] sm:$0xf] %v1176_v21  ;;  %v1197_v27 = vsel %vm8680_vm3, %v940_v42, %v1196_v12  ;;  %v1455_v51 = vsel %vm8886_vm9, %v1450_v43, %v9183_v52  ;;  %v1462_v5 = vrot.slane %v1460_v9, 5  ;;  %v1466_v30 = vshll.u32 %v1252_v18, 16  ;;  %7818 = vmatprep.mubr.msk.bf16.mxu1 %vm1802_vm10, %v8359_v50 }
 0x167   :  { %1180 = vst [vmem:[#allocation2 + $0x11c] sm:$0x1] %v1179_v24  ;;  %1195 = vst [vmem:[#allocation2 + $0x130] sm:$0xf] %v1194_v37  ;;  %v297_v39 = vadd.f32 %v9141_v22, %v9064_v19  ;;  %v1471_v29 = vshrl.u32 %v9188_v54, 16  ;;  %v1474_v31 = vshll.u32 %v9188_v54, 16  ;;  %7819 = vmatmul.mubr.msk.bf16.gmra.mrb[12].mxu1 %vm1802_vm10, %v8360_v28 }
 0x168   :  { %1198 = vst [vmem:[#allocation2 + $0x134] sm:$0x1] %v1197_v27  ;;  %v1463_v33 = vor.u32 %v1462_v5, %v1459_v62  ;;  %v1480_v34 = vshll.u32 %v1253_v26, 16  ;;  %v1485_v14 = vshrl.u32 %v9198_v55, 16  ;;  %v1488_v36 = vshll.u32 %v9198_v55, 16 }
 0x169   :  { %v1468_v19 = vrot.slane %v1466_v30, 5  ;;  %v337_v22 = vmax.f32 %v297_v39, 0.0  ;;  %v1473_v40 = vrot.slane %v1471_v29, 4  ;;  %v1476_v25 = vrot.slane %v1474_v31, 5  ;;  %v1257_v12 = vld [vmem:[#allocation2 + $0xb4] sm:$0x1] }
 0x16a   :  { %v1464_v46 = vrot.slane %v1463_v33, 4  ;;  %v1482_v2 = vrot.slane %v1480_v34, 5  ;;  %v1487_v57 = vrot.slane %v1485_v14, 4  ;;  %v1490_v59 = vrot.slane %v1488_v36, 5  ;;  %v1181_v15 = vld [vmem:[#allocation2 + $0x120] sm:$0xf] }
 0x16b   :  { %v7391_v0 = vpack.c.bf16 %v337_v22, %v337_v22  ;;  %v1477_v4 = vor.u32 %v1476_v25, %v1473_v40  ;;  %v1494_v44 = vshll.u32 %v1254_v60, 16  ;;  %v1513_v1 = vshrl.u32 %v9219_v53, 16  ;;  %v1184_v21 = vld [vmem:[#allocation2 + $0x124] sm:$0x1]  ;;  %v1258_v50 = vld [vmem:[#allocation2 + $0xbc] sm:$0x1] }
 0x16c   :  { %v1469_v32 = vsel %vm8886_vm9, %v1464_v46, %v1468_v19  ;;  %v1491_v7 = vor.u32 %v1490_v59, %v1487_v57  ;;  %v1516_v35 = vshll.u32 %v9219_v53, 16  ;;  %v1522_v52 = vshll.u32 %v1256_v45, 16  ;;  %v1219_v39 = vld [vmem:[#allocation2 + $0xc0] sm:$0xf]  ;;  %v9241_v22 = vld [vmem:[#allocation2 + $0xc8] sm:$0xf] }
 0x16d   :  { %v6926_v13 = vcombine.low %v1455_v51, %v1469_v32  ;;  %v918_v38 = vshrl.u32 %v7391_v0, 16  ;;  %v921_v9 = vshll.u32 %v7391_v0, 16  ;;  %v1478_v41 = vrot.slane %v1477_v4, 4  ;;  %v1259_v40 = vld [vmem:[#allocation2 + $0xc4] sm:$0x1] }
 0x16e   :  { %v1492_v16 = vrot.slane %v1491_v7, 4  ;;  %v1496_v18 = vrot.slane %v1494_v44, 5  ;;  %v1515_v20 = vrot.slane %v1513_v1, 4  ;;  %v1518_v42 = vrot.slane %v1516_v35, 5  ;;  %v1221_v4 = vld [vmem:[#allocation2 + $0xd0] sm:$0xf] }
 0x16f   :  { %7686 = vmatprep.mubr.msk.bf16.mxu0 %vm1802_vm10, %v6926_v13  ;;  %v920_v43 = vrot.slane %v918_v38, 7  ;;  %v1483_v62 = vsel %vm8886_vm9, %v1478_v41, %v1482_v2  ;;  %v1524_v3 = vrot.slane %v1522_v52, 5  ;;  %v1527_v23 = vshrl.u32 %v1217_v8, 16  ;;  %v1222_v35 = vld [vmem:[#allocation2 + $0xd8] sm:$0xf] }
 0x170   :  { %v1497_v24 = vsel %vm8886_vm9, %v1492_v16, %v1496_v18  ;;  %v1519_v26 = vor.u32 %v1518_v42, %v1515_v20  ;;  %v1530_v37 = vshll.u32 %v1217_v8, 16  ;;  %v1536_v27 = vshll.u32 %v1257_v12, 16  ;;  %v1261_v38 = vld [vmem:[#allocation2 + $0xd4] sm:$0x1]  ;;  %v1262_v20 = vld [vmem:[#allocation2 + $0xdc] sm:$0x1] }
 0x171   :  { %v923_v51 = vor.u32 %v921_v9, %v920_v43  ;;  %v924_v5 = vrot.slane %v920_v43, 4  ;;  %v6927_v28 = vcombine.low %v1483_v62, %v1497_v24  ;;  %v1529_v30 = vrot.slane %v1527_v23, 4  ;;  %v1224_v23 = vld [vmem:[#allocation2 + $0xf8] sm:$0xf]  ;;  %v1265_v61 = vld [vmem:[#allocation2 + $0x104] sm:$0x1] }
 0x172   :  { %v1520_v60 = vrot.slane %v1519_v26, 4  ;;  %v1532_v29 = vrot.slane %v1530_v37, 5  ;;  %v1538_v31 = vrot.slane %v1536_v27, 5  ;;  %v1541_v33 = vshrl.u32 %v9227_v58, 16 }
 0x173   :  { %v1182_v34 = vsel %vm8708_vm6, %v923_v51, %v1181_v15  ;;  %v1185_v14 = vsel %vm8680_vm3, %v924_v5, %v1184_v21  ;;  %7687 = vmatmul.mubr.msk.bf16.gmra.mrb[44].mxu0 %vm1802_vm10, %v6927_v28  ;;  %v1544_v36 = vshll.u32 %v9227_v58, 16  ;;  %v1550_v19 = vshll.u32 %v1258_v50, 16 }
 0x174   :  { %1183 = vst [vmem:[#allocation2 + $0x120] sm:$0xf] %v1182_v34  ;;  %1186 = vst [vmem:[#allocation2 + $0x124] sm:$0x1] %v1185_v14  ;;  %v1525_v25 = vsel %vm8886_vm9, %v1520_v60, %v1524_v3  ;;  %v1533_v45 = vor.u32 %v1532_v29, %v1529_v30  ;;  %v1543_v46 = vrot.slane %v1541_v33, 4  ;;  %v1555_v2 = vshrl.u32 %v1219_v39, 16 }
 0x175   :  { %v6928_v56 = vcombine.low %v1511_v63, %v1525_v25  ;;  %v1546_v57 = vrot.slane %v1544_v36, 5  ;;  %v1552_v59 = vrot.slane %v1550_v19, 5  ;;  %v1558_v0 = vshll.u32 %v1219_v39, 16  ;;  %v8364_v30 = vld [vmem:[#allocation2 + $0x128] ss:$8 sps:$4 sm:$0xff]  }
 0x176   :  { %v1534_v44 = vrot.slane %v1533_v45, 4  ;;  %v1557_v1 = vrot.slane %v1555_v2, 4  ;;  %v1564_v32 = vshll.u32 %v1259_v40, 16  ;;  %v1569_v7 = vshrl.u32 %v9241_v22, 16  ;;  %v1263_v33 = vld [vmem:[#allocation2 + $0xf4] sm:$0x1] }
 0x177   :  { %7690 = vmatprep.mubr.msk.bf16.mxu0 %vm1802_vm10, %v6928_v56  ;;  %v1547_v52 = vor.u32 %v1546_v57, %v1543_v46  ;;  %v1560_v8 = vrot.slane %v1558_v0, 5  ;;  %v1572_v12 = vshll.u32 %v9241_v22, 16  ;;  %v1578_v13 = vshll.u32 %v1260_v10, 16  ;;  %v1264_v14 = vld [vmem:[#allocation2 + $0xfc] sm:$0x1] }
 0x178   :  { %v1539_v48 = vsel %vm8886_vm9, %v1534_v44, %v1538_v31  ;;  %v1566_v49 = vrot.slane %v1564_v32, 5  ;;  %v1571_v63 = vrot.slane %v1569_v7, 4  ;;  %v1583_v9 = vshrl.u32 %v1221_v4, 16  ;;  %v9263_v19 = vld [vmem:[#allocation2 + $0xf0] sm:$0xf] }
 0x179   :  { %v1548_v41 = vrot.slane %v1547_v52, 4  ;;  %v1561_v15 = vor.u32 %v1560_v8, %v1557_v1  ;;  %v1574_v16 = vrot.slane %v1572_v12, 5  ;;  %v1580_v18 = vrot.slane %v1578_v13, 5  ;;  %v1225_v56 = vld [vmem:[#allocation2 + $0x100] sm:$0xf] }
 0x17a   :  { %v1585_v42 = vrot.slane %v1583_v9, 4  ;;  %v1586_v43 = vshll.u32 %v1221_v4, 16  ;;  %v1592_v62 = vshll.u32 %v1261_v38, 16  ;;  %v1597_v3 = vshrl.u32 %v1222_v35, 16  ;;  %v1226_v52 = vld [vmem:[#allocation2 + $0x108] sm:$0xf] }
 0x17b   :  { %v1553_v21 = vsel %vm8886_vm9, %v1548_v41, %v1552_v59  ;;  %v1562_v24 = vrot.slane %v1561_v15, 4  ;;  %v1575_v26 = vor.u32 %v1574_v16, %v1571_v63  ;;  %v1600_v50 = vshll.u32 %v1222_v35, 16  ;;  %v8362_v37 = vld [vmem:[#allocation2 + $0x118] ss:$8 sps:$4 sm:$0xff]   ;;  %v3258_v63 = vld [vmem:[#allocation2 + $0x8] sm:$0xf] }
 0x17c   :  { %v6929_v27 = vcombine.low %v1539_v48, %v1553_v21  ;;  %v1588_v51 = vrot.slane %v1586_v43, 5  ;;  %v1594_v5 = vrot.slane %v1592_v62, 5  ;;  %v1599_v28 = vrot.slane %v1597_v3, 4  ;;  %7822 = vmatprep.mubr.msk.bf16.mxu1 %vm1802_vm10, %v8362_v37  ;;  %v1266_v48 = vld [vmem:[#allocation2 + $0x10c] sm:$0x1] }
 0x17d   :  { %v1567_v39 = vsel %vm8886_vm9, %v1562_v24, %v1566_v49  ;;  %v1576_v60 = vrot.slane %v1575_v26, 4  ;;  %v1602_v29 = vrot.slane %v1600_v50, 5  ;;  %v1606_v31 = vshll.u32 %v1262_v20, 16  ;;  %7823 = vmatmul.mubr.msk.bf16.gmra.mrb[16].mxu1 %vm1802_vm10, %v8364_v30  ;;  %v3260_v21 = vld [vmem:[#allocation2 + $0x10] sm:$0xf] }
 0x17e   :  { %7691 = vmatmul.mubr.msk.bf16.gmra.mrb[48].mxu0 %vm1802_vm10, %v6929_v27  ;;  %v1589_v34 = vor.u32 %v1588_v51, %v1585_v42  ;;  %v1613_v36 = vrot.slane %v1611_v17, 4  ;;  %v1614_v40 = vshll.u32 %v9263_v19, 16  ;;  %v1620_v25 = vshll.u32 %v1263_v33, 16  ;;  %v3259_v27 = vld [vmem:[#allocation2 + $0xc] sm:$0x1] }
 0x17f   :  { %v1581_v45 = vsel %vm8886_vm9, %v1576_v60, %v1580_v18  ;;  %v1603_v46 = vor.u32 %v1602_v29, %v1599_v28  ;;  %v1608_v10 = vrot.slane %v1606_v31, 5  ;;  %v1625_v2 = vshrl.u32 %v1224_v23, 16 }
 0x180   :  { %v6930_v57 = vcombine.low %v1567_v39, %v1581_v45  ;;  %v1590_v59 = vrot.slane %v1589_v34, 4  ;;  %v1616_v0 = vrot.slane %v1614_v40, 5  ;;  %v1622_v4 = vrot.slane %v1620_v25, 5  ;;  %v3261_v39 = vld [vmem:[#allocation2 + $0x14] sm:$0x1] }
 0x181   :  { %v1604_v17 = vrot.slane %v1603_v46, 4  ;;  %v1627_v44 = vrot.slane %v1625_v2, 4  ;;  %v1628_v1 = vshll.u32 %v1224_v23, 16  ;;  %v1634_v32 = vshll.u32 %v1264_v14, 16  ;;  %v9279_v14 = vld [vmem:[#allocation2 + $0x110] sm:$0xf] }
 0x182   :  { %7694 = vmatprep.mubr.msk.bf16.mxu0 %vm1802_vm10, %v6930_v57  ;;  %v1595_v7 = vsel %vm8886_vm9, %v1590_v59, %v1594_v5  ;;  %v1617_v35 = vor.u32 %v1616_v0, %v1613_v36  ;;  %v1639_v8 = vshrl.u32 %v1225_v56, 16  ;;  %v1642_v12 = vshll.u32 %v1225_v56, 16  ;;  %v9283_v46 = vld [vmem:[#allocation2 + $0x118] sm:$0xf] }
 0x183   :  { %v1609_v13 = vsel %vm8886_vm9, %v1604_v17, %v1608_v10  ;;  %v1630_v38 = vrot.slane %v1628_v1, 5  ;;  %v1648_v49 = vshll.u32 %v1265_v61, 16  ;;  %v1636_v20 = vrot.slane %v1634_v32, 5  ;;  %v1267_v10 = vld [vmem:[#allocation2 + $0x114] sm:$0x1] }
 0x184   :  { %v6931_v9 = vcombine.low %v1595_v7, %v1609_v13  ;;  %v1618_v41 = vrot.slane %v1617_v35, 4  ;;  %v1641_v15 = vrot.slane %v1639_v8, 4  ;;  %v1644_v16 = vrot.slane %v1642_v12, 5  ;;  %v9291_v35 = vld [vmem:[#allocation2 + $0x120] sm:$0xf] }
 0x185   :  { %v1631_v18 = vor.u32 %v1630_v38, %v1627_v44  ;;  %v1653_v42 = vshrl.u32 %v1226_v52, 16  ;;  %v1656_v43 = vshll.u32 %v1226_v52, 16  ;;  %v1662_v23 = vshll.u32 %v1266_v48, 16  ;;  %v9293_v38 = vld [vmem:[#allocation2 + $0x128] sm:$0xf] }
 0x186   :  { %7695 = vmatmul.mubr.msk.bf16.gmra.mrb[52].mxu0 %vm1802_vm10, %v6931_v9  ;;  %v1623_v62 = vsel %vm8886_vm9, %v1618_v41, %v1622_v4  ;;  %v1645_v3 = vor.u32 %v1644_v16, %v1641_v15  ;;  %v3323_v24 = vshrl.u32 %v3258_v63, 16  ;;  %v3326_v51 = vshll.u32 %v3258_v63, 16  ;;  %v1268_v4 = vld [vmem:[#allocation2 + $0x11c] sm:$0x1] }
 0x187   :  { %v1632_v26 = vrot.slane %v1631_v18, 4  ;;  %v1655_v50 = vrot.slane %v1653_v42, 4  ;;  %v1658_v37 = vrot.slane %v1656_v43, 5  ;;  %v1650_v28 = vrot.slane %v1648_v49, 5  ;;  %v1269_v18 = vld [vmem:[#allocation2 + $0x124] sm:$0x1] }
 0x188   :  { %v1646_v5 = vrot.slane %v1645_v3, 4  ;;  %v1664_v30 = vrot.slane %v1662_v23, 5  ;;  %v3325_v60 = vrot.slane %v3323_v24, 4  ;;  %v3328_v33 = vrot.slane %v3326_v51, 5 }
 0x189   :  { %v1637_v29 = vsel %vm8886_vm9, %v1632_v26, %v1636_v20  ;;  %v1659_v31 = vor.u32 %v1658_v37, %v1655_v50  ;;  %v3337_v34 = vshrl.u32 %v3260_v21, 16  ;;  %v3332_v25 = vshll.u32 %v3259_v27, 16  ;;  %v3262_v37 = vld [vmem:[#allocation2 + $0x18] sm:$0xf] }
 0x18a   :  { %v6932_v36 = vcombine.low %v1623_v62, %v1637_v29  ;;  %v1651_v40 = vsel %vm8886_vm9, %v1646_v5, %v1650_v28  ;;  %v3340_v45 = vshll.u32 %v3260_v21, 16  ;;  %v3329_v56 = vor.u32 %v3328_v33, %v3325_v60  ;;  %v1270_v62 = vld [vmem:[#allocation2 + $0x12c] sm:$0x1] }
 0x18b   :  { %v1660_v2 = vrot.slane %v1659_v31, 4  ;;  %v3339_v57 = vrot.slane %v3337_v34, 4  ;;  %v3346_v59 = vshll.u32 %v3261_v39, 16  ;;  %v1667_v61 = vshrl.u32 %v9279_v14, 16  ;;  %v3264_v39 = vld [vmem:[#allocation2 + $0x20] sm:$0xf] }
 0x18c   :  { %7698 = vmatprep.mubr.msk.bf16.mxu0 %vm1802_vm10, %v6932_v36  ;;  %v3342_v0 = vrot.slane %v3340_v45, 5  ;;  %v1670_v17 = vshll.u32 %v9279_v14, 16  ;;  %v3330_v1 = vrot.slane %v3329_v56, 4  ;;  %v1676_v32 = vshll.u32 %v1267_v10, 16 }
 0x18d   :  { %v1665_v44 = vsel %vm8886_vm9, %v1660_v2, %v1664_v30  ;;  %v1681_v7 = vshrl.u32 %v9283_v46, 16  ;;  %v1669_v12 = vrot.slane %v1667_v61, 4  ;;  %v3334_v48 = vrot.slane %v3332_v25, 5  ;;  %v9304_v30 = vld [vmem:[#allocation2 + $0x1c] sm:$0x1] }
 0x18e   :  { %v6933_v52 = vcombine.low %v1651_v40, %v1665_v44  ;;  %v3343_v8 = vor.u32 %v3342_v0, %v3339_v57  ;;  %v1672_v13 = vrot.slane %v1670_v17, 5  ;;  %v3348_v49 = vrot.slane %v3346_v59, 5  ;;  %v9310_v2 = vld [vmem:[#allocation2 + $0x24] sm:$0x1]  ;;  %v3266_v17 = vld [vmem:[#allocation2 + $0x28] sm:$0xf] }
 0x18f   :  { %v1683_v63 = vrot.slane %v1681_v7, 4  ;;  %v1684_v9 = vshll.u32 %v9283_v46, 16  ;;  %v1690_v16 = vshll.u32 %v1268_v4, 16  ;;  %v1695_v20 = vshrl.u32 %v9291_v35, 16 }
 0x190   :  { %7699 = vmatmul.mubr.msk.bf16.gmra.mrb[56].mxu0 %vm1802_vm10, %v6933_v52  ;;  %v3344_v41 = vrot.slane %v3343_v8, 4  ;;  %v1673_v15 = vor.u32 %v1672_v13, %v1669_v12  ;;  %v3335_v42 = vsel %vm8886_vm9, %v3330_v1, %v3334_v48  ;;  %v1698_v3 = vshll.u32 %v9291_v35, 16  ;;  %v9315_v52 = vld [vmem:[#allocation2 + $0x2c] sm:$0x1] }
 0x191   :  { %v1686_v43 = vrot.slane %v1684_v9, 5  ;;  %v1709_v23 = vshrl.u32 %v9293_v38, 16  ;;  %v1678_v26 = vrot.slane %v1676_v32, 5  ;;  %v1697_v50 = vrot.slane %v1695_v20, 4 }
 0x192   :  { %v3349_v21 = vsel %vm8886_vm9, %v3344_v41, %v3348_v49  ;;  %v1674_v24 = vrot.slane %v1673_v15, 4  ;;  %v1700_v5 = vrot.slane %v1698_v3, 5  ;;  %v1704_v28 = vshll.u32 %v1269_v18, 16  ;;  %v3268_v49 = vld [vmem:[#allocation2 + $0x30] sm:$0xf] }
 0x193   :  { %v7096_v27 = vcombine.low %v3335_v42, %v3349_v21  ;;  %v1687_v51 = vor.u32 %v1686_v43, %v1683_v63  ;;  %v1692_v60 = vrot.slane %v1690_v16, 5  ;;  %v1711_v29 = vrot.slane %v1709_v23, 4  ;;  %v9321_v42 = vld [vmem:[#allocation2 + $0x34] sm:$0x1] }
 0x194   :  { %v1712_v31 = vshll.u32 %v9293_v38, 16  ;;  %v1718_v33 = vshll.u32 %v1270_v62, 16  ;;  %v1701_v36 = vor.u32 %v1700_v5, %v1697_v50  ;;  %v3351_v40 = vshrl.u32 %v3262_v37, 16 }
 0x195   :  { %7834 = vmatprep.mubr.msk.bf16.mxu1 %vm1802_vm10, %v7096_v27  ;;  %v1688_v34 = vrot.slane %v1687_v51, 4  ;;  %v3354_v25 = vshll.u32 %v3262_v37, 16  ;;  %v1679_v45 = vsel %vm8886_vm9, %v1674_v24, %v1678_v26  ;;  %v3360_v56 = vshll.u32 %v9304_v30, 16  ;;  %v3270_v24 = vld [vmem:[#allocation2 + $0x38] sm:$0xf] }
 0x196   :  { %v1714_v10 = vrot.slane %v1712_v31, 5  ;;  %v3365_v57 = vshrl.u32 %v3264_v39, 16  ;;  %v1702_v0 = vrot.slane %v1701_v36, 4  ;;  %v3353_v4 = vrot.slane %v3351_v40, 4  ;;  %v8431_v27 = vld [vmem:[#allocation2] sm:$0xf] }
 0x197   :  { %v1693_v59 = vsel %vm8886_vm9, %v1688_v34, %v1692_v60  ;;  %v3356_v61 = vrot.slane %v3354_v25, 5  ;;  %v1706_v1 = vrot.slane %v1704_v28, 5  ;;  %v1720_v7 = vrot.slane %v1718_v33, 5  ;;  %v8432_v51 = vld [vmem:[#allocation2 + $0x8] sm:$0xf] }
 0x198   :  { %v6934_v44 = vcombine.low %v1679_v45, %v1693_v59  ;;  %v1715_v32 = vor.u32 %v1714_v10, %v1711_v29  ;;  %v3367_v12 = vrot.slane %v3365_v57, 4  ;;  %v3368_v13 = vshll.u32 %v3264_v39, 16  ;;  %v3272_v31 = vld [vmem:[#allocation2 + $0x40] sm:$0xf]  ;;  %v9330_v36 = vld [vmem:[#allocation2 + $0x3c] sm:$0x1] }
 0x199   :  { %v3357_v8 = vor.u32 %v3356_v61, %v3353_v4  ;;  %v3374_v48 = vshll.u32 %v9310_v2, 16  ;;  %v1707_v63 = vsel %vm8886_vm9, %v1702_v0, %v1706_v1  ;;  %v3379_v41 = vshrl.u32 %v3266_v17, 16  ;;  %v8433_v57 = vld [vmem:[#allocation2 + $0x10] sm:$0xf]  ;;  %v8434_v59 = vld [vmem:[#allocation2 + $0x18] sm:$0xf] }
 0x19a   :  { %7702 = vmatprep.mubr.msk.bf16.mxu0 %vm1802_vm10, %v6934_v44  ;;  %v1716_v9 = vrot.slane %v1715_v32, 4  ;;  %v3382_v15 = vshll.u32 %v3266_v17, 16  ;;  %v3362_v18 = vrot.slane %v3360_v56, 5  ;;  %v3370_v20 = vrot.slane %v3368_v13, 5  ;;  %v9333_v4 = vld [vmem:[#allocation2 + $0x44] sm:$0x1] }
 0x19b   :  { %v3358_v16 = vrot.slane %v3357_v8, 4  ;;  %v3388_v43 = vshll.u32 %v9315_v52, 16  ;;  %v3381_v3 = vrot.slane %v3379_v41, 4  ;;  %v3393_v21 = vshrl.u32 %v3268_v49, 16  ;;  %v3274_v32 = vld [vmem:[#allocation2 + $0x58] sm:$0xf] }
 0x19c   :  { %v1721_v62 = vsel %vm8886_vm9, %v1716_v9, %v1720_v7  ;;  %v3384_v23 = vrot.slane %v3382_v15, 5  ;;  %v3371_v50 = vor.u32 %v3370_v20, %v3367_v12  ;;  %v3376_v37 = vrot.slane %v3374_v48, 5  ;;  %v9338_v48 = vld [vmem:[#allocation2 + $0x5c] sm:$0x1] }
 0x19d   :  { %v6935_v26 = vcombine.low %v1707_v63, %v1721_v62  ;;  %v6956_v5 = vcombine.low %v8431_v27, %v8432_v51  ;;  %v3395_v39 = vrot.slane %v3393_v21, 4  ;;  %v3396_v60 = vshll.u32 %v3268_v49, 16  ;;  %v8371_v49 = vld [vmem:[%s10643_s3 + $0xa8] sm:$0xff]  }
 0x19e   :  { %v3385_v28 = vor.u32 %v3384_v23, %v3381_v3  ;;  %v3402_v29 = vshll.u32 %v9321_v42, 16  ;;  %v3363_v33 = vsel %vm8886_vm9, %v3358_v16, %v3362_v18  ;;  %v3372_v34 = vrot.slane %v3371_v50, 4  ;;  %v3276_v16 = vld [vmem:[#allocation2 + $0x60] sm:$0xf]  ;;  %v8437_v50 = vld [vmem:[#allocation2 + $0x28] sm:$0xf] }
 0x19f   :  { %7703 = vmatmul.mubr.msk.bf16.gmra.mrb[60].mxu0 %vm1802_vm10, %v6935_v26  ;;  %v3407_v40 = vshrl.u32 %v3270_v24, 16  ;;  %v3410_v25 = vshll.u32 %v3270_v24, 16  ;;  %v3390_v10 = vrot.slane %v3388_v43, 5  ;;  %v3398_v56 = vrot.slane %v3396_v60, 5  ;;  %v9347_v43 = vld [vmem:[#allocation2 + $0x64] sm:$0x1] }
 0x1a0   :  { %7714 = vmatprep.mubr.msk.bf16.mxu0 %vm1802_vm10, %v6956_v5  ;;  %v3386_v45 = vrot.slane %v3385_v28, 4  ;;  %v6957_v0 = vcombine.low %v8433_v57, %v8434_v59  ;;  %v3377_v61 = vsel %vm8886_vm9, %v3372_v34, %v3376_v37  ;;  %v3421_v1 = vshrl.u32 %v3272_v31, 16  ;;  %v8435_v23 = vld [vmem:[%s10643_s3 + $0xa0] sm:$0xff]   ;;  %v3278_v51 = vld [vmem:[#allocation2 + $0x68] sm:$0xf] }
 0x1a1   :  { %v3409_v17 = vrot.slane %v3407_v40, 4  ;;  %v3412_v44 = vrot.slane %v3410_v25, 5  ;;  %v7097_v7 = vcombine.low %v3363_v33, %v3377_v61  ;;  %v3399_v8 = vor.u32 %v3398_v56, %v3395_v39  ;;  %v8436_v26 = vld [vmem:[#allocation2 + $0x20] sm:$0xf]  ;;  %v3280_v59 = vld [vmem:[#allocation2 + $0x70] sm:$0xf] }
 0x1a2   :  { %v3404_v12 = vrot.slane %v3402_v29, 5  ;;  %v3416_v13 = vshll.u32 %v9330_v36, 16  ;;  %v3423_v9 = vrot.slane %v3421_v1, 4  ;;  %v3424_v41 = vshll.u32 %v3272_v31, 16  ;;  %v8376_v29 = vld [vmem:[%s10643_s3 + $0xb0] sm:$0xff]   ;;  %v8387_v31 = vld [vmem:[%s10643_s3 + $0x48] sm:$0xff]  }
 0x1a3   :  { %v3413_v63 = vor.u32 %v3412_v44, %v3409_v17  ;;  %v3430_v15 = vshll.u32 %v9333_v4, 16  ;;  %7835 = vmatmul.mubr.msk.bf16.vlgmr.msra.gmra.mrb[20].mxu1 %vm1802_vm10, %v7097_v7  ;;  %v3391_v18 = vsel %vm8886_vm9, %v3386_v45, %v3390_v10  ;;  %v3400_v20 = vrot.slane %v3399_v8, 4 }
 0x1a4   :  { %v3435_v62 = vshrl.u32 %v3274_v32, 16  ;;  %v3438_v3 = vshll.u32 %v3274_v32, 16  ;;  %7867 = vmatpush3.bf16.msra.mxu1 %v8435_v23  ;;  %v3426_v24 = vrot.slane %v3424_v41, 5  ;;  %v6958_v37 = vcombine.low %v8436_v26, %v8437_v50  ;;  %v8390_v32 = vld [vmem:[%s10643_s3 + $0x50] sm:$0xff]   ;;  %v8381_v41 = vld [vmem:[%s10643_s3 + $0xb8] sm:$0xff]  }
 0x1a5   :  { %v3414_v21 = vrot.slane %v3413_v63, 4  ;;  %v3444_v27 = vshll.u32 %v9338_v48, 16  ;;  %v3405_v5 = vsel %vm8886_vm9, %v3400_v20, %v3404_v12  ;;  %v3449_v60 = vshrl.u32 %v3276_v16, 16  ;;  %7868 = vmatprep.subr.bf16.mxu1 %v8371_v49  ;;  %v3282_v20 = vld [vmem:[#allocation2 + $0x78] sm:$0xf] }
 0x1a6   :  { %v3437_v28 = vrot.slane %v3435_v62, 4  ;;  %v3440_v39 = vrot.slane %v3438_v3, 5  ;;  %v7098_v33 = vcombine.low %v3391_v18, %v3405_v5  ;;  %v3418_v34 = vrot.slane %v3416_v13, 5  ;;  %v8438_v13 = vld [vmem:[#allocation2 + $0x30] sm:$0xf] }
 0x1a7   :  { %7715 = vmatmul.mubr.msk.bf16.vlgmr.msra.gmra.mrb[32].mxu0 %vm1802_vm10, %v6957_v0  ;;  %v3427_v40 = vor.u32 %v3426_v24, %v3423_v9  ;;  %v3432_v25 = vrot.slane %v3430_v15, 5  ;;  %v3451_v10 = vrot.slane %v3449_v60, 4  ;;  %v3452_v56 = vshll.u32 %v3276_v16, 16  ;;  %v9368_v0 = vld [vmem:[#allocation2 + $0x6c] sm:$0x1] }
 0x1a8   :  { %7718 = vmatprep.mubr.msk.bf16.mxu0 %vm1802_vm10, %v6958_v37  ;;  %v3441_v45 = vor.u32 %v3440_v39, %v3437_v28  ;;  %v3458_v57 = vshll.u32 %v9347_v43, 16  ;;  %7747 = vmatpush3.bf16.msra.mxu0 %v9210_v11  ;;  %v3419_v61 = vsel %vm8886_vm9, %v3414_v21, %v3418_v34  ;;  %v3463_v44 = vshrl.u32 %v3278_v51, 16  ;;  %v8439_v11 = vld [vmem:[#allocation2 + $0x38] sm:$0xf]  ;;  %v9373_v9 = vld [vmem:[#allocation2 + $0x74] sm:$0x1] }
 0x1a9   :  { %7838 = vmatprep.mubr.msk.bf16.mxu1 %vm1802_vm10, %v7098_v33  ;;  %v3428_v17 = vrot.slane %v3427_v40, 4  ;;  %v3466_v1 = vshll.u32 %v3278_v51, 16  ;;  %7869 = vmatpush3.bf16.msra.mxu1 %v8371_v49  ;;  %v3446_v8 = vrot.slane %v3444_v27, 5  ;;  %v3454_v12 = vrot.slane %v3452_v56, 5  ;;  %v9381_v24 = vld [vmem:[#allocation2 + $0x7c] sm:$0x1] }
 0x1aa   :  { %v3442_v7 = vrot.slane %v3441_v45, 4  ;;  %v6959_v63 = vcombine.low %v8438_v13, %v8439_v11  ;;  %7870 = vmatprep.subr.bf16.mxu1 %v8376_v29  ;;  %7748 = vmatprep.subr.bf16.mxu0 %v8387_v31  ;;  %v3465_v15 = vrot.slane %v3463_v44, 4  ;;  %v3477_v18 = vshrl.u32 %v3280_v59, 16  ;;  %v3284_v26 = vld [vmem:[#allocation2 + $0x80] sm:$0xf]  ;;  %v8391_v28 = vld [vmem:[%s10643_s3 + $0x58] sm:$0xff]  }
 0x1ab   :  { %v3433_v49 = vsel %vm8886_vm9, %v3428_v17, %v3432_v25  ;;  %v3468_v16 = vrot.slane %v3466_v1, 5  ;;  %v3455_v3 = vor.u32 %v3454_v12, %v3451_v10  ;;  %v3460_v23 = vrot.slane %v3458_v57, 5  ;;  %v9384_v5 = vld [vmem:[#allocation2 + $0x84] sm:$0x1]  ;;  %v8440_v60 = vld [vmem:[#allocation2 + $0x50] sm:$0xf] }
 0x1ac   :  { %v7099_v62 = vcombine.low %v3419_v61, %v3433_v49  ;;  %v3472_v21 = vshll.u32 %v9368_v0, 16  ;;  %7749 = vmatpush3.bf16.msra.mxu0 %v8387_v31  ;;  %v3479_v37 = vrot.slane %v3477_v18, 4  ;;  %v3480_v27 = vshll.u32 %v3280_v59, 16  ;;  %v8441_v33 = vld [vmem:[#allocation2 + $0x58] sm:$0xf]  ;;  %v9393_v45 = vld [vmem:[%s10643_s3 + $0xc0] sm:$0xff]  }
 0x1ad   :  { %v3469_v50 = vor.u32 %v3468_v16, %v3465_v15  ;;  %v3486_v51 = vshll.u32 %v9373_v9, 16  ;;  %7871 = vmatpush3.bf16.msra.mxu1 %v8376_v29  ;;  %7750 = vmatprep.subr.bf16.mxu0 %v8390_v32  ;;  %v3456_v39 = vrot.slane %v3455_v3, 4  ;;  %v6960_v34 = vcombine.low %v8440_v60, %v8441_v33  ;;  %v3286_v25 = vld [vmem:[#allocation2 + $0x88] sm:$0xf]  ;;  %v3288_v1 = vld [vmem:[#allocation2 + $0x90] sm:$0xf] }
 0x1ae   :  { %7839 = vmatmul.mubr.msk.bf16.gmra.mrb[24].mxu1 %vm1802_vm10, %v7099_v62  ;;  %v3491_v31 = vshrl.u32 %v3282_v20, 16  ;;  %v3494_v40 = vshll.u32 %v3282_v20, 16  ;;  %7872 = vmatprep.subr.bf16.mxu1 %v8381_v41  ;;  %v3447_v29 = vsel %vm8886_vm9, %v3442_v7, %v3446_v8  ;;  %v3482_v56 = vrot.slane %v3480_v27, 5  ;;  %v9402_v8 = vld [vmem:[#allocation2 + $0x8c] sm:$0x1] }
 0x1af   :  { %7719 = vmatmul.mubr.msk.bf16.gmra.mrb[36].mxu0 %vm1802_vm10, %v6959_v63  ;;  %v3470_v10 = vrot.slane %v3469_v50, 4  ;;  %v3500_v57 = vshll.u32 %v9381_v24, 16  ;;  %v3461_v59 = vsel %vm8886_vm9, %v3456_v39, %v3460_v23  ;;  %v3505_v44 = vshrl.u32 %v3284_v26, 16  ;;  %v9405_v18 = vld [vmem:[#allocation2 + $0x94] sm:$0x1] }
 0x1b0   :  { %7722 = vmatprep.mubr.msk.bf16.mxu0 %vm1802_vm10, %v6960_v34  ;;  %v3493_v61 = vrot.slane %v3491_v31, 4  ;;  %v3496_v17 = vrot.slane %v3494_v40, 5  ;;  %7751 = vmatpush3.bf16.msra.mxu0 %v8390_v32  ;;  %v7100_v12 = vcombine.low %v3447_v29, %v3461_v59  ;;  %v3474_v13 = vrot.slane %v3472_v21, 5  ;;  %v3290_v23 = vld [vmem:[#allocation2 + $0xa8] sm:$0xf]  ;;  %v9418_v31 = vld [vmem:[%s10643_s3 + $0x60] sm:$0xff]  }
 0x1b1   :  { %v3483_v11 = vor.u32 %v3482_v56, %v3479_v37  ;;  %v3488_v7 = vrot.slane %v3486_v51, 5  ;;  %7873 = vmatpush3.bf16.msra.mxu1 %v8381_v41  ;;  %7752 = vmatprep.subr.bf16.mxu0 %v8391_v28  ;;  %v3507_v49 = vrot.slane %v3505_v44, 4  ;;  %v3508_v15 = vshll.u32 %v3284_v26, 16  ;;  %v8442_v37 = vld [vmem:[#allocation2 + $0x60] sm:$0xf] }
 0x1b2   :  { %v3497_v63 = vor.u32 %v3496_v17, %v3493_v61  ;;  %v3514_v16 = vshll.u32 %v9384_v5, 16  ;;  %7906 = vmatprep.subr.bf16.mxu1 %v9393_v45  ;;  %7842 = vmatprep.mubr.msk.bf16.mxu1 %vm1802_vm10, %v7100_v12  ;;  %v3475_v32 = vsel %vm8886_vm9, %v3470_v10, %v3474_v13  ;;  %v3519_v62 = vshrl.u32 %v3286_v25, 16  ;;  %v8443_v26 = vld [vmem:[#allocation2 + $0x68] sm:$0xf]  ;;  %v9413_v34 = vld [vmem:[#allocation2 + $0xac] sm:$0x1] }
 0x1b3   :  { %v3484_v20 = vrot.slane %v3483_v11, 4  ;;  %v3522_v3 = vshll.u32 %v3286_v25, 16  ;;  %v3502_v21 = vrot.slane %v3500_v57, 5  ;;  %v3510_v50 = vrot.slane %v3508_v15, 5  ;;  %v3292_v10 = vld [vmem:[#allocation2 + $0xb0] sm:$0xf] }
 0x1b4   :  { %v3498_v41 = vrot.slane %v3497_v63, 4  ;;  %v6961_v27 = vcombine.low %v8442_v37, %v8443_v26  ;;  %7753 = vmatpush3.bf16.msra.mxu0 %v8391_v28  ;;  %v3521_v39 = vrot.slane %v3519_v62, 4  ;;  %v3533_v33 = vshrl.u32 %v3288_v1, 16  ;;  %v9424_v17 = vld [vmem:[#allocation2 + $0xb4] sm:$0x1] }
 0x1b5   :  { %v3489_v51 = vsel %vm8886_vm9, %v3484_v20, %v3488_v7  ;;  %v3524_v60 = vrot.slane %v3522_v3, 5  ;;  %7786 = vmatprep.subr.bf16.mxu0 %v9418_v31  ;;  %v3511_v25 = vor.u32 %v3510_v50, %v3507_v49  ;;  %v3516_v29 = vrot.slane %v3514_v16, 5  ;;  %v8445_v12 = vld [vmem:[#allocation2 + $0x70] sm:$0xf]  ;;  %v9434_v26 = vld [vmem:[#allocation2 + $0xbc] sm:$0x1] }
 0x1b6   :  { %v7101_v40 = vcombine.low %v3475_v32, %v3489_v51  ;;  %v3528_v28 = vshll.u32 %v9402_v8, 16  ;;  %v3535_v57 = vrot.slane %v3533_v33, 4  ;;  %v3536_v59 = vshll.u32 %v3288_v1, 16  ;;  %v3294_v1 = vld [vmem:[#allocation2 + $0xb8] sm:$0xf] }
 0x1b7   :  { %7723 = vmatmul.mubr.msk.bf16.gmra.mrb[40].mxu0 %vm1802_vm10, %v6961_v27  ;;  %v3525_v56 = vor.u32 %v3524_v60, %v3521_v39  ;;  %v3542_v61 = vshll.u32 %v9405_v18, 16  ;;  %v3512_v44 = vrot.slane %v3511_v25, 4  ;;  %v6962_v13 = vcombine.low %v8445_v12, %v9179_v6  ;;  %v9437_v60 = vld [vmem:[#allocation2 + $0xc4] sm:$0x1] }
 0x1b8   :  { %7843 = vmatmul.mubr.msk.bf16.gmra.mrb[28].mxu1 %vm1802_vm10, %v7101_v40  ;;  %v3547_v11 = vshrl.u32 %v3290_v23, 16  ;;  %v3550_v7 = vshll.u32 %v3290_v23, 16  ;;  %v3503_v63 = vsel %vm8886_vm9, %v3498_v41, %v3502_v21  ;;  %v3538_v15 = vrot.slane %v3536_v59, 5  ;;  %v3296_v41 = vld [vmem:[#allocation2 + $0xc0] sm:$0xf] }
 0x1b9   :  { %v3526_v49 = vrot.slane %v3525_v56, 4  ;;  %v3556_v16 = vshll.u32 %v9413_v34, 16  ;;  %v3517_v32 = vsel %vm8886_vm9, %v3512_v44, %v3516_v29  ;;  %7726 = vmatprep.mubr.msk.bf16.mxu0 %vm1802_vm10, %v6962_v13  ;;  %v3561_v3 = vshrl.u32 %v3292_v10, 16 }
 0x1ba   :  { %v3549_v20 = vrot.slane %v3547_v11, 4  ;;  %v3552_v62 = vrot.slane %v3550_v7, 5  ;;  %v7102_v50 = vcombine.low %v3503_v63, %v3517_v32  ;;  %v3530_v6 = vrot.slane %v3528_v28, 5  ;;  %v3298_v28 = vld [vmem:[#allocation2 + $0xc8] sm:$0xf] }
 0x1bb   :  { %v3539_v37 = vor.u32 %v3538_v15, %v3535_v57  ;;  %v3544_v23 = vrot.slane %v3542_v61, 5  ;;  %v3563_v27 = vrot.slane %v3561_v3, 4  ;;  %v3564_v51 = vshll.u32 %v3292_v10, 16  ;;  %v9444_v10 = vld [vmem:[#allocation2 + $0xcc] sm:$0x1] }
 0x1bc   :  { %v3553_v21 = vor.u32 %v3552_v62, %v3549_v20  ;;  %v3570_v39 = vshll.u32 %v9424_v17, 16  ;;  %7846 = vmatprep.mubr.msk.bf16.mxu1 %vm1802_vm10, %v7102_v50  ;;  %v6963_v40 = vcombine.low %v9188_v54, %v9198_v55  ;;  %v3575_v25 = vshrl.u32 %v3294_v1, 16  ;;  %v3300_v15 = vld [vmem:[#allocation2 + $0xd0] sm:$0xf]  ;;  %v8446_v62 = vld [vmem:[#allocation2 + $0xa0] sm:$0xf] }
 0x1bd   :  { %v3540_v33 = vrot.slane %v3539_v37, 4  ;;  %v3578_v29 = vshll.u32 %v3294_v1, 16  ;;  %v3531_v56 = vsel %vm8886_vm9, %v3526_v49, %v3530_v6  ;;  %v3558_v59 = vrot.slane %v3556_v16, 5  ;;  %v3302_v37 = vld [vmem:[#allocation2 + $0xd8] sm:$0xf] }
 0x1be   :  { %v3554_v57 = vrot.slane %v3553_v21, 4  ;;  %v3566_v61 = vrot.slane %v3564_v51, 5  ;;  %v3577_v12 = vrot.slane %v3575_v25, 4  ;;  %v3589_v11 = vshrl.u32 %v3296_v41, 16  ;;  %v9455_v51 = vld [vmem:[#allocation2 + $0xd4] sm:$0x1] }
 0x1bf   :  { %v3545_v44 = vsel %vm8886_vm9, %v3540_v33, %v3544_v23  ;;  %7727 = vmatmul.mubr.msk.bf16.gmra.mrb[44].mxu0 %vm1802_vm10, %v6963_v40  ;;  %v3580_v13 = vrot.slane %v3578_v29, 5  ;;  %v3572_v7 = vrot.slane %v3570_v39, 5  ;;  %v3584_v63 = vshll.u32 %v9434_v26, 16 }
 0x1c0   :  { %v7103_v54 = vcombine.low %v3531_v56, %v3545_v44  ;;  %v3567_v55 = vor.u32 %v3566_v61, %v3563_v27  ;;  %v3591_v1 = vrot.slane %v3589_v11, 4  ;;  %v3592_v16 = vshll.u32 %v3296_v41, 16  ;;  %v9461_v61 = vld [vmem:[#allocation2 + $0xdc] sm:$0x1]  ;;  %v9464_v11 = vld [vmem:[#allocation2 + $0xe4] sm:$0x1] }
 0x1c1   :  { %v3581_v49 = vor.u32 %v3580_v13, %v3577_v12  ;;  %v3598_v32 = vshll.u32 %v9437_v60, 16  ;;  %v6964_v3 = vcombine.low %v8446_v62, %v9219_v53  ;;  %v3603_v50 = vshrl.u32 %v3298_v28, 16 }
 0x1c2   :  { %7847 = vmatmul.mubr.msk.bf16.gmra.mrb[0].mxu1 %vm1802_vm10, %v7103_v54  ;;  %v3568_v20 = vrot.slane %v3567_v55, 4  ;;  %v3606_v6 = vshll.u32 %v3298_v28, 16  ;;  %v3559_v23 = vsel %vm8886_vm9, %v3554_v57, %v3558_v59  ;;  %v3594_v27 = vrot.slane %v3592_v16, 5  ;;  %v3304_v57 = vld [vmem:[#allocation2 + $0xe0] sm:$0xf] }
 0x1c3   :  { %v3582_v21 = vrot.slane %v3581_v49, 4  ;;  %v3612_v41 = vshll.u32 %v9444_v10, 16  ;;  %7730 = vmatprep.mubr.msk.bf16.mxu0 %vm1802_vm10, %v6964_v3  ;;  %v3605_v33 = vrot.slane %v3603_v50, 4  ;;  %v3617_v53 = vshrl.u32 %v3300_v15, 16  ;;  %v8447_v55 = vld [vmem:[#allocation2 + $0xb0] sm:$0xf] }
 0x1c4   :  { %v3573_v39 = vsel %vm8886_vm9, %v3568_v20, %v3572_v7  ;;  %v3608_v40 = vrot.slane %v3606_v6, 5  ;;  %v3586_v29 = vrot.slane %v3584_v63, 5  ;;  %v3595_v28 = vor.u32 %v3594_v27, %v3591_v1  ;;  %v3306_v1 = vld [vmem:[#allocation2 + $0xf8] sm:$0xf] }
 0x1c5   :  { %v7104_v25 = vcombine.low %v3559_v23, %v3573_v39  ;;  %v3600_v56 = vrot.slane %v3598_v32, 5  ;;  %v3619_v44 = vrot.slane %v3617_v53, 4  ;;  %v3620_v12 = vshll.u32 %v3300_v15, 16  ;;  %v9470_v15 = vld [vmem:[#allocation2 + $0xfc] sm:$0x1] }
 0x1c6   :  { %v3609_v59 = vor.u32 %v3608_v40, %v3605_v33  ;;  %v3626_v13 = vshll.u32 %v9455_v51, 16  ;;  %v3596_v54 = vrot.slane %v3595_v28, 4  ;;  %v6965_v7 = vcombine.low %v8447_v55, %v9227_v58  ;;  %v3308_v33 = vld [vmem:[#allocation2 + $0x100] sm:$0xf] }
 0x1c7   :  { %7850 = vmatprep.mubr.msk.bf16.mxu1 %vm1802_vm10, %v7104_v25  ;;  %v3631_v49 = vshrl.u32 %v3302_v37, 16  ;;  %v3634_v63 = vshll.u32 %v3302_v37, 16  ;;  %v3587_v16 = vsel %vm8886_vm9, %v3582_v21, %v3586_v29  ;;  %v3614_v20 = vrot.slane %v3612_v41, 5  ;;  %v9477_v25 = vld [vmem:[#allocation2 + $0x104] sm:$0x1] }
 0x1c8   :  { %v3610_v32 = vrot.slane %v3609_v59, 4  ;;  %v3622_v62 = vrot.slane %v3620_v12, 5  ;;  %v3601_v3 = vsel %vm8886_vm9, %v3596_v54, %v3600_v56  ;;  %7731 = vmatmul.mubr.msk.bf16.gmra.mrb[48].mxu0 %vm1802_vm10, %v6965_v7  ;;  %v3645_v23 = vshrl.u32 %v3304_v57, 16  ;;  %v8448_v28 = vld [vmem:[#allocation2 + $0xc0] sm:$0xf] }
 0x1c9   :  { %v3633_v50 = vrot.slane %v3631_v49, 4  ;;  %v3636_v6 = vrot.slane %v3634_v63, 5  ;;  %v7105_v58 = vcombine.low %v3587_v16, %v3601_v3  ;;  %v3628_v37 = vrot.slane %v3626_v13, 5 }
 0x1ca   :  { %v3623_v27 = vor.u32 %v3622_v62, %v3619_v44  ;;  %v3640_v39 = vshll.u32 %v9461_v61, 16  ;;  %v3647_v40 = vrot.slane %v3645_v23, 4  ;;  %v3648_v41 = vshll.u32 %v3304_v57, 16  ;;  %v3310_v44 = vld [vmem:[#allocation2 + $0x108] sm:$0xf] }
 0x1cb   :  { %v3637_v21 = vor.u32 %v3636_v6, %v3633_v50  ;;  %v3654_v53 = vshll.u32 %v9464_v11, 16  ;;  %7851 = vmatmul.mubr.msk.bf16.gmra.mrb[4].mxu1 %vm1802_vm10, %v7105_v58  ;;  %v6966_v56 = vcombine.low %v8448_v28, %v9241_v22  ;;  %v3659_v59 = vshrl.u32 %v3306_v1, 16  ;;  %v9487_v50 = vld [vmem:[#allocation2 + $0x10c] sm:$0x1]  ;;  %v3312_v6 = vld [vmem:[#allocation2 + $0x110] sm:$0xf] }
 0x1cc   :  { %v3624_v29 = vrot.slane %v3623_v27, 4  ;;  %v3662_v12 = vshll.u32 %v3306_v1, 16  ;;  %v3615_v13 = vsel %vm8886_vm9, %v3610_v32, %v3614_v20  ;;  %v3650_v55 = vrot.slane %v3648_v41, 5  ;;  %v9490_v27 = vld [vmem:[#allocation2 + $0x114] sm:$0x1] }
 0x1cd   :  { %v3638_v54 = vrot.slane %v3637_v21, 4  ;;  %v3668_v57 = vshll.u32 %v9470_v15, 16  ;;  %7734 = vmatprep.mubr.msk.bf16.mxu0 %vm1802_vm10, %v6966_v56  ;;  %v3661_v49 = vrot.slane %v3659_v59, 4  ;;  %v3673_v16 = vshrl.u32 %v3308_v33, 16  ;;  %v8449_v21 = vld [vmem:[#allocation2 + $0xd0] sm:$0xf] }
 0x1ce   :  { %v3629_v7 = vsel %vm8886_vm9, %v3624_v29, %v3628_v37  ;;  %v3664_v63 = vrot.slane %v3662_v12, 5  ;;  %v3642_v22 = vrot.slane %v3640_v39, 5  ;;  %v3651_v3 = vor.u32 %v3650_v55, %v3647_v40  ;;  %v8450_v41 = vld [vmem:[#allocation2 + $0xd8] sm:$0xf] }
 0x1cf   :  { %v7106_v62 = vcombine.low %v3615_v13, %v3629_v7  ;;  %v3656_v1 = vrot.slane %v3654_v53, 5  ;;  %v3675_v20 = vrot.slane %v3673_v16, 4  ;;  %v3676_v23 = vshll.u32 %v3308_v33, 16  ;;  %v3314_v40 = vld [vmem:[#allocation2 + $0x118] sm:$0xf] }
 0x1d0   :  { %v3665_v32 = vor.u32 %v3664_v63, %v3661_v49  ;;  %v3682_v58 = vshll.u32 %v9477_v25, 16  ;;  %v3652_v37 = vrot.slane %v3651_v3, 4  ;;  %v6967_v29 = vcombine.low %v8449_v21, %v8450_v41  ;;  %v9495_v33 = vld [vmem:[#allocation2 + $0x11c] sm:$0x1]  ;;  %v3316_v63 = vld [vmem:[#allocation2 + $0x120] sm:$0xf] }
 0x1d1   :  { %7854 = vmatprep.mubr.msk.bf16.mxu1 %vm1802_vm10, %v7106_v62  ;;  %v3687_v28 = vshrl.u32 %v3310_v44, 16  ;;  %v3690_v39 = vshll.u32 %v3310_v44, 16  ;;  %v3643_v53 = vsel %vm8886_vm9, %v3638_v54, %v3642_v22  ;;  %v3670_v59 = vrot.slane %v3668_v57, 5 }
 0x1d2   :  { %v3666_v56 = vrot.slane %v3665_v32, 4  ;;  %v3678_v12 = vrot.slane %v3676_v23, 5  ;;  %v3657_v13 = vsel %vm8886_vm9, %v3652_v37, %v3656_v1  ;;  %7735 = vmatmul.mubr.msk.bf16.gmra.mrb[52].mxu0 %vm1802_vm10, %v6967_v29  ;;  %v3701_v49 = vshrl.u32 %v3312_v6, 16  ;;  %v9502_v23 = vld [vmem:[#allocation2 + $0x124] sm:$0x1] }
 0x1d3   :  { %v3689_v55 = vrot.slane %v3687_v28, 4  ;;  %v3692_v7 = vrot.slane %v3690_v39, 5  ;;  %v7107_v16 = vcombine.low %v3643_v53, %v3657_v13  ;;  %v3684_v62 = vrot.slane %v3682_v58, 5  ;;  %v8451_v37 = vld [vmem:[#allocation2 + $0xf8] sm:$0xf] }
 0x1d4   :  { %v3679_v44 = vor.u32 %v3678_v12, %v3675_v20  ;;  %v3696_v3 = vshll.u32 %v9487_v50, 16  ;;  %v3703_v22 = vrot.slane %v3701_v49, 4  ;;  %v3704_v57 = vshll.u32 %v3312_v6, 16 }
 0x1d5   :  { %v3693_v54 = vor.u32 %v3692_v7, %v3689_v55  ;;  %v3710_v32 = vshll.u32 %v9490_v27, 16  ;;  %7855 = vmatmul.mubr.msk.bf16.gmra.mrb[8].mxu1 %vm1802_vm10, %v7107_v16  ;;  %v6968_v21 = vcombine.low %v9263_v19, %v8451_v37  ;;  %v3715_v41 = vshrl.u32 %v3314_v40, 16  ;;  %v3318_v55 = vld [vmem:[#allocation2 + $0x128] sm:$0xf]  ;;  %v9512_v16 = vld [vmem:[#allocation2 + $0x12c] sm:$0x1] }
 0x1d6   :  { %v3680_v1 = vrot.slane %v3679_v44, 4  ;;  %v3718_v29 = vshll.u32 %v3314_v40, 16  ;;  %v3671_v20 = vsel %vm8886_vm9, %v3666_v56, %v3670_v59  ;;  %v3706_v28 = vrot.slane %v3704_v57, 5  ;;  %v3320_v57 = vld [vmem:[#allocation2 + $0x130] sm:$0xf] }
 0x1d7   :  { %v3694_v58 = vrot.slane %v3693_v54, 4  ;;  %v3724_v39 = vshll.u32 %v9495_v33, 16  ;;  %7738 = vmatprep.mubr.msk.bf16.mxu0 %vm1802_vm10, %v6968_v21  ;;  %v3717_v53 = vrot.slane %v3715_v41, 4  ;;  %v3729_v13 = vshrl.u32 %v3316_v63, 16  ;;  %v8453_v37 = vld [vmem:[#allocation2 + $0x108] sm:$0xf] }
 0x1d8   :  { %v3685_v6 = vsel %vm8886_vm9, %v3680_v1, %v3684_v62  ;;  %v3720_v12 = vrot.slane %v3718_v29, 5  ;;  %v3698_v19 = vrot.slane %v3696_v3, 5  ;;  %v3707_v49 = vor.u32 %v3706_v28, %v3703_v22  ;;  %v8452_v1 = vld [vmem:[#allocation2 + $0x100] sm:$0xf]  ;;  %v9518_v28 = vld [vmem:[#allocation2 + $0x134] sm:$0x1] }
 0x1d9   :  { %v7108_v7 = vcombine.low %v3671_v20, %v3685_v6  ;;  %v3712_v40 = vrot.slane %v3710_v32, 5  ;;  %v3731_v59 = vrot.slane %v3729_v13, 4  ;;  %v3732_v44 = vshll.u32 %v3316_v63, 16 }
 0x1da   :  { %v3721_v56 = vor.u32 %v3720_v12, %v3717_v53  ;;  %v3738_v54 = vshll.u32 %v9502_v23, 16  ;;  %v3708_v62 = vrot.slane %v3707_v49, 4  ;;  %v6969_v21 = vcombine.low %v8452_v1, %v8453_v37  ;;  %v4091_v1 = vld [vmem:[#allocation2 + $0x8] sm:$0xe] }
 0x1db   :  { %7858 = vmatprep.mubr.msk.bf16.mxu1 %vm1802_vm10, %v7108_v7  ;;  %v3743_v41 = vshrl.u32 %v3318_v55, 16  ;;  %v3746_v29 = vshll.u32 %v3318_v55, 16  ;;  %v3699_v3 = vsel %vm8886_vm9, %v3694_v58, %v3698_v19  ;;  %v3726_v32 = vrot.slane %v3724_v39, 5 }
 0x1dc   :  { %v3722_v22 = vrot.slane %v3721_v56, 4  ;;  %v3734_v20 = vrot.slane %v3732_v44, 5  ;;  %v3713_v63 = vsel %vm8886_vm9, %v3708_v62, %v3712_v40  ;;  %7739 = vmatmul.mubr.msk.bf16.gmra.mrb[56].mxu0 %vm1802_vm10, %v6969_v21  ;;  %v3757_v12 = vshrl.u32 %v3320_v57, 16  ;;  %v4092_v44 = vld [vmem:[#allocation2 + $0x10] sm:$0xe] }
 0x1dd   :  { %v3745_v6 = vrot.slane %v3743_v41, 4  ;;  %v3748_v53 = vrot.slane %v3746_v29, 5  ;;  %v7109_v13 = vcombine.low %v3699_v3, %v3713_v63  ;;  %v3740_v49 = vrot.slane %v3738_v54, 5  ;;  %v4093_v41 = vld [vmem:[#allocation2 + $0x18] sm:$0xe] }
 0x1de   :  { %v3735_v7 = vor.u32 %v3734_v20, %v3731_v59  ;;  %v3752_v55 = vshll.u32 %v9512_v16, 16  ;;  %v3759_v19 = vrot.slane %v3757_v12, 4  ;;  %v3760_v39 = vshll.u32 %v3320_v57, 16  ;;  %v8454_v29 = vld [vmem:[#allocation2 + $0xc] sm:$0x1] }
 0x1df   :  { %v3749_v58 = vor.u32 %v3748_v53, %v3745_v6  ;;  %v3766_v56 = vshll.u32 %v9518_v28, 16  ;;  %7859 = vmatmul.mubr.msk.bf16.gmra.mrb[12].mxu1 %vm1802_vm10, %v7109_v13  ;;  %v6970_v62 = vcombine.low %v9279_v14, %v9283_v46  ;;  %v3727_v59 = vsel %vm8886_vm9, %v3722_v22, %v3726_v32  ;;  %v8455_v63 = vld [vmem:[#allocation2 + $0x14] sm:$0x1]  ;;  %v4094_v14 = vld [vmem:[#allocation2 + $0x20] sm:$0xe] }
 0x1e0   :  { %v3736_v40 = vrot.slane %v3735_v7, 4  ;;  %v3762_v37 = vrot.slane %v3760_v39, 5  ;;  %v7132_v21 = vrot.slane %v4091_v1, 9  ;;  %v4189_v3 = vrot.slane %v8454_v29, 5  ;;  %v2325_v13 = vld [vmem:[#allocation2] sm:$0xe] }
 0x1e1   :  { %v3750_v54 = vrot.slane %v3749_v58, 4  ;;  %7742 = vmatprep.mubr.msk.bf16.mxu0 %vm1802_vm10, %v6970_v62  ;;  %v7133_v20 = vrot.slane %v4092_v44, 9  ;;  %v4193_v6 = vrot.slane %v8455_v63, 5  ;;  %v3754_v53 = vrot.slane %v3752_v55, 5  ;;  %v2326_v7 = vld [vmem:[#allocation2 + $0x8] sm:$0xe] }
 0x1e2   :  { %v3741_v57 = vsel %vm8886_vm9, %v3736_v40, %v3740_v49  ;;  %v3763_v12 = vor.u32 %v3762_v37, %v3759_v19  ;;  %v6971_v32 = vcombine.low %v9291_v35, %v9293_v38  ;;  %v3768_v49 = vrot.slane %v3766_v56, 5  ;;  %v4095_v55 = vld [vmem:[#allocation2 + $0x28] sm:$0xe]  ;;  %v4096_v38 = vld [vmem:[#allocation2 + $0x30] sm:$0xe] }
 0x1e3   :  { %v7110_v46 = vcombine.low %v3727_v59, %v3741_v57  ;;  %v4194_v1 = vsel %vm9535_vm13, %v7133_v20, %v4193_v6  ;;  %v7134_v58 = vrot.slane %v4093_v41, 9  ;;  %v4197_v39 = vrot.slane %v9304_v30, 5  ;;  %v8456_v59 = vld [vmem:[#allocation2 + $0x4] sm:$0x1]  ;;  %v2327_v41 = vld [vmem:[#allocation2 + $0x10] sm:$0xe] }
 0x1e4   :  { %v3755_v19 = vsel %vm8886_vm9, %v3750_v54, %v3754_v53  ;;  %v3764_v44 = vrot.slane %v3763_v12, 4  ;;  %7743 = vmatmul.mubr.msk.bf16.gmra.mrb[60].mxu0 %vm1802_vm10, %v6971_v32  ;;  %v7135_v40 = vrot.slane %v4094_v14, 9  ;;  %v4201_v35 = vrot.slane %v9310_v2, 5  ;;  %v8457_v20 = vld [vmem:[#allocation2 + $0xc] sm:$0x1] }
 0x1e5   :  { %7862 = vmatprep.mubr.msk.bf16.mxu1 %vm1802_vm10, %v7110_v46  ;;  %v4190_v56 = vsel %vm9535_vm13, %v7132_v21, %v4189_v3  ;;  %v6992_v62 = vrot.slane %v2325_v13, 9  ;;  %v2426_v37 = vrot.slane %v8456_v59, 5  ;;  %v6993_v30 = vrot.slane %v2326_v7, 9  ;;  %v2328_v2 = vld [vmem:[#allocation2 + $0x18] sm:$0xe] }
 0x1e6   :  { %v3769_v57 = vsel %vm8886_vm9, %v3764_v44, %v3768_v49  ;;  %v7164_v29 = vcombine.low %v4190_v56, %v4194_v1  ;;  %v9555_v54 = vsel %vm9535_vm13, %v7134_v58, %v4197_v39  ;;  %v2430_v63 = vrot.slane %v8457_v20, 5  ;;  %v4097_v46 = vld [vmem:[#allocation2 + $0x38] sm:$0xe]  ;;  %v4098_v7 = vld [vmem:[#allocation2 + $0x40] sm:$0xe] }
 0x1e7   :  { %v7111_v6 = vcombine.low %v3755_v19, %v3769_v57  ;;  %v4202_v21 = vsel %vm9535_vm13, %v7135_v40, %v4201_v35  ;;  %v2427_v3 = vsel %vm9535_vm13, %v6992_v62, %v2426_v37  ;;  %v7136_v14 = vrot.slane %v4095_v55, 9  ;;  %v8458_v58 = vld [vmem:[#allocation2 + $0x14] sm:$0x1]  ;;  %v2329_v44 = vld [vmem:[#allocation2 + $0x20] sm:$0xe] }
 0x1e8   :  { %v2431_v53 = vsel %vm9535_vm13, %v6993_v30, %v2430_v63  ;;  %v7137_v12 = vrot.slane %v4096_v38, 9  ;;  %v4209_v32 = vrot.slane %v9321_v42, 5  ;;  %v6994_v13 = vrot.slane %v2327_v41, 9  ;;  %v8459_v35 = vld [vmem:[#allocation2 + $0x1c] sm:$0x1] }
 0x1e9   :  { %7863 = vmatmul.mubr.msk.bf16.gmra.mrb[16].mxu1 %vm1802_vm10, %v7111_v6  ;;  %v7024_v49 = vcombine.low %v2427_v3, %v2431_v53  ;;  %v4205_v1 = vrot.slane %v9315_v52, 5  ;;  %v2434_v39 = vrot.slane %v8458_v58, 5  ;;  %v6995_v19 = vrot.slane %v2328_v2, 9  ;;  %v2330_v38 = vld [vmem:[#allocation2 + $0x28] sm:$0xe] }
 0x1ea   :  { %7874 = vmatprep.mubr.msk.bf16.mxu1 %vm1802_vm10, %v7164_v29  ;;  %v7165_v55 = vcombine.low %v9555_v54, %v4202_v21  ;;  %v4210_v40 = vsel %vm9535_vm13, %v7137_v12, %v4209_v32  ;;  %v2438_v42 = vrot.slane %v8459_v35, 5  ;;  %v4099_v56 = vld [vmem:[#allocation2 + $0x58] sm:$0xe]  ;;  %v7138_v62 = vrot.slane %v4097_v46, 9  ;;  %v4100_v30 = vld [vmem:[#allocation2 + $0x60] sm:$0xe] }
 0x1eb   :  { %7754 = vmatprep.mubr.msk.bf16.mxu0 %vm1802_vm10, %v7024_v49  ;;  %v2435_v52 = vsel %vm9535_vm13, %v6994_v13, %v2434_v39  ;;  %v7139_v59 = vrot.slane %v4098_v7, 9  ;;  %v4217_v37 = vrot.slane %v9333_v4, 5  ;;  %v4213_v57 = vrot.slane %v9330_v36, 5  ;;  %v8460_v54 = vld [vmem:[#allocation2 + $0x24] sm:$0x1]  ;;  %v8392_v49 = vld [vmem:[%s10643_s3 + $0xc8] sm:$0xff]  }
 0x1ec   :  { %v2439_v41 = vsel %vm9535_vm13, %v6995_v19, %v2438_v42  ;;  %v6996_v29 = vrot.slane %v2329_v44, 9  ;;  %v2442_v20 = vrot.slane %v8460_v54, 5  ;;  %v2331_v63 = vld [vmem:[#allocation2 + $0x30] sm:$0xe]  ;;  %v4206_v2 = vsel %vm9535_vm13, %v7136_v14, %v4205_v1  ;;  %v8461_v3 = vld [vmem:[#allocation2 + $0x2c] sm:$0x1] }
 0x1ed   :  { %v7025_v6 = vcombine.low %v2435_v52, %v2439_v41  ;;  %v6997_v21 = vrot.slane %v2330_v38, 9  ;;  %v2446_v46 = vrot.slane %v8461_v3, 5  ;;  %v2332_v53 = vld [vmem:[#allocation2 + $0x38] sm:$0xe]  ;;  %v7166_v12 = vcombine.low %v4206_v2, %v4210_v40  ;;  %v4102_v58 = vld [vmem:[#allocation2 + $0x70] sm:$0xe] }
 0x1ee   :  { %v9581_v4 = vsel %vm9535_vm13, %v7139_v59, %v4217_v37  ;;  %v7140_v32 = vrot.slane %v4099_v56, 9  ;;  %v4221_v36 = vrot.slane %v9338_v48, 5  ;;  %v7141_v7 = vrot.slane %v4100_v30, 9  ;;  %v8462_v19 = vld [vmem:[#allocation2 + $0x34] sm:$0x1]  ;;  %v8464_v37 = vld [vmem:[%s10643_s3 + $0x68] sm:$0xff]  }
 0x1ef   :  { %7755 = vmatmul.mubr.msk.bf16.vlgmr.msra.gmra.mrb[32].mxu0 %vm1802_vm10, %v7025_v6  ;;  %v2447_v13 = vsel %vm9535_vm13, %v6997_v21, %v2446_v46  ;;  %v4225_v14 = vrot.slane %v9347_v43, 5  ;;  %v6998_v1 = vrot.slane %v2331_v63, 9  ;;  %v9593_v39 = vsel %vm9535_vm13, %v7138_v62, %v4213_v57  ;;  %v4101_v35 = vld [vmem:[#allocation2 + $0x68] sm:$0xe]  ;;  %v2333_v42 = vld [vmem:[#allocation2 + $0x50] sm:$0xe] }
 0x1f0   :  { %v2443_v48 = vsel %vm9535_vm13, %v6996_v29, %v2442_v20  ;;  %v2450_v44 = vrot.slane %v8462_v19, 5  ;;  %v6999_v40 = vrot.slane %v2332_v53, 9  ;;  %7787 = vmatpush3.bf16.msra.mxu0 %v9418_v31  ;;  %v7167_v43 = vcombine.low %v9593_v39, %v9581_v4  ;;  %v8463_v52 = vld [vmem:[#allocation2 + $0x3c] sm:$0x1]  ;;  %v2334_v59 = vld [vmem:[#allocation2 + $0x58] sm:$0xe] }
 0x1f1   :  { %7875 = vmatmul.mubr.msk.bf16.vlgmr.msra.gmra.mrb[20].mxu1 %vm1802_vm10, %v7165_v55  ;;  %v7026_v38 = vcombine.low %v2443_v48, %v2447_v13  ;;  %v9603_v56 = vsel %vm9535_vm13, %v7140_v32, %v4221_v36  ;;  %v2454_v62 = vrot.slane %v8463_v52, 5  ;;  %7788 = vmatprep.subr.bf16.mxu0 %v8464_v37  ;;  %v4226_v31 = vsel %vm9535_vm13, %v7141_v7, %v4225_v14  ;;  %v4103_v57 = vld [vmem:[#allocation2 + $0x78] sm:$0xe]  ;;  %v4104_v29 = vld [vmem:[#allocation2 + $0x80] sm:$0xe]  ;;  %v8393_v21 = vld [vmem:[%s10643_s3 + $0xd0] sm:$0xff]  }
 0x1f2   :  { %7907 = vmatpush3.bf16.msra.mxu1 %v9393_v45  ;;  %7878 = vmatprep.mubr.msk.bf16.mxu1 %vm1802_vm10, %v7166_v12  ;;  %v2451_v55 = vsel %vm9535_vm13, %v6998_v1, %v2450_v44  ;;  %v7143_v30 = vrot.slane %v4102_v58, 9  ;;  %v4233_v41 = vrot.slane %v9373_v9, 5  ;;  %v7142_v45 = vrot.slane %v4101_v35, 9  ;;  %v8465_v63 = vld [vmem:[#allocation2 + $0x54] sm:$0x1] }
 0x1f3   :  { %7758 = vmatprep.mubr.msk.bf16.mxu0 %vm1802_vm10, %v7026_v38  ;;  %7908 = vmatprep.subr.bf16.mxu1 %v8392_v49  ;;  %v2455_v54 = vsel %vm9535_vm13, %v6999_v40, %v2454_v62  ;;  %v7000_v20 = vrot.slane %v2333_v42, 9  ;;  %v2458_v2 = vrot.slane %v8465_v63, 5  ;;  %v2335_v6 = vld [vmem:[#allocation2 + $0x60] sm:$0xe]  ;;  %v4229_v9 = vrot.slane %v9368_v0, 5  ;;  %v8467_v0 = vld [vmem:[%s10643_s3 + $0x70] sm:$0xff]  }
 0x1f4   :  { %v7027_v3 = vcombine.low %v2451_v55, %v2455_v54  ;;  %v7001_v46 = vrot.slane %v2334_v59, 9  ;;  %v8466_v53 = vld [vmem:[#allocation2 + $0x5c] sm:$0x1]  ;;  %v2336_v4 = vld [vmem:[#allocation2 + $0x68] sm:$0xe]  ;;  %7789 = vmatpush3.bf16.msra.mxu0 %v8464_v37  ;;  %v9624_v32 = vsel %vm9535_vm13, %v7143_v30, %v4233_v41  ;;  %v7144_v13 = vrot.slane %v4103_v57, 9 }
 0x1f5   :  { %v2462_v12 = vrot.slane %v8466_v53, 5  ;;  %v2459_v36 = vsel %vm9535_vm13, %v7000_v20, %v2458_v2  ;;  %v4237_v7 = vrot.slane %v9381_v24, 5  ;;  %v4105_v14 = vld [vmem:[#allocation2 + $0x88] sm:$0xe]  ;;  %7790 = vmatprep.subr.bf16.mxu0 %v8467_v0  ;;  %v7145_v58 = vrot.slane %v4104_v29, 9  ;;  %v9666_v53 = vld [vmem:[%s10643_s3 + $0xe0] sm:$0xff]  }
 0x1f6   :  { %7909 = vmatpush3.bf16.msra.mxu1 %v8392_v49  ;;  %v4241_v39 = vrot.slane %v9384_v5, 5  ;;  %v7002_v48 = vrot.slane %v2335_v6, 9  ;;  %v4106_v19 = vld [vmem:[#allocation2 + $0x90] sm:$0xe]  ;;  %v7168_v44 = vcombine.low %v9603_v56, %v4226_v31  ;;  %v8468_v40 = vld [vmem:[#allocation2 + $0x64] sm:$0x1]  ;;  %v9642_v52 = vsel %vm9535_vm13, %v7142_v45, %v4229_v9 }
 0x1f7   :  { %v2463_v1 = vsel %vm9535_vm13, %v7001_v46, %v2462_v12  ;;  %7759 = vmatmul.mubr.msk.bf16.gmra.mrb[36].mxu0 %vm1802_vm10, %v7027_v3  ;;  %v2466_v35 = vrot.slane %v8468_v40, 5  ;;  %v7003_v42 = vrot.slane %v2336_v4, 9  ;;  %v2337_v38 = vld [vmem:[#allocation2 + $0x70] sm:$0xe]  ;;  %7910 = vmatprep.subr.bf16.mxu1 %v8393_v21  ;;  %v8394_v49 = vld [vmem:[%s10643_s3 + $0xd8] sm:$0xff]   ;;  %v7146_v59 = vrot.slane %v4105_v14, 9 }
 0x1f8   :  { %v7028_v24 = vcombine.low %v2459_v36, %v2463_v1  ;;  %v8469_v5 = vld [vmem:[#allocation2 + $0x6c] sm:$0x1]  ;;  %v4245_v56 = vrot.slane %v9402_v8, 5  ;;  %v2338_v37 = vld [vmem:[#allocation2 + $0x78] sm:$0xe]  ;;  %7791 = vmatpush3.bf16.msra.mxu0 %v8467_v0  ;;  %v7169_v31 = vcombine.low %v9642_v52, %v9624_v32  ;;  %v7147_v30 = vrot.slane %v4106_v19, 9 }
 0x1f9   :  { %v2470_v62 = vrot.slane %v8469_v5, 5  ;;  %7879 = vmatmul.mubr.msk.bf16.gmra.mrb[24].mxu1 %vm1802_vm10, %v7167_v43  ;;  %v2467_v55 = vsel %vm9535_vm13, %v7002_v48, %v2466_v35  ;;  %v4249_v41 = vrot.slane %v9405_v18, 5  ;;  %v4107_v57 = vld [vmem:[#allocation2 + $0xa8] sm:$0xe]  ;;  %v4238_v8 = vsel %vm9535_vm13, %v7144_v13, %v4237_v7  ;;  %v8470_v54 = vld [vmem:[#allocation2 + $0x74] sm:$0x1] }
 0x1fa   :  { %7762 = vmatprep.mubr.msk.bf16.mxu0 %vm1802_vm10, %v7028_v24  ;;  %7882 = vmatprep.mubr.msk.bf16.mxu1 %vm1802_vm10, %v7168_v44  ;;  %v4242_v43 = vsel %vm9535_vm13, %v7145_v58, %v4241_v39  ;;  %v7004_v29 = vrot.slane %v2337_v38, 9  ;;  %v2474_v45 = vrot.slane %v8470_v54, 5  ;;  %v4108_v20 = vld [vmem:[#allocation2 + $0xb0] sm:$0xe]  ;;  %v2339_v63 = vld [vmem:[#allocation2 + $0x80] sm:$0xe]  ;;  %v9661_v18 = vsel %vm9535_vm13, %v7146_v59, %v4245_v56 }
 0x1fb   :  { %7911 = vmatpush3.bf16.msra.mxu1 %v8393_v21  ;;  %v2471_v2 = vsel %vm9535_vm13, %v7003_v42, %v2470_v62  ;;  %v7005_v6 = vrot.slane %v2338_v37, 9  ;;  %v8471_v3 = vld [vmem:[#allocation2 + $0x7c] sm:$0x1]  ;;  %v2340_v46 = vld [vmem:[#allocation2 + $0x88] sm:$0xe]  ;;  %v9673_v4 = vsel %vm9535_vm13, %v7147_v30, %v4249_v41  ;;  %v7148_v32 = vrot.slane %v4107_v57, 9 }
 0x1fc   :  { %v2478_v9 = vrot.slane %v8471_v3, 5  ;;  %7912 = vmatprep.subr.bf16.mxu1 %v8394_v49  ;;  %v8472_v21 = vld [vmem:[%s10643_s3 + $0x78] sm:$0xff]   ;;  %v7029_v12 = vcombine.low %v2467_v55, %v2471_v2  ;;  %v4253_v36 = vrot.slane %v9413_v34, 5  ;;  %v2475_v13 = vsel %vm9535_vm13, %v7004_v29, %v2474_v45  ;;  %v4110_v58 = vld [vmem:[#allocation2 + $0xc0] sm:$0xe] }
 0x1fd   :  { %7792 = vmatprep.subr.bf16.mxu0 %v8472_v21  ;;  %v7149_v14 = vrot.slane %v4108_v20, 9  ;;  %v4257_v0 = vrot.slane %v9424_v17, 5  ;;  %v4109_v1 = vld [vmem:[#allocation2 + $0xb8] sm:$0xe]  ;;  %v7006_v48 = vrot.slane %v2339_v63, 9  ;;  %v7007_v24 = vrot.slane %v2340_v46, 9 }
 0x1fe   :  { %7793 = vmatpush3.bf16.msra.mxu0 %v8472_v21  ;;  %v2479_v7 = vsel %vm9535_vm13, %v7005_v6, %v2478_v9  ;;  %v8473_v19 = vld [vmem:[#allocation2 + $0x84] sm:$0x1]  ;;  %v2341_v40 = vld [vmem:[#allocation2 + $0xa0] sm:$0xe]  ;;  %v7170_v34 = vcombine.low %v4238_v8, %v4242_v43  ;;  %v7171_v35 = vcombine.low %v9661_v18, %v9673_v4  ;;  %v8474_v17 = vld [vmem:[#allocation2 + $0x8c] sm:$0x1] }
 0x1ff   :  { %v7030_v39 = vcombine.low %v2475_v13, %v2479_v7  ;;  %v2482_v44 = vrot.slane %v8473_v19, 5  ;;  %7913 = vmatpush3.bf16.msra.mxu1 %v8394_v49  ;;  %7763 = vmatmul.mubr.msk.bf16.gmra.mrb[40].mxu0 %vm1802_vm10, %v7029_v12  ;;  %v9686_v42 = vsel %vm9535_vm13, %v7149_v14, %v4257_v0  ;;  %v2486_v38 = vrot.slane %v8474_v17, 5  ;;  %v2342_v52 = vld [vmem:[#allocation2 + $0xa8] sm:$0xe]  ;;  %v4112_v37 = vld [vmem:[#allocation2 + $0xd0] sm:$0xe] }
 0x200   :  { %v4111_v5 = vld [vmem:[#allocation2 + $0xc8] sm:$0xe]  ;;  %7946 = vmatprep.subr.bf16.mxu1 %v9666_v53  ;;  %v4254_v49 = vsel %vm9535_vm13, %v7148_v32, %v4253_v36  ;;  %v7150_v62 = vrot.slane %v4109_v1, 9  ;;  %v7151_v59 = vrot.slane %v4110_v58, 9  ;;  %v4265_v56 = vrot.slane %v9437_v60, 5 }
 0x201   :  { %7766 = vmatprep.mubr.msk.bf16.mxu0 %vm1802_vm10, %v7030_v39  ;;  %7883 = vmatmul.mubr.msk.bf16.gmra.mrb[28].mxu1 %vm1802_vm10, %v7169_v31  ;;  %v7172_v55 = vcombine.low %v4254_v49, %v9686_v42  ;;  %v4261_v30 = vrot.slane %v9434_v26, 5  ;;  %v7008_v41 = vrot.slane %v2341_v40, 9  ;;  %v8475_v57 = vld [vmem:[#allocation2 + $0xa4] sm:$0x1]  ;;  %v2343_v43 = vld [vmem:[#allocation2 + $0xb0] sm:$0xe]  ;;  %v2483_v29 = vsel %vm9535_vm13, %v7006_v48, %v2482_v44 }
 0x202   :  { %v2490_v8 = vrot.slane %v8475_v57, 5  ;;  %7886 = vmatprep.mubr.msk.bf16.mxu1 %vm1802_vm10, %v7170_v34  ;;  %v2487_v54 = vsel %vm9535_vm13, %v7007_v24, %v2486_v38  ;;  %v7009_v60 = vrot.slane %v2342_v52, 9  ;;  %v8476_v45 = vld [vmem:[#allocation2 + $0xac] sm:$0x1]  ;;  %v9703_v31 = vsel %vm9535_vm13, %v7151_v59, %v4265_v56  ;;  %v2344_v18 = vld [vmem:[#allocation2 + $0xb8] sm:$0xe] }
 0x203   :  { %v2494_v20 = vrot.slane %v8476_v45, 5  ;;  %v7152_v63 = vrot.slane %v4111_v5, 9  ;;  %v4269_v2 = vrot.slane %v9444_v10, 5  ;;  %v4113_v6 = vld [vmem:[#allocation2 + $0xd8] sm:$0xe]  ;;  %v7153_v9 = vrot.slane %v4112_v37, 9 }
 0x204   :  { %v2491_v26 = vsel %vm9535_vm13, %v7008_v41, %v2490_v8  ;;  %v4273_v46 = vrot.slane %v9455_v51, 5  ;;  %v7010_v21 = vrot.slane %v2343_v43, 9  ;;  %v4114_v12 = vld [vmem:[#allocation2 + $0xe0] sm:$0xe]  ;;  %v7031_v4 = vcombine.low %v2483_v29, %v2487_v54  ;;  %v8477_v13 = vld [vmem:[#allocation2 + $0xb4] sm:$0x1] }
 0x205   :  { %v2495_v3 = vsel %vm9535_vm13, %v7009_v60, %v2494_v20  ;;  %v9713_v32 = vsel %vm9535_vm13, %v7150_v62, %v4261_v30  ;;  %v2498_v7 = vrot.slane %v8477_v13, 5  ;;  %v2345_v14 = vld [vmem:[#allocation2 + $0xc0] sm:$0xe]  ;;  %v7011_v10 = vrot.slane %v2344_v18, 9  ;;  %v8478_v0 = vld [vmem:[#allocation2 + $0xbc] sm:$0x1] }
 0x206   :  { %v7032_v36 = vcombine.low %v2491_v26, %v2495_v3  ;;  %v2502_v1 = vrot.slane %v8478_v0, 5  ;;  %v7154_v58 = vrot.slane %v4113_v6, 9  ;;  %v4277_v39 = vrot.slane %v9461_v61, 5  ;;  %v2346_v48 = vld [vmem:[#allocation2 + $0xc8] sm:$0xe] }
 0x207   :  { %7767 = vmatmul.mubr.msk.bf16.gmra.mrb[44].mxu0 %vm1802_vm10, %v7031_v4  ;;  %v7173_v51 = vcombine.low %v9713_v32, %v9703_v31  ;;  %v9721_v19 = vsel %vm9535_vm13, %v7152_v63, %v4269_v2  ;;  %v7155_v44 = vrot.slane %v4114_v12, 9  ;;  %v4281_v24 = vrot.slane %v9464_v11, 5  ;;  %v4115_v40 = vld [vmem:[#allocation2 + $0xf8] sm:$0xe]  ;;  %v8479_v17 = vld [vmem:[#allocation2 + $0xc4] sm:$0x1] }
 0x208   :  { %7770 = vmatprep.mubr.msk.bf16.mxu0 %vm1802_vm10, %v7032_v36  ;;  %v4274_v34 = vsel %vm9535_vm13, %v7153_v9, %v4273_v46  ;;  %v2499_v61 = vsel %vm9535_vm13, %v7010_v21, %v2498_v7  ;;  %v7012_v42 = vrot.slane %v2345_v14, 9  ;;  %v2506_v38 = vrot.slane %v8479_v17, 5  ;;  %v4116_v52 = vld [vmem:[#allocation2 + $0x100] sm:$0xe]  ;;  %v8480_v62 = vld [vmem:[#allocation2 + $0xcc] sm:$0x1] }
 0x209   :  { %7887 = vmatmul.mubr.msk.bf16.gmra.mrb[0].mxu1 %vm1802_vm10, %v7171_v35  ;;  %v9732_v5 = vsel %vm9535_vm13, %v7154_v58, %v4277_v39  ;;  %v9736_v11 = vsel %vm9535_vm13, %v7155_v44, %v4281_v24  ;;  %v7013_v49 = vrot.slane %v2346_v48, 9  ;;  %v2510_v59 = vrot.slane %v8480_v62, 5  ;;  %v2347_v56 = vld [vmem:[#allocation2 + $0xd0] sm:$0xe]  ;;  %v4117_v57 = vld [vmem:[#allocation2 + $0x108] sm:$0xe] }
 0x20a   :  { %7890 = vmatprep.mubr.msk.bf16.mxu1 %vm1802_vm10, %v7172_v55  ;;  %v2503_v37 = vsel %vm9535_vm13, %v7011_v10, %v2502_v1  ;;  %v7175_v35 = vcombine.low %v9732_v5, %v9736_v11  ;;  %v7156_v30 = vrot.slane %v4115_v40, 9  ;;  %v4285_v41 = vrot.slane %v9470_v15, 5  ;;  %v4118_v55 = vld [vmem:[#allocation2 + $0x110] sm:$0xe]  ;;  %v2348_v31 = vld [vmem:[#allocation2 + $0xd8] sm:$0xe] }
 0x20b   :  { %v2507_v8 = vsel %vm9535_vm13, %v7012_v42, %v2506_v38  ;;  %v2511_v43 = vsel %vm9535_vm13, %v7013_v49, %v2510_v59  ;;  %v7157_v29 = vrot.slane %v4116_v52, 9  ;;  %v4289_v54 = vrot.slane %v9477_v25, 5  ;;  %v2349_v63 = vld [vmem:[#allocation2 + $0xf0] sm:$0xe]  ;;  %v2350_v25 = vld [vmem:[#allocation2 + $0xf8] sm:$0xe] }
 0x20c   :  { %v7174_v60 = vcombine.low %v9721_v19, %v4274_v34  ;;  %v7033_v45 = vcombine.low %v2499_v61, %v2503_v37  ;;  %v7034_v20 = vcombine.low %v2507_v8, %v2511_v43  ;;  %v7014_v26 = vrot.slane %v2347_v56, 9  ;;  %v8481_v9 = vld [vmem:[#allocation2 + $0xd4] sm:$0x1]  ;;  %v4119_v4 = vld [vmem:[#allocation2 + $0x118] sm:$0xe] }
 0x20d   :  { %v9752_v15 = vsel %vm9535_vm13, %v7156_v30, %v4285_v41  ;;  %v9756_v2 = vsel %vm9535_vm13, %v7157_v29, %v4289_v54  ;;  %v7158_v18 = vrot.slane %v4117_v57, 9  ;;  %v4293_v6 = vrot.slane %v9487_v50, 5  ;;  %v8482_v36 = vld [vmem:[#allocation2 + $0xdc] sm:$0x1]  ;;  %v8483_v14 = vld [vmem:[#allocation2 + $0xf4] sm:$0x1] }
 0x20e   :  { %v7176_v3 = vcombine.low %v9752_v15, %v9756_v2  ;;  %v2514_v46 = vrot.slane %v8481_v9, 5  ;;  %v7159_v21 = vrot.slane %v4118_v55, 9  ;;  %v4297_v12 = vrot.slane %v9490_v27, 5  ;;  %v4120_v0 = vld [vmem:[#allocation2 + $0x120] sm:$0xe] }
 0x20f   :  { %7771 = vmatmul.mubr.msk.bf16.gmra.mrb[48].mxu0 %vm1802_vm10, %v7033_v45  ;;  %v7015_v32 = vrot.slane %v2348_v31, 9  ;;  %v2518_v13 = vrot.slane %v8482_v36, 5  ;;  %v7016_v7 = vrot.slane %v2349_v63, 9  ;;  %v2522_v10 = vrot.slane %v8483_v14, 5  ;;  %v8484_v58 = vld [vmem:[#allocation2 + $0xfc] sm:$0x1] }
 0x210   :  { %7774 = vmatprep.mubr.msk.bf16.mxu0 %vm1802_vm10, %v7034_v20  ;;  %v9766_v50 = vsel %vm9535_vm13, %v7158_v18, %v4293_v6  ;;  %v9770_v1 = vsel %vm9535_vm13, %v7159_v21, %v4297_v12  ;;  %v7017_v27 = vrot.slane %v2350_v25, 9  ;;  %v2526_v39 = vrot.slane %v8484_v58, 5  ;;  %v4121_v24 = vld [vmem:[#allocation2 + $0x128] sm:$0xe]  ;;  %v4122_v42 = vld [vmem:[#allocation2 + $0x130] sm:$0xe] }
 0x211   :  { %7891 = vmatmul.mubr.msk.bf16.gmra.mrb[4].mxu1 %vm1802_vm10, %v7173_v51  ;;  %v7177_v48 = vcombine.low %v9766_v50, %v9770_v1  ;;  %v7160_v19 = vrot.slane %v4119_v4, 9  ;;  %v4301_v44 = vrot.slane %v9495_v33, 5  ;;  %v2515_v40 = vsel %vm9535_vm13, %v7014_v26, %v2514_v46  ;;  %v2351_v33 = vld [vmem:[#allocation2 + $0x100] sm:$0xe]  ;;  %v2354_v59 = vld [vmem:[#allocation2 + $0x118] sm:$0xe] }
 0x212   :  { %7894 = vmatprep.mubr.msk.bf16.mxu1 %vm1802_vm10, %v7174_v60  ;;  %v7161_v34 = vrot.slane %v4120_v0, 9  ;;  %v4305_v61 = vrot.slane %v9502_v23, 5  ;;  %v2519_v17 = vsel %vm9535_vm13, %v7015_v32, %v2518_v13  ;;  %v2523_v51 = vsel %vm9535_vm13, %v7016_v7, %v2522_v10  ;;  %v2352_v30 = vld [vmem:[#allocation2 + $0x108] sm:$0xe]  ;;  %v8485_v29 = vld [vmem:[#allocation2 + $0x104] sm:$0x1] }
 0x213   :  { %v2527_v38 = vsel %vm9535_vm13, %v7017_v27, %v2526_v39  ;;  %v4302_v52 = vsel %vm9535_vm13, %v7160_v19, %v4301_v44  ;;  %v7162_v62 = vrot.slane %v4121_v24, 9  ;;  %v4309_v23 = vrot.slane %v9512_v16, 5  ;;  %v2353_v55 = vld [vmem:[#allocation2 + $0x110] sm:$0xe]  ;;  %v8486_v20 = vld [vmem:[#allocation2 + $0x11c] sm:$0x1] }
 0x214   :  { %v4306_v49 = vsel %vm9535_vm13, %v7161_v34, %v4305_v61  ;;  %v7035_v56 = vcombine.low %v2515_v40, %v2519_v17  ;;  %v7163_v41 = vrot.slane %v4122_v42, 9  ;;  %v4313_v57 = vrot.slane %v9518_v28, 5  ;;  %v8487_v28 = vld [vmem:[#allocation2 + $0x10c] sm:$0x1]  ;;  %v8488_v25 = vld [vmem:[#allocation2 + $0x114] sm:$0x1] }
 0x215   :  { %v7178_v37 = vcombine.low %v4302_v52, %v4306_v49  ;;  %v7036_v8 = vcombine.low %v2523_v51, %v2527_v38  ;;  %v7018_v43 = vrot.slane %v2351_v33, 9  ;;  %v2530_v54 = vrot.slane %v8485_v29, 5  ;;  %v2355_v12 = vld [vmem:[#allocation2 + $0x120] sm:$0xe]  ;;  %v2356_v4 = vld [vmem:[#allocation2 + $0x128] sm:$0xe] }
 0x216   :  { %v4310_v60 = vsel %vm9535_vm13, %v7162_v62, %v4309_v23  ;;  %v4314_v16 = vsel %vm9535_vm13, %v7163_v41, %v4313_v57  ;;  %v7021_v45 = vrot.slane %v2354_v59, 9  ;;  %v2542_v31 = vrot.slane %v8486_v20, 5  ;;  %v8489_v15 = vld [vmem:[#allocation2 + $0x124] sm:$0x1]  ;;  %v8490_v13 = vld [vmem:[#allocation2 + $0x12c] sm:$0x1] }
 0x217   :  { %7775 = vmatmul.mubr.msk.bf16.gmra.mrb[52].mxu0 %vm1802_vm10, %v7035_v56  ;;  %v7019_v26 = vrot.slane %v2352_v30, 9  ;;  %v2534_v63 = vrot.slane %v8487_v28, 5  ;;  %v7179_v18 = vcombine.low %v4310_v60, %v4314_v16  ;;  %v7020_v6 = vrot.slane %v2353_v55, 9  ;;  %v8398_v50 = vld [vmem:[#allocation2 + $0x8] ss:$8 sps:$4 sm:$0xff]   ;;  %v8417_v42 = vld [vmem:[%s10643_s3 + $0xf8] sm:$0xff]  }
 0x218   :  { %7778 = vmatprep.mubr.msk.bf16.mxu0 %vm1802_vm10, %v7036_v8  ;;  %v2538_v9 = vrot.slane %v8488_v25, 5  ;;  %v2531_v46 = vsel %vm9535_vm13, %v7018_v43, %v2530_v54  ;;  %v2543_v21 = vsel %vm9535_vm13, %v7021_v45, %v2542_v31  ;;  %v7022_v36 = vrot.slane %v2355_v12, 9  ;;  %v8395_v1 = vld [vmem:[#allocation2 + $0x10] ss:$8 sps:$4 sm:$0xff]   ;;  %v8397_v39 = vld [vmem:[#allocation2 + $0x20] ss:$8 sps:$4 sm:$0xff]  }
 0x219   :  { %7895 = vmatmul.mubr.msk.bf16.gmra.mrb[8].mxu1 %vm1802_vm10, %v7175_v35  ;;  %v2535_v5 = vsel %vm9535_vm13, %v7019_v26, %v2534_v63  ;;  %v2546_v2 = vrot.slane %v8489_v15, 5  ;;  %v2550_v7 = vrot.slane %v8490_v13, 5  ;;  %v8400_v27 = vld [vmem:[#allocation2 + $0x18] ss:$8 sps:$4 sm:$0xff]   ;;  %v8402_v58 = vld [vmem:[#allocation2 + $0x28] ss:$8 sps:$4 sm:$0xff]  }
 0x21a   :  { %7898 = vmatprep.mubr.msk.bf16.mxu1 %vm1802_vm10, %v7176_v3  ;;  %v7037_v11 = vcombine.low %v2531_v46, %v2535_v5  ;;  %v2539_v35 = vsel %vm9535_vm13, %v7020_v6, %v2538_v9  ;;  %v7023_v3 = vrot.slane %v2356_v4, 9  ;;  %v8399_v19 = vld [vmem:[#allocation2 + $0x30] ss:$8 sps:$4 sm:$0xff]   ;;  %v8401_v61 = vld [vmem:[#allocation2 + $0x40] ss:$8 sps:$4 sm:$0xff]  }
 0x21b   :  { %v7038_v32 = vcombine.low %v2539_v35, %v2543_v21  ;;  %v2547_v14 = vsel %vm9535_vm13, %v7022_v36, %v2546_v2  ;;  %v8412_v44 = vld [vmem:[%s10643_s3 + $0xf0] sm:$0xff]   ;;  %v8405_v24 = vld [vmem:[#allocation2 + $0x38] ss:$8 sps:$4 sm:$0xff]   ;;  %v9854_v31 = vld [vmem:[#allocation2 + $0x1c] sm:$0x1] }
 0x21c   :  { %v2551_v10 = vsel %vm9535_vm13, %v7023_v3, %v2550_v7  ;;  %v5022_v40 = vld [vmem:[#allocation2 + $0x10] sm:$0xf]  ;;  %v8407_v34 = vld [vmem:[#allocation2 + $0x58] ss:$8 sps:$4 sm:$0xff]   ;;  %v9850_v54 = vld [vmem:[#allocation2 + $0x14] sm:$0x1] }
 0x21d   :  { %v7039_v0 = vcombine.low %v2547_v14, %v2551_v10  ;;  %v8403_v17 = vld [vmem:[#allocation2 + $0x60] ss:$8 sps:$4 sm:$0xff]   ;;  %v5087_v51 = vshrl.u32 %v5022_v40, 16  ;;  %v5090_v38 = vshll.u32 %v5022_v40, 16  ;;  %v8406_v43 = vld [vmem:[#allocation2 + $0x70] ss:$8 sps:$4 sm:$0xff]  }
 0x21e   :  { %v9847_v49 = vld [vmem:[%s10643_s3 + $0x100] sm:$0xff]   ;;  %v8409_v56 = vld [vmem:[#allocation2 + $0x68] ss:$8 sps:$4 sm:$0xff]   ;;  %v5032_v20 = vld [vmem:[#allocation2 + $0x38] sm:$0xf]  ;;  %v5096_v28 = vshll.u32 %v9850_v54, 16 }
 0x21f   :  { %7779 = vmatmul.mubr.msk.bf16.gmra.mrb[56].mxu0 %vm1802_vm10, %v7037_v11  ;;  %v5026_v62 = vld [vmem:[#allocation2 + $0x20] sm:$0xf]  ;;  %v5089_v23 = vrot.slane %v5087_v51, 4  ;;  %v5092_v59 = vrot.slane %v5090_v38, 5  ;;  %v5030_v45 = vld [vmem:[#allocation2 + $0x30] sm:$0xf] }
 0x220   :  { %7782 = vmatprep.mubr.msk.bf16.mxu0 %vm1802_vm10, %v7038_v32  ;;  %v5115_v57 = vshrl.u32 %v5026_v62, 16  ;;  %v5118_v8 = vshll.u32 %v5026_v62, 16  ;;  %v8408_v29 = vld [vmem:[#allocation2 + $0x80] ss:$8 sps:$4 sm:$0xff]   ;;  %v9858_v9 = vld [vmem:[#allocation2 + $0x24] sm:$0x1] }
 0x221   :  { %7899 = vmatmul.mubr.msk.bf16.gmra.mrb[12].mxu1 %vm1802_vm10, %v7177_v48  ;;  %v8404_v48 = vld [vmem:[%s10643_s3 + $0xe8] sm:$0xff]   ;;  %v5093_v55 = vor.u32 %v5092_v59, %v5089_v23  ;;  %v5034_v26 = vld [vmem:[#allocation2 + $0x40] sm:$0xf]  ;;  %v5143_v46 = vshrl.u32 %v5030_v45, 16  ;;  %v5146_v21 = vshll.u32 %v5030_v45, 16  ;;  %v5157_v12 = vshrl.u32 %v5032_v20, 16 }
 0x222   :  { %7902 = vmatprep.mubr.msk.bf16.mxu1 %vm1802_vm10, %v7178_v37  ;;  %v5028_v37 = vld [vmem:[#allocation2 + $0x28] sm:$0xf]  ;;  %v5120_v6 = vrot.slane %v5118_v8, 5  ;;  %v5160_v5 = vshll.u32 %v5032_v20, 16  ;;  %v5110_v35 = vshll.u32 %v9854_v31, 16  ;;  %v5171_v2 = vshrl.u32 %v5034_v26, 16 }
 0x223   :  { %v5129_v60 = vshrl.u32 %v5028_v37, 16  ;;  %v5132_v16 = vshll.u32 %v5028_v37, 16  ;;  %v5036_v25 = vld [vmem:[#allocation2 + $0x48] sm:$0xf]  ;;  %v5094_v11 = vrot.slane %v5093_v55, 4  ;;  %v5174_v3 = vshll.u32 %v5034_v26, 16 }
 0x224   :  { %v8410_v36 = vld [vmem:[#allocation2 + $0x90] ss:$8 sps:$4 sm:$0xff]   ;;  %v9861_v15 = vld [vmem:[#allocation2 + $0x2c] sm:$0x1]  ;;  %v5185_v13 = vshrl.u32 %v5036_v25, 16  ;;  %v5188_v7 = vshll.u32 %v5036_v25, 16 }
 0x225   :  { %v5131_v4 = vrot.slane %v5129_v60, 4  ;;  %v5134_v32 = vrot.slane %v5132_v16, 5  ;;  %v5098_v14 = vrot.slane %v5096_v28, 5  ;;  %v5112_v40 = vrot.slane %v5110_v35, 5  ;;  %v5040_v38 = vld [vmem:[#allocation2 + $0x68] sm:$0xf] }
 0x226   :  { %v5190_v51 = vrot.slane %v5188_v7, 5  ;;  %v9876_v37 = vld [vmem:[#allocation2 + $0x3c] sm:$0x1]  ;;  %v5213_v55 = vshrl.u32 %v5040_v38, 16  ;;  %v5216_v60 = vshll.u32 %v5040_v38, 16 }
 0x227   :  { %7783 = vmatmul.mubr.msk.bf16.gmra.mrb[60].mxu0 %vm1802_vm10, %v7039_v0  ;;  %v8413_v16 = vld [vmem:[#allocation2 + $0xc0] ss:$8 sps:$4 sm:$0xff]  }
 0x228   :  { %7794 = vmatprep.mubr.msk.bf16.mxu0 %vm1802_vm10, %v8398_v50  ;;  %v5124_v50 = vshll.u32 %v9858_v9, 16  ;;  %v8415_v38 = vld [vmem:[#allocation2 + $0xe0] ss:$8 sps:$4 sm:$0xff]  }
 0x229   :  { %7903 = vmatmul.mubr.msk.bf16.gmra.mrb[16].mxu1 %vm1802_vm10, %v7179_v18  ;;  %v5117_v18 = vrot.slane %v5115_v57, 4  ;;  %v9878_v57 = vld [vmem:[#allocation2 + $0x44] sm:$0x1] }
 0x22a   :  { %7914 = vmatprep.mubr.msk.bf16.mxu1 %vm1802_vm10, %v8395_v1  ;;  %v9864_v1 = vld [vmem:[#allocation2 + $0x34] sm:$0x1]  ;;  %v5180_v25 = vshll.u32 %v9878_v57, 16 }
 0x22b   :  { %v5121_v0 = vor.u32 %v5120_v6, %v5117_v18  ;;  %v8414_v18 = vld [vmem:[#allocation2 + $0xd0] ss:$8 sps:$4 sm:$0xff]   ;;  %v5166_v6 = vshll.u32 %v9876_v37, 16  ;;  %v5969_v47 = vrot.slane %v9864_v1, 5 }
 0x22f   :  { %7795 = vmatmul.mubr.msk.bf16.vlgmr.msra.gmra.mrb[32].mxu0 %vm1802_vm10, %v8400_v27  ;;  %v5145_v27 = vrot.slane %v5143_v46, 4  ;;  %v9887_v46 = vld [vmem:[#allocation2 + $0x64] sm:$0x1] }
 0x230   :  { %7798 = vmatprep.mubr.msk.bf16.mxu0 %vm1802_vm10, %v8402_v58  ;;  %v5148_v58 = vrot.slane %v5146_v21, 5 }
 0x231   :  { %7915 = vmatmul.mubr.msk.bf16.vlgmr.msra.gmra.mrb[20].mxu1 %vm1802_vm10, %v8397_v39  ;;  %v5159_v39 = vrot.slane %v5157_v12, 4 }
 0x232   :  { %7947 = vmatpush3.bf16.msra.mxu1 %v9666_v53  ;;  %7918 = vmatprep.mubr.msk.bf16.mxu1 %vm1802_vm10, %v8399_v19  ;;  %v5024_v53 = vld [vmem:[#allocation2 + $0x18] sm:$0xf]  ;;  %v5038_v19 = vld [vmem:[#allocation2 + $0x60] sm:$0xf] }
 0x233   :  { %7948 = vmatprep.subr.bf16.mxu1 %v8404_v48  ;;  %v5101_v33 = vshrl.u32 %v5024_v53, 16  ;;  %v5104_v52 = vshll.u32 %v5024_v53, 16  ;;  %v5176_v53 = vrot.slane %v5174_v3, 5  ;;  %v5199_v62 = vshrl.u32 %v5038_v19, 16  ;;  %v5044_v3 = vld [vmem:[#allocation2 + $0x78] sm:$0xf] }
 0x234   :  { %v5202_v23 = vshll.u32 %v5038_v19, 16  ;;  %v5046_v19 = vld [vmem:[#allocation2 + $0x80] sm:$0xf] }
 0x235   :  { %v5103_v30 = vrot.slane %v5101_v33, 4  ;;  %v5106_v41 = vrot.slane %v5104_v52, 5  ;;  %v9871_v33 = vrot.slane %v5124_v50, 5  ;;  %v5152_v52 = vshll.u32 %v9864_v1, 16  ;;  %v5863_v1 = vld [vmem:[#allocation2 + $0x60] sm:$0xe] }
 0x236   :  { %7949 = vmatpush3.bf16.msra.mxu1 %v8404_v48  ;;  %v5162_v48 = vrot.slane %v5160_v5, 5  ;;  %v5201_v21 = vrot.slane %v5199_v62, 4  ;;  %v5204_v12 = vrot.slane %v5202_v23, 5  ;;  %v9910_v62 = vld [vmem:[#allocation2 + $0x7c] sm:$0x1]  ;;  %v5255_v23 = vshrl.u32 %v5046_v19, 16 }
 0x237   :  { %7799 = vmatmul.mubr.msk.bf16.gmra.mrb[36].mxu0 %vm1802_vm10, %v8405_v24  ;;  %7950 = vmatprep.subr.bf16.mxu1 %v8412_v44  ;;  %v5107_v63 = vor.u32 %v5106_v41, %v5103_v30  ;;  %v5099_v24 = vsel %vm8886_vm9, %v5094_v11, %v5098_v14  ;;  %v5149_v30 = vor.u32 %v5148_v58, %v5145_v27  ;;  %v5154_v35 = vrot.slane %v5152_v52, 5 }
 0x238   :  { %7802 = vmatprep.mubr.msk.bf16.mxu0 %vm1802_vm10, %v8407_v34  ;;  %v5135_v34 = vor.u32 %v5134_v32, %v5131_v4  ;;  %v5163_v41 = vor.u32 %v5162_v48, %v5159_v39  ;;  %v9892_v32 = vld [vmem:[#allocation2 + $0x6c] sm:$0x1]  ;;  %v5168_v27 = vrot.slane %v5166_v6, 5  ;;  %v5182_v58 = vrot.slane %v5180_v25, 5 }
 0x239   :  { %7919 = vmatmul.mubr.msk.bf16.gmra.mrb[24].mxu1 %vm1802_vm10, %v8401_v61  ;;  %v5108_v10 = vrot.slane %v5107_v63, 4  ;;  %v5138_v61 = vshll.u32 %v9861_v15, 16  ;;  %v5042_v63 = vld [vmem:[#allocation2 + $0x70] sm:$0xf]  ;;  %v5150_v11 = vrot.slane %v5149_v30, 4  ;;  %10672 = vst [vmem:[#allocation6_spill] sm:$0xff] %v9892_v32  ;;  %v5205_v39 = vor.u32 %v5204_v12, %v5201_v21 }
 0x23a   :  { %7922 = vmatprep.mubr.msk.bf16.mxu1 %vm1802_vm10, %v8403_v17  ;;  %7951 = vmatpush3.bf16.msra.mxu1 %v8412_v44  ;;  %v8411_v44 = vld [vmem:[#allocation2 + $0xb0] ss:$8 sps:$4 sm:$0xff]   ;;  %v5187_v17 = vrot.slane %v5185_v13, 4  ;;  %v5136_v45 = vrot.slane %v5135_v34, 4  ;;  %v5164_v4 = vrot.slane %v5163_v41, 4  ;;  %v5227_v13 = vshrl.u32 %v5042_v63, 16 }
 0x23b   :  { %7952 = vmatprep.subr.bf16.mxu1 %v8417_v42  ;;  %v5113_v59 = vsel %vm8886_vm9, %v5108_v10, %v5112_v40  ;;  %v5230_v7 = vshll.u32 %v5042_v63, 16  ;;  %v5208_v48 = vshll.u32 %v9887_v46, 16  ;;  %v5241_v40 = vshrl.u32 %v5044_v3, 16  ;;  %v8416_v63 = vld [vmem:[#allocation2 + $0x100] ss:$8 sps:$4 sm:$0xff]  }
 0x23c   :  { %v9880_v8 = vcombine.low %v5099_v24, %v5113_v59  ;;  %v5191_v26 = vor.u32 %v5190_v51, %v5187_v17  ;;  %v5222_v24 = vshll.u32 %v9892_v32, 16  ;;  %v5244_v34 = vshll.u32 %v5044_v3, 16  ;;  %v5052_v12 = vld [vmem:[#allocation2 + $0x98] sm:$0xf]  ;;  %v5871_v32 = vld [vmem:[#allocation2 + $0xb0] sm:$0xe] }
 0x23d   :  { %v5229_v17 = vrot.slane %v5227_v13, 4  ;;  %v5232_v51 = vrot.slane %v5230_v7, 5  ;;  %v5258_v59 = vshll.u32 %v5046_v19, 16  ;;  %v5206_v41 = vrot.slane %v5205_v39, 4  ;;  %v9933_v39 = vld [vmem:[#allocation2 + $0x8c] sm:$0x1] }
 0x23e   :  { %7953 = vmatpush3.bf16.msra.mxu1 %v8417_v42  ;;  %v5173_v42 = vrot.slane %v5171_v2, 4  ;;  %v5218_v2 = vrot.slane %v5216_v60, 5  ;;  %v5048_v60 = vld [vmem:[#allocation2 + $0x88] sm:$0xf]  ;;  %v5250_v21 = vshll.u32 %v9910_v62, 16 }
 0x23f   :  { %7803 = vmatmul.mubr.msk.bf16.gmra.mrb[40].mxu0 %vm1802_vm10, %v8409_v56  ;;  %7986 = vmatprep.subr.bf16.mxu1 %v9847_v49  ;;  %v5122_v56 = vrot.slane %v5121_v0, 4  ;;  %v5192_v0 = vrot.slane %v5191_v26, 4  ;;  %v5246_v26 = vrot.slane %v5244_v34, 5  ;;  %v5233_v25 = vor.u32 %v5232_v51, %v5229_v17  ;;  %v8419_v17 = vld [vmem:[#allocation2 + $0x120] ss:$8 sps:$4 sm:$0xff]  }
 0x240   :  { %v5177_v20 = vor.u32 %v5176_v53, %v5173_v42  ;;  %v9904_v53 = vld [vmem:[#allocation2 + $0x74] sm:$0x1] }
 0x241   :  { %7923 = vmatmul.mubr.msk.bf16.gmra.mrb[28].mxu1 %vm1802_vm10, %v8406_v43  ;;  %v5140_v43 = vrot.slane %v5138_v61, 5  ;;  %v5127_v5 = vsel %vm8886_vm9, %v5122_v56, %v9871_v33  ;;  %v5169_v61 = vsel %vm8886_vm9, %v5164_v4, %v5168_v27  ;;  %v5272_v4 = vshll.u32 %v5048_v60, 16 }
 0x242   :  { %7926 = vmatprep.mubr.msk.bf16.mxu1 %vm1802_vm10, %v8408_v29  ;;  %v9882_v29 = vld [vmem:[#allocation2 + $0x4c] sm:$0x1]  ;;  %v5178_v10 = vrot.slane %v5177_v20, 4  ;;  %v5243_v20 = vrot.slane %v5241_v40, 4 }
 0x243   :  { %v5194_v28 = vshll.u32 %v9882_v29, 16  ;;  %v5141_v14 = vsel %vm8886_vm9, %v5136_v45, %v5140_v43  ;;  %v5210_v43 = vrot.slane %v5208_v48, 5  ;;  %v5236_v45 = vshll.u32 %v9904_v53, 16 }
 0x244   :  { %v5183_v33 = vsel %vm8886_vm9, %v5178_v10, %v5182_v58  ;;  %v9912_v56 = vcombine.low %v5127_v5, %v5141_v14  ;;  %v5257_v5 = vrot.slane %v5255_v23, 4  ;;  %v5247_v10 = vor.u32 %v5246_v26, %v5243_v20  ;;  %v5058_v23 = vld [vmem:[#allocation2 + $0xc0] sm:$0xf] }
 0x245   :  { %v5196_v50 = vrot.slane %v5194_v28, 5  ;;  %v5050_v28 = vld [vmem:[#allocation2 + $0x90] sm:$0xf]  ;;  %v9927_v14 = vrot.slane %v5236_v45, 5  ;;  %v9931_v58 = vrot.slane %v5233_v25, 4 }
 0x246   :  { %v5283_v13 = vshrl.u32 %v5050_v28, 16  ;;  %v5286_v7 = vshll.u32 %v5050_v28, 16  ;;  %v9940_v45 = vld [vmem:[#allocation2 + $0x94] sm:$0x1] }
 0x247   :  { %v5197_v52 = vsel %vm8886_vm9, %v5192_v0, %v5196_v50  ;;  %v5297_v0 = vshrl.u32 %v5052_v12, 16  ;;  %v5300_v50 = vshll.u32 %v5052_v12, 16  ;;  %v5342_v12 = vshll.u32 %v5058_v23, 16 }
 0x249   :  { %7927 = vmatmul.mubr.msk.bf16.gmra.mrb[0].mxu1 %vm1802_vm10, %v8410_v36  ;;  %v5215_v36 = vrot.slane %v5213_v55, 4  ;;  %v9916_v55 = vld [vmem:[#allocation2 + $0x84] sm:$0x1] }
 0x24a   :  { %7930 = vmatprep.mubr.msk.bf16.mxu1 %vm1802_vm10, %v8411_v44  ;;  %v5155_v44 = vsel %vm8886_vm9, %v5150_v11, %v5154_v35  ;;  %v5260_v11 = vrot.slane %v5258_v59, 5  ;;  %v5269_v35 = vshrl.u32 %v5048_v60, 16  ;;  %v5264_v3 = vshll.u32 %v9916_v55, 16 }
 0x24b   :  { %v5219_v42 = vor.u32 %v5218_v2, %v5215_v36  ;;  %v9914_v30 = vcombine.low %v5155_v44, %v5169_v61  ;;  %v5054_v36 = vld [vmem:[#allocation2 + $0xb0] sm:$0xf]  ;;  %v5211_v2 = vsel %vm8886_vm9, %v5206_v41, %v5210_v43  ;;  %v5274_v61 = vrot.slane %v5272_v4, 5 }
 0x24c   :  { %v5311_v48 = vshrl.u32 %v5054_v36, 16  ;;  %v5314_v19 = vshll.u32 %v5054_v36, 16  ;;  %v8418_v44 = vld [vmem:[#allocation2 + $0x110] ss:$8 sps:$4 sm:$0xff]   ;;  %v5261_v40 = vor.u32 %v5260_v11, %v5257_v5  ;;  %v5271_v34 = vrot.slane %v5269_v35, 4 }
 0x24d   :  { %v5220_v6 = vrot.slane %v5219_v42, 4  ;;  %v5056_v42 = vld [vmem:[#allocation2 + $0xb8] sm:$0xf]  ;;  %v5248_v59 = vrot.slane %v5247_v10, 4  ;;  %v5278_v41 = vshll.u32 %v9933_v39, 16  ;;  %v5299_v43 = vrot.slane %v5297_v0, 4 }
 0x24e   :  { %v5302_v60 = vrot.slane %v5300_v50, 5  ;;  %v5313_v20 = vrot.slane %v5311_v48, 4  ;;  %v5316_v26 = vrot.slane %v5314_v19, 5  ;;  %v5325_v28 = vshrl.u32 %v5056_v42, 16  ;;  %v9948_v11 = vld [vmem:[#allocation2 + $0x9c] sm:$0x1] }
 0x24f   :  { %v5275_v25 = vor.u32 %v5274_v61, %v5271_v34  ;;  %v5239_v5 = vsel %vm8886_vm9, %v9931_v58, %v9927_v14  ;;  %v9952_v10 = vld [vmem:[#allocation2 + $0xb4] sm:$0x1]  ;;  %v9956_v50 = vld [vmem:[#allocation2 + $0xbc] sm:$0x1]  ;;  %v9958_v48 = vld [vmem:[#allocation2 + $0xc4] sm:$0x1] }
 0x250   :  { %v5327_v14 = vrot.slane %v5325_v28, 4  ;;  %v8420_v19 = vld [vmem:[#allocation2 + $0x130] ss:$8 sps:$4 sm:$0xff]   ;;  %v5344_v61 = vrot.slane %v5342_v12, 5 }
 0x251   :  { %7931 = vmatmul.mubr.msk.bf16.gmra.mrb[4].mxu1 %vm1802_vm10, %v8413_v16  ;;  %v5224_v16 = vrot.slane %v5222_v24, 5  ;;  %v5252_v24 = vrot.slane %v5250_v21, 5  ;;  %v5339_v21 = vshrl.u32 %v5058_v23, 16 }
 0x252   :  { %7934 = vmatprep.mubr.msk.bf16.mxu1 %vm1802_vm10, %v8414_v18  ;;  %v9919_v18 = vcombine.low %v5183_v33, %v5197_v52  ;;  %v5285_v33 = vrot.slane %v5283_v13, 4  ;;  %v5288_v52 = vrot.slane %v5286_v7, 5  ;;  %v5303_v13 = vor.u32 %v5302_v60, %v5299_v43  ;;  %v5064_v60 = vld [vmem:[#allocation2 + $0xd8] sm:$0xf] }
 0x253   :  { %v5225_v27 = vsel %vm8886_vm9, %v5220_v6, %v5224_v16  ;;  %v5060_v16 = vld [vmem:[#allocation2 + $0xc8] sm:$0xf]  ;;  %v5262_v6 = vrot.slane %v5261_v40, 4  ;;  %v5306_v7 = vshll.u32 %v9948_v11, 16  ;;  %v5253_v0 = vsel %vm8886_vm9, %v5248_v59, %v5252_v24 }
 0x254   :  { %v9935_v51 = vcombine.low %v5211_v2, %v5225_v27  ;;  %v5289_v35 = vor.u32 %v5288_v52, %v5285_v33  ;;  %v5353_v4 = vshrl.u32 %v5060_v16, 16  ;;  %v5356_v36 = vshll.u32 %v5060_v16, 16  ;;  %v5062_v52 = vld [vmem:[#allocation2 + $0xd0] sm:$0xf] }
 0x255   :  { %v5280_v2 = vrot.slane %v5278_v41, 5  ;;  %v5317_v27 = vor.u32 %v5316_v26, %v5313_v20  ;;  %v5276_v40 = vrot.slane %v5275_v25, 4  ;;  %v5341_v34 = vrot.slane %v5339_v21, 4 }
 0x256   :  { %v5355_v24 = vrot.slane %v5353_v4, 4  ;;  %v5358_v33 = vrot.slane %v5356_v36, 5  ;;  %v9966_v23 = vrot.slane %v5303_v13, 4  ;;  %v9968_v59 = vrot.slane %v5306_v7, 5  ;;  %v9989_v4 = vld [vmem:[#allocation2 + $0xd4] sm:$0x1] }
 0x257   :  { %v5334_v41 = vshll.u32 %v9956_v50, 16  ;;  %v5348_v43 = vshll.u32 %v9958_v48, 16  ;;  %v9976_v20 = vrot.slane %v5317_v27, 4  ;;  %v5281_v28 = vsel %vm8886_vm9, %v5276_v40, %v5280_v2  ;;  %v5865_v27 = vld [vmem:[#allocation2 + $0x70] sm:$0xe] }
 0x258   :  { %v5367_v25 = vshrl.u32 %v5062_v52, 16  ;;  %v5370_v21 = vshll.u32 %v5062_v52, 16  ;;  %v5381_v36 = vshrl.u32 %v5064_v60, 16  ;;  %v5384_v40 = vshll.u32 %v5064_v60, 16  ;;  %v10084_v2 = vld [vmem:[#allocation2 + $0x104] sm:$0x1] }
 0x259   :  { %7935 = vmatmul.mubr.msk.bf16.gmra.mrb[8].mxu1 %vm1802_vm10, %v8415_v38  ;;  %v9937_v38 = vrot.slane %v5264_v3, 5  ;;  %v5292_v3 = vshll.u32 %v9940_v45, 16  ;;  %v10001_v13 = vrot.slane %v5334_v41, 5  ;;  %v10003_v7 = vrot.slane %v5348_v43, 5  ;;  %v5868_v41 = vld [vmem:[#allocation2 + $0x88] sm:$0xe] }
 0x25a   :  { %7938 = vmatprep.mubr.msk.bf16.mxu1 %vm1802_vm10, %v8416_v63  ;;  %v5328_v63 = vshll.u32 %v5056_v42, 16  ;;  %v9963_v42 = vrot.slane %v5289_v35, 4  ;;  %v5359_v35 = vor.u32 %v5358_v33, %v5355_v24  ;;  %v10019_v24 = vrot.slane %v5367_v25, 4 }
 0x25b   :  { %v9974_v16 = vrot.slane %v5292_v3, 5  ;;  %v9991_v3 = vld [vmem:[#allocation2 + $0xe0] sm:$0xf]  ;;  %v10021_v33 = vrot.slane %v5370_v21, 5  ;;  %v5993_v60 = vrot.slane %v9904_v53, 5  ;;  %v5997_v25 = vrot.slane %v9910_v62, 5 }
 0x25c   :  { %v5330_v58 = vrot.slane %v5328_v63, 5  ;;  %v9981_v63 = vld [vmem:[#allocation2 + $0xcc] sm:$0x1]  ;;  %v10024_v43 = vrot.slane %v5359_v35, 4  ;;  %v5870_v21 = vld [vmem:[#allocation2 + $0x98] sm:$0xe] }
 0x25d   :  { %v7285_v62 = vrot.slane %v5868_v41, 9  ;;  %v7287_v41 = vrot.slane %v5870_v21, 9 }
 0x25e   :  { %v5331_v26 = vor.u32 %v5330_v58, %v5327_v14  ;;  %v5866_v14 = vld [vmem:[#allocation2 + $0x78] sm:$0xe]  ;;  %v5869_v58 = vld [vmem:[#allocation2 + $0x90] sm:$0xe] }
 0x261   :  { %7939 = vmatmul.mubr.msk.bf16.gmra.mrb[12].mxu1 %vm1802_vm10, %v8418_v44  ;;  %v5267_v44 = vsel %vm8886_vm9, %v5262_v6, %v9937_v38  ;;  %v9972_v38 = vcombine.low %v5239_v5, %v5253_v0  ;;  %v5345_v6 = vor.u32 %v5344_v61, %v5341_v34  ;;  %v10005_v0 = vld [vmem:[#allocation2 + $0xe8] sm:$0xf]  ;;  %v5867_v34 = vld [vmem:[#allocation2 + $0x80] sm:$0xe] }
 0x262   :  { %7942 = vmatprep.mubr.msk.bf16.mxu1 %vm1802_vm10, %v8419_v17  ;;  %v5320_v17 = vshll.u32 %v9952_v10, 16  ;;  %v9985_v12 = vcombine.low %v5267_v44, %v5281_v28  ;;  %v8422_v61 = vld [vmem:[%s10643_s3 + $0x108] sm:$0xff]   ;;  %v7282_v28 = vrot.slane %v5865_v27, 9  ;;  %v10032_v44 = vrot.slane %v5384_v40, 5  ;;  %v5872_v40 = vld [vmem:[#allocation2 + $0xb8] sm:$0xe] }
 0x263   :  { %v7284_v35 = vrot.slane %v5867_v34, 9  ;;  %v7286_v34 = vrot.slane %v5869_v58, 9  ;;  %v10067_v58 = vld [vmem:[#allocation2 + $0xe4] sm:$0x1]  ;;  %v7289_v52 = vrot.slane %v5872_v40, 9 }
 0x264   :  { %v9987_v5 = vrot.slane %v5320_v17, 5  ;;  %v10017_v17 = vrot.slane %v5345_v6, 4  ;;  %v10040_v53 = vsel %vm9535_vm13, %v7282_v28, %v5993_v60  ;;  %v5873_v28 = vld [vmem:[#allocation2 + $0xc0] sm:$0xe]  ;;  %v6013_v60 = vrot.slane %v9948_v11, 5 }
 0x265   :  { %v5875_v6 = vld [vmem:[#allocation2 + $0xd0] sm:$0xe]  ;;  %v7290_v21 = vrot.slane %v5873_v28, 9 }
 0x266   :  { %v10080_v11 = vsel %vm9535_vm13, %v7287_v41, %v6013_v60  ;;  %v5877_v41 = vld [vmem:[#allocation2 + $0xe0] sm:$0xe]  ;;  %v5878_v60 = vld [vmem:[#allocation2 + $0xe8] sm:$0xe] }
 0x267   :  { %10677 = vst [vmem:[#allocation11_spill] sm:$0xff] %v10080_v11  ;;  %v10109_v11 = vld [vmem:[#allocation2 + $0x11c] sm:$0x1] }
 0x269   :  { %7943 = vmatmul.mubr.msk.bf16.gmra.mrb[16].mxu1 %vm1802_vm10, %v8420_v19  ;;  %v10011_v19 = vrot.slane %v5331_v26, 4  ;;  %v10026_v26 = vrot.slane %v5381_v36, 4  ;;  %v6001_v36 = vrot.slane %v9916_v55, 5 }
 0x26a   :  { %7954 = vmatprep.mubr.msk.bf16.mxu1 %vm1802_vm10, %v9880_v8  ;;  %v7283_v8 = vrot.slane %v5866_v14, 9  ;;  %v6005_v14 = vrot.slane %v9933_v39, 5  ;;  %v8423_v39 = vld [vmem:[%s10643_s3 + $0x110] sm:$0xff]  }
 0x26b   :  { %v10054_v55 = vsel %vm9535_vm13, %v7284_v35, %v6001_v36  ;;  %v5874_v35 = vld [vmem:[#allocation2 + $0xc8] sm:$0xe] }
 0x26c   :  { %v10044_v27 = vsel %vm9535_vm13, %v7283_v8, %v5997_v25  ;;  %10674 = vst [vmem:[#allocation8_spill] sm:$0xff] %v10054_v55  ;;  %v6009_v8 = vrot.slane %v9940_v45, 5  ;;  %v7288_v25 = vrot.slane %v5871_v32, 9  ;;  %v6021_v32 = vrot.slane %v9956_v50, 5  ;;  %v5876_v45 = vld [vmem:[#allocation2 + $0xd8] sm:$0xe] }
 0x26d   :  { %10673 = vst [vmem:[#allocation7_spill] sm:$0xff] %v10044_v27  ;;  %v10093_v50 = vld [vmem:[#allocation2 + $0x10c] sm:$0x1]  ;;  %v7293_v55 = vrot.slane %v5876_v45, 9  ;;  %v7295_v45 = vrot.slane %v5878_v60, 9 }
 0x26e   :  { %v10073_v36 = vsel %vm9535_vm13, %v7286_v34, %v6009_v8  ;;  %v7291_v34 = vrot.slane %v5874_v35, 9  ;;  %v6029_v8 = vrot.slane %v9981_v63, 5  ;;  %v10102_v28 = vsel %vm9535_vm13, %v7289_v52, %v6021_v32  ;;  %v5880_v32 = vld [vmem:[#allocation2 + $0x108] sm:$0xe]  ;;  %v10151_v27 = vld [vmem:[#allocation2 + $0x134] sm:$0x1] }
 0x26f   :  { %10676 = vst [vmem:[#allocation10_spill] sm:$0xff] %v10073_v36  ;;  %10679 = vst [vmem:[#allocation13_spill] sm:$0xff] %v10102_v28  ;;  %v6033_v35 = vrot.slane %v9989_v4, 5  ;;  %v7294_v36 = vrot.slane %v5877_v41, 9  ;;  %v6061_v41 = vrot.slane %v10109_v11, 5 }
 0x271   :  { %7955 = vmatmul.mubr.msk.bf16.vlgmr.msra.gmra.mrb[20].mxu1 %vm1802_vm10, %v9912_v56  ;;  %v6017_v56 = vrot.slane %v9952_v10, 5  ;;  %v5879_v10 = vld [vmem:[#allocation2 + $0x100] sm:$0xe] }
 0x272   :  { %7987 = vmatpush3.bf16.msra.mxu1 %v9847_v49  ;;  %7958 = vmatprep.mubr.msk.bf16.mxu1 %vm1802_vm10, %v9914_v30  ;;  %v10060_v49 = vld [vmem:[#allocation2 + $0xdc] sm:$0x1]  ;;  %v10064_v30 = vsel %vm9535_vm13, %v7285_v62, %v6005_v14  ;;  %v10076_v62 = vld [vmem:[#allocation2 + $0xec] sm:$0x1]  ;;  %v6025_v14 = vrot.slane %v9958_v48, 5 }
 0x273   :  { %7988 = vmatprep.subr.bf16.mxu1 %v8422_v61  ;;  %10675 = vst [vmem:[#allocation9_spill] sm:$0xff] %v10064_v30  ;;  %v10090_v40 = vsel %vm9535_vm13, %v7288_v25, %v6017_v56  ;;  %v8424_v48 = vld [vmem:[%s10643_s3 + $0x118] sm:$0xff]   ;;  %v7292_v25 = vrot.slane %v5875_v6, 9  ;;  %v10115_v30 = vsel %vm9535_vm13, %v7291_v34, %v6029_v8  ;;  %v6037_v52 = vrot.slane %v10060_v49, 5  ;;  %v10120_v6 = vld [vmem:[#allocation2 + $0x124] sm:$0x1] }
 0x274   :  { %10678 = vst [vmem:[#allocation12_spill] sm:$0xff] %v10090_v40  ;;  %v10106_v56 = vsel %vm9535_vm13, %v7290_v21, %v6025_v14  ;;  %10681 = vst [vmem:[#allocation15_spill] sm:$0xff] %v10115_v30  ;;  %v6041_v34 = vrot.slane %v10067_v58, 5  ;;  %v5881_v8 = vld [vmem:[#allocation2 + $0x110] sm:$0xe]  ;;  %v6045_v28 = vrot.slane %v10076_v62, 5 }
 0x275   :  { %10680 = vst [vmem:[#allocation14_spill] sm:$0xff] %v10106_v56  ;;  %v10126_v14 = vsel %vm9535_vm13, %v7292_v25, %v6033_v35  ;;  %v7296_v21 = vrot.slane %v5879_v10, 9  ;;  %v5882_v30 = vld [vmem:[#allocation2 + $0x118] sm:$0xe]  ;;  %v10136_v25 = vld [vmem:[#allocation2 + $0x12c] sm:$0x1] }
 0x276   :  { %7989 = vmatpush3.bf16.msra.mxu1 %v8422_v61  ;;  %v10098_v61 = vld [vmem:[#allocation2 + $0x114] sm:$0x1]  ;;  %v10142_v35 = vsel %vm9535_vm13, %v7294_v36, %v6041_v34  ;;  %v10147_v60 = vsel %vm9535_vm13, %v7295_v45, %v6045_v28  ;;  %v6053_v10 = vrot.slane %v10093_v50, 5  ;;  %v5884_v40 = vld [vmem:[#allocation2 + $0x128] sm:$0xe] }
 0x277   :  { %7990 = vmatprep.subr.bf16.mxu1 %v8423_v39  ;;  %10683 = vst [vmem:[#allocation17_spill] sm:$0xff] %v10142_v35  ;;  %10684 = vst [vmem:[#allocation18_spill] sm:$0xff] %v10147_v60  ;;  %v6057_v56 = vrot.slane %v10098_v61, 5  ;;  %v5885_v28 = vld [vmem:[#allocation2 + $0x130] sm:$0xe]  ;;  %v6065_v60 = vrot.slane %v10120_v6, 5 }
 0x278   :  { %v10160_v45 = vld [vmem:[#allocation2 + $0x13c] sm:$0x1]  ;;  %v7301_v35 = vrot.slane %v5884_v40, 9 }
 0x279   :  { %7959 = vmatmul.mubr.msk.bf16.gmra.mrb[24].mxu1 %vm1802_vm10, %v9919_v18  ;;  %v10133_v18 = vsel %vm9535_vm13, %v7293_v55, %v6037_v52  ;;  %v5883_v55 = vld [vmem:[#allocation2 + $0x120] sm:$0xe]  ;;  %v7298_v52 = vrot.slane %v5881_v8, 9 }
 0x27a   :  { %7962 = vmatprep.mubr.msk.bf16.mxu1 %vm1802_vm10, %v9935_v51  ;;  %7991 = vmatpush3.bf16.msra.mxu1 %v8423_v39  ;;  %10682 = vst [vmem:[#allocation16_spill] sm:$0xff] %v10133_v18  ;;  %v6049_v51 = vrot.slane %v10084_v2, 5  ;;  %v7297_v39 = vrot.slane %v5880_v32, 9  ;;  %v7299_v32 = vrot.slane %v5882_v30, 9  ;;  %v7300_v36 = vrot.slane %v5883_v55, 9 }
 0x27b   :  { %7992 = vmatprep.subr.bf16.mxu1 %v8424_v48  ;;  %v10168_v18 = vsel %vm9535_vm13, %v7298_v52, %v6057_v56  ;;  %v7302_v55 = vrot.slane %v5885_v28, 9  ;;  %v6073_v52 = vrot.slane %v10151_v27, 5  ;;  %v5412_v30 = vshll.u32 %v10005_v0, 16  ;;  %v10703_v22 = vld [vmem:[#allocation12_spill] sm:$0xff] }
 0x27c   :  { %v10157_v34 = vsel %vm9535_vm13, %v7296_v21, %v6049_v51  ;;  %v10164_v8 = vsel %vm9535_vm13, %v7297_v39, %v6053_v10  ;;  %v5886_v21 = vld [vmem:[#allocation2 + $0x138] sm:$0xe]  ;;  %v5070_v51 = vld [vmem:[#allocation2 + $0x100] sm:$0xf]  ;;  %v6069_v39 = vrot.slane %v10136_v25, 5  ;;  %v10182_v56 = vsel %vm9535_vm13, %v7300_v36, %v6065_v60 }
 0x27d   :  { %v5423_v60 = vshrl.u32 %v5070_v51, 16  ;;  %v5426_v36 = vshll.u32 %v5070_v51, 16  ;;  %v5072_v10 = vld [vmem:[#allocation2 + $0x108] sm:$0xf] }
 0x27e   :  { %7993 = vmatpush3.bf16.msra.mxu1 %v8424_v48  ;;  %v10175_v48 = vsel %vm9535_vm13, %v7299_v32, %v6061_v41  ;;  %v10190_v40 = vsel %vm9535_vm13, %v7301_v35, %v6069_v39  ;;  %v7303_v41 = vrot.slane %v5886_v21, 9  ;;  %v6077_v32 = vrot.slane %v10160_v45, 5 }
 0x27f   :  { %10685 = vst [vmem:[#allocation19_spill] sm:$0xff] %v10190_v40  ;;  %v5337_v35 = vsel %vm8886_vm9, %v10011_v19, %v10001_v13  ;;  %v10686_v21 = vshll.u32 %v9981_v63, 16  ;;  %v10688_v40 = vshll.u32 %v9991_v3, 16 }
 0x280   :  { %v10211_v51 = vsel %vm9535_vm13, %v7303_v41, %v6077_v32  ;;  %v5414_v32 = vrot.slane %v5412_v30, 5 }
 0x281   :  { %7963 = vmatmul.mubr.msk.bf16.gmra.mrb[28].mxu1 %vm1802_vm10, %v9972_v38  ;;  %v10199_v38 = vsel %vm9535_vm13, %v7302_v55, %v6073_v52  ;;  %v5364_v39 = vrot.slane %v10686_v21, 5  ;;  %v5387_v55 = vor.u32 %v10032_v44, %v10026_v26  ;;  %v10687_v52 = vshrl.u32 %v9991_v3, 16 }
 0x282   :  { %7966 = vmatprep.mubr.msk.bf16.mxu1 %vm1802_vm10, %v9985_v12  ;;  %v5373_v12 = vor.u32 %v10021_v33, %v10019_v24  ;;  %v5400_v13 = vrot.slane %v10688_v40, 5  ;;  %v7319_v63 = vcombine.low %v10199_v38, %v10211_v51  ;;  %v5390_v24 = vshll.u32 %v10060_v49, 16 }
 0x283   :  { %v5397_v28 = vrot.slane %v10687_v52, 4  ;;  %v5365_v19 = vsel %vm8886_vm9, %v10024_v43, %v5364_v39  ;;  %v10689_v33 = vshrl.u32 %v10005_v0, 16  ;;  %v5425_v44 = vrot.slane %v5423_v60, 4 }
 0x284   :  { %v5428_v26 = vrot.slane %v5426_v36, 5  ;;  %v5437_v21 = vshrl.u32 %v5072_v10, 16  ;;  %v5440_v52 = vshll.u32 %v5072_v10, 16  ;;  %v10690_v3 = vsel %vm8886_vm9, %v9966_v23, %v9968_v59 }
 0x285   :  { %v5411_v41 = vrot.slane %v10689_v33, 4  ;;  %v10691_v43 = vsel %vm8886_vm9, %v9963_v42, %v9974_v16  ;;  %v10692_v0 = vsel %vm8886_vm9, %v9976_v20, %v9987_v5  ;;  %v5374_v30 = vrot.slane %v5373_v12, 4  ;;  %v5076_v42 = vld [vmem:[#allocation2 + $0x118] sm:$0xf] }
 0x286   :  { %v7243_v40 = vcombine.low %v10691_v43, %v10690_v3  ;;  %v7244_v49 = vcombine.low %v10692_v0, %v5337_v35  ;;  %v5404_v10 = vshll.u32 %v10067_v58, 16  ;;  %v5351_v23 = vsel %vm8886_vm9, %v10017_v17, %v10003_v7  ;;  %v5074_v3 = vld [vmem:[#allocation2 + $0x110] sm:$0xf]  ;;  %v5078_v7 = vld [vmem:[#allocation2 + $0x120] sm:$0xf] }
 0x287   :  { %v5388_v59 = vrot.slane %v5387_v55, 4  ;;  %v5401_v60 = vor.u32 %v5400_v13, %v5397_v28  ;;  %v5418_v36 = vshll.u32 %v10076_v62, 16  ;;  %v7245_v16 = vcombine.low %v5351_v23, %v5365_v19  ;;  %v5080_v43 = vld [vmem:[#allocation2 + $0x128] sm:$0xf] }
 0x288   :  { %v10693_v39 = vshll.u32 %v9989_v4, 16  ;;  %v5392_v5 = vrot.slane %v5390_v24, 5  ;;  %v5415_v58 = vor.u32 %v5414_v32, %v5411_v41  ;;  %v5429_v35 = vor.u32 %v5428_v26, %v5425_v44 }
 0x289   :  { %7967 = vmatmul.mubr.msk.bf16.gmra.mrb[0].mxu1 %vm1802_vm10, %v7243_v40  ;;  %v5439_v12 = vrot.slane %v5437_v21, 4  ;;  %v5442_v33 = vrot.slane %v5440_v52, 5  ;;  %v5406_v62 = vrot.slane %v5404_v10, 5  ;;  %v5465_v28 = vshrl.u32 %v5076_v42, 16 }
 0x28a   :  { %v5378_v20 = vrot.slane %v10693_v39, 5  ;;  %7970 = vmatprep.mubr.msk.bf16.mxu1 %vm1802_vm10, %v7244_v49  ;;  %v5468_v55 = vshll.u32 %v5076_v42, 16  ;;  %v5393_v13 = vsel %vm8886_vm9, %v5388_v59, %v5392_v5  ;;  %v5402_v4 = vrot.slane %v5401_v60, 4  ;;  %v5082_v60 = vld [vmem:[#allocation2 + $0x130] sm:$0xf] }
 0x28b   :  { %v5420_v19 = vrot.slane %v5418_v36, 5  ;;  %v5432_v24 = vshll.u32 %v10084_v2, 16  ;;  %v5446_v41 = vshll.u32 %v10093_v50, 16  ;;  %v5451_v32 = vshrl.u32 %v5074_v3, 16 }
 0x28c   :  { %v5379_v17 = vsel %vm8886_vm9, %v5374_v30, %v5378_v20  ;;  %v5479_v44 = vshrl.u32 %v5078_v7, 16  ;;  %v5482_v26 = vshll.u32 %v5078_v7, 16  ;;  %v5416_v21 = vrot.slane %v5415_v58, 4  ;;  %v5084_v20 = vld [vmem:[#allocation2 + $0x138] sm:$0xf] }
 0x28d   :  { %v5430_v52 = vrot.slane %v5429_v35, 4  ;;  %v5443_v40 = vor.u32 %v5442_v33, %v5439_v12  ;;  %v5454_v0 = vshll.u32 %v5074_v3, 16  ;;  %v5467_v49 = vrot.slane %v5465_v28, 4 }
 0x28e   :  { %v5470_v30 = vrot.slane %v5468_v55, 5  ;;  %v5493_v10 = vshrl.u32 %v5080_v43, 16  ;;  %v5496_v23 = vshll.u32 %v5080_v43, 16  ;;  %v7246_v42 = vcombine.low %v5379_v17, %v5393_v13 }
 0x28f   :  { %v5434_v59 = vrot.slane %v5432_v24, 5  ;;  %v5407_v2 = vsel %vm8886_vm9, %v5402_v4, %v5406_v62  ;;  %v5448_v50 = vrot.slane %v5446_v41, 5  ;;  %v5481_v36 = vrot.slane %v5479_v44, 4  ;;  %v8426_v24 = vld [vmem:[%s10645_s5 + $0x8] sm:$0xff]  }
 0x290   :  { %v5484_v39 = vrot.slane %v5482_v26, 5  ;;  %v5421_v5 = vsel %vm8886_vm9, %v5416_v21, %v5420_v19  ;;  %v5444_v58 = vrot.slane %v5443_v40, 4  ;;  %v5453_v35 = vrot.slane %v5451_v32, 4  ;;  %v8425_v19 = vld [vmem:[%s10645_s5] sm:$0xff]  }
 0x291   :  { %7971 = vmatmul.mubr.msk.bf16.gmra.mrb[4].mxu1 %vm1802_vm10, %v7245_v16  ;;  %v5456_v12 = vrot.slane %v5454_v0, 5  ;;  %v5435_v33 = vsel %vm8886_vm9, %v5430_v52, %v5434_v59  ;;  %v5471_v3 = vor.u32 %v5470_v30, %v5467_v49  ;;  %v5495_v16 = vrot.slane %v5493_v10, 4  ;;  %8026 = vmatprep.subr.bf16.mxu0 %v8425_v19 }
 0x292   :  { %7974 = vmatprep.mubr.msk.bf16.mxu1 %vm1802_vm10, %v7246_v42  ;;  %v5498_v7 = vrot.slane %v5496_v23, 5  ;;  %v5507_v17 = vshrl.u32 %v5082_v60, 16  ;;  %v5510_v62 = vshll.u32 %v5082_v60, 16  ;;  %v5521_v28 = vshrl.u32 %v5084_v20, 16  ;;  %8027 = vmatpush3.bf16.msra.mxu0 %v8425_v19 }
 0x293   :  { %v5524_v55 = vshll.u32 %v5084_v20, 16  ;;  %v5460_v13 = vshll.u32 %v10098_v61, 16  ;;  %v5485_v4 = vor.u32 %v5484_v39, %v5481_v36  ;;  %v7247_v43 = vcombine.low %v5407_v2, %v5421_v5  ;;  %8028 = vmatprep.subr.bf16.mxu0 %v8426_v24 }
 0x294   :  { %v5449_v41 = vsel %vm8886_vm9, %v5444_v58, %v5448_v50  ;;  %v5457_v32 = vor.u32 %v5456_v12, %v5453_v35  ;;  %v5474_v44 = vshll.u32 %v10109_v11, 16  ;;  %v5472_v21 = vrot.slane %v5471_v3, 4  ;;  %v5855_v35 = vld [vmem:[#allocation2 + $0x10] sm:$0xe] }
 0x295   :  { %v7248_v26 = vcombine.low %v5435_v33, %v5449_v41  ;;  %v5488_v61 = vshll.u32 %v10120_v6, 16  ;;  %v5499_v52 = vor.u32 %v5498_v7, %v5495_v16  ;;  %v5509_v40 = vrot.slane %v5507_v17, 4  ;;  %v5859_v41 = vld [vmem:[#allocation2 + $0x30] sm:$0xe] }
 0x296   :  { %v5512_v0 = vrot.slane %v5510_v62, 5  ;;  %v5523_v49 = vrot.slane %v5521_v28, 4  ;;  %v5526_v30 = vrot.slane %v5524_v55, 5  ;;  %v5486_v10 = vrot.slane %v5485_v4, 4  ;;  %8029 = vmatpush3.bf16.msra.mxu0 %v8426_v24 }
 0x297   :  { %v5502_v23 = vshll.u32 %v10136_v25, 16  ;;  %v5458_v11 = vrot.slane %v5457_v32, 4  ;;  %v5476_v42 = vrot.slane %v5474_v44, 5  ;;  %v5462_v59 = vrot.slane %v5460_v13, 5  ;;  %v5857_v44 = vld [vmem:[#allocation2 + $0x20] sm:$0xe] }
 0x298   :  { %v5490_v60 = vrot.slane %v5488_v61, 5  ;;  %v5500_v6 = vrot.slane %v5499_v52, 4  ;;  %v5513_v50 = vor.u32 %v5512_v0, %v5509_v40  ;;  %v5527_v36 = vor.u32 %v5526_v30, %v5523_v49  ;;  %v5860_v61 = vld [vmem:[#allocation2 + $0x38] sm:$0xe] }
 0x299   :  { %7975 = vmatmul.mubr.msk.bf16.gmra.mrb[8].mxu1 %vm1802_vm10, %v7247_v43  ;;  %v5477_v2 = vsel %vm8886_vm9, %v5472_v21, %v5476_v42  ;;  %v5530_v39 = vshll.u32 %v10160_v45, 16  ;;  %v5504_v25 = vrot.slane %v5502_v23, 5  ;;  %v5463_v5 = vsel %vm8886_vm9, %v5458_v11, %v5462_v59  ;;  %v5856_v45 = vld [vmem:[#allocation2 + $0x18] sm:$0xe]  ;;  %v5858_v43 = vld [vmem:[#allocation2 + $0x28] sm:$0xe] }
 0x29a   :  { %7978 = vmatprep.mubr.msk.bf16.mxu1 %vm1802_vm10, %v7248_v26  ;;  %v5491_v20 = vsel %vm8886_vm9, %v5486_v10, %v5490_v60  ;;  %v5516_v58 = vshll.u32 %v10151_v27, 16  ;;  %v7249_v12 = vcombine.low %v5463_v5, %v5477_v2  ;;  %v5514_v16 = vrot.slane %v5513_v50, 4  ;;  %v5861_v23 = vld [vmem:[#allocation2 + $0x40] sm:$0xe]  ;;  %v5862_v11 = vld [vmem:[#allocation2 + $0x48] sm:$0xe] }
 0x29b   :  { %v5505_v33 = vsel %vm8886_vm9, %v5500_v6, %v5504_v25  ;;  %v5528_v7 = vrot.slane %v5527_v36, 4  ;;  %v5532_v17 = vrot.slane %v5530_v39, 5  ;;  %v7272_v62 = vrot.slane %v5855_v35, 9  ;;  %v5864_v36 = vld [vmem:[#allocation2 + $0x68] sm:$0xe]  ;;  %v10694_v5 = vld [vmem:[#allocation6_spill] sm:$0xff] }
 0x29c   :  { %v7250_v3 = vcombine.low %v5491_v20, %v5505_v33  ;;  %v5953_v28 = vrot.slane %v9850_v54, 5  ;;  %v5518_v55 = vrot.slane %v5516_v58, 5  ;;  %v7273_v13 = vrot.slane %v5856_v45, 9 }
 0x29d   :  { %v5957_v27 = vrot.slane %v9854_v31, 5  ;;  %v5533_v19 = vsel %vm8886_vm9, %v5528_v7, %v5532_v17  ;;  %v7275_v21 = vrot.slane %v5858_v43, 9  ;;  %v5965_v31 = vrot.slane %v9861_v15, 5  ;;  %v10697_v7 = vld [vmem:[#allocation8_spill] sm:$0xff]  ;;  %v10698_v17 = vld [vmem:[#allocation9_spill] sm:$0xff] }
 0x29e   :  { %v5519_v4 = vsel %vm8886_vm9, %v5514_v16, %v5518_v55  ;;  %v5954_v24 = vsel %vm9535_vm13, %v7272_v62, %v5953_v28  ;;  %v7276_v52 = vrot.slane %v5859_v41, 9  ;;  %v7274_v40 = vrot.slane %v5857_v44, 9  ;;  %v10700_v62 = vld [vmem:[#allocation10_spill] sm:$0xff]  ;;  %v10701_v28 = vld [vmem:[#allocation11_spill] sm:$0xff]  ;;  %v10711_v41 = vld [vmem:[#allocation17_spill] sm:$0xff] }
 0x29f   :  { %v7251_v32 = vcombine.low %v5519_v4, %v5533_v19  ;;  %v5958_v54 = vsel %vm9535_vm13, %v7273_v13, %v5957_v27  ;;  %v5961_v0 = vrot.slane %v9858_v9, 5  ;;  %v7277_v49 = vrot.slane %v5860_v61, 9  ;;  %v10704_v13 = vld [vmem:[#allocation13_spill] sm:$0xff]  ;;  %v10706_v4 = vld [vmem:[#allocation14_spill] sm:$0xff]  ;;  %v10707_v19 = vld [vmem:[#allocation15_spill] sm:$0xff] }
 0x2a0   :  { %v7304_v26 = vcombine.low %v5954_v24, %v5958_v54  ;;  %v5973_v30 = vrot.slane %v9876_v37, 5  ;;  %v5966_v10 = vsel %vm9535_vm13, %v7275_v21, %v5965_v31  ;;  %v5970_v15 = vsel %vm9535_vm13, %v7276_v52, %v5969_v47  ;;  %v10709_v24 = vld [vmem:[#allocation16_spill] sm:$0xff]  ;;  %v10716_v52 = vld [vmem:[#allocation19_spill] sm:$0xff] }
 0x2a1   :  { %7979 = vmatmul.mubr.msk.bf16.gmra.mrb[12].mxu1 %vm1802_vm10, %v7249_v12  ;;  %v5962_v42 = vsel %vm9535_vm13, %v7274_v40, %v5961_v0  ;;  %v7278_v9 = vrot.slane %v5861_v23, 9  ;;  %v5977_v37 = vrot.slane %v9878_v57, 5  ;;  %v7279_v2 = vrot.slane %v5862_v11, 9 }
 0x2a2   :  { %7982 = vmatprep.mubr.msk.bf16.mxu1 %vm1802_vm10, %v7250_v3  ;;  %v7305_v59 = vcombine.low %v5962_v42, %v5966_v10  ;;  %v5974_v60 = vsel %vm9535_vm13, %v7277_v49, %v5973_v30  ;;  %v5981_v50 = vrot.slane %v9882_v29, 5  ;;  %v7280_v39 = vrot.slane %v5863_v1, 9 }
 0x2a3   :  { %v7306_v6 = vcombine.low %v5970_v15, %v5974_v60  ;;  %v5985_v20 = vrot.slane %v9887_v46, 5  ;;  %v7281_v25 = vrot.slane %v5864_v36, 9  ;;  %v5989_v58 = vrot.slane %v10694_v5, 5  ;;  %v10695_v46 = vld [vmem:[#allocation7_spill] sm:$0xff]  ;;  %v8428_v36 = vld [vmem:[%s10645_s5 + $0x18] sm:$0xff]  }
 0x2a4   :  { %v5978_v35 = vsel %vm9535_vm13, %v7278_v9, %v5977_v37  ;;  %v5982_v57 = vsel %vm9535_vm13, %v7279_v2, %v5981_v50  ;;  %v10696_v16 = vcombine.low %v10040_v53, %v10695_v46  ;;  %v10699_v45 = vcombine.low %v10697_v7, %v10698_v17  ;;  %v8427_v9 = vld [vmem:[%s10645_s5 + $0x10] sm:$0xff]  }
 0x2a5   :  { %v5986_v29 = vsel %vm9535_vm13, %v7280_v39, %v5985_v20  ;;  %v7307_v12 = vcombine.low %v5978_v35, %v5982_v57  ;;  %v5990_v33 = vsel %vm9535_vm13, %v7281_v25, %v5989_v58  ;;  %v10702_v55 = vcombine.low %v10700_v62, %v10701_v28  ;;  %8030 = vmatprep.subr.bf16.mxu0 %v8427_v9  ;;  %v10425_v35 = vld [vmem:[%s10644_s4] ss:$0 sm:$0xff] }
 0x2a6   :  { %v7308_v3 = vcombine.low %v5986_v29, %v5990_v33  ;;  %v10705_v27 = vcombine.low %v10703_v22, %v10704_v13  ;;  %v10708_v53 = vcombine.low %v10706_v4, %v10707_v19  ;;  %v10710_v43 = vcombine.low %v10126_v14, %v10709_v24  ;;  %8031 = vmatpush3.bf16.msra.mxu0 %v8427_v9 }
 0x2a7   :  { %v10714_v44 = vcombine.low %v10157_v34, %v10164_v8  ;;  %v10715_v14 = vcombine.low %v10168_v18, %v10175_v48  ;;  %v10717_v47 = vcombine.low %v10182_v56, %v10716_v52  ;;  %8032 = vmatprep.subr.bf16.mxu0 %v8428_v36 }
 0x2a9   :  { %7983 = vmatmul.mubr.msk.bf16.gmra.mrb[16].mxu1 %vm1802_vm10, %v7251_v32  ;;  %v10712_v32 = vld [vmem:[#allocation18_spill] sm:$0xff] }
 0x2aa   :  { %7994 = vmatprep.mubr.msk.bf16.mxu1 %vm1802_vm10, %v7304_v26  ;;  %v10713_v54 = vcombine.low %v10711_v41, %v10712_v32  ;;  %8033 = vmatpush3.bf16.msra.mxu0 %v8428_v36 }
 0x2b1   :  { %7995 = vmatmul.mubr.msk.bf16.vlgmr.msra.gmra.mrb[20].mxu1 %vm1802_vm10, %v7305_v59 }
 0x2b2   :  { %7998 = vmatprep.mubr.msk.bf16.mxu1 %vm1802_vm10, %v7306_v6 }
 0x2b9   :  { %7999 = vmatmul.mubr.msk.bf16.gmra.mrb[24].mxu1 %vm1802_vm10, %v7307_v12 }
 0x2ba   :  { %8002 = vmatprep.mubr.msk.bf16.mxu1 %vm1802_vm10, %v7308_v3 }
 0x2c1   :  { %8003 = vmatmul.mubr.msk.bf16.gmra.mrb[28].mxu1 %vm1802_vm10, %v10696_v16 }
 0x2c2   :  { %8006 = vmatprep.mubr.msk.bf16.mxu1 %vm1802_vm10, %v10699_v45 }
 0x2c9   :  { %8007 = vmatmul.mubr.msk.bf16.gmra.mrb[0].mxu1 %vm1802_vm10, %v10702_v55 }
 0x2ca   :  { %8010 = vmatprep.mubr.msk.bf16.mxu1 %vm1802_vm10, %v10705_v27 }
 0x2d1   :  { %8011 = vmatmul.mubr.msk.bf16.gmra.mrb[4].mxu1 %vm1802_vm10, %v10708_v53 }
 0x2d2   :  { %8014 = vmatprep.mubr.msk.bf16.mxu1 %vm1802_vm10, %v10710_v43 }
 0x2d9   :  { %8015 = vmatmul.mubr.msk.bf16.gmra.mrb[8].mxu1 %vm1802_vm10, %v10713_v54 }
 0x2da   :  { %8018 = vmatprep.mubr.msk.bf16.mxu1 %vm1802_vm10, %v10714_v44  ;;  %v10364_v26 = vpop.f32.mrb[44].mxu0 }
 0x2db   :  { %v10366_v21 = vpop.f32.mrb[45].mxu0 }
 0x2dc   :  { %v10368_v31 = vpop.f32.mrb[46].mxu0 }
 0x2dd   :  { %v10370_v61 = vpop.f32.mrb[47].mxu0 }
 0x2e1   :  { %8019 = vmatmul.mubr.msk.bf16.gmra.mrb[12].mxu1 %vm1802_vm10, %v10715_v14 }
 0x2e2   :  { %8022 = vmatprep.mubr.msk.bf16.mxu1 %vm1802_vm10, %v10717_v47  ;;  %v10380_v34 = vpop.f32.mrb[48].mxu0 }
 0x2e3   :  { %v10382_v8 = vpop.f32.mrb[49].mxu0 }
 0x2e4   :  { %v10384_v40 = vpop.f32.mrb[50].mxu0 }
 0x2e5   :  { %v10386_v0 = vpop.f32.mrb[51].mxu0 }
 0x2e9   :  { %8023 = vmatmul.mubr.msk.bf16.gmra.mrb[16].mxu1 %vm1802_vm10, %v7319_v63 }
 0x2ea   :  { %v10392_v18 = vpop.f32.mrb[52].mxu0 }
 0x2eb   :  { %v10394_v48 = vpop.f32.mrb[53].mxu0 }
 0x2ec   :  { %v10396_v56 = vpop.f32.mrb[54].mxu0 }
 0x2ed   :  { %v10398_v49 = vpop.f32.mrb[55].mxu0 }
 0x2f2   :  { %v10400_v30 = vpop.f32.mrb[56].mxu0 }
 0x2f3   :  { %v10402_v10 = vpop.f32.mrb[57].mxu0 }
 0x2f4   :  { %v10404_v23 = vpop.f32.mrb[58].mxu0 }
 0x2f5   :  { %v10406_v15 = vpop.f32.mrb[59].mxu0 }
 0x2fa   :  { %v10408_v11 = vpop.f32.mrb[60].mxu0 }
 0x2fb   :  { %v10410_v38 = vpop.f32.mrb[61].mxu0 }
 0x2fc   :  { %v10412_v51 = vpop.f32.mrb[62].mxu0 }
 0x2fd   :  { %v10414_v63 = vpop.f32.mrb[63].mxu0 }
 0x302   :  { %v7796_v42 = vpop.f32.mrb[32].mxu0 }
 0x303   :  { %v3099_v1 = vpop.f32.mrb[33].mxu0 }
 0x304   :  { %v7797_v59 = vpop.f32.mrb[34].mxu0 }
 0x305   :  { %v3102_v60 = vpop.f32.mrb[35].mxu0 }
 0x30a   :  { %v7800_v6 = vpop.f32.mrb[36].mxu0 }
 0x30b   :  { %v3115_v37 = vpop.f32.mrb[37].mxu0 }
 0x30c   :  { %v7801_v2 = vpop.f32.mrb[38].mxu0 }
 0x30d   :  { %v3118_v50 = vpop.f32.mrb[39].mxu0 }
 0x312   :  { %v7804_v39 = vpop.f32.mrb[40].mxu0 }
 0x313   :  { %v3131_v20 = vpop.f32.mrb[41].mxu0 }
 0x314   :  { %v7805_v25 = vpop.f32.mrb[42].mxu0 }
 0x315   :  { %v3134_v5 = vpop.f32.mrb[43].mxu0 }
 0x384   :  { %v7996_v58 = vpop.f32.mrb[20].mxu1 }
 0x385   :  { %v8074_v57 = vadd.f32 %v7996_v58, %v7796_v42  ;;  %v6241_v29 = vpop.f32.mrb[21].mxu1 }
 0x386   :  { %v8075_v12 = vadd.f32 %v6241_v29, %v3099_v1  ;;  %v7997_v33 = vpop.f32.mrb[22].mxu1 }
 0x387   :  { %v6409_v3 = vadd.f32 %v8074_v57, %v10425_v35  ;;  %v8076_v46 = vadd.f32 %v7997_v33, %v7797_v59  ;;  %v6244_v16 = vpop.f32.mrb[23].mxu1 }
 0x388   :  { %v6407_v7 = vadd.f32 %v8075_v12, %v10425_v35  ;;  %v8077_v17 = vadd.f32 %v6244_v16, %v3102_v60 }
 0x389   :  { %v6410_v45 = vadd.f32 %v8076_v46, %v10425_v35  ;;  %v6441_v28 = vmax.f32 %v6409_v3, 0.0 }
 0x38a   :  { %v6408_v62 = vadd.f32 %v8077_v17, %v10425_v35  ;;  %v6439_v22 = vmax.f32 %v6407_v7, 0.0 }
 0x38b   :  { %v6442_v55 = vmax.f32 %v6410_v45, 0.0 }
 0x38c   :  { %v6440_v13 = vmax.f32 %v6408_v62, 0.0  ;;  %v8000_v27 = vpop.f32.mrb[24].mxu1 }
 0x38d   :  { %v6472_v4 = vpack.c.bf16 %v6442_v55, %v6441_v28  ;;  %v8078_v19 = vadd.f32 %v8000_v27, %v7800_v6  ;;  %v6257_v53 = vpop.f32.mrb[25].mxu1 }
 0x38e   :  { %v6471_v24 = vpack.c.bf16 %v6440_v13, %v6439_v22  ;;  %v8079_v43 = vadd.f32 %v6257_v53, %v3115_v37  ;;  %v8001_v41 = vpop.f32.mrb[26].mxu1 }
 0x38f   :  { %v6413_v32 = vadd.f32 %v8078_v19, %v10425_v35  ;;  %v8080_v54 = vadd.f32 %v8001_v41, %v7801_v2  ;;  %v6260_v44 = vpop.f32.mrb[27].mxu1 }
 0x390   :  { %v6411_v14 = vadd.f32 %v8079_v43, %v10425_v35  ;;  %v8081_v52 = vadd.f32 %v6260_v44, %v3118_v50  ;;  %8034 = vmatprep.mubr.msk.bf16.mxu0 %vm1802_vm10, %v6471_v24 }
 0x391   :  { %v6414_v47 = vadd.f32 %v8080_v54, %v10425_v35  ;;  %8035 = vmatmul.mubr.msk.bf16.vlgmr.msra.gmra.mrb[64].mxu0 %vm1802_vm10, %v6472_v4  ;;  %v6445_v1 = vmax.f32 %v6413_v32, 0.0 }
 0x392   :  { %v6412_v42 = vadd.f32 %v8081_v52, %v10425_v35  ;;  %v6443_v60 = vmax.f32 %v6411_v14, 0.0 }
 0x393   :  { %v6446_v59 = vmax.f32 %v6414_v47, 0.0 }
 0x394   :  { %v6444_v9 = vmax.f32 %v6412_v42, 0.0  ;;  %v8004_v6 = vpop.f32.mrb[28].mxu1 }
 0x395   :  { %v6474_v37 = vpack.c.bf16 %v6446_v59, %v6445_v1  ;;  %v8082_v36 = vadd.f32 %v8004_v6, %v7804_v39  ;;  %v6273_v2 = vpop.f32.mrb[29].mxu1 }
 0x396   :  { %v6473_v58 = vpack.c.bf16 %v6444_v9, %v6443_v60  ;;  %v8083_v57 = vadd.f32 %v6273_v2, %v3131_v20  ;;  %v8005_v29 = vpop.f32.mrb[30].mxu1 }
 0x397   :  { %v6417_v50 = vadd.f32 %v8082_v36, %v10425_v35  ;;  %v8084_v12 = vadd.f32 %v8005_v29, %v7805_v25  ;;  %v6276_v33 = vpop.f32.mrb[31].mxu1 }
 0x398   :  { %v6415_v3 = vadd.f32 %v8083_v57, %v10425_v35  ;;  %v8085_v46 = vadd.f32 %v6276_v33, %v3134_v5  ;;  %8038 = vmatprep.mubr.msk.bf16.mxu0 %vm1802_vm10, %v6473_v58 }
 0x399   :  { %v6418_v16 = vadd.f32 %v8084_v12, %v10425_v35  ;;  %8039 = vmatmul.mubr.msk.bf16.gmra.mrb[68].mxu0 %vm1802_vm10, %v6474_v37  ;;  %v6449_v39 = vmax.f32 %v6417_v50, 0.0 }
 0x39a   :  { %v6416_v7 = vadd.f32 %v8085_v46, %v10425_v35  ;;  %v6447_v45 = vmax.f32 %v6415_v3, 0.0 }
 0x39b   :  { %v6450_v17 = vmax.f32 %v6418_v16, 0.0 }
 0x39c   :  { %v6448_v20 = vmax.f32 %v6416_v7, 0.0  ;;  %v8008_v62 = vpop.f32.mrb[0].mxu1 }
 0x39d   :  { %v6476_v28 = vpack.c.bf16 %v6450_v17, %v6449_v39  ;;  %v8086_v25 = vadd.f32 %v8008_v62, %v10364_v26  ;;  %v6289_v55 = vpop.f32.mrb[1].mxu1 }
 0x39e   :  { %v6475_v22 = vpack.c.bf16 %v6448_v20, %v6447_v45  ;;  %v8087_v5 = vadd.f32 %v6289_v55, %v10366_v21  ;;  %v8009_v13 = vpop.f32.mrb[2].mxu1 }
 0x39f   :  { %v6421_v27 = vadd.f32 %v8086_v25, %v10425_v35  ;;  %v8088_v4 = vadd.f32 %v8009_v13, %v10368_v31  ;;  %v6292_v19 = vpop.f32.mrb[3].mxu1 }
 0x3a0   :  { %v6419_v53 = vadd.f32 %v8087_v5, %v10425_v35  ;;  %v8089_v24 = vadd.f32 %v6292_v19, %v10370_v61  ;;  %8042 = vmatprep.mubr.msk.bf16.mxu0 %vm1802_vm10, %v6475_v22 }
 0x3a1   :  { %v6422_v43 = vadd.f32 %v8088_v4, %v10425_v35  ;;  %8043 = vmatmul.mubr.msk.bf16.gmra.mrb[72].mxu0 %vm1802_vm10, %v6476_v28  ;;  %v6453_v41 = vmax.f32 %v6421_v27, 0.0 }
 0x3a2   :  { %v6420_v26 = vadd.f32 %v8089_v24, %v10425_v35  ;;  %v6451_v32 = vmax.f32 %v6419_v53, 0.0 }
 0x3a3   :  { %v6454_v21 = vmax.f32 %v6422_v43, 0.0 }
 0x3a4   :  { %v6452_v54 = vmax.f32 %v6420_v26, 0.0  ;;  %v8012_v44 = vpop.f32.mrb[4].mxu1 }
 0x3a5   :  { %v6478_v14 = vpack.c.bf16 %v6454_v21, %v6453_v41  ;;  %v8090_v31 = vadd.f32 %v8012_v44, %v10380_v34  ;;  %v6305_v52 = vpop.f32.mrb[5].mxu1 }
 0x3a6   :  { %v6477_v47 = vpack.c.bf16 %v6452_v54, %v6451_v32  ;;  %v8091_v61 = vadd.f32 %v6305_v52, %v10382_v8  ;;  %v8013_v42 = vpop.f32.mrb[6].mxu1 }
 0x3a7   :  { %v6425_v1 = vadd.f32 %v8090_v31, %v10425_v35  ;;  %v8092_v59 = vadd.f32 %v8013_v42, %v10384_v40  ;;  %v6308_v60 = vpop.f32.mrb[7].mxu1 }
 0x3a8   :  { %v6423_v9 = vadd.f32 %v8091_v61, %v10425_v35  ;;  %v8093_v6 = vadd.f32 %v6308_v60, %v10386_v0  ;;  %8046 = vmatprep.mubr.msk.bf16.mxu0 %vm1802_vm10, %v6477_v47 }
 0x3a9   :  { %v6426_v37 = vadd.f32 %v8092_v59, %v10425_v35  ;;  %8047 = vmatmul.mubr.msk.bf16.gmra.mrb[76].mxu0 %vm1802_vm10, %v6478_v14  ;;  %v6457_v36 = vmax.f32 %v6425_v1, 0.0 }
 0x3aa   :  { %v6424_v34 = vadd.f32 %v8093_v6, %v10425_v35  ;;  %v6455_v2 = vmax.f32 %v6423_v9, 0.0 }
 0x3ab   :  { %v6458_v8 = vmax.f32 %v6426_v37, 0.0 }
 0x3ac   :  { %v6456_v58 = vmax.f32 %v6424_v34, 0.0  ;;  %v8016_v57 = vpop.f32.mrb[8].mxu1 }
 0x3ad   :  { %v6480_v29 = vpack.c.bf16 %v6458_v8, %v6457_v36  ;;  %v8094_v40 = vadd.f32 %v8016_v57, %v10392_v18  ;;  %v6321_v50 = vpop.f32.mrb[9].mxu1  ;;  %v6735_v8 = vld [vmem:[%s10640_s0] sm:$0xff]  ;;  %v6738_v57 = vld [vmem:[%s10640_s0 + $0x18] sm:$0xff] }
 0x3ae   :  { %v6479_v12 = vpack.c.bf16 %v6456_v58, %v6455_v2  ;;  %v8095_v0 = vadd.f32 %v6321_v50, %v10394_v48  ;;  %v8017_v33 = vpop.f32.mrb[10].mxu1 }
 0x3af   :  { %v6429_v3 = vadd.f32 %v8094_v40, %v10425_v35  ;;  %v8096_v46 = vadd.f32 %v8017_v33, %v10396_v56  ;;  %v6324_v16 = vpop.f32.mrb[11].mxu1 }
 0x3b0   :  { %v6427_v7 = vadd.f32 %v8095_v0, %v10425_v35  ;;  %v8097_v39 = vadd.f32 %v6324_v16, %v10398_v49  ;;  %8050 = vmatprep.mubr.msk.bf16.mxu0 %vm1802_vm10, %v6479_v12  ;;  %v6736_v12 = vld [vmem:[%s10640_s0 + $0x8] sm:$0xff] }
 0x3b1   :  { %v6430_v17 = vadd.f32 %v8096_v46, %v10425_v35  ;;  %8051 = vmatmul.mubr.msk.bf16.gmra.mrb[80].mxu0 %vm1802_vm10, %v6480_v29  ;;  %v6461_v45 = vmax.f32 %v6429_v3, 0.0 }
 0x3b2   :  { %v6428_v18 = vadd.f32 %v8097_v39, %v10425_v35  ;;  %v6459_v20 = vmax.f32 %v6427_v7, 0.0 }
 0x3b3   :  { %v6462_v48 = vmax.f32 %v6430_v17, 0.0 }
 0x3b4   :  { %v6460_v62 = vmax.f32 %v6428_v18, 0.0  ;;  %v8020_v28 = vpop.f32.mrb[12].mxu1 }
 0x3b5   :  { %v6482_v25 = vpack.c.bf16 %v6462_v48, %v6461_v45  ;;  %v8098_v56 = vadd.f32 %v8020_v28, %v10400_v30  ;;  %v6337_v55 = vpop.f32.mrb[13].mxu1  ;;  %v6741_v45 = vld [vmem:[%s10640_s0 + $0x30] sm:$0xff] }
 0x3b6   :  { %v6481_v22 = vpack.c.bf16 %v6460_v62, %v6459_v20  ;;  %v8099_v49 = vadd.f32 %v6337_v55, %v10402_v10  ;;  %v8021_v5 = vpop.f32.mrb[14].mxu1  ;;  %v6739_v62 = vld [vmem:[%s10640_s0 + $0x20] sm:$0xff] }
 0x3b7   :  { %v6433_v13 = vadd.f32 %v8098_v56, %v10425_v35  ;;  %v8100_v27 = vadd.f32 %v8021_v5, %v10404_v23  ;;  %v6340_v4 = vpop.f32.mrb[15].mxu1  ;;  %v6742_v56 = vld [vmem:[%s10640_s0 + $0x38] sm:$0xff]  ;;  %v6740_v5 = vld [vmem:[%s10640_s0 + $0x28] sm:$0xff] }
 0x3b8   :  { %v6431_v19 = vadd.f32 %v8099_v49, %v10425_v35  ;;  %v8101_v53 = vadd.f32 %v6340_v4, %v10406_v15  ;;  %8054 = vmatprep.mubr.msk.bf16.mxu0 %vm1802_vm10, %v6481_v22 }
 0x3b9   :  { %v6434_v24 = vadd.f32 %v8100_v27, %v10425_v35  ;;  %8055 = vmatmul.mubr.msk.bf16.gmra.mrb[84].mxu0 %vm1802_vm10, %v6482_v25  ;;  %v6465_v43 = vmax.f32 %v6433_v13, 0.0 }
 0x3ba   :  { %v6432_v30 = vadd.f32 %v8101_v53, %v10425_v35  ;;  %v6463_v26 = vmax.f32 %v6431_v19, 0.0 }
 0x3bb   :  { %v6466_v10 = vmax.f32 %v6434_v24, 0.0 }
 0x3bc   :  { %v6464_v41 = vmax.f32 %v6432_v30, 0.0  ;;  %v8024_v21 = vpop.f32.mrb[16].mxu1 }
 0x3bd   :  { %v6484_v32 = vpack.c.bf16 %v6466_v10, %v6465_v43  ;;  %v8102_v23 = vadd.f32 %v8024_v21, %v10408_v11  ;;  %v6353_v54 = vpop.f32.mrb[17].mxu1 }
 0x3be   :  { %v6483_v44 = vpack.c.bf16 %v6464_v41, %v6463_v26  ;;  %v8103_v15 = vadd.f32 %v6353_v54, %v10410_v38  ;;  %v8025_v14 = vpop.f32.mrb[18].mxu1  ;;  %v6745_v26 = vld [vmem:[%s10640_s0 + $0x50] sm:$0xff] }
 0x3bf   :  { %v6437_v31 = vadd.f32 %v8102_v23, %v10425_v35  ;;  %v8104_v52 = vadd.f32 %v8025_v14, %v10412_v51  ;;  %v6356_v47 = vpop.f32.mrb[19].mxu1  ;;  %v10498_v51 = vld [vmem:[%s10646_s6] ss:$0 sm:$0xff]  ;;  %s8516_s6 = smov [#allocation3]  }
 0x3c0   :  { %v6435_v61 = vadd.f32 %v8103_v15, %v10425_v35  ;;  %v8105_v42 = vadd.f32 %v6356_v47, %v10414_v63  ;;  %8058 = vmatprep.mubr.msk.bf16.mxu0 %vm1802_vm10, %v6483_v44  ;;  %v6746_v44 = vld [vmem:[%s10640_s0 + $0x58] sm:$0xff]  ;;  %s6868_s11 = sshll.u32 %s8516_s6, 4  ;;  %s6869_s11 = int_to_ptr.vmem [resolvable:$true] %s6868_s11 }
 0x3c1   :  { %v6438_v1 = vadd.f32 %v8104_v52, %v10425_v35  ;;  %8059 = vmatmul.mubr.msk.bf16.gmra.mrb[88].mxu0 %vm1802_vm10, %v6484_v32  ;;  %v6469_v59 = vmax.f32 %v6437_v31, 0.0  ;;  %v6743_v32 = vld [vmem:[%s10640_s0 + $0x40] sm:$0xff]  ;;  %v6744_v52 = vld [vmem:[%s10640_s0 + $0x48] sm:$0xff]  ;;  %s8491_s12 = scalar_lea.vmem %s6869_s11, 4096  ;;  %p8496_p1 = scmp.lt.s32.totalorder %s6869_s11, %s6869_s11 }
 0x3c2   :  { %v6436_v11 = vadd.f32 %v8105_v42, %v10425_v35  ;;  %v6467_v60 = vmax.f32 %v6435_v61, 0.0  ;;  %v6737_v35 = vld [vmem:[%s10640_s0 + $0x10] sm:$0xff]  ;;  %p8492_p0 = scmp.ne.s32.totalorder %s6869_s11, %s8491_s12  ;;  %p8497_p2 = scmp.lt.s32.totalorder %s8491_s12, %s8491_s12 }
 0x3c3   :  { %v6470_v38 = vmax.f32 %v6438_v1, 0.0 }
 0x3c4   :  { %v6468_v9 = vmax.f32 %v6436_v11, 0.0  ;;  %p8498_p3 = por %p8497_p2, %p8496_p1 }
 0x3c5   :  { %v6486_v6 = vpack.c.bf16 %v6470_v38, %v6469_v59 }
 0x3c6   :  { %v6485_v37 = vpack.c.bf16 %v6468_v9, %v6467_v60  ;;  %p8499_p4 = pnand %p8498_p3, %p8492_p0 }
 0x3c8   :  { %8062 = vmatprep.mubr.msk.bf16.mxu0 %vm1802_vm10, %v6485_v37 }
 0x3c9   :  { %8063 = vmatmul.mubr.msk.bf16.gmra.mrb[92].mxu0 %vm1802_vm10, %v6486_v6  ;;  %v6749_v6 = vld [vmem:[%s10640_s0 + $0x70] sm:$0xff] }
 0x464   :  { %v8036_v63 = vpop.f32.mrb[64].mxu0 }
 0x465   :  { %v6617_v34 = vadd.f32 %v8036_v63, %v10498_v51  ;;  %v6608_v36 = vpop.f32.mrb[65].mxu0 }
 0x466   :  { %v6609_v2 = vadd.f32 %v10498_v51, %v6608_v36  ;;  %v8037_v58 = vpop.f32.mrb[66].mxu0 }
 0x467   :  { %v6769_v29 = vadd.f32 %v6737_v35, %v6617_v34  ;;  %v6620_v40 = vadd.f32 %v8037_v58, %v10498_v51  ;;  %v6611_v50 = vpop.f32.mrb[67].mxu0  ;;  %v6747_v35 = vld [vmem:[%s10640_s0 + $0x60] sm:$0xff] }
 0x468   :  { %v6767_v0 = vadd.f32 %v6735_v8, %v6609_v2  ;;  %v6612_v33 = vadd.f32 %v10498_v51, %v6611_v50  ;;  %v6750_v8 = vld [vmem:[%s10640_s0 + $0x78] sm:$0xff] }
 0x469   :  { %v6801_v3 = vmax.f32 %v6769_v29, 0.0  ;;  %v6770_v46 = vadd.f32 %v6738_v57, %v6620_v40  ;;  %v6748_v29 = vld [vmem:[%s10640_s0 + $0x68] sm:$0xff] }
 0x46a   :  { %v6799_v16 = vmax.f32 %v6767_v0, 0.0  ;;  %v6768_v7 = vadd.f32 %v6736_v12, %v6612_v33 }
 0x46b   :  { %6833 = vst [vmem:[#allocation3 + $0x10] sm:$0xff] %v6801_v3  ;;  %v6802_v39 = vmax.f32 %v6770_v46, 0.0 }
 0x46c   :  { %6831 = vst [vmem:[#allocation3] sm:$0xff] %v6799_v16  ;;  %v6800_v17 = vmax.f32 %v6768_v7, 0.0  ;;  %v8040_v18 = vpop.f32.mrb[68].mxu0 }
 0x46d   :  { %6834 = vst [vmem:[#allocation3 + $0x18] sm:$0xff] %v6802_v39  ;;  %v6633_v48 = vadd.f32 %v8040_v18, %v10498_v51  ;;  %v6624_v20 = vpop.f32.mrb[69].mxu0  ;;  %v6753_v39 = vld [vmem:[%s10640_s0 + $0x90] sm:$0xff] }
 0x46e   :  { %6832 = vst [vmem:[#allocation3 + $0x8] sm:$0xff] %v6800_v17  ;;  %v6625_v28 = vadd.f32 %v10498_v51, %v6624_v20  ;;  %v8041_v25 = vpop.f32.mrb[70].mxu0 }
 0x46f   :  { %v6773_v55 = vadd.f32 %v6741_v45, %v6633_v48  ;;  %v6636_v22 = vadd.f32 %v8041_v25, %v10498_v51  ;;  %v6627_v49 = vpop.f32.mrb[71].mxu0  ;;  %v6751_v45 = vld [vmem:[%s10640_s0 + $0x80] sm:$0xff] }
 0x470   :  { %v6771_v13 = vadd.f32 %v6739_v62, %v6625_v28  ;;  %v6628_v27 = vadd.f32 %v10498_v51, %v6627_v49  ;;  %v6754_v62 = vld [vmem:[%s10640_s0 + $0x98] sm:$0xff] }
 0x471   :  { %v6805_v4 = vmax.f32 %v6773_v55, 0.0  ;;  %v6774_v19 = vadd.f32 %v6742_v56, %v6636_v22  ;;  %v6752_v55 = vld [vmem:[%s10640_s0 + $0x88] sm:$0xff] }
 0x472   :  { %v6803_v53 = vmax.f32 %v6771_v13, 0.0  ;;  %v6772_v24 = vadd.f32 %v6740_v5, %v6628_v27 }
 0x473   :  { %6837 = vst [vmem:[#allocation3 + $0x30] sm:$0xff] %v6805_v4  ;;  %v6806_v30 = vmax.f32 %v6774_v19, 0.0 }
 0x474   :  { %6835 = vst [vmem:[#allocation3 + $0x20] sm:$0xff] %v6803_v53  ;;  %v6804_v43 = vmax.f32 %v6772_v24, 0.0  ;;  %v8044_v10 = vpop.f32.mrb[72].mxu0 }
 0x475   :  { %6838 = vst [vmem:[#allocation3 + $0x38] sm:$0xff] %v6806_v30  ;;  %v6649_v41 = vadd.f32 %v8044_v10, %v10498_v51  ;;  %v6640_v21 = vpop.f32.mrb[73].mxu0  ;;  %v6757_v30 = vld [vmem:[%s10640_s0 + $0xb0] sm:$0xff] }
 0x476   :  { %6836 = vst [vmem:[#allocation3 + $0x28] sm:$0xff] %v6804_v43  ;;  %v6641_v23 = vadd.f32 %v10498_v51, %v6640_v21  ;;  %v8045_v54 = vpop.f32.mrb[74].mxu0 }
 0x477   :  { %v6777_v15 = vadd.f32 %v6745_v26, %v6649_v41  ;;  %v6652_v14 = vadd.f32 %v8045_v54, %v10498_v51  ;;  %v6643_v31 = vpop.f32.mrb[75].mxu0  ;;  %v6755_v26 = vld [vmem:[%s10640_s0 + $0xa0] sm:$0xff] }
 0x478   :  { %v6775_v47 = vadd.f32 %v6743_v32, %v6641_v23  ;;  %v6644_v61 = vadd.f32 %v10498_v51, %v6643_v31  ;;  %v6758_v32 = vld [vmem:[%s10640_s0 + $0xb8] sm:$0xff] }
 0x479   :  { %v6809_v42 = vmax.f32 %v6777_v15, 0.0  ;;  %v6778_v1 = vadd.f32 %v6746_v44, %v6652_v14  ;;  %v6756_v15 = vld [vmem:[%s10640_s0 + $0xa8] sm:$0xff] }
 0x47a   :  { %v6807_v11 = vmax.f32 %v6775_v47, 0.0  ;;  %v6776_v59 = vadd.f32 %v6744_v52, %v6644_v61 }
 0x47b   :  { %6841 = vst [vmem:[#allocation3 + $0x50] sm:$0xff] %v6809_v42  ;;  %v6810_v38 = vmax.f32 %v6778_v1, 0.0 }
 0x47c   :  { %6839 = vst [vmem:[#allocation3 + $0x40] sm:$0xff] %v6807_v11  ;;  %v6808_v60 = vmax.f32 %v6776_v59, 0.0  ;;  %v8048_v9 = vpop.f32.mrb[76].mxu0 }
 0x47d   :  { %6842 = vst [vmem:[#allocation3 + $0x58] sm:$0xff] %v6810_v38  ;;  %v6665_v37 = vadd.f32 %v8048_v9, %v10498_v51  ;;  %v6656_v63 = vpop.f32.mrb[77].mxu0  ;;  %v6761_v38 = vld [vmem:[%s10640_s0 + $0xd0] sm:$0xff] }
 0x47e   :  { %6840 = vst [vmem:[#allocation3 + $0x48] sm:$0xff] %v6808_v60  ;;  %v6657_v34 = vadd.f32 %v10498_v51, %v6656_v63  ;;  %v8049_v36 = vpop.f32.mrb[78].mxu0 }
 0x47f   :  { %v6781_v2 = vadd.f32 %v6749_v6, %v6665_v37  ;;  %v6668_v58 = vadd.f32 %v8049_v36, %v10498_v51  ;;  %v6659_v57 = vpop.f32.mrb[79].mxu0  ;;  %v6759_v6 = vld [vmem:[%s10640_s0 + $0xc0] sm:$0xff] }
 0x480   :  { %v6779_v40 = vadd.f32 %v6747_v35, %v6657_v34  ;;  %v6660_v50 = vadd.f32 %v10498_v51, %v6659_v57  ;;  %v6762_v35 = vld [vmem:[%s10640_s0 + $0xd8] sm:$0xff] }
 0x481   :  { %v6813_v12 = vmax.f32 %v6781_v2, 0.0  ;;  %v6782_v0 = vadd.f32 %v6750_v8, %v6668_v58  ;;  %v6760_v2 = vld [vmem:[%s10640_s0 + $0xc8] sm:$0xff] }
 0x482   :  { %v6811_v33 = vmax.f32 %v6779_v40, 0.0  ;;  %v6780_v3 = vadd.f32 %v6748_v29, %v6660_v50 }
 0x483   :  { %6845 = vst [vmem:[#allocation3 + $0x70] sm:$0xff] %v6813_v12  ;;  %v6814_v46 = vmax.f32 %v6782_v0, 0.0 }
 0x484   :  { %6843 = vst [vmem:[#allocation3 + $0x60] sm:$0xff] %v6811_v33  ;;  %v6812_v16 = vmax.f32 %v6780_v3, 0.0  ;;  %v8052_v7 = vpop.f32.mrb[80].mxu0 }
 0x485   :  { %6846 = vst [vmem:[#allocation3 + $0x78] sm:$0xff] %v6814_v46  ;;  %v6681_v17 = vadd.f32 %v8052_v7, %v10498_v51  ;;  %v6672_v18 = vpop.f32.mrb[81].mxu0  ;;  %v6765_v46 = vld [vmem:[%s10640_s0 + $0xf0] sm:$0xff] }
 0x486   :  { %6844 = vst [vmem:[#allocation3 + $0x68] sm:$0xff] %v6812_v16  ;;  %v6673_v48 = vadd.f32 %v10498_v51, %v6672_v18  ;;  %v8053_v20 = vpop.f32.mrb[82].mxu0 }
 0x487   :  { %v6785_v28 = vadd.f32 %v6753_v39, %v6681_v17  ;;  %v6684_v25 = vadd.f32 %v8053_v20, %v10498_v51  ;;  %v6675_v56 = vpop.f32.mrb[83].mxu0  ;;  %v6763_v39 = vld [vmem:[%s10640_s0 + $0xe0] sm:$0xff] }
 0x488   :  { %v6783_v22 = vadd.f32 %v6751_v45, %v6673_v48  ;;  %v6676_v49 = vadd.f32 %v10498_v51, %v6675_v56  ;;  %v6766_v45 = vld [vmem:[%s10640_s0 + $0xf8] sm:$0xff] }
 0x489   :  { %v6817_v5 = vmax.f32 %v6785_v28, 0.0  ;;  %v6786_v13 = vadd.f32 %v6754_v62, %v6684_v25  ;;  %v6764_v28 = vld [vmem:[%s10640_s0 + $0xe8] sm:$0xff] }
 0x48a   :  { %v6815_v27 = vmax.f32 %v6783_v22, 0.0  ;;  %v6784_v4 = vadd.f32 %v6752_v55, %v6676_v49 }
 0x48b   :  { %6849 = vst [vmem:[#allocation3 + $0x90] sm:$0xff] %v6817_v5  ;;  %v6818_v19 = vmax.f32 %v6786_v13, 0.0 }
 0x48c   :  { %6847 = vst [vmem:[#allocation3 + $0x80] sm:$0xff] %v6815_v27  ;;  %v6816_v53 = vmax.f32 %v6784_v4, 0.0  ;;  %v8056_v24 = vpop.f32.mrb[84].mxu0 }
 0x48d   :  { %6850 = vst [vmem:[#allocation3 + $0x98] sm:$0xff] %v6818_v19  ;;  %v6697_v43 = vadd.f32 %v8056_v24, %v10498_v51  ;;  %v6688_v10 = vpop.f32.mrb[85].mxu0 }
 0x48e   :  { %6848 = vst [vmem:[#allocation3 + $0x88] sm:$0xff] %v6816_v53  ;;  %v6689_v41 = vadd.f32 %v10498_v51, %v6688_v10  ;;  %v8057_v21 = vpop.f32.mrb[86].mxu0 }
 0x48f   :  { %v6789_v23 = vadd.f32 %v6757_v30, %v6697_v43  ;;  %v6700_v54 = vadd.f32 %v8057_v21, %v10498_v51  ;;  %v6691_v44 = vpop.f32.mrb[87].mxu0 }
 0x490   :  { %v6787_v14 = vadd.f32 %v6755_v26, %v6689_v41  ;;  %v6692_v31 = vadd.f32 %v10498_v51, %v6691_v44 }
 0x491   :  { %v6821_v52 = vmax.f32 %v6789_v23, 0.0  ;;  %v6790_v47 = vadd.f32 %v6758_v32, %v6700_v54 }
 0x492   :  { %v6819_v61 = vmax.f32 %v6787_v14, 0.0  ;;  %v6788_v42 = vadd.f32 %v6756_v15, %v6692_v31 }
 0x493   :  { %6853 = vst [vmem:[#allocation3 + $0xb0] sm:$0xff] %v6821_v52  ;;  %v6822_v1 = vmax.f32 %v6790_v47, 0.0 }
 0x494   :  { %6851 = vst [vmem:[#allocation3 + $0xa0] sm:$0xff] %v6819_v61  ;;  %v6820_v11 = vmax.f32 %v6788_v42, 0.0  ;;  %v8060_v59 = vpop.f32.mrb[88].mxu0 }
 0x495   :  { %6854 = vst [vmem:[#allocation3 + $0xb8] sm:$0xff] %v6822_v1  ;;  %v6713_v60 = vadd.f32 %v8060_v59, %v10498_v51  ;;  %v6704_v9 = vpop.f32.mrb[89].mxu0 }
 0x496   :  { %6852 = vst [vmem:[#allocation3 + $0xa8] sm:$0xff] %v6820_v11  ;;  %v6705_v37 = vadd.f32 %v10498_v51, %v6704_v9  ;;  %v8061_v63 = vpop.f32.mrb[90].mxu0 }
 0x497   :  { %v6793_v34 = vadd.f32 %v6761_v38, %v6713_v60  ;;  %v6716_v36 = vadd.f32 %v8061_v63, %v10498_v51  ;;  %v6707_v8 = vpop.f32.mrb[91].mxu0 }
 0x498   :  { %v6791_v58 = vadd.f32 %v6759_v6, %v6705_v37  ;;  %v6708_v57 = vadd.f32 %v10498_v51, %v6707_v8 }
 0x499   :  { %v6825_v29 = vmax.f32 %v6793_v34, 0.0  ;;  %v6794_v40 = vadd.f32 %v6762_v35, %v6716_v36 }
 0x49a   :  { %v6823_v50 = vmax.f32 %v6791_v58, 0.0  ;;  %v6792_v12 = vadd.f32 %v6760_v2, %v6708_v57 }
 0x49b   :  { %6857 = vst [vmem:[#allocation3 + $0xd0] sm:$0xff] %v6825_v29  ;;  %v6826_v0 = vmax.f32 %v6794_v40, 0.0 }
 0x49c   :  { %6855 = vst [vmem:[#allocation3 + $0xc0] sm:$0xff] %v6823_v50  ;;  %v6824_v33 = vmax.f32 %v6792_v12, 0.0  ;;  %v8064_v3 = vpop.f32.mrb[92].mxu0 }
 0x49d   :  { %6858 = vst [vmem:[#allocation3 + $0xd8] sm:$0xff] %v6826_v0  ;;  %v6729_v16 = vadd.f32 %v8064_v3, %v10498_v51  ;;  %v6720_v7 = vpop.f32.mrb[93].mxu0 }
 0x49e   :  { %6856 = vst [vmem:[#allocation3 + $0xc8] sm:$0xff] %v6824_v33  ;;  %v6721_v17 = vadd.f32 %v10498_v51, %v6720_v7  ;;  %v8065_v18 = vpop.f32.mrb[94].mxu0 }
 0x49f   :  { %v6797_v48 = vadd.f32 %v6765_v46, %v6729_v16  ;;  %v6732_v20 = vadd.f32 %v8065_v18, %v10498_v51  ;;  %v6723_v62 = vpop.f32.mrb[95].mxu0 }
 0x4a0   :  { %v6795_v25 = vadd.f32 %v6763_v39, %v6721_v17  ;;  %v6724_v56 = vadd.f32 %v10498_v51, %v6723_v62 }
 0x4a1   :  { %v6829_v55 = vmax.f32 %v6797_v48, 0.0  ;;  %v6798_v22 = vadd.f32 %v6766_v45, %v6732_v20 }
 0x4a2   :  { %v6827_v49 = vmax.f32 %v6795_v25, 0.0  ;;  %v6796_v5 = vadd.f32 %v6764_v28, %v6724_v56 }
 0x4a3   :  { %6861 = vst [vmem:[#allocation3 + $0xf0] sm:$0xff] %v6829_v55  ;;  %v6830_v13 = vmax.f32 %v6798_v22, 0.0 }
 0x4a4   :  { %6859 = vst [vmem:[#allocation3 + $0xe0] sm:$0xff] %v6827_v49  ;;  %v6828_v27 = vmax.f32 %v6796_v5, 0.0 }
 0x4a5   :  { %6862 = vst [vmem:[#allocation3 + $0xf8] sm:$0xff] %v6830_v13 }
 0x4a6   :  { %6860 = vst [vmem:[#allocation3 + $0xe8] sm:$0xff] %v6828_v27 }
 0x4a7   :  { %8502 = shalt.err (!%p8499_p4)
}
 0x4a8   :  { %s8503_s14 = scalar_lea.hbm %s10647_s7, 4096 }
 0x4a9   :  { %p8504_p5 = scmp.ne.s32.totalorder %s10647_s7, %s8503_s14  ;;  %p8507_p6 = scmp.lt.u32.totalorder %s8503_s14, %s10647_s7 }
 0x4ab   :  { %p8509_p7 = pnand %p8507_p6, %p8504_p5 }
 0x4ad   :  { %8512 = shalt.err (!%p8509_p7)
}
 0x4ae   :  { %s8517_s19 = smov 128   ;;  %s8518_s20 = smov 8  }
 0x4af   :  { %6874 = dma.vmem_to_hbm [thread:$0]  %s6869_s11, 4096, %s10647_s7, [#allocation4], %s8517_s19, %s8517_s19, %s8518_s20  }
 0x4b0   :  { %8513 = dma.done.wait [#allocation4], 4096  }
 0x4b1   :  { %8514 = vsyncadd [#allocation4], 4294963200 }
 0x4b2   :  { %6878 = vsyncpa [#allocation4], 1 }

</bundles_post_ra>
